<compile_context>
chip_gen: v7x
topology: tpu7x:2x2x1
jax: 0.10.0
libtpu: 0.0.40
codegen_flags: <defaults>
</compile_context>

<pallas_src>
import functools
import math

import jax
import jax.numpy as jnp
from jax.experimental import pallas as pl
from jax.experimental.pallas import tpu as pltpu


# ----------------------------- config (small) -------------------------------
HIDDEN = 256
NUM_HEADS = 2
NUM_KV_HEADS = 1
HEAD_DIM = HIDDEN // NUM_HEADS            # 128
N_REP = NUM_HEADS // NUM_KV_HEADS         # 2
INTERMEDIATE = 512
BATCH = 2
SEQ = 128
RMS_EPS = 1e-6
ROPE_BASE = 10000.0
DTYPE = jnp.float32


# --------------------------- fused decoder-layer kernel ----------------------
def _decoder_layer_kernel(x_ref, cos_ref, sin_ref, ln1_ref, ln2_ref,
                          wq_ref, wk_ref, wv_ref, wo_ref,
                          wg_ref, wu_ref, wd_ref, o_ref,
                          *, eps, scale, num_heads, n_rep, head_dim):
    x = x_ref[0].astype(jnp.float32)                      # (S, H)
    S = x.shape[0]
    D = head_dim

    # ---------------- input RMSNorm ----------------
    var = jnp.mean(x * x, axis=-1, keepdims=True)
    hn = (x * jax.lax.rsqrt(var + eps)) * ln1_ref[...].astype(jnp.float32)

    # ---------------- QKV projections (full-K single dots) ----------------
    q = jnp.dot(hn, wq_ref[...], preferred_element_type=jnp.float32)  # (S, NH*D)
    k = jnp.dot(hn, wk_ref[...], preferred_element_type=jnp.float32)  # (S, KVH*D)
    v = jnp.dot(hn, wv_ref[...], preferred_element_type=jnp.float32)  # (S, KVH*D)

    # ---------------- RoPE (GPT-NeoX, non-interleaved) ----------------
    cos = cos_ref[...].astype(jnp.float32)                # (S, D)
    sin = sin_ref[...].astype(jnp.float32)

    def rope(t):                                          # t: (S, D)
        t1 = t[:, : D // 2]
        t2 = t[:, D // 2:]
        rot = jnp.concatenate([-t2, t1], axis=-1)
        return t * cos + rot * sin

    # ---------------- causal GQA attention ----------------
    row = jax.lax.broadcasted_iota(jnp.int32, (S, S), 0)
    col = jax.lax.broadcasted_iota(jnp.int32, (S, S), 1)
    causal = col <= row

    num_kv_heads = num_heads // n_rep
    k_heads = [rope(k[:, kvh * D:(kvh + 1) * D]) for kvh in range(num_kv_heads)]
    v_heads = [v[:, kvh * D:(kvh + 1) * D] for kvh in range(num_kv_heads)]

    head_outs = []
    for h in range(num_heads):                            # static unroll (NH=2)
        qh = rope(q[:, h * D:(h + 1) * D])
        kh = k_heads[h // n_rep]                          # GQA: no repeat, just share
        vh = v_heads[h // n_rep]
        s = jax.lax.dot_general(qh, kh, (((1,), (1,)), ((), ())),
                                preferred_element_type=jnp.float32) * scale
        s = jnp.where(causal, s, -jnp.inf)
        s = s - jnp.max(s, axis=-1, keepdims=True)
        p = jnp.exp(s)
        p = p / jnp.sum(p, axis=-1, keepdims=True)
        head_outs.append(jnp.dot(p, vh, preferred_element_type=jnp.float32))
    attn = jnp.concatenate(head_outs, axis=-1)            # (S, NH*D)

    # ---------------- o_proj + residual ----------------
    h1 = x + jnp.dot(attn, wo_ref[...], preferred_element_type=jnp.float32)

    # ---------------- post-attention RMSNorm ----------------
    var2 = jnp.mean(h1 * h1, axis=-1, keepdims=True)
    hn2 = (h1 * jax.lax.rsqrt(var2 + eps)) * ln2_ref[...].astype(jnp.float32)

    # ---------------- SwiGLU MLP + residual ----------------
    g = jnp.dot(hn2, wg_ref[...], preferred_element_type=jnp.float32)
    u = jnp.dot(hn2, wu_ref[...], preferred_element_type=jnp.float32)
    act = (g * jax.nn.sigmoid(g)) * u                     # SiLU(gate) * up
    mlp = jnp.dot(act, wd_ref[...], preferred_element_type=jnp.float32)

    o_ref[0] = (h1 + mlp).astype(o_ref.dtype)


def _llama_decoder_layer(hidden_states, params, cos_full, sin_full):
    B, S, H = hidden_states.shape
    assert H == HIDDEN and S % 128 == 0, "this kernel assumes S multiple of 128"

    kernel = functools.partial(
        _decoder_layer_kernel,
        eps=RMS_EPS,
        scale=1.0 / math.sqrt(HEAD_DIM),      # python float: no tracer -> float()
        num_heads=NUM_HEADS,
        n_rep=N_REP,
        head_dim=HEAD_DIM,
    )

    q_dim = NUM_HEADS * HEAD_DIM
    kv_dim = NUM_KV_HEADS * HEAD_DIM

    return pl.pallas_call(
        kernel,
        out_shape=jax.ShapeDtypeStruct((B, S, H), hidden_states.dtype),
        grid_spec=pltpu.PrefetchScalarGridSpec(
            num_scalar_prefetch=0,
            grid=(B,),
            in_specs=[
                pl.BlockSpec((1, S, H), lambda b: (b, 0, 0)),          # x
                pl.BlockSpec((S, HEAD_DIM), lambda b: (0, 0)),          # cos
                pl.BlockSpec((S, HEAD_DIM), lambda b: (0, 0)),          # sin
                pl.BlockSpec((1, H), lambda b: (0, 0)),                 # ln1 w
                pl.BlockSpec((1, H), lambda b: (0, 0)),                 # ln2 w
                pl.BlockSpec((H, q_dim), lambda b: (0, 0)),             # w_q
                pl.BlockSpec((H, kv_dim), lambda b: (0, 0)),            # w_k
                pl.BlockSpec((H, kv_dim), lambda b: (0, 0)),            # w_v
                pl.BlockSpec((q_dim, H), lambda b: (0, 0)),             # w_o
                pl.BlockSpec((H, INTERMEDIATE), lambda b: (0, 0)),      # w_gate
                pl.BlockSpec((H, INTERMEDIATE), lambda b: (0, 0)),      # w_up
                pl.BlockSpec((INTERMEDIATE, H), lambda b: (0, 0)),      # w_down
            ],
            out_specs=pl.BlockSpec((1, S, H), lambda b: (b, 0, 0)),
        ),
        compiler_params=pltpu.CompilerParams(
            dimension_semantics=("parallel",),       # B axis -> both TCs on v7x
            vmem_limit_bytes=32 * 1024 * 1024,
        ),
    )(hidden_states, cos_full, sin_full,
      params["ln1_w"].reshape(1, H), params["ln2_w"].reshape(1, H),
      params["w_q"], params["w_k"], params["w_v"], params["w_o"],
      params["w_gate"], params["w_up"], params["w_down"])


llama_decoder_layer = jax.jit(_llama_decoder_layer)


# ------------------------------ parameter init -------------------------------
def init_params(key):
    ks = jax.random.split(key, 6)
    s = 0.02
    # Weights stored as (in, out); equivalent to torch Linear weight.T
    return {
        "ln1_w": jnp.ones((HIDDEN,), DTYPE),
        "ln2_w": jnp.ones((HIDDEN,), DTYPE),
        "w_q": (s * jax.random.normal(ks[0], (HIDDEN, NUM_HEADS * HEAD_DIM))).astype(DTYPE),
        "w_k": (s * jax.random.normal(ks[1], (HIDDEN, NUM_KV_HEADS * HEAD_DIM))).astype(DTYPE),
        "w_v": (s * jax.random.normal(ks[2], (HIDDEN, NUM_KV_HEADS * HEAD_DIM))).astype(DTYPE),
        "w_o": (s * jax.random.normal(ks[3], (NUM_HEADS * HEAD_DIM, HIDDEN))).astype(DTYPE),
        "w_gate": (s * jax.random.normal(ks[4], (HIDDEN, INTERMEDIATE))).astype(DTYPE),
        "w_up": (s * jax.random.normal(ks[5], (HIDDEN, INTERMEDIATE))).astype(DTYPE),
        "w_down": (s * jax.random.normal(jax.random.fold_in(key, 99),
                                         (INTERMEDIATE, HIDDEN))).astype(DTYPE),
    }


def rope_tables(seqlen, dim, base=ROPE_BASE, scaling_factor=1.0, dtype=DTYPE):
    # Precomputed ONCE outside the jitted forward (hoisted per perf feedback).
    inv_freq = 1.0 / (base ** (jnp.arange(0, dim, 2, dtype=jnp.float32) / dim))
    t = jnp.arange(seqlen, dtype=jnp.float32) / scaling_factor
    freqs = jnp.outer(t, inv_freq)                        # (S, D/2)
    cos = jnp.cos(freqs)
    sin = jnp.sin(freqs)
    cos_full = jnp.concatenate([cos, cos], axis=-1).astype(dtype)  # (S, D)
    sin_full = jnp.concatenate([sin, sin], axis=-1).astype(dtype)
    return cos_full, sin_full


# TODO(synk): KV-cache (past_key_value), padded/varlen flash path and
# output_attentions are inference/bookkeeping paths not implemented here;
# the core causal-prefill forward matches the reference semantics.

if __name__ == "__main__":
    key = jax.random.PRNGKey(0)
    pkey, xkey = jax.random.split(key)
    params = init_params(pkey)
    cos_full, sin_full = rope_tables(SEQ, HEAD_DIM)
    x = jax.random.normal(xkey, (BATCH, SEQ, HIDDEN), dtype=DTYPE)

    out = llama_decoder_layer(x, params, cos_full, sin_full)
    jax.block_until_ready(out)
    assert out.shape == (BATCH, SEQ, HIDDEN)
    assert bool(jnp.all(jnp.isfinite(out)))
    print("KERNEL_OK")
</pallas_src>

<mosaic_0001>
module attributes {stable_mosaic.version = 11 : i64} {
  func.func @_decoder_layer_kernel(%arg0: i32, %arg1: memref<1x128x256xf32, #tpu.memory_space<vmem>>, %arg2: memref<128x128xf32, #tpu.memory_space<vmem>>, %arg3: memref<128x128xf32, #tpu.memory_space<vmem>>, %arg4: memref<1x256xf32, #tpu.memory_space<vmem>>, %arg5: memref<1x256xf32, #tpu.memory_space<vmem>>, %arg6: memref<256x256xf32, #tpu.memory_space<vmem>>, %arg7: memref<256x128xf32, #tpu.memory_space<vmem>>, %arg8: memref<256x128xf32, #tpu.memory_space<vmem>>, %arg9: memref<256x256xf32, #tpu.memory_space<vmem>>, %arg10: memref<256x512xf32, #tpu.memory_space<vmem>>, %arg11: memref<256x512xf32, #tpu.memory_space<vmem>>, %arg12: memref<512x256xf32, #tpu.memory_space<vmem>>, %arg13: memref<1x128x256xf32, #tpu.memory_space<vmem>>) attributes {dimension_semantics = [#tpu.dimension_semantics<parallel>], iteration_bounds = array<i64: 2>, scalar_prefetch = 0 : i64, scratch_operands = 0 : i64, tpu.core_type = #tpu.core_type<tc>, window_params = [{transform_indices = @transform_0, window_bounds = array<i64: 1, 128, 256>}, {pipeline_mode = #tpu.pipeline_mode<synchronous>, transform_indices = @transform_1, window_bounds = array<i64: 128, 128>}, {pipeline_mode = #tpu.pipeline_mode<synchronous>, transform_indices = @transform_2, window_bounds = array<i64: 128, 128>}, {pipeline_mode = #tpu.pipeline_mode<synchronous>, transform_indices = @transform_3, window_bounds = array<i64: 1, 256>}, {pipeline_mode = #tpu.pipeline_mode<synchronous>, transform_indices = @transform_4, window_bounds = array<i64: 1, 256>}, {pipeline_mode = #tpu.pipeline_mode<synchronous>, transform_indices = @transform_5, window_bounds = array<i64: 256, 256>}, {pipeline_mode = #tpu.pipeline_mode<synchronous>, transform_indices = @transform_6, window_bounds = array<i64: 256, 128>}, {pipeline_mode = #tpu.pipeline_mode<synchronous>, transform_indices = @transform_7, window_bounds = array<i64: 256, 128>}, {pipeline_mode = #tpu.pipeline_mode<synchronous>, transform_indices = @transform_8, window_bounds = array<i64: 256, 256>}, {pipeline_mode = #tpu.pipeline_mode<synchronous>, transform_indices = @transform_9, window_bounds = array<i64: 256, 512>}, {pipeline_mode = #tpu.pipeline_mode<synchronous>, transform_indices = @transform_10, window_bounds = array<i64: 256, 512>}, {pipeline_mode = #tpu.pipeline_mode<synchronous>, transform_indices = @transform_11, window_bounds = array<i64: 512, 256>}, {transform_indices = @transform_12, window_bounds = array<i64: 1, 128, 256>}]} {
    %c0 = arith.constant 0 : index
    %c0_0 = arith.constant 0 : index
    %c0_1 = arith.constant 0 : index
    %0 = vector.load %arg1[%c0, %c0_0, %c0_1] : memref<1x128x256xf32, #tpu.memory_space<vmem>>, vector<1x128x256xf32>
    %1 = vector.shape_cast %0 : vector<1x128x256xf32> to vector<128x256xf32>
    %2 = arith.mulf %1, %1 : vector<128x256xf32>
    %cst = arith.constant dense<0.000000e+00> : vector<128xf32>
    %3 = vector.multi_reduction <add>, %2, %cst [1] : vector<128x256xf32> to vector<128xf32>
    %4 = vector.shape_cast %3 : vector<128xf32> to vector<128x1xf32>
    %cst_2 = arith.constant 2.560000e+02 : f32
    %5 = vector.broadcast %cst_2 : f32 to vector<128x1xf32>
    %6 = arith.divf %4, %5 : vector<128x1xf32>
    %cst_3 = arith.constant 9.99999997E-7 : f32
    %7 = vector.broadcast %cst_3 : f32 to vector<128x1xf32>
    %8 = arith.addf %6, %7 : vector<128x1xf32>
    %9 = math.rsqrt %8 : vector<128x1xf32>
    %10 = vector.broadcast %9 : vector<128x1xf32> to vector<128x256xf32>
    %11 = arith.mulf %1, %10 : vector<128x256xf32>
    %c0_4 = arith.constant 0 : index
    %c0_5 = arith.constant 0 : index
    %12 = vector.load %arg4[%c0_4, %c0_5] : memref<1x256xf32, #tpu.memory_space<vmem>>, vector<1x256xf32>
    %13 = vector.broadcast %12 : vector<1x256xf32> to vector<128x256xf32>
    %14 = arith.mulf %11, %13 : vector<128x256xf32>
    %c0_6 = arith.constant 0 : index
    %c0_7 = arith.constant 0 : index
    %15 = vector.load %arg6[%c0_6, %c0_7] : memref<256x256xf32, #tpu.memory_space<vmem>>, vector<256x256xf32>
    %cst_8 = arith.constant dense<0.000000e+00> : vector<128x256xf32>
    %16 = tpu.matmul %14, %15, %cst_8 {dimension_numbers = #tpu.dot_dimension_numbers<[1], [0], [0], [1], [0, 0, 1, 1], [], []>} : vector<128x256xf32>, vector<256x256xf32>, vector<128x256xf32> -> vector<128x256xf32>
    %c0_9 = arith.constant 0 : index
    %c0_10 = arith.constant 0 : index
    %17 = vector.load %arg7[%c0_9, %c0_10] : memref<256x128xf32, #tpu.memory_space<vmem>>, vector<256x128xf32>
    %cst_11 = arith.constant dense<0.000000e+00> : vector<128x128xf32>
    %18 = tpu.matmul %14, %17, %cst_11 {dimension_numbers = #tpu.dot_dimension_numbers<[1], [0], [0], [1], [0, 0, 1, 1], [], []>} : vector<128x256xf32>, vector<256x128xf32>, vector<128x128xf32> -> vector<128x128xf32>
    %c0_12 = arith.constant 0 : index
    %c0_13 = arith.constant 0 : index
    %19 = vector.load %arg8[%c0_12, %c0_13] : memref<256x128xf32, #tpu.memory_space<vmem>>, vector<256x128xf32>
    %cst_14 = arith.constant dense<0.000000e+00> : vector<128x128xf32>
    %20 = tpu.matmul %14, %19, %cst_14 {dimension_numbers = #tpu.dot_dimension_numbers<[1], [0], [0], [1], [0, 0, 1, 1], [], []>} : vector<128x256xf32>, vector<256x128xf32>, vector<128x128xf32> -> vector<128x128xf32>
    %c0_15 = arith.constant 0 : index
    %c0_16 = arith.constant 0 : index
    %21 = vector.load %arg2[%c0_15, %c0_16] : memref<128x128xf32, #tpu.memory_space<vmem>>, vector<128x128xf32>
    %c0_17 = arith.constant 0 : index
    %c0_18 = arith.constant 0 : index
    %22 = vector.load %arg3[%c0_17, %c0_18] : memref<128x128xf32, #tpu.memory_space<vmem>>, vector<128x128xf32>
    %23 = tpu.iota {dimensions = array<i32: 0>} : vector<128x128xi32>
    %24 = tpu.iota {dimensions = array<i32: 1>} : vector<128x128xi32>
    %25 = arith.cmpi sle, %24, %23 : vector<128x128xi32>
    %26 = vector.extract_strided_slice %18 {offsets = [0, 0], sizes = [128, 64], strides = [1, 1]} : vector<128x128xf32> to vector<128x64xf32>
    %27 = vector.extract_strided_slice %18 {offsets = [0, 64], sizes = [128, 64], strides = [1, 1]} : vector<128x128xf32> to vector<128x64xf32>
    %cst_19 = arith.constant 0.000000e+00 : f32
    %28 = vector.broadcast %cst_19 : f32 to vector<128x64xf32>
    %29 = arith.subf %28, %27 : vector<128x64xf32>
    %30 = tpu.concatenate %29, %26 in 1 : vector<128x64xf32>, vector<128x64xf32> -> vector<128x128xf32>
    %31 = arith.mulf %18, %21 : vector<128x128xf32>
    %32 = arith.mulf %30, %22 : vector<128x128xf32>
    %33 = arith.addf %31, %32 : vector<128x128xf32>
    %34 = vector.extract_strided_slice %16 {offsets = [0, 0], sizes = [128, 128], strides = [1, 1]} : vector<128x256xf32> to vector<128x128xf32>
    %35 = vector.extract_strided_slice %34 {offsets = [0, 0], sizes = [128, 64], strides = [1, 1]} : vector<128x128xf32> to vector<128x64xf32>
    %36 = vector.extract_strided_slice %34 {offsets = [0, 64], sizes = [128, 64], strides = [1, 1]} : vector<128x128xf32> to vector<128x64xf32>
    %cst_20 = arith.constant 0.000000e+00 : f32
    %37 = vector.broadcast %cst_20 : f32 to vector<128x64xf32>
    %38 = arith.subf %37, %36 : vector<128x64xf32>
    %39 = tpu.concatenate %38, %35 in 1 : vector<128x64xf32>, vector<128x64xf32> -> vector<128x128xf32>
    %40 = arith.mulf %34, %21 : vector<128x128xf32>
    %41 = arith.mulf %39, %22 : vector<128x128xf32>
    %42 = arith.addf %40, %41 : vector<128x128xf32>
    %cst_21 = arith.constant dense<0.000000e+00> : vector<128x128xf32>
    %43 = tpu.matmul %42, %33, %cst_21 {dimension_numbers = #tpu.dot_dimension_numbers<[1], [1], [0], [0], [0, 0, 1, 0], [], []>} : vector<128x128xf32>, vector<128x128xf32>, vector<128x128xf32> -> vector<128x128xf32>
    %cst_22 = arith.constant 0.0883883461 : f32
    %44 = vector.broadcast %cst_22 : f32 to vector<128x128xf32>
    %45 = arith.mulf %43, %44 : vector<128x128xf32>
    %cst_23 = arith.constant 0xFF800000 : f32
    %46 = vector.broadcast %cst_23 : f32 to vector<128x128xf32>
    %47 = arith.select %25, %45, %46 : vector<128x128xi1>, vector<128x128xf32>
    %cst_24 = arith.constant dense<0xFF800000> : vector<128xf32>
    %48 = vector.multi_reduction <maximumf>, %47, %cst_24 [1] : vector<128x128xf32> to vector<128xf32>
    %49 = vector.shape_cast %48 : vector<128xf32> to vector<128x1xf32>
    %50 = vector.broadcast %49 : vector<128x1xf32> to vector<128x128xf32>
    %51 = arith.subf %47, %50 : vector<128x128xf32>
    %52 = math.exp %51 : vector<128x128xf32>
    %cst_25 = arith.constant dense<0.000000e+00> : vector<128xf32>
    %53 = vector.multi_reduction <add>, %52, %cst_25 [1] : vector<128x128xf32> to vector<128xf32>
    %54 = vector.shape_cast %53 : vector<128xf32> to vector<128x1xf32>
    %55 = vector.broadcast %54 : vector<128x1xf32> to vector<128x128xf32>
    %56 = arith.divf %52, %55 : vector<128x128xf32>
    %cst_26 = arith.constant dense<0.000000e+00> : vector<128x128xf32>
    %57 = tpu.matmul %56, %20, %cst_26 {dimension_numbers = #tpu.dot_dimension_numbers<[1], [0], [0], [1], [0, 0, 1, 1], [], []>} : vector<128x128xf32>, vector<128x128xf32>, vector<128x128xf32> -> vector<128x128xf32>
    %58 = vector.extract_strided_slice %16 {offsets = [0, 128], sizes = [128, 128], strides = [1, 1]} : vector<128x256xf32> to vector<128x128xf32>
    %59 = vector.extract_strided_slice %58 {offsets = [0, 0], sizes = [128, 64], strides = [1, 1]} : vector<128x128xf32> to vector<128x64xf32>
    %60 = vector.extract_strided_slice %58 {offsets = [0, 64], sizes = [128, 64], strides = [1, 1]} : vector<128x128xf32> to vector<128x64xf32>
    %cst_27 = arith.constant 0.000000e+00 : f32
    %61 = vector.broadcast %cst_27 : f32 to vector<128x64xf32>
    %62 = arith.subf %61, %60 : vector<128x64xf32>
    %63 = tpu.concatenate %62, %59 in 1 : vector<128x64xf32>, vector<128x64xf32> -> vector<128x128xf32>
    %64 = arith.mulf %58, %21 : vector<128x128xf32>
    %65 = arith.mulf %63, %22 : vector<128x128xf32>
    %66 = arith.addf %64, %65 : vector<128x128xf32>
    %cst_28 = arith.constant dense<0.000000e+00> : vector<128x128xf32>
    %67 = tpu.matmul %66, %33, %cst_28 {dimension_numbers = #tpu.dot_dimension_numbers<[1], [1], [0], [0], [0, 0, 1, 0], [], []>} : vector<128x128xf32>, vector<128x128xf32>, vector<128x128xf32> -> vector<128x128xf32>
    %cst_29 = arith.constant 0.0883883461 : f32
    %68 = vector.broadcast %cst_29 : f32 to vector<128x128xf32>
    %69 = arith.mulf %67, %68 : vector<128x128xf32>
    %cst_30 = arith.constant 0xFF800000 : f32
    %70 = vector.broadcast %cst_30 : f32 to vector<128x128xf32>
    %71 = arith.select %25, %69, %70 : vector<128x128xi1>, vector<128x128xf32>
    %cst_31 = arith.constant dense<0xFF800000> : vector<128xf32>
    %72 = vector.multi_reduction <maximumf>, %71, %cst_31 [1] : vector<128x128xf32> to vector<128xf32>
    %73 = vector.shape_cast %72 : vector<128xf32> to vector<128x1xf32>
    %74 = vector.broadcast %73 : vector<128x1xf32> to vector<128x128xf32>
    %75 = arith.subf %71, %74 : vector<128x128xf32>
    %76 = math.exp %75 : vector<128x128xf32>
    %cst_32 = arith.constant dense<0.000000e+00> : vector<128xf32>
    %77 = vector.multi_reduction <add>, %76, %cst_32 [1] : vector<128x128xf32> to vector<128xf32>
    %78 = vector.shape_cast %77 : vector<128xf32> to vector<128x1xf32>
    %79 = vector.broadcast %78 : vector<128x1xf32> to vector<128x128xf32>
    %80 = arith.divf %76, %79 : vector<128x128xf32>
    %cst_33 = arith.constant dense<0.000000e+00> : vector<128x128xf32>
    %81 = tpu.matmul %80, %20, %cst_33 {dimension_numbers = #tpu.dot_dimension_numbers<[1], [0], [0], [1], [0, 0, 1, 1], [], []>} : vector<128x128xf32>, vector<128x128xf32>, vector<128x128xf32> -> vector<128x128xf32>
    %82 = tpu.concatenate %57, %81 in 1 : vector<128x128xf32>, vector<128x128xf32> -> vector<128x256xf32>
    %c0_34 = arith.constant 0 : index
    %c0_35 = arith.constant 0 : index
    %83 = vector.load %arg9[%c0_34, %c0_35] : memref<256x256xf32, #tpu.memory_space<vmem>>, vector<256x256xf32>
    %cst_36 = arith.constant dense<0.000000e+00> : vector<128x256xf32>
    %84 = tpu.matmul %82, %83, %cst_36 {dimension_numbers = #tpu.dot_dimension_numbers<[1], [0], [0], [1], [0, 0, 1, 1], [], []>} : vector<128x256xf32>, vector<256x256xf32>, vector<128x256xf32> -> vector<128x256xf32>
    %85 = arith.addf %1, %84 : vector<128x256xf32>
    %86 = arith.mulf %85, %85 : vector<128x256xf32>
    %cst_37 = arith.constant dense<0.000000e+00> : vector<128xf32>
    %87 = vector.multi_reduction <add>, %86, %cst_37 [1] : vector<128x256xf32> to vector<128xf32>
    %88 = vector.shape_cast %87 : vector<128xf32> to vector<128x1xf32>
    %cst_38 = arith.constant 2.560000e+02 : f32
    %89 = vector.broadcast %cst_38 : f32 to vector<128x1xf32>
    %90 = arith.divf %88, %89 : vector<128x1xf32>
    %cst_39 = arith.constant 9.99999997E-7 : f32
    %91 = vector.broadcast %cst_39 : f32 to vector<128x1xf32>
    %92 = arith.addf %90, %91 : vector<128x1xf32>
    %93 = math.rsqrt %92 : vector<128x1xf32>
    %94 = vector.broadcast %93 : vector<128x1xf32> to vector<128x256xf32>
    %95 = arith.mulf %85, %94 : vector<128x256xf32>
    %c0_40 = arith.constant 0 : index
    %c0_41 = arith.constant 0 : index
    %96 = vector.load %arg5[%c0_40, %c0_41] : memref<1x256xf32, #tpu.memory_space<vmem>>, vector<1x256xf32>
    %97 = vector.broadcast %96 : vector<1x256xf32> to vector<128x256xf32>
    %98 = arith.mulf %95, %97 : vector<128x256xf32>
    %c0_42 = arith.constant 0 : index
    %c0_43 = arith.constant 0 : index
    %99 = vector.load %arg10[%c0_42, %c0_43] : memref<256x512xf32, #tpu.memory_space<vmem>>, vector<256x512xf32>
    %cst_44 = arith.constant dense<0.000000e+00> : vector<128x512xf32>
    %100 = tpu.matmul %98, %99, %cst_44 {dimension_numbers = #tpu.dot_dimension_numbers<[1], [0], [0], [1], [0, 0, 1, 1], [], []>} : vector<128x256xf32>, vector<256x512xf32>, vector<128x512xf32> -> vector<128x512xf32>
    %c0_45 = arith.constant 0 : index
    %c0_46 = arith.constant 0 : index
    %101 = vector.load %arg11[%c0_45, %c0_46] : memref<256x512xf32, #tpu.memory_space<vmem>>, vector<256x512xf32>
    %cst_47 = arith.constant dense<0.000000e+00> : vector<128x512xf32>
    %102 = tpu.matmul %98, %101, %cst_47 {dimension_numbers = #tpu.dot_dimension_numbers<[1], [0], [0], [1], [0, 0, 1, 1], [], []>} : vector<128x256xf32>, vector<256x512xf32>, vector<128x512xf32> -> vector<128x512xf32>
    %103 = arith.negf %100 : vector<128x512xf32>
    %104 = math.exp %103 : vector<128x512xf32>
    %cst_48 = arith.constant 1.000000e+00 : f32
    %105 = vector.broadcast %cst_48 : f32 to vector<128x512xf32>
    %106 = arith.addf %105, %104 : vector<128x512xf32>
    %107 = arith.divf %105, %106 : vector<128x512xf32>
    %108 = arith.mulf %100, %107 : vector<128x512xf32>
    %109 = arith.mulf %108, %102 : vector<128x512xf32>
    %c0_49 = arith.constant 0 : index
    %c0_50 = arith.constant 0 : index
    %110 = vector.load %arg12[%c0_49, %c0_50] : memref<512x256xf32, #tpu.memory_space<vmem>>, vector<512x256xf32>
    %cst_51 = arith.constant dense<0.000000e+00> : vector<128x256xf32>
    %111 = tpu.matmul %109, %110, %cst_51 {dimension_numbers = #tpu.dot_dimension_numbers<[1], [0], [0], [1], [0, 0, 1, 1], [], []>} : vector<128x512xf32>, vector<512x256xf32>, vector<128x256xf32> -> vector<128x256xf32>
    %112 = arith.addf %85, %111 : vector<128x256xf32>
    %c0_52 = arith.constant 0 : index
    %c0_53 = arith.constant 0 : index
    %c0_54 = arith.constant 0 : index
    %113 = vector.load %arg13[%c0_52, %c0_53, %c0_54] : memref<1x128x256xf32, #tpu.memory_space<vmem>>, vector<1x128x256xf32>
    %114 = vector.shape_cast %113 : vector<1x128x256xf32> to vector<128x256xf32>
    %115 = vector.shape_cast %112 : vector<128x256xf32> to vector<1x128x256xf32>
    tpu.vector_store %arg13[%c0_52, %c0_53, %c0_54], %115 {strides = array<i32>} : memref<1x128x256xf32, #tpu.memory_space<vmem>>, vector<1x128x256xf32>,
    return
  }
  func.func @transform_0(%arg0: i32) -> (i32, i32, i32) {
    %c0_i32 = arith.constant 0 : i32
    %c0_i32_0 = arith.constant 0 : i32
    %c0_i32_1 = arith.constant 0 : i32
    return %arg0, %c0_i32, %c0_i32_0 : i32, i32, i32
  }
  func.func @transform_1(%arg0: i32) -> (i32, i32) {
    %c0_i32 = arith.constant 0 : i32
    %c0_i32_0 = arith.constant 0 : i32
    %c0_i32_1 = arith.constant 0 : i32
    return %c0_i32, %c0_i32_0 : i32, i32
  }
  func.func @transform_2(%arg0: i32) -> (i32, i32) {
    %c0_i32 = arith.constant 0 : i32
    %c0_i32_0 = arith.constant 0 : i32
    %c0_i32_1 = arith.constant 0 : i32
    return %c0_i32, %c0_i32_0 : i32, i32
  }
  func.func @transform_3(%arg0: i32) -> (i32, i32) {
    %c0_i32 = arith.constant 0 : i32
    %c0_i32_0 = arith.constant 0 : i32
    %c0_i32_1 = arith.constant 0 : i32
    return %c0_i32, %c0_i32_0 : i32, i32
  }
  func.func @transform_4(%arg0: i32) -> (i32, i32) {
    %c0_i32 = arith.constant 0 : i32
    %c0_i32_0 = arith.constant 0 : i32
    %c0_i32_1 = arith.constant 0 : i32
    return %c0_i32, %c0_i32_0 : i32, i32
  }
  func.func @transform_5(%arg0: i32) -> (i32, i32) {
    %c0_i32 = arith.constant 0 : i32
    %c0_i32_0 = arith.constant 0 : i32
    %c0_i32_1 = arith.constant 0 : i32
    return %c0_i32, %c0_i32_0 : i32, i32
  }
  func.func @transform_6(%arg0: i32) -> (i32, i32) {
    %c0_i32 = arith.constant 0 : i32
    %c0_i32_0 = arith.constant 0 : i32
    %c0_i32_1 = arith.constant 0 : i32
    return %c0_i32, %c0_i32_0 : i32, i32
  }
  func.func @transform_7(%arg0: i32) -> (i32, i32) {
    %c0_i32 = arith.constant 0 : i32
    %c0_i32_0 = arith.constant 0 : i32
    %c0_i32_1 = arith.constant 0 : i32
    return %c0_i32, %c0_i32_0 : i32, i32
  }
  func.func @transform_8(%arg0: i32) -> (i32, i32) {
    %c0_i32 = arith.constant 0 : i32
    %c0_i32_0 = arith.constant 0 : i32
    %c0_i32_1 = arith.constant 0 : i32
    return %c0_i32, %c0_i32_0 : i32, i32
  }
  func.func @transform_9(%arg0: i32) -> (i32, i32) {
    %c0_i32 = arith.constant 0 : i32
    %c0_i32_0 = arith.constant 0 : i32
    %c0_i32_1 = arith.constant 0 : i32
    return %c0_i32, %c0_i32_0 : i32, i32
  }
  func.func @transform_10(%arg0: i32) -> (i32, i32) {
    %c0_i32 = arith.constant 0 : i32
    %c0_i32_0 = arith.constant 0 : i32
    %c0_i32_1 = arith.constant 0 : i32
    return %c0_i32, %c0_i32_0 : i32, i32
  }
  func.func @transform_11(%arg0: i32) -> (i32, i32) {
    %c0_i32 = arith.constant 0 : i32
    %c0_i32_0 = arith.constant 0 : i32
    %c0_i32_1 = arith.constant 0 : i32
    return %c0_i32, %c0_i32_0 : i32, i32
  }
  func.func @transform_12(%arg0: i32) -> (i32, i32, i32) {
    %c0_i32 = arith.constant 0 : i32
    %c0_i32_0 = arith.constant 0 : i32
    %c0_i32_1 = arith.constant 0 : i32
    return %arg0, %c0_i32, %c0_i32_0 : i32, i32, i32
  }
}

</mosaic_0001>

<bundles_post_ra>
// kernel: _llama_decoder_layer.1
= control target key start
LH: loop header
LB: loop body
LE: loop exit
PB: predicated region body
PF: predicated region fallthrough
CT: control target
= control target key end

     0   :  { %s10946_s0 = inlined_call_operand.hbm [shape: f32[2,128,256], index: 0, kind: input, shape index: {}]   ;;  %s10947_s1 = inlined_call_operand.hbm [shape: f32[128,128], index: 1, kind: input, shape index: {}]   ;;  %s10948_s2 = inlined_call_operand.hbm [shape: f32[128,128], index: 2, kind: input, shape index: {}]   ;;  %s10949_s3 = inlined_call_operand.vmem [shape: f32[1,256], index: 3, kind: input, shape index: {}]   ;;  %s10950_s4 = inlined_call_operand.vmem [shape: f32[1,256], index: 4, kind: input, shape index: {}]   ;;  %s10951_s5 = inlined_call_operand.hbm [shape: f32[256,256], index: 5, kind: input, shape index: {}]   ;;  %s10952_s6 = inlined_call_operand.hbm [shape: f32[256,128], index: 6, kind: input, shape index: {}]   ;;  %s10953_s7 = inlined_call_operand.hbm [shape: f32[256,128], index: 7, kind: input, shape index: {}]   ;;  %s10954_s8 = inlined_call_operand.hbm [shape: f32[256,256], index: 8, kind: input, shape index: {}]   ;;  %s10955_s9 = inlined_call_operand.hbm [shape: f32[256,512], index: 9, kind: input, shape index: {}]   ;;  %s10956_s10 = inlined_call_operand.hbm [shape: f32[256,512], index: 10, kind: input, shape index: {}]   ;;  %s10957_s11 = inlined_call_operand.hbm [shape: f32[512,256], index: 11, kind: input, shape index: {}]   ;;  %s10958_s12 = inlined_call_operand.hbm [shape: f32[2,128,256], index: 12, kind: output, shape index: {}]  }
   0x1   :  { %11108 = sst [smem:[#allocation131_spill]] %s10947_s1 }
   0x2   :  { %11109 = sst [smem:[#allocation132_spill]] %s10948_s2 }
   0x3   :  { %11110 = sst [smem:[#allocation133_spill]] %s10949_s3 }
   0x4   :  { %11111 = sst [smem:[#allocation134_spill]] %s10950_s4 }
   0x5   :  { %11112 = sst [smem:[#allocation135_spill]] %s10958_s12 }
   0x6   :  { %17 = vsyncpa [#allocation3], 0 }
   0x7   :  { %19 = vsyncpa [#allocation3 + $0x1], 0 }
   0x8   :  { %20 = vsyncpa [#allocation6], 0 }
   0x9   :  { %21 = vsyncpa [#allocation9], 0 }
   0xa   :  { %22 = vsyncpa [#allocation12], 0 }
   0xb   :  { %23 = vsyncpa [#allocation15], 0 }
   0xc   :  { %24 = vsyncpa [#allocation18], 0 }
   0xd   :  { %25 = vsyncpa [#allocation4], 0 }
   0xe   :  { %27 = vsyncpa [#allocation4 + $0x1], 0  ;;  %s8022_s21 = smov 0   ;;  %s8024_s22 = smov 0  }
   0xf   :  { %s8026_s23 = smov 0   ;;  %s8028_s24 = smov 0  }
  0x10 LB: > { %s7937_s25 = smov [#allocation5]   ;;  %s8043_s27 = sadd.s32 4294967295, %s7935_s24   ;;  %s7935_s24 = sphi %s8028_s24, %s11443_s24   ;;  %s7931_s23 = sphi %s8026_s23, %s11442_s23   ;;  %s7927_s22 = sphi %s8024_s22, %s11441_s22   ;;  %s7923_s21 = sphi %s8022_s21, %s11440_s21  }
  0x11   : > { %s333_s26 = sshll.u32 %s7937_s25, 4  ;;  %p5564_p0 = scmp.ge.s32.totalorder %s7935_s24, 1  ;;  %s8048_s26 = int_to_ptr.vmem [resolvable:$true] %s333_s26 }
  0x12   : > { %p10963_p1 = scmp.eq.s32.totalorder %s8043_s27, 0  ;;  %p321_p2 = scmp.lt.s32.totalorder %s7935_s24, 3 }
  0x13   : > { %s7938_s29 = smov [#allocation8]   ;;  %s7939_s14 = smov [#allocation11]  }
  0x14   : > { %p8050_p3 = pnand %p5564_p0, %p321_p2  ;;  %s365_s30 = sshll.u32 %s7938_s29, 4  ;;  %s8063_s30 = int_to_ptr.vmem [resolvable:$true] %s365_s30 }
  0x15   : > { %s8065_s15 = sshll.u32 %s7939_s14, 4  ;;  %s11116_s1 = sld [smem:[#allocation131_spill]]  ;;  %s392_s15 = int_to_ptr.vmem [resolvable:$true] %s8065_s15 }
  0x16   : > { %s11113_s28 = scalar_select %p8050_p3, 1, 0 }
  0x17   : > { %p6981_p5 = pneg %p8050_p3 }
  0x18   : > { %11114 = sst [smem:[#allocation27_spill]] %s11113_s28 }
  0x19   : > { %p8059_p6 = pnand %p6981_p5, %p10963_p1 }
  0x1b   : > { %s7567_s18 = scalar_lea.hbm %s11116_s1, 2048  ;;  %p8075_p8 = pneg %p8059_p6 }
  0x1c   : > { %p7568_p7 = scmp.ne.s32.totalorder %s11116_s1, %s7567_s18  ;;  %p7574_p11 = scmp.lt.u32.totalorder %s7567_s18, %s11116_s1 }
  0x1e   : > { %p7570_p9 = pnand %p8075_p8, %p7568_p7 }
  0x20   : > { %p7571_p10 = pneg %p7570_p9 }
  0x22   : > { %p7576_p12 = pnand %p7574_p11, %p7571_p10 }
  0x24   : > { %7579 = shalt.err (!%p7576_p12)
}
  0x25   : > { %s7580_s16 = scalar_lea.vmem %s8048_s26, 2048  ;;  %p7588_p5 = scmp.lt.s32.totalorder %s8048_s26, %s8048_s26 }
  0x26   : > { %p7581_p13 = scmp.ne.s32.totalorder %s8048_s26, %s7580_s16  ;;  %p7589_p4 = scmp.lt.s32.totalorder %s7580_s16, %s7580_s16 }
  0x28   : > { %p7583_p0 = pnand %p7581_p13, %p8075_p8  ;;  %p7590_p7 = por %p7589_p4, %p7588_p5 }
  0x2a   : > { %p7584_p2 = pneg %p7583_p0 }
  0x2c   : > { %p7591_p9 = pnand %p7590_p7, %p7584_p2 }
  0x2e   : > { %7594 = shalt.err (!%p7591_p9)
}
  0x2f   : > { %s10961_s17 = smov 128   ;;  %s10969_s18 = smov 8  }
  0x30   : > { %6984 = dma.hbm_to_vmem [thread:$0]  (!%p8059_p6), %s11116_s1, 2048, %s8048_s26, [#allocation6], %s10961_s17, %s10961_s17, %s10969_s18  }
  0x31   : > { %s7595_s16 = scalar_lea.hbm %s10951_s5, 8192 }
  0x32   : > { %p7596_p4 = scmp.ne.s32.totalorder %s10951_s5, %s7595_s16  ;;  %p7602_p12 = scmp.lt.u32.totalorder %s7595_s16, %s10951_s5 }
  0x34   : > { %p7598_p10 = pnand %p7596_p4, %p8075_p8 }
  0x36   : > { %p7599_p11 = pneg %p7598_p10 }
  0x38   : > { %p7604_p13 = pnand %p7602_p12, %p7599_p11 }
  0x3a   : > { %7607 = shalt.err (!%p7604_p13)
}
  0x3b   : > { %s7608_s26 = scalar_lea.vmem %s8063_s30, 8192  ;;  %p7616_p7 = scmp.lt.s32.totalorder %s8063_s30, %s8063_s30 }
  0x3c   : > { %p7609_p0 = scmp.ne.s32.totalorder %s8063_s30, %s7608_s26  ;;  %p7617_p9 = scmp.lt.s32.totalorder %s7608_s26, %s7608_s26 }
  0x3e   : > { %p7611_p2 = pnand %p7609_p0, %p8075_p8  ;;  %p7618_p4 = por %p7617_p9, %p7616_p7 }
  0x40   : > { %p7612_p5 = pneg %p7611_p2 }
  0x42   : > { %p7619_p10 = pnand %p7618_p4, %p7612_p5 }
  0x44   : > { %7622 = shalt.err (!%p7619_p10)
}
  0x45   : > { %s10965_s4 = smov 256   ;;  %s10967_s3 = smov 16  }
  0x46   : > { %6990 = dma.hbm_to_vmem [thread:$0]  (!%p8059_p6), %s10951_s5, 8192, %s8063_s30, [#allocation9], %s10965_s4, %s10965_s4, %s10967_s3  }
  0x47   : > { %s7623_s29 = scalar_lea.hbm %s10953_s7, 4096 }
  0x48   : > { %p7624_p11 = scmp.ne.s32.totalorder %s10953_s7, %s7623_s29  ;;  %p7630_p0 = scmp.lt.u32.totalorder %s7623_s29, %s10953_s7 }
  0x4a   : > { %p7626_p12 = pnand %p7624_p11, %p8075_p8 }
  0x4c   : > { %p7627_p13 = pneg %p7626_p12 }
  0x4e   : > { %p7632_p2 = pnand %p7630_p0, %p7627_p13 }
  0x50   : > { %7635 = shalt.err (!%p7632_p2)
}
  0x51   : > { %s7636_s12 = scalar_lea.vmem %s392_s15, 4096  ;;  %p7644_p4 = scmp.lt.s32.totalorder %s392_s15, %s392_s15 }
  0x52   : > { %p7637_p5 = scmp.ne.s32.totalorder %s392_s15, %s7636_s12  ;;  %p7645_p10 = scmp.lt.s32.totalorder %s7636_s12, %s7636_s12 }
  0x54   : > { %p7639_p7 = pnand %p7637_p5, %p8075_p8  ;;  %p7646_p1 = por %p7645_p10, %p7644_p4 }
  0x56   : > { %p7640_p9 = pneg %p7639_p7 }
  0x58   : > { %p7647_p3 = pnand %p7646_p1, %p7640_p9 }
  0x5a   : > { %7650 = shalt.err (!%p7647_p3)
}
  0x5b   : > { %s11118_s30 = smov 128   ;;  %s7944_s19 = smov [#allocation14]  }
  0x5c   : > { %6996 = dma.hbm_to_vmem [thread:$0]  (!%p8059_p6), %s10953_s7, 4096, %s392_s15, [#allocation12], %s11118_s30, %s11118_s30, %s10969_s18  }
  0x5d   : > { %s417_s20 = sshll.u32 %s7944_s19, 4  ;;  %s7651_s16 = scalar_lea.hbm %s10955_s9, 16384  ;;  %s418_s20 = int_to_ptr.vmem [resolvable:$true] %s417_s20 }
  0x5e   : > { %p7652_p1 = scmp.ne.s32.totalorder %s10955_s9, %s7651_s16  ;;  %p7658_p12 = scmp.lt.u32.totalorder %s7651_s16, %s10955_s9 }
  0x60   : > { %p7654_p3 = pnand %p7652_p1, %p8075_p8 }
  0x62   : > { %p7655_p11 = pneg %p7654_p3 }
  0x64   : > { %p7660_p13 = pnand %p7658_p12, %p7655_p11 }
  0x66   : > { %7663 = shalt.err (!%p7660_p13)
}
  0x67   : > { %s7664_s15 = scalar_lea.vmem %s418_s20, 16384  ;;  %p7672_p7 = scmp.lt.s32.totalorder %s418_s20, %s418_s20 }
  0x68   : > { %p7665_p0 = scmp.ne.s32.totalorder %s418_s20, %s7664_s15  ;;  %p7673_p9 = scmp.lt.s32.totalorder %s7664_s15, %s7664_s15 }
  0x6a   : > { %p7667_p2 = pnand %p7665_p0, %p8075_p8  ;;  %p7674_p4 = por %p7673_p9, %p7672_p7 }
  0x6c   : > { %p7668_p5 = pneg %p7667_p2 }
  0x6e   : > { %p7675_p10 = pnand %p7674_p4, %p7668_p5 }
  0x70   : > { %7678 = shalt.err (!%p7675_p10)
}
  0x71   : > { %s10971_s17 = smov 512   ;;  %s7946_s28 = smov 32  }
  0x72   : > { %7002 = dma.hbm_to_vmem [thread:$0]  (!%p8059_p6), %s10955_s9, 16384, %s418_s20, [#allocation15], %s10971_s17, %s10971_s17, %s7946_s28  }
  0x73   : > { %s7947_s19 = smov [#allocation7]   ;;  %s7948_s14 = smov [#allocation10]  }
  0x74   : > { %s346_s29 = sshll.u32 %s7947_s19, 4  ;;  %s378_s16 = sshll.u32 %s7948_s14, 4  ;;  %s347_s29 = int_to_ptr.vmem [resolvable:$true] %s346_s29  ;;  %s8168_s16 = int_to_ptr.vmem [resolvable:$true] %s378_s16 }
  0x75   : > { %s11119_s2 = sld [smem:[#allocation132_spill]] }
  0x7b   : > { %s7679_s15 = scalar_lea.hbm %s11119_s2, 2048 }
  0x7c   : > { %p7680_p1 = scmp.ne.s32.totalorder %s11119_s2, %s7679_s15  ;;  %p7686_p12 = scmp.lt.u32.totalorder %s7679_s15, %s11119_s2 }
  0x7e   : > { %p7682_p3 = pnand %p7680_p1, %p8075_p8 }
  0x80   : > { %p7683_p11 = pneg %p7682_p3 }
  0x82   : > { %p7688_p13 = pnand %p7686_p12, %p7683_p11 }
  0x84   : > { %7691 = shalt.err (!%p7688_p13)
}
  0x85   : > { %s7692_s3 = scalar_lea.vmem %s347_s29, 2048  ;;  %p7700_p7 = scmp.lt.s32.totalorder %s347_s29, %s347_s29 }
  0x86   : > { %p7693_p0 = scmp.ne.s32.totalorder %s347_s29, %s7692_s3  ;;  %p7701_p9 = scmp.lt.s32.totalorder %s7692_s3, %s7692_s3 }
  0x88   : > { %p7695_p2 = pnand %p7693_p0, %p8075_p8  ;;  %p7702_p4 = por %p7701_p9, %p7700_p7 }
  0x8a   : > { %p7696_p5 = pneg %p7695_p2 }
  0x8c   : > { %p7703_p10 = pnand %p7702_p4, %p7696_p5 }
  0x8e   : > { %7706 = shalt.err (!%p7703_p10)
}
  0x8f   : > { %s11120_s1 = smov 8   ;;  %s7707_s12 = scalar_lea.hbm %s10952_s6, 4096 }
  0x90   : > { %6987 = dma.hbm_to_vmem [thread:$0]  (!%p8059_p6), %s11119_s2, 2048, %s347_s29, [#allocation6], %s11118_s30, %s11118_s30, %s11120_s1  }
  0x91   : > { %p7708_p1 = scmp.ne.s32.totalorder %s10952_s6, %s7707_s12  ;;  %p7714_p12 = scmp.lt.u32.totalorder %s7707_s12, %s10952_s6 }
  0x93   : > { %p7710_p3 = pnand %p7708_p1, %p8075_p8 }
  0x95   : > { %p7711_p11 = pneg %p7710_p3 }
  0x97   : > { %p7716_p13 = pnand %p7714_p12, %p7711_p11 }
  0x99   : > { %7719 = shalt.err (!%p7716_p13)
}
  0x9a   : > { %s7720_s29 = scalar_lea.vmem %s8168_s16, 4096  ;;  %p7728_p7 = scmp.lt.s32.totalorder %s8168_s16, %s8168_s16 }
  0x9b   : > { %p7721_p0 = scmp.ne.s32.totalorder %s8168_s16, %s7720_s29  ;;  %p7729_p9 = scmp.lt.s32.totalorder %s7720_s29, %s7720_s29 }
  0x9d   : > { %p7723_p2 = pnand %p7721_p0, %p8075_p8  ;;  %p7730_p4 = por %p7729_p9, %p7728_p7 }
  0x9f   : > { %p7724_p5 = pneg %p7723_p2 }
  0xa1   : > { %p7731_p10 = pnand %p7730_p4, %p7724_p5 }
  0xa3   : > { %7734 = shalt.err (!%p7731_p10)
}
  0xa4   : > { %6993 = dma.hbm_to_vmem [thread:$0]  (!%p8059_p6), %s10952_s6, 4096, %s8168_s16, [#allocation9], %s11118_s30, %s11118_s30, %s11120_s1  }
  0xa5   : > { %s7949_s14 = smov [#allocation13]   ;;  %s7950_s12 = smov [#allocation16]  }
  0xa6   : > { %s404_s26 = sshll.u32 %s7949_s14, 4  ;;  %s430_s15 = sshll.u32 %s7950_s12, 4  ;;  %s405_s26 = int_to_ptr.vmem [resolvable:$true] %s404_s26  ;;  %s8217_s15 = int_to_ptr.vmem [resolvable:$true] %s430_s15 }
  0xa7   : > { %s7735_s3 = scalar_lea.hbm %s10954_s8, 8192 }
  0xa8   : > { %p7736_p1 = scmp.ne.s32.totalorder %s10954_s8, %s7735_s3  ;;  %p7742_p12 = scmp.lt.u32.totalorder %s7735_s3, %s10954_s8 }
  0xaa   : > { %p7738_p3 = pnand %p7736_p1, %p8075_p8 }
  0xac   : > { %p7739_p11 = pneg %p7738_p3 }
  0xae   : > { %p7744_p13 = pnand %p7742_p12, %p7739_p11 }
  0xb0   : > { %7747 = shalt.err (!%p7744_p13)
}
  0xb1   : > { %s7748_s16 = scalar_lea.vmem %s405_s26, 8192  ;;  %p7756_p7 = scmp.lt.s32.totalorder %s405_s26, %s405_s26 }
  0xb2   : > { %p7749_p0 = scmp.ne.s32.totalorder %s405_s26, %s7748_s16  ;;  %p7757_p9 = scmp.lt.s32.totalorder %s7748_s16, %s7748_s16 }
  0xb4   : > { %p7751_p2 = pnand %p7749_p0, %p8075_p8  ;;  %p7758_p4 = por %p7757_p9, %p7756_p7 }
  0xb6   : > { %p7752_p5 = pneg %p7751_p2 }
  0xb8   : > { %p7759_p10 = pnand %p7758_p4, %p7752_p5 }
  0xba   : > { %7762 = shalt.err (!%p7759_p10)
}
  0xbb   : > { %s11121_s17 = smov 16   ;;  %s11122_s1 = smov 256  }
  0xbc   : > { %6999 = dma.hbm_to_vmem [thread:$0]  (!%p8059_p6), %s10954_s8, 8192, %s405_s26, [#allocation12], %s11122_s1, %s11122_s1, %s11121_s17  }
  0xbd   : > { %s7763_s20 = scalar_lea.hbm %s10956_s10, 16384 }
  0xbe   : > { %p7764_p1 = scmp.ne.s32.totalorder %s10956_s10, %s7763_s20  ;;  %p7770_p12 = scmp.lt.u32.totalorder %s7763_s20, %s10956_s10 }
  0xc0   : > { %p7766_p3 = pnand %p7764_p1, %p8075_p8 }
  0xc2   : > { %p7767_p11 = pneg %p7766_p3 }
  0xc4   : > { %p7772_p13 = pnand %p7770_p12, %p7767_p11 }
  0xc6   : > { %7775 = shalt.err (!%p7772_p13)
}
  0xc7   : > { %s7776_s26 = scalar_lea.vmem %s8217_s15, 16384  ;;  %p7784_p7 = scmp.lt.s32.totalorder %s8217_s15, %s8217_s15 }
  0xc8   : > { %p7777_p0 = scmp.ne.s32.totalorder %s8217_s15, %s7776_s26  ;;  %p7785_p9 = scmp.lt.s32.totalorder %s7776_s26, %s7776_s26 }
  0xca   : > { %p7779_p2 = pnand %p7777_p0, %p8075_p8  ;;  %p7786_p4 = por %p7785_p9, %p7784_p7 }
  0xcc   : > { %p7780_p5 = pneg %p7779_p2 }
  0xce   : > { %p7787_p10 = pnand %p7786_p4, %p7780_p5 }
  0xd0   : > { %7790 = shalt.err (!%p7787_p10)
}
  0xd1   : > { %s11123_s16 = smov 512   ;;  %s7951_s12 = smov [#allocation17]  }
  0xd2   : > { %7005 = dma.hbm_to_vmem [thread:$0]  (!%p8059_p6), %s10956_s10, 16384, %s8217_s15, [#allocation15], %s11123_s16, %s11123_s16, %s7946_s28  }
  0xd3   : > { %s443_s4 = sshll.u32 %s7951_s12, 4  ;;  %s7791_s29 = scalar_lea.hbm %s10957_s11, 16384  ;;  %s444_s4 = int_to_ptr.vmem [resolvable:$true] %s443_s4 }
  0xd4   : > { %p7792_p1 = scmp.ne.s32.totalorder %s10957_s11, %s7791_s29  ;;  %p7798_p12 = scmp.lt.u32.totalorder %s7791_s29, %s10957_s11 }
  0xd6   : > { %p7794_p3 = pnand %p7792_p1, %p8075_p8 }
  0xd8   : > { %p7795_p11 = pneg %p7794_p3 }
  0xda   : > { %p7800_p13 = pnand %p7798_p12, %p7795_p11 }
  0xdc   : > { %7803 = shalt.err (!%p7800_p13)
}
  0xdd   : > { %s7804_s28 = scalar_lea.vmem %s444_s4, 16384  ;;  %p7812_p7 = scmp.lt.s32.totalorder %s444_s4, %s444_s4 }
  0xde   : > { %p7805_p0 = scmp.ne.s32.totalorder %s444_s4, %s7804_s28  ;;  %p7813_p9 = scmp.lt.s32.totalorder %s7804_s28, %s7804_s28 }
  0xe0   : > { %p7807_p2 = pnand %p7805_p0, %p8075_p8  ;;  %p7814_p4 = por %p7813_p9, %p7812_p7 }
  0xe2   : > { %p7808_p5 = pneg %p7807_p2 }
  0xe4   : > { %p7815_p10 = pnand %p7814_p4, %p7808_p5 }
  0xe6   : > { %7818 = shalt.err (!%p7815_p10)
}
  0xe7   : > { %7008 = dma.hbm_to_vmem [thread:$0]  (!%p8059_p6), %s10957_s11, 16384, %s444_s4, [#allocation18], %s11122_s1, %s11122_s1, %s11121_s17  }
  0xe8   : > { %s5563_s13 = sadd.s32 4294967294, %s7935_s24   ;;  %s8289_s25 = sadd.s32 1, %s7935_s24  }
  0xe9   : > { %s40_s16 = sadd.s32 1, %s7931_s23  ;;  %s37_s19 = ssub.s32 %s7935_s24, %s8289_s25 }
  0xea   : > { %p47_p8 = scmp.ne.s32.totalorder %s7931_s23, %s7927_s22  ;;  %p38_p1 = scmp.eq.s32.totalorder %s37_s19, 0 }
  0xeb   : > { %p48_p3 = scmp.eq.s32.totalorder %s7935_s24, 0  ;;  %p53_p11 = scmp.ne.s32.totalorder %s7927_s22, %s7923_s21 }
  0xec   : > { %p308_p12 = scmp.eq.s32.totalorder %s8043_s27, 1  ;;  %p11124_p0 = scmp.eq.s32.totalorder %s8043_s27, 0 }
  0xed   : > { %s8301_s14 = scalar_select %p38_p1, %s7931_s23, %s40_s16  }
  0xee   : > { %p49_p13 = por %p48_p3, %p47_p8  ;;  %p8305_p2 = por %p11124_p0, %p53_p11 }
  0xef   : > { %p8309_p6 = por %p308_p12, %p47_p8  ;;  %p314_p5 = scmp.eq.s32.totalorder %s5563_s13, 1 }
  0xf0   : > { %p7026_p7 = scmp.lt.s32.totalorder %s7935_s24, 2  ;;  %s457_s20 = sand.u32 1, %s7931_s23  }
  0xf1   : > { %s11126_s4 = scalar_select %p8309_p6, 1, 0 }
  0xf2   : > { %p8315_p9 = por %p314_p5, %p53_p11  ;;  %s5575_s29 = sshll.u32 %s457_s20, 8 }
  0xf3   : > { %s5659_s18 = sshll.u32 %s7935_s24, 12  ;;  %s461_s2 = scalar_lea.vmem [#allocation2], %s5575_s29 }
  0xf4   : > { %s11127_s3 = scalar_select %p8315_p9, 1, 0 }
  0xf5   : > { %s8323_s28 = scalar_lea.hbm %s10946_s0, %s5659_s18  ;;  %s468_s15 = sshll.u32 %s461_s2, 4  ;;  %s8329_s15 = int_to_ptr.vmem [resolvable:$true] %s468_s15 }
  0xf6   : > { %p8325_p4 = pnand %p7026_p7, %p49_p13  ;;  %s8331_s16 = scalar_lea.sflag [#allocation3], %s457_s20 }
  0xf7   : > { %s7819_s19 = scalar_lea.hbm %s8323_s28, 4096  ;;  %s7824_s30 = scalar_lea.hbm %s10946_s0, 8192 }
  0xf8   : > { %p7820_p10 = scmp.ne.s32.totalorder %s8323_s28, %s7819_s19  ;;  %p7821_p8 = pneg %p8325_p4 }
  0xf9   : > { %p7825_p11 = scmp.lt.u32.totalorder %s8323_s28, %s10946_s0  ;;  %p7826_p12 = scmp.lt.u32.totalorder %s7824_s30, %s7819_s19 }
  0xfa   : > { %p7822_p1 = pnand %p7821_p8, %p7820_p10  ;;  %p7828_p0 = scmp.lt.u32.totalorder %s7819_s19, %s8323_s28 }
  0xfb   : > { %p7827_p13 = por %p7826_p12, %p7825_p11 }
  0xfc   : > { %p7823_p3 = pneg %p7822_p1 }
  0xfd   : > { %p7829_p5 = por %p7828_p0, %p7827_p13 }
  0xff   : > { %p7830_p7 = pnand %p7829_p5, %p7823_p3 }
 0x101   : > { %7833 = shalt.err (!%p7830_p7)
}
 0x102   : > { %s7834_s20 = scalar_lea.vmem %s8329_s15, 4096  ;;  %s7952_s29 = smov [#allocation2]  }
 0x103   : > { %p7835_p10 = scmp.ne.s32.totalorder %s8329_s15, %s7834_s20  ;;  %s7839_s18 = sshll.u32 %s7952_s29, 4  ;;  %s7840_s18 = int_to_ptr.vmem [resolvable:$false] %s7839_s18 }
 0x104   : > { %s7841_s26 = scalar_lea.vmem %s7840_s18, 8192  ;;  %p7842_p6 = scmp.lt.s32.totalorder %s8329_s15, %s7840_s18 }
 0x105   : > { %p7837_p1 = pnand %p7835_p10, %p7821_p8  ;;  %p7843_p11 = scmp.lt.s32.totalorder %s7841_s26, %s7834_s20 }
 0x107   : > { %p7838_p9 = pneg %p7837_p1  ;;  %p7844_p12 = por %p7843_p11, %p7842_p6 }
 0x109   : > { %p7845_p13 = pnand %p7844_p12, %p7838_p9 }
 0x10b   : > { %7848 = shalt.err (!%p7845_p13)
}
 0x10c   : > { %7012 = dma.hbm_to_vmem [thread:$0]  (!%p8325_p4), %s8323_s28, 4096, %s8329_s15, %s8331_s16, %s11122_s1, %s11122_s1, %s11121_s17  }
 0x10d   : > { %s11129_s19 = sld [smem:[#allocation27_spill]] }
 0x113   : > { %p11130_p8 = scmp.ne.s32.totalorder %s11129_s19, 0 }
 0x115   : > { %480 = sbr.rel (%p11130_p8) target bundleno = 2669 (0xa6d), region = 68 }
 0x11c   : > { %s8365_s30 = sand.u32 1, %s7927_s22  }
 0x11d   : > { %s5579_s2 = sshll.u32 %s8365_s30, 8  ;;  %s483_s20 = scalar_lea.sflag [#allocation3], %s8365_s30 }
 0x11e   : > { %s8371_s13 = scalar_lea.vmem [#allocation2], %s5579_s2 }
 0x11f   : > { %7894 = dma.done.wait (%p8305_p2), %s483_s20, 4096  }
 0x120   : > { %7896 = vsyncadd (%p8305_p2), %s483_s20, 4294963200  ;;  %p11131_p6 = scmp.eq.s32.totalorder %s8043_s27, 0 }
 0x122   : > { %7898 = dma.done.wait (%p11131_p6), [#allocation6], 4096   ;;  %p11132_p9 = pmov %p11131_p6 }
 0x123   : > { %p11133_p4 = pmov %p11131_p6 }
 0x124   : > { %7900 = vsyncadd (%p11132_p9), [#allocation6], 4294963200 }
 0x125   : > { %7902 = dma.done.wait (%p11133_p4), [#allocation9], 12288   ;;  %p11134_p3 = pmov %p11133_p4 }
 0x127   : > { %7904 = vsyncadd (%p11134_p3), [#allocation9], 4294955008  ;;  %p11135_p0 = pmov %p11134_p3 }
 0x129   : > { %7906 = dma.done.wait (%p11135_p0), [#allocation12], 12288   ;;  %p11136_p5 = pmov %p11135_p0 }
 0x12a   : > { %p11137_p2 = pmov %p11135_p0 }
 0x12b   : > { %7908 = vsyncadd (%p11136_p5), [#allocation12], 4294955008 }
 0x12c   : > { %7910 = dma.done.wait (%p11137_p2), [#allocation15], 32768   ;;  %p11138_p7 = pmov %p11135_p0 }
 0x12d   : > { %p11139_p10 = pmov %p11135_p0 }
 0x12e   : > { %7912 = vsyncadd (%p11138_p7), [#allocation15], 4294934528 }
 0x12f   : > { %7914 = dma.done.wait (%p11139_p10), [#allocation18], 16384   ;;  %p11140_p1 = pmov %p11135_p0 }
 0x130   : > { %v8398_v0 = vld [vmem:[%s8371_s13] sm:$0xff]  ;;  %v8401_v1 = vld [vmem:[%s8371_s13 + $0x8] sm:$0xff]  ;;  %v8404_v2 = vld [vmem:[%s8371_s13 + $0x10] sm:$0xff]  ;;  %s11142_s12 = sld [smem:[#allocation133_spill]]  ;;  %s7953_s28 = smov 64   ;;  %vm1590_vm0 = vcmask 523264  }
 0x131   : > { %7916 = vsyncadd (%p11140_p1), [#allocation18], 4294950912  ;;  %v595_v3 = vmul.f32 %v8398_v0, %v8398_v0  ;;  %v596_v4 = vmul.f32 %v8401_v1, %v8401_v1  ;;  %v8411_v5 = vld [vmem:[%s8371_s13 + $0x18] sm:$0xff]  ;;  %v597_v6 = vmul.f32 %v8404_v2, %v8404_v2  ;;  %v8416_v7 = vld [vmem:[%s8371_s13 + $0x20] sm:$0xff]  ;;  %s11259_s29 = sld [smem:[#allocation134_spill]]  ;;  %s10831_s18 = scalar_lea.vmem [#allocation19], %s5579_s2 }
 0x132   : > { %v8419_v8 = vld [vmem:[%s8371_s13 + $0x28] sm:$0xff]  ;;  %v598_v9 = vmul.f32 %v8411_v5, %v8411_v5  ;;  %v599_v10 = vmul.f32 %v8416_v7, %v8416_v7  ;;  %v8428_v12 = vld [vmem:[%s8371_s13 + $0x30] sm:$0xff]  ;;  %v8431_v13 = vld [vmem:[%s8371_s13 + $0x38] sm:$0xff]  ;;  %s5660_s26 = sshll.u32 %s8043_s27, 12  ;;  %s5404_s19 = sshll.u32 %s10831_s18, 4  ;;  %s10899_s19 = int_to_ptr.vmem [resolvable:$true] %s5404_s19 }
 0x133   : > { %v600_v11 = vmul.f32 %v8419_v8, %v8419_v8  ;;  %v8434_v14 = vld [vmem:[%s8371_s13 + $0x40] sm:$0xff]  ;;  %v627_v15 = vadd.f32 %v596_v4, %v595_v3  ;;  %v601_v16 = vmul.f32 %v8428_v12, %v8428_v12  ;;  %v602_v17 = vmul.f32 %v8431_v13, %v8431_v13  ;;  %v8441_v18 = vld [vmem:[%s8371_s13 + $0x48] sm:$0xff]  ;;  %v8444_v19 = vld [vmem:[%s8371_s13 + $0x50] sm:$0xff]  ;;  %s5391_s27 = scalar_lea.sflag [#allocation4], %s8365_s30  ;;  %s7849_s1 = scalar_lea.vmem %s10899_s19, 4096 }
 0x134   : > { %v8447_v20 = vld [vmem:[%s8371_s13 + $0x58] sm:$0xff]  ;;  %v630_v22 = vadd.f32 %v598_v9, %v597_v6  ;;  %v603_v23 = vmul.f32 %v8434_v14, %v8434_v14  ;;  %v604_v24 = vmul.f32 %v8441_v18, %v8441_v18  ;;  %v605_v26 = vmul.f32 %v8444_v19, %v8444_v19  ;;  %v8458_v28 = vld [vmem:[%s8371_s13 + $0x60] sm:$0xff]  ;;  %v8461_v29 = vld [vmem:[%s8371_s13 + $0x68] sm:$0xff]  ;;  %p7850_p11 = scmp.ne.s32.totalorder %s10899_s19, %s7849_s1  ;;  %p11437_p12 = scmp.ne.s32.totalorder %s11126_s4, 0 }
 0x135   : > { %v633_v21 = vadd.f32 %v600_v11, %v599_v10  ;;  %628 = vadd.xlane.f32.xlu0 %v627_v15  ;;  %v636_v25 = vadd.f32 %v602_v17, %v601_v16  ;;  %v606_v27 = vmul.f32 %v8447_v20, %v8447_v20  ;;  %v8464_v30 = vld [vmem:[%s8371_s13 + $0x70] sm:$0xff]  ;;  %v8467_v31 = vld [vmem:[%s8371_s13 + $0x78] sm:$0xff]  ;;  %v607_v33 = vmul.f32 %v8458_v28, %v8458_v28  ;;  %v8474_v35 = vld [vmem:[%s8371_s13 + $0x80] sm:$0xff] }
 0x136   : > { %v639_v32 = vadd.f32 %v604_v24, %v603_v23  ;;  %v608_v34 = vmul.f32 %v8461_v29, %v8461_v29  ;;  %v8477_v36 = vld [vmem:[%s8371_s13 + $0x88] sm:$0xff]  ;;  %v609_v38 = vmul.f32 %v8464_v30, %v8464_v30  ;;  %v610_v39 = vmul.f32 %v8467_v31, %v8467_v31  ;;  %v8484_v40 = vld [vmem:[%s8371_s13 + $0x90] sm:$0xff]  ;;  %v8487_v41 = vld [vmem:[%s8371_s13 + $0x98] sm:$0xff]  ;;  %p7851_p13 = pnand %p7850_p11, %p11437_p12 }
 0x137   : > { %634 = vadd.xlane.f32.xlu1 %v633_v21  ;;  %v642_v37 = vadd.f32 %v606_v27, %v605_v26  ;;  %v801_v42 = vld [vmem:[#allocation8 + $0x8] sm:$0xff]  ;;  %v803_v43 = vld [vmem:[#allocation8 + $0x18] sm:$0xff]  ;;  %v800_v44 = vld [vmem:[#allocation8] sm:$0xff]  ;;  %v611_v46 = vmul.f32 %v8474_v35, %v8474_v35  ;;  %v612_v52 = vmul.f32 %v8477_v36, %v8477_v36  ;;  %v613_v59 = vmul.f32 %v8484_v40, %v8484_v40 }
 0x138   : > { %v802_v45 = vld [vmem:[#allocation8 + $0x10] sm:$0xff]  ;;  %v6173_v47 = vpack.c.bf16 %v803_v43, %v801_v42  ;;  %v805_v48 = vld [vmem:[#allocation8 + $0x28] sm:$0xff]  ;;  %v807_v49 = vld [vmem:[#allocation8 + $0x38] sm:$0xff]  ;;  %v645_v51 = vadd.f32 %v608_v34, %v607_v33  ;;  %v648_v58 = vadd.f32 %v610_v39, %v609_v38  ;;  %v614_v60 = vmul.f32 %v8487_v41, %v8487_v41  ;;  %p7852_p8 = pneg %p7851_p13 }
 0x139   : > { %631 = vadd.xlane.f32.xlu0 %v630_v22  ;;  %v804_v50 = vld [vmem:[#allocation8 + $0x20] sm:$0xff]  ;;  %v6175_v53 = vpack.c.bf16 %v802_v45, %v800_v44  ;;  %v6177_v54 = vpack.c.bf16 %v807_v49, %v805_v48  ;;  %v806_v55 = vld [vmem:[#allocation8 + $0x30] sm:$0xff]  ;;  %v809_v56 = vld [vmem:[#allocation8 + $0x48] sm:$0xff]  ;;  %v651_v11 = vadd.f32 %v612_v52, %v611_v46 }
 0x13a   : > { %v811_v57 = vld [vmem:[#allocation8 + $0x58] sm:$0xff]  ;;  %v8498_v61 = vld [vmem:[%s8371_s13 + $0xa0] sm:$0xff]  ;;  %v8501_v62 = vld [vmem:[%s8371_s13 + $0xa8] sm:$0xff]  ;;  %6174 = vmatprep.subr.bf16.mxu0 %v6173_v47  ;;  %v6179_v4 = vpack.c.bf16 %v806_v55, %v804_v50  ;;  %v654_v22 = vadd.f32 %v614_v60, %v613_v59 }
 0x13b   : > { %637 = vadd.xlane.f32.xlu1 %v636_v25  ;;  %v8504_v63 = vld [vmem:[%s8371_s13 + $0xb0] sm:$0xff]  ;;  %v8507_v3 = vld [vmem:[%s8371_s13 + $0xb8] sm:$0xff]  ;;  %6176 = vmatpush1.bf16.msra.mxu0 %v6175_v53  ;;  %v6181_v6 = vpack.c.bf16 %v811_v57, %v809_v56  ;;  %v808_v9 = vld [vmem:[#allocation8 + $0x40] sm:$0xff]  ;;  %v615_v15 = vmul.f32 %v8498_v61, %v8498_v61  ;;  %v616_v16 = vmul.f32 %v8501_v62, %v8501_v62 }
 0x13c   : > { %6178 = vmatprep.subr.bf16.mxu0 %v6177_v54  ;;  %v810_v10 = vld [vmem:[#allocation8 + $0x50] sm:$0xff]  ;;  %v813_v17 = vld [vmem:[#allocation8 + $0x68] sm:$0xff]  ;;  %v815_v21 = vld [vmem:[#allocation8 + $0x78] sm:$0xff]  ;;  %v617_v23 = vmul.f32 %v8504_v63, %v8504_v63  ;;  %v618_v24 = vmul.f32 %v8507_v3, %v8507_v3 }
 0x13d   : > { %640 = vadd.xlane.f32.xlu0 %v639_v32  ;;  %v8518_v25 = vld [vmem:[%s8371_s13 + $0xc0] sm:$0xff]  ;;  %v8521_v26 = vld [vmem:[%s8371_s13 + $0xc8] sm:$0xff]  ;;  %v8524_v27 = vld [vmem:[%s8371_s13 + $0xd0] sm:$0xff]  ;;  %v6183_v33 = vpack.c.bf16 %v810_v10, %v808_v9  ;;  %v657_v42 = vadd.f32 %v616_v16, %v615_v15 }
 0x13e   : > { %v8527_v32 = vld [vmem:[%s8371_s13 + $0xd8] sm:$0xff]  ;;  %v8530_v34 = vld [vmem:[%s8371_s13 + $0xe0] sm:$0xff]  ;;  %v814_v39 = vld [vmem:[#allocation8 + $0x70] sm:$0xff]  ;;  %v619_v43 = vmul.f32 %v8518_v25, %v8518_v25  ;;  %v620_v44 = vmul.f32 %v8521_v26, %v8521_v26  ;;  %v660_v48 = vadd.f32 %v618_v24, %v617_v23  ;;  %v621_v49 = vmul.f32 %v8524_v27, %v8524_v27 }
 0x13f   : > { %643 = vadd.xlane.f32.xlu1 %v642_v37  ;;  %6180 = vmatpush1.bf16.msra.mxu0 %v6179_v4  ;;  %v6185_v37 = vpack.c.bf16 %v815_v21, %v813_v17  ;;  %v812_v38 = vld [vmem:[#allocation8 + $0x60] sm:$0xff]  ;;  %v8537_v45 = vld [vmem:[%s8371_s13 + $0xe8] sm:$0xff]  ;;  %v819_v47 = vld [vmem:[#allocation8 + $0x98] sm:$0xff]  ;;  %v622_v50 = vmul.f32 %v8527_v32, %v8527_v32  ;;  %v623_v59 = vmul.f32 %v8530_v34, %v8530_v34 }
 0x140   : > { %6182 = vmatprep.subr.bf16.mxu0 %v6181_v6  ;;  %v817_v46 = vld [vmem:[#allocation8 + $0x88] sm:$0xff]  ;;  %v1041_v52 = vld [vmem:[#allocation10 + $0x80] sm:$0xff]  ;;  %v8547_v54 = vld [vmem:[%s8371_s13 + $0xf8] sm:$0xff]  ;;  %v6187_v55 = vpack.c.bf16 %v814_v39, %v812_v38  ;;  %v624_v15 = vmul.f32 %v8537_v45, %v8537_v45 }
 0x141   : > { %646 = vadd.xlane.f32.xlu0 %v645_v51  ;;  %v8544_v51 = vld [vmem:[%s8371_s13 + $0xf0] sm:$0xff]  ;;  %v1042_v53 = vld [vmem:[#allocation10 + $0x88] sm:$0xff]  ;;  %v1025_v57 = vld [vmem:[#allocation10] sm:$0xff]  ;;  %v6189_v60 = vpack.c.bf16 %v819_v47, %v817_v46  ;;  %v666_v23 = vadd.f32 %v622_v50, %v621_v49  ;;  %v626_v24 = vmul.f32 %v8547_v54, %v8547_v54 }
 0x142   : > { %v6237_v56 = vpack.c.bf16 %v1042_v53, %v1041_v52  ;;  %v816_v4 = vld [vmem:[#allocation8 + $0x80] sm:$0xff]  ;;  %v818_v6 = vld [vmem:[#allocation8 + $0x90] sm:$0xff]  ;;  %v625_v16 = vmul.f32 %v8544_v51, %v8544_v51  ;;  %v821_v17 = vld [vmem:[#allocation8 + $0xa8] sm:$0xff]  ;;  %v669_v49 = vadd.f32 %v624_v15, %v623_v59 }
 0x143   : > { %649 = vadd.xlane.f32.xlu1 %v648_v58  ;;  %6184 = vmatpush1.bf16.msra.mxu0 %v6183_v33  ;;  %v1026_v58 = vld [vmem:[#allocation10 + $0x8] sm:$0xff]  ;;  %v1043_v10 = vld [vmem:[#allocation10 + $0x90] sm:$0xff]  ;;  %v823_v21 = vld [vmem:[#allocation8 + $0xb8] sm:$0xff]  ;;  %v6191_v39 = vpack.c.bf16 %v818_v6, %v816_v4 }
 0x144   : > { %6186 = vmatprep.subr.bf16.mxu0 %v6185_v37  ;;  %v6239_v9 = vpack.c.bf16 %v1026_v58, %v1025_v57  ;;  %6238 = vmatprep.subr.bf16.mxu1 %v6237_v56  ;;  %v1027_v37 = vld [vmem:[#allocation10 + $0x10] sm:$0xff]  ;;  %v1028_v38 = vld [vmem:[#allocation10 + $0x18] sm:$0xff]  ;;  %v6193_v46 = vpack.c.bf16 %v823_v21, %v821_v17  ;;  %v820_v47 = vld [vmem:[#allocation8 + $0xa0] sm:$0xff]  ;;  %v672_v58 = vadd.f32 %v626_v24, %v625_v16 }
 0x145   : > { %652 = vadd.xlane.f32.xlu0 %v651_v11  ;;  %v663_v11 = vadd.f32 %v620_v44, %v619_v43  ;;  %v1045_v43 = vld [vmem:[#allocation10 + $0xa0] sm:$0xff]  ;;  %v1046_v44 = vld [vmem:[#allocation10 + $0xa8] sm:$0xff]  ;;  %v822_v52 = vld [vmem:[#allocation8 + $0xb0] sm:$0xff] }
 0x146   : > { %6240 = vmatpush3.bf16.msra.mxu1 %v6239_v9  ;;  %v6245_v53 = vpack.c.bf16 %v1046_v44, %v1045_v43  ;;  %v825_v50 = vld [vmem:[#allocation8 + $0xc8] sm:$0xff]  ;;  %v827_v56 = vld [vmem:[#allocation8 + $0xd8] sm:$0xff]  ;;  %v1047_v4 = vld [vmem:[#allocation10 + $0xb0] sm:$0xff]  ;;  %v6195_v9 = vpack.c.bf16 %v822_v52, %v820_v47 }
 0x147   : > { %655 = vadd.xlane.f32.xlu1 %v654_v22  ;;  %v1044_v22 = vld [vmem:[#allocation10 + $0x98] sm:$0xff]  ;;  %6188 = vmatpush1.bf16.msra.mxu0 %v6187_v55  ;;  %v1030_v57 = vld [vmem:[#allocation10 + $0x28] sm:$0xff]  ;;  %v6197_v21 = vpack.c.bf16 %v827_v56, %v825_v50  ;;  %v1049_v59 = vld [vmem:[#allocation10 + $0xc0] sm:$0xff] }
 0x148   : > { %v6241_v33 = vpack.c.bf16 %v1044_v22, %v1043_v10  ;;  %6190 = vmatprep.subr.bf16.mxu0 %v6189_v60  ;;  %v1048_v6 = vld [vmem:[#allocation10 + $0xb8] sm:$0xff]  ;;  %v1031_v10 = vld [vmem:[#allocation10 + $0x30] sm:$0xff]  ;;  %v824_v22 = vld [vmem:[#allocation8 + $0xc0] sm:$0xff] }
 0x149   : > { %658 = vadd.xlane.f32.xlu0 %v657_v42  ;;  %v6243_v42 = vpack.c.bf16 %v1028_v38, %v1027_v37  ;;  %v6249_v60 = vpack.c.bf16 %v1048_v6, %v1047_v4  ;;  %v1032_v17 = vld [vmem:[#allocation10 + $0x38] sm:$0xff]  ;;  %v829_v15 = vld [vmem:[#allocation8 + $0xe8] sm:$0xff]  ;;  %v828_v37 = vld [vmem:[#allocation8 + $0xe0] sm:$0xff] }
 0x14a   : > { %6242 = vmatprep.subr.bf16.mxu1 %v6241_v33  ;;  %v831_v33 = vld [vmem:[#allocation8 + $0xf8] sm:$0xff]  ;;  %v6251_v16 = vpack.c.bf16 %v1032_v17, %v1031_v10  ;;  %v830_v44 = vld [vmem:[#allocation8 + $0xf0] sm:$0xff]  ;;  %v833_v52 = vld [vmem:[#allocation8 + $0x108] sm:$0xff] }
 0x14b   : > { %661 = vadd.xlane.f32.xlu1 %v660_v48  ;;  %v1029_v48 = vld [vmem:[#allocation10 + $0x20] sm:$0xff]  ;;  %6244 = vmatpush3.bf16.msra.mxu1 %v6243_v42  ;;  %v1034_v42 = vld [vmem:[#allocation10 + $0x48] sm:$0xff]  ;;  %v6201_v43 = vpack.c.bf16 %v831_v33, %v829_v15  ;;  %v1052_v47 = vld [vmem:[#allocation10 + $0xd8] sm:$0xff] }
 0x14c   : > { %v6247_v55 = vpack.c.bf16 %v1030_v57, %v1029_v48  ;;  %6192 = vmatpush1.bf16.msra.mxu0 %v6191_v39  ;;  %6246 = vmatprep.subr.bf16.mxu1 %v6245_v53  ;;  %v1033_v39 = vld [vmem:[#allocation10 + $0x40] sm:$0xff]  ;;  %v835_v53 = vld [vmem:[#allocation8 + $0x118] sm:$0xff]  ;;  %v1035_v57 = vld [vmem:[#allocation10 + $0x50] sm:$0xff] }
 0x14d   : > { %664 = vadd.xlane.f32.xlu0 %v663_v11  ;;  %6194 = vmatprep.subr.bf16.mxu0 %v6193_v46  ;;  %v826_v11 = vld [vmem:[#allocation8 + $0xd0] sm:$0xff]  ;;  %v6255_v48 = vpack.c.bf16 %v1034_v42, %v1033_v39  ;;  %v832_v50 = vld [vmem:[#allocation8 + $0x100] sm:$0xff]  ;;  %v839_v10 = vld [vmem:[#allocation8 + $0x138] sm:$0xff] }
 0x14e   : > { %v6199_v24 = vpack.c.bf16 %v826_v11, %v824_v22  ;;  %v1051_v46 = vld [vmem:[#allocation10 + $0xd0] sm:$0xff]  ;;  %v1053_v6 = vld [vmem:[#allocation10 + $0xe0] sm:$0xff]  ;;  %v1038_v15 = vld [vmem:[#allocation10 + $0x68] sm:$0xff] }
 0x14f   : > { %667 = vadd.xlane.f32.xlu1 %v666_v23  ;;  %v1050_v23 = vld [vmem:[#allocation10 + $0xc8] sm:$0xff]  ;;  %6248 = vmatpush3.bf16.msra.mxu1 %v6247_v55  ;;  %v6257_v56 = vpack.c.bf16 %v1052_v47, %v1051_v46  ;;  %v6205_v55 = vpack.c.bf16 %v835_v53, %v833_v52  ;;  %v834_v4 = vld [vmem:[#allocation8 + $0x110] sm:$0xff]  ;;  %v836_v22 = vld [vmem:[#allocation8 + $0x120] sm:$0xff] }
 0x150   : > { %6196 = vmatpush1.bf16.msra.mxu0 %v6195_v9  ;;  %6250 = vmatprep.subr.bf16.mxu1 %v6249_v60  ;;  %v6253_v38 = vpack.c.bf16 %v1050_v23, %v1049_v59  ;;  %v1054_v9 = vld [vmem:[#allocation10 + $0xe8] sm:$0xff]  ;;  %v1037_v59 = vld [vmem:[#allocation10 + $0x60] sm:$0xff]  ;;  %v838_v23 = vld [vmem:[#allocation8 + $0x130] sm:$0xff] }
 0x151   : > { %670 = vadd.xlane.f32.xlu0 %v669_v49  ;;  %6198 = vmatprep.subr.bf16.mxu0 %v6197_v21  ;;  %v6203_v49 = vpack.c.bf16 %v830_v44, %v828_v37  ;;  %v837_v60 = vld [vmem:[#allocation8 + $0x128] sm:$0xff]  ;;  %v6207_v21 = vpack.c.bf16 %v834_v4, %v832_v50  ;;  %v6261_v11 = vpack.c.bf16 %v1054_v9, %v1053_v6  ;;  %v1039_v44 = vld [vmem:[#allocation10 + $0x70] sm:$0xff]  ;;  %v1040_v46 = vld [vmem:[#allocation10 + $0x78] sm:$0xff] }
 0x152   : > { %v6209_v33 = vpack.c.bf16 %v839_v10, %v837_v60  ;;  %v841_v37 = vld [vmem:[#allocation8 + $0x148] sm:$0xff]  ;;  %v6263_v39 = vpack.c.bf16 %v1038_v15, %v1037_v59  ;;  %v6211_v42 = vpack.c.bf16 %v838_v23, %v836_v22  ;;  %v840_v52 = vld [vmem:[#allocation8 + $0x140] sm:$0xff]  ;;  %v842_v53 = vld [vmem:[#allocation8 + $0x150] sm:$0xff]  ;;  %v6267_v50 = vpack.c.bf16 %v1040_v46, %v1039_v44 }
 0x153   : > { %673 = vadd.xlane.f32.xlu1 %v672_v58  ;;  %6252 = vmatpush3.bf16.msra.mxu1 %v6251_v16  ;;  %v1036_v58 = vld [vmem:[#allocation10 + $0x58] sm:$0xff]  ;;  %v1055_v16 = vld [vmem:[#allocation10 + $0xf0] sm:$0xff]  ;;  %v849_v4 = vld [vmem:[#allocation8 + $0x188] sm:$0xff] }
 0x154   : > { %6200 = vmatpush1.bf16.msra.mxu0 %v6199_v24  ;;  %6254 = vmatprep.subr.bf16.mxu1 %v6253_v38  ;;  %v6259_v17 = vpack.c.bf16 %v1036_v58, %v1035_v57  ;;  %v1056_v24 = vld [vmem:[#allocation10 + $0xf8] sm:$0xff]  ;;  %v844_v58 = vld [vmem:[#allocation8 + $0x160] sm:$0xff]  ;;  %v857_v23 = vld [vmem:[#allocation8 + $0x1c8] sm:$0xff] }
 0x155   : > { %6202 = vmatprep.subr.bf16.mxu0 %v6201_v43  ;;  %v843_v38 = vld [vmem:[#allocation8 + $0x158] sm:$0xff]  ;;  %v6265_v43 = vpack.c.bf16 %v1056_v24, %v1055_v16  ;;  %v848_v10 = vld [vmem:[#allocation8 + $0x180] sm:$0xff] }
 0x156   : > { %v6213_v47 = vpack.c.bf16 %v843_v38, %v841_v37  ;;  %v851_v6 = vld [vmem:[#allocation8 + $0x198] sm:$0xff]  ;;  %v852_v15 = vld [vmem:[#allocation8 + $0x1a0] sm:$0xff] }
 0x157   : > { %6256 = vmatpush3.bf16.msra.mxu1 %v6255_v48  ;;  %v845_v48 = vld [vmem:[#allocation8 + $0x168] sm:$0xff]  ;;  %v6221_v60 = vpack.c.bf16 %v851_v6, %v849_v4  ;;  %v855_v22 = vld [vmem:[#allocation8 + $0x1b8] sm:$0xff]  ;;  %v856_v38 = vld [vmem:[#allocation8 + $0x1c0] sm:$0xff]  ;;  %v10975_v4 = vlaneseq }
 0x158   : > { %6204 = vmatpush1.bf16.msra.mxu0 %v6203_v49  ;;  %6258 = vmatprep.subr.bf16.mxu1 %v6257_v56  ;;  %v847_v49 = vld [vmem:[#allocation8 + $0x178] sm:$0xff]  ;;  %v6215_v56 = vpack.c.bf16 %v842_v53, %v840_v52  ;;  %v860_v46 = vld [vmem:[#allocation8 + $0x1e0] sm:$0xff]  ;;  %v862_v52 = vld [vmem:[#allocation8 + $0x1f0] sm:$0xff] }
 0x159   : > { %6206 = vmatprep.subr.bf16.mxu0 %v6205_v55  ;;  %v6217_v57 = vpack.c.bf16 %v847_v49, %v845_v48  ;;  %v846_v55 = vld [vmem:[#allocation8 + $0x170] sm:$0xff]  ;;  %v859_v16 = vld [vmem:[#allocation8 + $0x1d8] sm:$0xff]  ;;  %v1218_v53 = vld [vmem:[#allocation11 + $0x80] sm:$0xff] }
 0x15a   : > { %v6219_v9 = vpack.c.bf16 %v846_v55, %v844_v58  ;;  %v6229_v37 = vpack.c.bf16 %v859_v16, %v857_v23  ;;  %v1219_v48 = vld [vmem:[#allocation11 + $0x88] sm:$0xff] }
 0x15b   : > { %6260 = vmatpush3.bf16.msra.mxu1 %v6259_v17  ;;  %v850_v17 = vld [vmem:[#allocation8 + $0x190] sm:$0xff]  ;;  %v6269_v49 = vpack.c.bf16 %v1219_v48, %v1218_v53  ;;  %v1202_v48 = vld [vmem:[#allocation11] sm:$0xff] }
 0x15c   : > { %6208 = vmatpush1.bf16.msra.mxu0 %v6207_v21  ;;  %6262 = vmatprep.subr.bf16.mxu1 %v6261_v11  ;;  %v853_v21 = vld [vmem:[#allocation8 + $0x1a8] sm:$0xff]  ;;  %v6223_v11 = vpack.c.bf16 %v850_v17, %v848_v10 }
 0x15d   : > { %6210 = vmatprep.subr.bf16.mxu0 %v6209_v33  ;;  %v6225_v59 = vpack.c.bf16 %v855_v22, %v853_v21  ;;  %v854_v33 = vld [vmem:[#allocation8 + $0x1b0] sm:$0xff]  ;;  %v8558_v22 = vshrl.u32 %v10975_v4, 7 }
 0x15e   : > { %v6227_v24 = vpack.c.bf16 %v854_v33, %v852_v15 }
 0x15f   : > { %6264 = vmatpush3.bf16.msra.mxu1 %v6263_v39  ;;  %v858_v39 = vld [vmem:[#allocation8 + $0x1d0] sm:$0xff]  ;;  %11141 = vst [vmem:[#allocation28_spill] sm:$0xff] %v8558_v22 }
 0x160   : > { %6212 = vmatpush1.bf16.msra.mxu0 %v6211_v42  ;;  %6266 = vmatprep.subr.bf16.mxu1 %v6265_v43  ;;  %v861_v42 = vld [vmem:[#allocation8 + $0x1e8] sm:$0xff]  ;;  %v863_v43 = vld [vmem:[#allocation8 + $0x1f8] sm:$0xff]  ;;  %v6231_v44 = vpack.c.bf16 %v858_v39, %v856_v38  ;;  %v756_v39 = vld [vmem:[%s11142_s12] sm:$0x3]  ;;  %s7954_s12 = smov [#allocation19]  }
 0x161   : > { %6214 = vmatprep.subr.bf16.mxu0 %v6213_v47  ;;  %v6233_v47 = vpack.c.bf16 %v863_v43, %v861_v42 }
 0x163   : > { %6268 = vmatpush3.bf16.msra.mxu1 %v6267_v50  ;;  %v6235_v50 = vpack.c.bf16 %v862_v52, %v860_v46 }
 0x164   : > { %6216 = vmatpush1.bf16.msra.mxu0 %v6215_v56  ;;  %6270 = vmatprep.subr.bf16.mxu1 %v6269_v49  ;;  %v1203_v49 = vld [vmem:[#allocation11 + $0x8] sm:$0xff] }
 0x165   : > { %6218 = vmatprep.subr.bf16.mxu0 %v6217_v57 }
 0x168   : > { %6220 = vmatpush1.bf16.msra.mxu0 %v6219_v9 }
 0x169   : > { %6222 = vmatprep.subr.bf16.mxu0 %v6221_v60 }
 0x16c   : > { %6224 = vmatpush1.bf16.msra.mxu0 %v6223_v11 }
 0x16d   : > { %6226 = vmatprep.subr.bf16.mxu0 %v6225_v59 }
 0x170   : > { %6228 = vmatpush1.bf16.msra.mxu0 %v6227_v24  ;;  %v10973_v24 = vsub.s32 1, %v8558_v22 }
 0x171   : > { %6230 = vmatprep.subr.bf16.mxu0 %v6229_v37  ;;  %v10974_v37 = vsub.s32 0, %v8558_v22 }
 0x172   : > { %v8567_v46 = vrot.slane %v756_v39, %v10973_v24 }
 0x174   : > { %6232 = vmatpush1.bf16.msra.mxu0 %v6231_v44 }
 0x175   : > { %6234 = vmatprep.subr.bf16.mxu0 %v6233_v47  ;;  %v8571_v47 = vrot.slane %v756_v39, %v10974_v37 }
 0x178   : > { %6236 = vmatpush1.bf16.msra.mxu0 %v6235_v50 }
 0x1c2   : > { %v629_v56 = vpop.xlane.xlu0 %628 }
 0x1c3   : > { %v676_v57 = vmul.f32 0.00390625, %v629_v56 }
 0x1c4   : > { %v635_v58 = vpop.xlane.xlu1 %634 }
 0x1c5   : > { %v678_v55 = vmul.f32 0.00390625, %v635_v58  ;;  %v692_v6 = vadd.f32 1e-06, %v676_v57  ;;  %v1220_v58 = vld [vmem:[#allocation11 + $0x90] sm:$0xff] }
 0x1c6   : > { %v632_v9 = vpop.xlane.xlu0 %631 }
 0x1c7   : > { %v694_v60 = vadd.f32 1e-06, %v678_v55  ;;  %7087 = vrsqrt.f32 %v692_v6  ;;  %v677_v10 = vmul.f32 0.00390625, %v632_v9  ;;  %v1221_v55 = vld [vmem:[#allocation11 + $0x98] sm:$0xff] }
 0x1c8   : > { %v638_v17 = vpop.xlane.xlu1 %637 }
 0x1c9   : > { %7089 = vrsqrt.f32 %v694_v60  ;;  %v679_v21 = vmul.f32 0.00390625, %v638_v17  ;;  %v693_v11 = vadd.f32 1e-06, %v677_v10 }
 0x1ca   : > { %v641_v15 = vpop.xlane.xlu0 %640 }
 0x1cb   : > { %v695_v59 = vadd.f32 1e-06, %v679_v21  ;;  %7091 = vrsqrt.f32 %v693_v11  ;;  %v680_v33 = vmul.f32 0.00390625, %v641_v15  ;;  %v6271_v11 = vpack.c.bf16 %v1203_v49, %v1202_v48 }
 0x1cc   : > { %v644_v23 = vpop.xlane.xlu1 %643  ;;  %v6273_v15 = vpack.c.bf16 %v1221_v55, %v1220_v58 }
 0x1cd   : > { %7093 = vrsqrt.f32 %v695_v59  ;;  %v681_v16 = vmul.f32 0.00390625, %v644_v23  ;;  %v696_v38 = vadd.f32 1e-06, %v680_v33  ;;  %v1204_v23 = vld [vmem:[#allocation11 + $0x10] sm:$0xff] }
 0x1ce   : > { %v647_v42 = vpop.xlane.xlu0 %646 }
 0x1cf   : > { %7095 = vrsqrt.f32 %v696_v38  ;;  %v697_v43 = vadd.f32 1e-06, %v681_v16  ;;  %v682_v44 = vmul.f32 0.00390625, %v647_v42  ;;  %v1205_v16 = vld [vmem:[#allocation11 + $0x18] sm:$0xff] }
 0x1d0   : > { %v650_v52 = vpop.xlane.xlu1 %649  ;;  %v6275_v49 = vpack.c.bf16 %v1205_v16, %v1204_v23  ;;  %v1208_v23 = vld [vmem:[#allocation11 + $0x30] sm:$0xff] }
 0x1d1   : > { %v7088_v53 = vpop.eup %7087  ;;  %7097 = vrsqrt.f32 %v697_v43  ;;  %v698_v6 = vadd.f32 1e-06, %v682_v44  ;;  %v683_v9 = vmul.f32 0.00390625, %v650_v52  ;;  %v1222_v43 = vld [vmem:[#allocation11 + $0xa0] sm:$0xff]  ;;  %v1223_v44 = vld [vmem:[#allocation11 + $0xa8] sm:$0xff] }
 0x1d2   : > { %v725_v56 = vmul.f32 %v7088_v53, %v8401_v1  ;;  %v724_v57 = vmul.f32 %v7088_v53, %v8398_v0  ;;  %v653_v21 = vpop.xlane.xlu0 %652 }
 0x1d3   : > { %v7090_v50 = vpop.eup %7089  ;;  %7099 = vrsqrt.f32 %v698_v6  ;;  %v684_v39 = vmul.f32 0.00390625, %v653_v21  ;;  %v1224_v6 = vld [vmem:[#allocation11 + $0xb0] sm:$0xff] }
 0x1d4   : > { %v8576_v60 = vmul.f32 %v8567_v46, %v725_v56  ;;  %v8579_v10 = vmul.f32 %v8571_v47, %v724_v57  ;;  %v729_v17 = vmul.f32 %v7090_v50, %v8419_v8  ;;  %v699_v8 = vadd.f32 1e-06, %v683_v9  ;;  %v656_v42 = vpop.xlane.xlu1 %655  ;;  %v1206_v56 = vld [vmem:[#allocation11 + $0x20] sm:$0xff]  ;;  %v1207_v57 = vld [vmem:[#allocation11 + $0x28] sm:$0xff]  ;;  %v1225_v9 = vld [vmem:[#allocation11 + $0xb8] sm:$0xff] }
 0x1d5   : > { %v7092_v59 = vpop.eup %7091  ;;  %v728_v38 = vmul.f32 %v7090_v50, %v8416_v7  ;;  %v685_v7 = vmul.f32 0.00390625, %v656_v42  ;;  %v6277_v50 = vpack.c.bf16 %v1223_v44, %v1222_v43 }
 0x1d6   : > { %928 = vmatprep.mubr.f32.mxu0 %v8576_v60  ;;  %1121 = vmatprep.mubr.f32.mxu1 %v8576_v60  ;;  %v727_v0 = vmul.f32 %v7092_v59, %v8411_v5  ;;  %v726_v33 = vmul.f32 %v7092_v59, %v8404_v2  ;;  %v8596_v2 = vmul.f32 %v8567_v46, %v729_v17  ;;  %7101 = vrsqrt.f32 %v699_v8 }
 0x1d7   : > { %v7094_v1 = vpop.eup %7093  ;;  %929 = vmatmul.mubr.f32.vlgmr.msra.gmra.mrb[0].mxu0 %v8579_v10  ;;  %1122 = vmatmul.mubr.f32.vlgmr.msra.gmra.mrb[0].mxu1 %v8579_v10  ;;  %v8604_v58 = vmul.f32 %v8571_v47, %v728_v38  ;;  %v1226_v38 = vld [vmem:[#allocation11 + $0xc0] sm:$0xff] }
 0x1d8   : > { %v8590_v52 = vmul.f32 %v8567_v46, %v727_v0  ;;  %v8593_v5 = vmul.f32 %v8571_v47, %v726_v33  ;;  %v731_v53 = vmul.f32 %v7094_v1, %v8431_v13  ;;  %6272 = vmatpush3.bf16.msra.mxu1 %v6271_v11  ;;  %v700_v13 = vadd.f32 1e-06, %v684_v39  ;;  %v659_v11 = vpop.xlane.xlu0 %658  ;;  %v662_v8 = vpop.xlane.xlu1 %661  ;;  %v1227_v39 = vld [vmem:[#allocation11 + $0xc8] sm:$0xff] }
 0x1d9   : > { %v7096_v48 = vpop.eup %7095  ;;  %6274 = vmatprep.subr.bf16.mxu1 %v6273_v15  ;;  %v730_v55 = vmul.f32 %v7094_v1, %v8428_v12  ;;  %v6279_v15 = vpack.c.bf16 %v1207_v57, %v1206_v56  ;;  %v701_v0 = vadd.f32 1e-06, %v685_v7  ;;  %v6281_v33 = vpack.c.bf16 %v1225_v9, %v1224_v6  ;;  %v1209_v12 = vld [vmem:[#allocation11 + $0x38] sm:$0xff] }
 0x1da   : > { %1126 = vmatprep.mubr.f32.mxu1 %v8590_v52  ;;  %934 = vmatprep.mubr.f32.mxu0 %v8590_v52  ;;  %v8610_v17 = vmul.f32 %v8567_v46, %v731_v53  ;;  %v733_v21 = vmul.f32 %v7096_v48, %v8441_v18  ;;  %7103 = vrsqrt.f32 %v700_v13  ;;  %v732_v16 = vmul.f32 %v7096_v48, %v8434_v14  ;;  %v1210_v14 = vld [vmem:[#allocation11 + $0x40] sm:$0xff]  ;;  %v1211_v48 = vld [vmem:[#allocation11 + $0x48] sm:$0xff]  ;;  %v1229_v13 = vld [vmem:[#allocation11 + $0xd8] sm:$0xff] }
 0x1db   : > { %1127 = vmatmul.mubr.f32.gmra.mrb[2].mxu1 %v8593_v5  ;;  %935 = vmatmul.mubr.f32.gmra.mrb[2].mxu0 %v8593_v5  ;;  %v7098_v59 = vpop.eup %7097  ;;  %v8616_v1 = vmul.f32 %v8571_v47, %v730_v55  ;;  %v686_v18 = vmul.f32 0.00390625, %v659_v11  ;;  %v6283_v53 = vpack.c.bf16 %v1209_v12, %v1208_v23  ;;  %v6285_v7 = vpack.c.bf16 %v1227_v39, %v1226_v38 }
 0x1dc   : > { %1131 = vmatprep.mubr.f32.mxu1 %v8596_v2  ;;  %940 = vmatprep.mubr.f32.mxu0 %v8596_v2  ;;  %v8621_v42 = vmul.f32 %v8567_v46, %v733_v21  ;;  %v735_v43 = vmul.f32 %v7098_v59, %v8447_v20  ;;  %7105 = vrsqrt.f32 %v701_v0  ;;  %v734_v57 = vmul.f32 %v7098_v59, %v8444_v19  ;;  %v1228_v20 = vld [vmem:[#allocation11 + $0xd0] sm:$0xff]  ;;  %v665_v9 = vpop.xlane.xlu0 %664  ;;  %v1213_v0 = vld [vmem:[#allocation11 + $0x58] sm:$0xff]  ;;  %v668_v12 = vpop.xlane.xlu1 %667 }
 0x1dd   : > { %6276 = vmatpush3.bf16.msra.mxu1 %v6275_v49  ;;  %v7100_v44 = vpop.eup %7099  ;;  %v687_v49 = vmul.f32 0.00390625, %v662_v8  ;;  %v702_v56 = vadd.f32 1e-06, %v686_v18  ;;  %v6287_v11 = vpack.c.bf16 %v1211_v48, %v1210_v14  ;;  %v6289_v19 = vpack.c.bf16 %v1229_v13, %v1228_v20  ;;  %v1212_v59 = vld [vmem:[#allocation11 + $0x50] sm:$0xff]  ;;  %v1231_v18 = vld [vmem:[#allocation11 + $0xe8] sm:$0xff] }
 0x1de   : > { %6278 = vmatprep.subr.bf16.mxu1 %v6277_v50  ;;  %v8627_v50 = vmul.f32 %v8571_v47, %v732_v16  ;;  %v8633_v55 = vmul.f32 %v8567_v46, %v735_v43  ;;  %v737_v6 = vmul.f32 %v7100_v44, %v8461_v29  ;;  %v736_v23 = vmul.f32 %v7100_v44, %v8458_v28  ;;  %v1230_v16 = vld [vmem:[#allocation11 + $0xe0] sm:$0xff] }
 0x1df   : > { %1132 = vmatmul.mubr.f32.gmra.mrb[4].mxu1 %v8604_v58  ;;  %941 = vmatmul.mubr.f32.gmra.mrb[4].mxu0 %v8604_v58  ;;  %7107 = vrsqrt.f32 %v702_v56  ;;  %v688_v29 = vmul.f32 0.00390625, %v665_v9  ;;  %v6291_v43 = vpack.c.bf16 %v1213_v0, %v1212_v59  ;;  %v6293_v28 = vpack.c.bf16 %v1231_v18, %v1230_v16  ;;  %v1214_v44 = vld [vmem:[#allocation11 + $0x60] sm:$0xff]  ;;  %v1233_v56 = vld [vmem:[#allocation11 + $0xf8] sm:$0xff] }
 0x1e0   : > { %1136 = vmatprep.mubr.f32.mxu1 %v8610_v17  ;;  %946 = vmatprep.mubr.f32.mxu0 %v8610_v17  ;;  %v7102_v21 = vpop.eup %7101  ;;  %v8645_v8 = vmul.f32 %v8567_v46, %v737_v6  ;;  %v671_v13 = vpop.xlane.xlu0 %670 }
 0x1e1   : > { %6280 = vmatpush3.bf16.msra.mxu1 %v6279_v15  ;;  %v703_v15 = vadd.f32 1e-06, %v687_v49  ;;  %v739_v38 = vmul.f32 %v7102_v21, %v8467_v31  ;;  %v1215_v49 = vld [vmem:[#allocation11 + $0x68] sm:$0xff]  ;;  %v704_v14 = vadd.f32 1e-06, %v688_v29  ;;  %v738_v48 = vmul.f32 %v7102_v21, %v8464_v30  ;;  %v1232_v31 = vld [vmem:[#allocation11 + $0xf0] sm:$0xff]  ;;  %v674_v29 = vpop.xlane.xlu1 %673 }
 0x1e2   : > { %6282 = vmatprep.subr.bf16.mxu1 %v6281_v33  ;;  %v8639_v33 = vmul.f32 %v8571_v47, %v734_v57  ;;  %v6295_v9 = vpack.c.bf16 %v1215_v49, %v1214_v44  ;;  %v6297_v30 = vpack.c.bf16 %v1233_v56, %v1232_v31  ;;  %v1216_v21 = vld [vmem:[#allocation11 + $0x70] sm:$0xff] }
 0x1e3   : > { %1137 = vmatmul.mubr.f32.gmra.mrb[6].mxu1 %v8616_v1  ;;  %947 = vmatmul.mubr.f32.gmra.mrb[6].mxu0 %v8616_v1  ;;  %7109 = vrsqrt.f32 %v703_v15  ;;  %v8657_v57 = vmul.f32 %v8567_v46, %v739_v38  ;;  %v1217_v15 = vld [vmem:[#allocation11 + $0x78] sm:$0xff] }
 0x1e4   : > { %1141 = vmatprep.mubr.f32.mxu1 %v8621_v42  ;;  %952 = vmatprep.mubr.f32.mxu0 %v8621_v42  ;;  %v7104_v39 = vpop.eup %7103  ;;  %7111 = vrsqrt.f32 %v704_v14  ;;  %v6299_v16 = vpack.c.bf16 %v1217_v15, %v1216_v21 }
 0x1e5   : > { %6284 = vmatpush3.bf16.msra.mxu1 %v6283_v53  ;;  %v689_v53 = vmul.f32 0.00390625, %v668_v12  ;;  %v741_v20 = vmul.f32 %v7104_v39, %v8477_v36  ;;  %v740_v59 = vmul.f32 %v7104_v39, %v8474_v35  ;;  %v690_v36 = vmul.f32 0.00390625, %v671_v13 }
 0x1e6   : > { %6286 = vmatprep.subr.bf16.mxu1 %v6285_v7  ;;  %v8651_v7 = vmul.f32 %v8571_v47, %v736_v23  ;;  %v7106_v6 = vpop.eup %7105  ;;  %v691_v39 = vmul.f32 0.00390625, %v674_v29 }
 0x1e7   : > { %1142 = vmatmul.mubr.f32.gmra.mrb[8].mxu1 %v8627_v50  ;;  %953 = vmatmul.mubr.f32.gmra.mrb[8].mxu0 %v8627_v50  ;;  %v8669_v0 = vmul.f32 %v8567_v46, %v741_v20  ;;  %v743_v23 = vmul.f32 %v7106_v6, %v8487_v41  ;;  %v8675_v35 = vmul.f32 %v8571_v47, %v740_v59  ;;  %v706_v18 = vadd.f32 1e-06, %v690_v36 }
 0x1e8   : > { %1146 = vmatprep.mubr.f32.mxu1 %v8633_v55  ;;  %958 = vmatprep.mubr.f32.mxu0 %v8633_v55  ;;  %v742_v38 = vmul.f32 %v7106_v6, %v8484_v40  ;;  %v707_v40 = vadd.f32 1e-06, %v691_v39 }
 0x1e9   : > { %6288 = vmatpush3.bf16.msra.mxu1 %v6287_v11  ;;  %v705_v11 = vadd.f32 1e-06, %v689_v53  ;;  %v7108_v12 = vpop.eup %7107  ;;  %v8681_v41 = vmul.f32 %v8567_v46, %v743_v23 }
 0x1ea   : > { %6290 = vmatprep.subr.bf16.mxu1 %v6289_v19  ;;  %v8663_v19 = vmul.f32 %v8571_v47, %v738_v48  ;;  %v744_v44 = vmul.f32 %v7108_v12, %v8498_v61 }
 0x1eb   : > { %1147 = vmatmul.mubr.f32.gmra.mrb[10].mxu1 %v8639_v33  ;;  %959 = vmatmul.mubr.f32.gmra.mrb[10].mxu0 %v8639_v33  ;;  %7113 = vrsqrt.f32 %v705_v11 }
 0x1ec   : > { %1151 = vmatprep.mubr.f32.mxu1 %v8645_v8  ;;  %964 = vmatprep.mubr.f32.mxu0 %v8645_v8  ;;  %7115 = vrsqrt.f32 %v706_v18  ;;  %v8699_v48 = vmul.f32 %v8571_v47, %v744_v44 }
 0x1ed   : > { %6292 = vmatpush3.bf16.msra.mxu1 %v6291_v43  ;;  %v745_v43 = vmul.f32 %v7108_v12, %v8501_v62  ;;  %v7110_v53 = vpop.eup %7109  ;;  %7117 = vrsqrt.f32 %v707_v40 }
 0x1ee   : > { %6294 = vmatprep.subr.bf16.mxu1 %v6293_v28  ;;  %v8687_v28 = vmul.f32 %v8571_v47, %v742_v38  ;;  %v747_v62 = vmul.f32 %v7110_v53, %v8507_v3  ;;  %v7112_v14 = vpop.eup %7111  ;;  %v746_v61 = vmul.f32 %v7110_v53, %v8504_v63  ;;  %v8799_v38 = vld [vmem:[#allocation5 + $0x18] sm:$0xff] }
 0x1ef   : > { %1152 = vmatmul.mubr.f32.gmra.mrb[12].mxu1 %v8651_v7  ;;  %965 = vmatmul.mubr.f32.gmra.mrb[12].mxu0 %v8651_v7  ;;  %v8693_v49 = vmul.f32 %v8567_v46, %v745_v43  ;;  %v749_v3 = vmul.f32 %v7112_v14, %v8521_v26  ;;  %v748_v13 = vmul.f32 %v7112_v14, %v8518_v25 }
 0x1f0   : > { %1156 = vmatprep.mubr.f32.mxu1 %v8657_v57  ;;  %970 = vmatprep.mubr.f32.mxu0 %v8657_v57  ;;  %v8705_v56 = vmul.f32 %v8567_v46, %v747_v62  ;;  %v790_v20 = vmul.f32 %v8571_v47, %v746_v61  ;;  %v8816_v62 = vld [vmem:[#allocation5 + $0x20] sm:$0xff] }
 0x1f1   : > { %6296 = vmatpush3.bf16.msra.mxu1 %v6295_v9  ;;  %v793_v63 = vmul.f32 %v8567_v46, %v749_v3  ;;  %v792_v26 = vmul.f32 %v8571_v47, %v748_v13  ;;  %v8832_v13 = vld [vmem:[#allocation5 + $0x28] sm:$0xff] }
 0x1f2   : > { %6298 = vmatprep.subr.bf16.mxu1 %v6297_v30 }
 0x1f3   : > { %1157 = vmatmul.mubr.f32.gmra.mrb[14].mxu1 %v8663_v19  ;;  %971 = vmatmul.mubr.f32.gmra.mrb[14].mxu0 %v8663_v19 }
 0x1f4   : > { %1161 = vmatprep.mubr.f32.mxu1 %v8669_v0  ;;  %976 = vmatprep.mubr.f32.mxu0 %v8669_v0 }
 0x1f5   : > { %6300 = vmatpush3.bf16.msra.mxu1 %v6299_v16  ;;  %v7114_v31 = vpop.eup %7113 }
 0x1f6   : > { %v751_v6 = vmul.f32 %v7114_v31, %v8527_v32  ;;  %v7116_v9 = vpop.eup %7115  ;;  %v750_v11 = vmul.f32 %v7114_v31, %v8524_v27 }
 0x1f7   : > { %1162 = vmatmul.mubr.f32.gmra.mrb[16].mxu1 %v8675_v35  ;;  %977 = vmatmul.mubr.f32.gmra.mrb[16].mxu0 %v8675_v35  ;;  %v753_v30 = vmul.f32 %v7116_v9, %v8537_v45  ;;  %v7118_v21 = vpop.eup %7117  ;;  %v752_v32 = vmul.f32 %v7116_v9, %v8530_v34 }
 0x1f8   : > { %1166 = vmatprep.mubr.f32.mxu1 %v8681_v41  ;;  %982 = vmatprep.mubr.f32.mxu0 %v8681_v41  ;;  %v795_v25 = vmul.f32 %v8567_v46, %v751_v6  ;;  %v794_v15 = vmul.f32 %v8571_v47, %v750_v11  ;;  %v755_v36 = vmul.f32 %v7118_v21, %v8547_v54 }
 0x1f9   : > { %v797_v59 = vmul.f32 %v8567_v46, %v753_v30  ;;  %v796_v27 = vmul.f32 %v8571_v47, %v752_v32  ;;  %v754_v23 = vmul.f32 %v7118_v21, %v8544_v51  ;;  %v8752_v51 = vld [vmem:[#allocation5] sm:$0xff] }
 0x1fa   : > { %v799_v45 = vmul.f32 %v8567_v46, %v755_v36 }
 0x1fb   : > { %1167 = vmatmul.mubr.f32.gmra.mrb[18].mxu1 %v8687_v28  ;;  %983 = vmatmul.mubr.f32.gmra.mrb[18].mxu0 %v8687_v28  ;;  %v798_v34 = vmul.f32 %v8571_v47, %v754_v23 }
 0x1fc   : > { %1171 = vmatprep.mubr.f32.mxu1 %v8693_v49  ;;  %988 = vmatprep.mubr.f32.mxu0 %v8693_v49 }
 0x1ff   : > { %1172 = vmatmul.mubr.f32.gmra.mrb[20].mxu1 %v8699_v48  ;;  %989 = vmatmul.mubr.f32.gmra.mrb[20].mxu0 %v8699_v48 }
 0x200   : > { %1176 = vmatprep.mubr.f32.mxu1 %v8705_v56  ;;  %994 = vmatprep.mubr.f32.mxu0 %v8705_v56 }
 0x203   : > { %1177 = vmatmul.mubr.f32.gmra.mrb[22].mxu1 %v790_v20  ;;  %995 = vmatmul.mubr.f32.gmra.mrb[22].mxu0 %v790_v20 }
 0x204   : > { %1181 = vmatprep.mubr.f32.mxu1 %v793_v63  ;;  %1000 = vmatprep.mubr.f32.mxu0 %v793_v63 }
 0x207   : > { %1182 = vmatmul.mubr.f32.gmra.mrb[24].mxu1 %v792_v26  ;;  %1001 = vmatmul.mubr.f32.gmra.mrb[24].mxu0 %v792_v26 }
 0x208   : > { %1186 = vmatprep.mubr.f32.mxu1 %v795_v25  ;;  %1006 = vmatprep.mubr.f32.mxu0 %v795_v25 }
 0x20b   : > { %1187 = vmatmul.mubr.f32.gmra.mrb[26].mxu1 %v794_v15  ;;  %1007 = vmatmul.mubr.f32.gmra.mrb[26].mxu0 %v794_v15 }
 0x20c   : > { %1191 = vmatprep.mubr.f32.mxu1 %v797_v59  ;;  %1012 = vmatprep.mubr.f32.mxu0 %v797_v59 }
 0x20f   : > { %1192 = vmatmul.mubr.f32.gmra.mrb[28].mxu1 %v796_v27  ;;  %1013 = vmatmul.mubr.f32.gmra.mrb[28].mxu0 %v796_v27 }
 0x210   : > { %1196 = vmatprep.mubr.f32.mxu1 %v799_v45  ;;  %1018 = vmatprep.mubr.f32.mxu0 %v799_v45 }
 0x213   : > { %1197 = vmatmul.mubr.f32.gmra.mrb[30].mxu1 %v798_v34  ;;  %1019 = vmatmul.mubr.f32.gmra.mrb[30].mxu0 %v798_v34 }
 0x214   : > { %1298 = vmatprep.mubr.f32.mxu1 %v8576_v60 }
 0x217   : > { %1299 = vmatmul.mubr.f32.vlgmr.msra.gmra.mrb[32].mxu1 %v8579_v10 }
 0x218   : > { %1303 = vmatprep.mubr.f32.mxu1 %v8590_v52 }
 0x21b   : > { %1304 = vmatmul.mubr.f32.gmra.mrb[34].mxu1 %v8593_v5 }
 0x21c   : > { %1308 = vmatprep.mubr.f32.mxu1 %v8596_v2  ;;  %v8767_v2 = vld [vmem:[#allocation5 + $0x8] sm:$0xff] }
 0x21f   : > { %1309 = vmatmul.mubr.f32.gmra.mrb[36].mxu1 %v8604_v58 }
 0x220   : > { %1313 = vmatprep.mubr.f32.mxu1 %v8610_v17 }
 0x223   : > { %1314 = vmatmul.mubr.f32.gmra.mrb[38].mxu1 %v8616_v1 }
 0x224   : > { %1318 = vmatprep.mubr.f32.mxu1 %v8621_v42 }
 0x227   : > { %1319 = vmatmul.mubr.f32.gmra.mrb[40].mxu1 %v8627_v50 }
 0x228   : > { %1323 = vmatprep.mubr.f32.mxu1 %v8633_v55 }
 0x22b   : > { %1324 = vmatmul.mubr.f32.gmra.mrb[42].mxu1 %v8639_v33 }
 0x22c   : > { %1328 = vmatprep.mubr.f32.mxu1 %v8645_v8 }
 0x22f   : > { %1329 = vmatmul.mubr.f32.gmra.mrb[44].mxu1 %v8651_v7  ;;  %v8784_v7 = vld [vmem:[#allocation5 + $0x10] sm:$0xff] }
 0x230   : > { %1333 = vmatprep.mubr.f32.mxu1 %v8657_v57 }
 0x233   : > { %1334 = vmatmul.mubr.f32.gmra.mrb[46].mxu1 %v8663_v19 }
 0x234   : > { %1338 = vmatprep.mubr.f32.mxu1 %v8669_v0 }
 0x237   : > { %1339 = vmatmul.mubr.f32.gmra.mrb[48].mxu1 %v8675_v35 }
 0x238   : > { %1343 = vmatprep.mubr.f32.mxu1 %v8681_v41 }
 0x23b   : > { %1344 = vmatmul.mubr.f32.gmra.mrb[50].mxu1 %v8687_v28 }
 0x23c   : > { %1348 = vmatprep.mubr.f32.mxu1 %v8693_v49 }
 0x23f   : > { %1349 = vmatmul.mubr.f32.gmra.mrb[52].mxu1 %v8699_v48 }
 0x240   : > { %1353 = vmatprep.mubr.f32.mxu1 %v8705_v56 }
 0x243   : > { %1354 = vmatmul.mubr.f32.gmra.mrb[54].mxu1 %v790_v20 }
 0x244   : > { %1358 = vmatprep.mubr.f32.mxu1 %v793_v63 }
 0x247   : > { %1359 = vmatmul.mubr.f32.gmra.mrb[56].mxu1 %v792_v26 }
 0x248   : > { %1363 = vmatprep.mubr.f32.mxu1 %v795_v25 }
 0x24b   : > { %1364 = vmatmul.mubr.f32.gmra.mrb[58].mxu1 %v794_v15  ;;  %v8847_v15 = vld [vmem:[#allocation5 + $0x30] sm:$0xff] }
 0x24c   : > { %1368 = vmatprep.mubr.f32.mxu1 %v797_v59 }
 0x24f   : > { %1369 = vmatmul.mubr.f32.gmra.mrb[60].mxu1 %v796_v27 }
 0x250   : > { %1373 = vmatprep.mubr.f32.mxu1 %v799_v45 }
 0x253   : > { %1374 = vmatmul.mubr.f32.gmra.mrb[62].mxu1 %v798_v34 }
 0x2aa   : > { %v8754_v54 = vpop.f32.mrb[0].mxu0  ;;  %v5693_v46 = vpop.f32.mrb[0].mxu1 }
 0x2ab   : > { %v1655_v47 = vsub.f32 0.0, %v8754_v54  ;;  %v5694_v60 = vpop.f32.mrb[1].mxu1  ;;  %1751 = vrot.lane.b32.xlu1 %v8754_v54, %s7953_s28  ;;  %v8759_v10 = vpop.f32.mrb[1].mxu0 }
 0x2ac   : > { %v8761_v52 = vadd.f32 %v5694_v60, %v5693_v46  ;;  %v8765_v5 = vmul.f32 %v8752_v51, %v8759_v10  ;;  %v8862_v46 = vld [vmem:[#allocation5 + $0x38] sm:$0xff] }
 0x2ad   : > { %1687 = vrot.lane.b32.xlu0 %v1655_v47, %s7953_s28 }
 0x2ae   : > { %11143 = vst [vmem:[#allocation29_spill] sm:$0xff] %v8765_v5  ;;  %v936_v58 = vpop.f32.mrb[2].mxu0  ;;  %v5696_v17 = vpop.f32.mrb[2].mxu1  ;;  %v1446_v1 = vsub.f32 0.0, %v8761_v52 }
 0x2af   : > { %1542 = vrot.lane.b32.xlu1 %v8761_v52, %s7953_s28  ;;  %v8774_v42 = vmul.f32 %v8767_v2, %v936_v58  ;;  %v8776_v50 = vpop.f32.mrb[3].mxu0  ;;  %v5697_v55 = vpop.f32.mrb[3].mxu1  ;;  %v1656_v57 = vsub.f32 0.0, %v936_v58 }
 0x2b0   : > { %v8780_v33 = vmul.f32 %v8767_v2, %v8776_v50  ;;  %v8782_v8 = vadd.f32 %v5697_v55, %v5696_v17 }
 0x2b1   : > { %11144 = vst [vmem:[#allocation30_spill] sm:$0xff] %v8774_v42  ;;  %1478 = vrot.lane.b32.xlu0 %v1446_v1, %s7953_s28 }
 0x2b2   : > { %11145 = vst [vmem:[#allocation31_spill] sm:$0xff] %v8780_v33  ;;  %v942_v19 = vpop.f32.mrb[4].mxu0  ;;  %v5699_v0 = vpop.f32.mrb[4].mxu1  ;;  %v1447_v20 = vsub.f32 0.0, %v8782_v8 }
 0x2b3   : > { %1753 = vrot.lane.b32.xlu1 %v936_v58, %s7953_s28  ;;  %v8789_v29 = vmul.f32 %v8784_v7, %v942_v19  ;;  %v5700_v12 = vpop.f32.mrb[5].mxu1  ;;  %v8791_v16 = vpop.f32.mrb[5].mxu0  ;;  %v1657_v39 = vsub.f32 0.0, %v942_v19 }
 0x2b4   : > { %v8793_v35 = vadd.f32 %v5700_v12, %v5699_v0  ;;  %v8797_v18 = vmul.f32 %v8784_v7, %v8791_v16 }
 0x2b5   : > { %11146 = vst [vmem:[#allocation32_spill] sm:$0xff] %v8789_v29  ;;  %1689 = vrot.lane.b32.xlu0 %v1656_v57, %s7953_s28  ;;  %v8877_v57 = vld [vmem:[#allocation5 + $0x40] sm:$0xff] }
 0x2b6   : > { %11147 = vst [vmem:[#allocation33_spill] sm:$0xff] %v8797_v18  ;;  %v948_v41 = vpop.f32.mrb[6].mxu0  ;;  %v5702_v43 = vpop.f32.mrb[6].mxu1  ;;  %v1448_v9 = vsub.f32 0.0, %v8793_v35  ;;  %v8973_v18 = vld [vmem:[#allocation5 + $0x70] sm:$0xff] }
 0x2b7   : > { %1544 = vrot.lane.b32.xlu1 %v8782_v8, %s7953_s28  ;;  %v8805_v53 = vmul.f32 %v8799_v38, %v948_v41  ;;  %v5703_v28 = vpop.f32.mrb[7].mxu1  ;;  %v8807_v40 = vpop.f32.mrb[7].mxu0  ;;  %v1658_v21 = vsub.f32 0.0, %v948_v41  ;;  %11170 = vst [vmem:[#allocation56_spill] sm:$0xff] %v8973_v18 }
 0x2b8   : > { %v8809_v44 = vadd.f32 %v5703_v28, %v5702_v43  ;;  %v8813_v49 = vmul.f32 %v8799_v38, %v8807_v40 }
 0x2b9   : > { %11148 = vst [vmem:[#allocation34_spill] sm:$0xff] %v8805_v53  ;;  %1691 = vrot.lane.b32.xlu0 %v1657_v39, %s7953_s28 }
 0x2ba   : > { %11149 = vst [vmem:[#allocation35_spill] sm:$0xff] %v8813_v49  ;;  %v8818_v14 = vpop.f32.mrb[8].mxu0  ;;  %v5705_v48 = vpop.f32.mrb[8].mxu1  ;;  %v1449_v28 = vsub.f32 0.0, %v8809_v44 }
 0x2bb   : > { %11150 = vst [vmem:[#allocation36_spill] sm:$0xff] %v8818_v14  ;;  %1755 = vrot.lane.b32.xlu1 %v942_v19, %s7953_s28  ;;  %v5706_v61 = vpop.f32.mrb[9].mxu1  ;;  %v8821_v31 = vpop.f32.mrb[9].mxu0  ;;  %v1659_v34 = vsub.f32 0.0, %v8818_v14 }
 0x2bc   : > { %v8823_v56 = vadd.f32 %v5706_v61, %v5705_v48  ;;  %v8827_v3 = vmul.f32 %v8816_v62, %v8821_v31  ;;  %v8894_v48 = vld [vmem:[#allocation5 + $0x48] sm:$0xff] }
 0x2bd   : > { %1546 = vrot.lane.b32.xlu0 %v8793_v35, %s7953_s28 }
 0x2be   : > { %11151 = vst [vmem:[#allocation37_spill] sm:$0xff] %v8827_v3  ;;  %v8834_v63 = vpop.f32.mrb[10].mxu0  ;;  %v5708_v6 = vpop.f32.mrb[10].mxu1 }
 0x2bf   : > { %11152 = vst [vmem:[#allocation38_spill] sm:$0xff] %v8834_v63  ;;  %1480 = vrot.lane.b32.xlu1 %v1447_v20, %s7953_s28  ;;  %v5709_v26 = vpop.f32.mrb[11].mxu1  ;;  %v8838_v11 = vpop.f32.mrb[11].mxu0 }
 0x2c0   : > { %v8840_v25 = vadd.f32 %v5709_v26, %v5708_v6  ;;  %v8844_v30 = vmul.f32 %v8832_v13, %v8838_v11  ;;  %v1450_v6 = vsub.f32 0.0, %v8823_v56 }
 0x2c1   : > { %1482 = vrot.lane.b32.xlu0 %v1448_v9, %s7953_s28 }
 0x2c2   : > { %11153 = vst [vmem:[#allocation39_spill] sm:$0xff] %v8844_v30  ;;  %v8849_v32 = vpop.f32.mrb[12].mxu0  ;;  %v5711_v59 = vpop.f32.mrb[12].mxu1 }
 0x2c3   : > { %11154 = vst [vmem:[#allocation40_spill] sm:$0xff] %v8849_v32  ;;  %1757 = vrot.lane.b32.xlu1 %v948_v41, %s7953_s28  ;;  %v5712_v36 = vpop.f32.mrb[13].mxu1  ;;  %v8852_v27 = vpop.f32.mrb[13].mxu0 }
 0x2c4   : > { %v8854_v23 = vadd.f32 %v5712_v36, %v5711_v59  ;;  %v8858_v45 = vmul.f32 %v8847_v15, %v8852_v27  ;;  %v1660_v36 = vsub.f32 0.0, %v8834_v63 }
 0x2c5   : > { %1693 = vrot.lane.b32.xlu0 %v1658_v21, %s7953_s28 }
 0x2c6   : > { %11155 = vst [vmem:[#allocation41_spill] sm:$0xff] %v8858_v45  ;;  %v5714_v47 = vpop.f32.mrb[14].mxu1  ;;  %v8864_v60 = vpop.f32.mrb[14].mxu0  ;;  %v1452_v3 = vsub.f32 0.0, %v8854_v23 }
 0x2c7   : > { %1548 = vrot.lane.b32.xlu1 %v8809_v44, %s7953_s28  ;;  %v5715_v58 = vpop.f32.mrb[15].mxu1  ;;  %v8868_v17 = vpop.f32.mrb[15].mxu0 }
 0x2c8   : > { %v8870_v1 = vadd.f32 %v5715_v58, %v5714_v47  ;;  %v8874_v55 = vmul.f32 %v8862_v46, %v8868_v17 }
 0x2c9   : > { %1695 = vrot.lane.b32.xlu0 %v1659_v34, %s7953_s28  ;;  %v8910_v34 = vld [vmem:[#allocation5 + $0x50] sm:$0xff] }
 0x2ca   : > { %11156 = vst [vmem:[#allocation42_spill] sm:$0xff] %v8874_v55  ;;  %v5717_v19 = vpop.f32.mrb[16].mxu1  ;;  %v8879_v0 = vpop.f32.mrb[16].mxu0 }
 0x2cb   : > { %1759 = vrot.lane.b32.xlu1 %v8818_v14, %s7953_s28  ;;  %v5718_v12 = vpop.f32.mrb[17].mxu1  ;;  %v8883_v39 = vpop.f32.mrb[17].mxu0 }
 0x2cc   : > { %v8885_v41 = vadd.f32 %v5718_v12, %v5717_v19  ;;  %v8889_v43 = vmul.f32 %v8877_v57, %v8883_v39 }
 0x2cd   : > { %1550 = vrot.lane.b32.xlu0 %v8823_v56, %s7953_s28 }
 0x2ce   : > { %11157 = vst [vmem:[#allocation43_spill] sm:$0xff] %v8889_v43  ;;  %v5720_v61 = vpop.f32.mrb[18].mxu1  ;;  %v8896_v20 = vpop.f32.mrb[18].mxu0  ;;  %v1454_v14 = vsub.f32 0.0, %v8885_v41 }
 0x2cf   : > { %11158 = vst [vmem:[#allocation44_spill] sm:$0xff] %v8896_v20  ;;  %1484 = vrot.lane.b32.xlu1 %v1449_v28, %s7953_s28  ;;  %v5721_v9 = vpop.f32.mrb[19].mxu1  ;;  %v8900_v26 = vpop.f32.mrb[19].mxu0 }
 0x2d0   : > { %v8902_v21 = vadd.f32 %v5721_v9, %v5720_v61  ;;  %v8906_v59 = vmul.f32 %v8894_v48, %v8900_v26  ;;  %v8926_v9 = vld [vmem:[#allocation5 + $0x58] sm:$0xff] }
 0x2d1   : > { %1486 = vrot.lane.b32.xlu0 %v1450_v6, %s7953_s28  ;;  %v1661_v6 = vsub.f32 0.0, %v8849_v32  ;;  %11163 = vst [vmem:[#allocation49_spill] sm:$0xff] %v8926_v9 }
 0x2d2   : > { %11159 = vst [vmem:[#allocation45_spill] sm:$0xff] %v8906_v59  ;;  %v5723_v47 = vpop.f32.mrb[20].mxu1  ;;  %v8912_v58 = vpop.f32.mrb[20].mxu0 }
 0x2d3   : > { %11160 = vst [vmem:[#allocation46_spill] sm:$0xff] %v8912_v58  ;;  %1761 = vrot.lane.b32.xlu1 %v8834_v63, %s7953_s28  ;;  %v5724_v19 = vpop.f32.mrb[21].mxu1  ;;  %v8916_v12 = vpop.f32.mrb[21].mxu0 }
 0x2d4   : > { %v8918_v28 = vadd.f32 %v5724_v19, %v5723_v47  ;;  %v8922_v61 = vmul.f32 %v8910_v34, %v8916_v12 }
 0x2d5   : > { %1697 = vrot.lane.b32.xlu0 %v1660_v36, %s7953_s28  ;;  %v8941_v36 = vld [vmem:[#allocation5 + $0x60] sm:$0xff] }
 0x2d6   : > { %11161 = vst [vmem:[#allocation47_spill] sm:$0xff] %v8918_v28  ;;  %11162 = vst [vmem:[#allocation48_spill] sm:$0xff] %v8922_v61  ;;  %v5726_v24 = vpop.f32.mrb[22].mxu1  ;;  %v8928_v37 = vpop.f32.mrb[22].mxu0 }
 0x2d7   : > { %11164 = vst [vmem:[#allocation50_spill] sm:$0xff] %v8928_v37  ;;  %1552 = vrot.lane.b32.xlu1 %v8840_v25, %s7953_s28  ;;  %v5727_v4 = vpop.f32.mrb[23].mxu1  ;;  %v8932_v22 = vpop.f32.mrb[23].mxu0  ;;  %11166 = vst [vmem:[#allocation52_spill] sm:$0xff] %v8941_v36 }
 0x2d8   : > { %v8934_v47 = vadd.f32 %v5727_v4, %v5726_v24  ;;  %v8938_v19 = vmul.f32 %v8926_v9, %v8932_v22  ;;  %v1451_v24 = vsub.f32 0.0, %v8840_v25 }
 0x2d9   : > { %1699 = vrot.lane.b32.xlu0 %v1661_v6, %s7953_s28  ;;  %v8958_v6 = vld [vmem:[#allocation5 + $0x68] sm:$0xff] }
 0x2da   : > { %11165 = vst [vmem:[#allocation51_spill] sm:$0xff] %v8938_v19  ;;  %v5729_v61 = vpop.f32.mrb[24].mxu1  ;;  %v8943_v59 = vpop.f32.mrb[24].mxu0  ;;  %11168 = vst [vmem:[#allocation54_spill] sm:$0xff] %v8958_v6  ;;  %v1457_v9 = vsub.f32 0.0, %v8934_v47 }
 0x2db   : > { %1763 = vrot.lane.b32.xlu1 %v8849_v32, %s7953_s28  ;;  %v5730_v43 = vpop.f32.mrb[25].mxu1  ;;  %v8947_v55 = vpop.f32.mrb[25].mxu0 }
 0x2dc   : > { %v8949_v45 = vadd.f32 %v5730_v43, %v5729_v61  ;;  %v8953_v4 = vmul.f32 %v8941_v36, %v8947_v55 }
 0x2dd   : > { %1554 = vrot.lane.b32.xlu0 %v8854_v23, %s7953_s28 }
 0x2de   : > { %11167 = vst [vmem:[#allocation53_spill] sm:$0xff] %v8953_v4  ;;  %v5732_v19 = vpop.f32.mrb[26].mxu1  ;;  %v8960_v30 = vpop.f32.mrb[26].mxu0 }
 0x2df   : > { %1488 = vrot.lane.b32.xlu1 %v1451_v24, %s7953_s28  ;;  %v5733_v43 = vpop.f32.mrb[27].mxu1  ;;  %v8964_v61 = vpop.f32.mrb[27].mxu0 }
 0x2e0   : > { %v8966_v49 = vadd.f32 %v5733_v43, %v5732_v19  ;;  %v8970_v4 = vmul.f32 %v8958_v6, %v8964_v61  ;;  %v8990_v43 = vld [vmem:[#allocation5 + $0x78] sm:$0xff] }
 0x2e1   : > { %1490 = vrot.lane.b32.xlu0 %v1452_v3, %s7953_s28  ;;  %v1453_v3 = vsub.f32 0.0, %v8870_v1  ;;  %11173 = vst [vmem:[#allocation59_spill] sm:$0xff] %v8990_v43 }
 0x2e2   : > { %11169 = vst [vmem:[#allocation55_spill] sm:$0xff] %v8970_v4  ;;  %v5735_v33 = vpop.f32.mrb[28].mxu1  ;;  %v8975_v5 = vpop.f32.mrb[28].mxu0 }
 0x2e3   : > { %1556 = vrot.lane.b32.xlu1 %v8870_v1, %s7953_s28  ;;  %v5736_v24 = vpop.f32.mrb[29].mxu1  ;;  %v8979_v32 = vpop.f32.mrb[29].mxu0 }
 0x2e4   : > { %v8981_v63 = vadd.f32 %v5736_v24, %v5735_v33  ;;  %v8985_v19 = vmul.f32 %v8973_v18, %v8979_v32 }
 0x2e5   : > { %1558 = vrot.lane.b32.xlu0 %v8885_v41, %s7953_s28 }
 0x2e6   : > { %11171 = vst [vmem:[#allocation57_spill] sm:$0xff] %v8981_v63  ;;  %11172 = vst [vmem:[#allocation58_spill] sm:$0xff] %v8985_v19  ;;  %v5738_v4 = vpop.f32.mrb[30].mxu1  ;;  %v8992_v53 = vpop.f32.mrb[30].mxu0 }
 0x2e7   : > { %1492 = vrot.lane.b32.xlu1 %v1453_v3, %s7953_s28  ;;  %v5739_v33 = vpop.f32.mrb[31].mxu1  ;;  %v8996_v24 = vpop.f32.mrb[31].mxu0  ;;  %v1455_v3 = vsub.f32 0.0, %v8902_v21 }
 0x2e8   : > { %v8998_v29 = vadd.f32 %v5739_v33, %v5738_v4  ;;  %v9002_v19 = vmul.f32 %v8990_v43, %v8996_v24  ;;  %v1456_v33 = vsub.f32 0.0, %v8918_v28 }
 0x2e9   : > { %1494 = vrot.lane.b32.xlu0 %v1454_v14, %s7953_s28 }
 0x2ea   : > { %11174 = vst [vmem:[#allocation60_spill] sm:$0xff] %v8998_v29  ;;  %11175 = vst [vmem:[#allocation61_spill] sm:$0xff] %v9002_v19  ;;  %v5773_v42 = vpop.f32.mrb[32].mxu1 }
 0x2eb   : > { %1560 = vrot.lane.b32.xlu1 %v8902_v21, %s7953_s28  ;;  %v5774_v18 = vpop.f32.mrb[33].mxu1 }
 0x2ec   : > { %v5775_v6 = vadd.f32 %v5774_v18, %v5773_v42 }
 0x2ed   : > { %1562 = vrot.lane.b32.xlu0 %v8918_v28, %s7953_s28 }
 0x2ee   : > { %v5776_v36 = vpop.f32.mrb[34].mxu1 }
 0x2ef   : > { %1496 = vrot.lane.b32.xlu1 %v1455_v3, %s7953_s28  ;;  %v5777_v4 = vpop.f32.mrb[35].mxu1 }
 0x2f0   : > { %v5778_v19 = vadd.f32 %v5777_v4, %v5776_v36  ;;  %v1458_v36 = vsub.f32 0.0, %v8949_v45 }
 0x2f1   : > { %1498 = vrot.lane.b32.xlu0 %v1456_v33, %s7953_s28 }
 0x2f2   : > { %v9013_v14 = vpack.c.bf16 %v5778_v19, %v5775_v6  ;;  %v5779_v43 = vpop.f32.mrb[36].mxu1 }
 0x2f3   : > { %1564 = vrot.lane.b32.xlu1 %v8934_v47, %s7953_s28  ;;  %v5780_v42 = vpop.f32.mrb[37].mxu1 }
 0x2f4   : > { %11176 = vst [vmem:[#allocation62_spill] sm:$0xff] %v9013_v14  ;;  %v5781_v18 = vadd.f32 %v5780_v42, %v5779_v43  ;;  %v1459_v42 = vsub.f32 0.0, %v8966_v49 }
 0x2f5   : > { %1566 = vrot.lane.b32.xlu0 %v8949_v45, %s7953_s28 }
 0x2f6   : > { %v5782_v3 = vpop.f32.mrb[38].mxu1 }
 0x2f7   : > { %1500 = vrot.lane.b32.xlu1 %v1457_v9, %s7953_s28  ;;  %v5783_v28 = vpop.f32.mrb[39].mxu1 }
 0x2f8   : > { %v5784_v4 = vadd.f32 %v5783_v28, %v5782_v3  ;;  %v1460_v28 = vsub.f32 0.0, %v8981_v63 }
 0x2f9   : > { %1502 = vrot.lane.b32.xlu0 %v1458_v36, %s7953_s28 }
 0x2fa   : > { %v9023_v6 = vpack.c.bf16 %v5784_v4, %v5781_v18  ;;  %v5785_v19 = vpop.f32.mrb[40].mxu1  ;;  %v1662_v4 = vsub.f32 0.0, %v8864_v60 }
 0x2fb   : > { %1568 = vrot.lane.b32.xlu1 %v8966_v49, %s7953_s28  ;;  %v5786_v43 = vpop.f32.mrb[41].mxu1 }
 0x2fc   : > { %11177 = vst [vmem:[#allocation63_spill] sm:$0xff] %v9023_v6  ;;  %v5787_v33 = vadd.f32 %v5786_v43, %v5785_v19 }
 0x2fd   : > { %1570 = vrot.lane.b32.xlu0 %v8981_v63, %s7953_s28  ;;  %v1663_v63 = vsub.f32 0.0, %v8879_v0 }
 0x2fe   : > { %v5788_v9 = vpop.f32.mrb[42].mxu1 }
 0x2ff   : > { %1504 = vrot.lane.b32.xlu1 %v1459_v42, %s7953_s28  ;;  %v5789_v14 = vpop.f32.mrb[43].mxu1  ;;  %v1461_v42 = vsub.f32 0.0, %v8998_v29 }
 0x300   : > { %v5790_v3 = vadd.f32 %v5789_v14, %v5788_v9 }
 0x301   : > { %1506 = vrot.lane.b32.xlu0 %v1460_v28, %s7953_s28 }
 0x302   : > { %v9033_v18 = vpack.c.bf16 %v5790_v3, %v5787_v33  ;;  %v5791_v36 = vpop.f32.mrb[44].mxu1  ;;  %v1664_v3 = vsub.f32 0.0, %v8896_v20 }
 0x303   : > { %v5792_v19 = vpop.f32.mrb[45].mxu1  ;;  %1572 = vrot.lane.b32.xlu1 %v8998_v29, %s7953_s28 }
 0x304   : > { %11178 = vst [vmem:[#allocation64_spill] sm:$0xff] %v9033_v18  ;;  %v5793_v43 = vadd.f32 %v5792_v19, %v5791_v36  ;;  %v1665_v19 = vsub.f32 0.0, %v8912_v58 }
 0x305   : > { %1701 = vrot.lane.b32.xlu0 %v1662_v4, %s7953_s28 }
 0x306   : > { %v5794_v6 = vpop.f32.mrb[46].mxu1 }
 0x307   : > { %v5795_v14 = vpop.f32.mrb[47].mxu1  ;;  %1508 = vrot.lane.b32.xlu1 %v1461_v42, %s7953_s28  ;;  %v1666_v42 = vsub.f32 0.0, %v8928_v37 }
 0x308   : > { %v5796_v33 = vadd.f32 %v5795_v14, %v5794_v6 }
 0x309   : > { %1703 = vrot.lane.b32.xlu0 %v1663_v63, %s7953_s28 }
 0x30a   : > { %v9043_v9 = vpack.c.bf16 %v5796_v33, %v5793_v43  ;;  %v5797_v28 = vpop.f32.mrb[48].mxu1 }
 0x30b   : > { %v5798_v18 = vpop.f32.mrb[49].mxu1  ;;  %1765 = vrot.lane.b32.xlu1 %v8864_v60, %s7953_s28 }
 0x30c   : > { %v5799_v36 = vadd.f32 %v5798_v18, %v5797_v28  ;;  %v1667_v28 = vsub.f32 0.0, %v8943_v59 }
 0x30d   : > { %1705 = vrot.lane.b32.xlu0 %v1664_v3, %s7953_s28 }
 0x30e   : > { %v5800_v4 = vpop.f32.mrb[50].mxu1 }
 0x30f   : > { %v5801_v29 = vpop.f32.mrb[51].mxu1  ;;  %1767 = vrot.lane.b32.xlu1 %v8879_v0, %s7953_s28 }
 0x310   : > { %v5802_v63 = vadd.f32 %v5801_v29, %v5800_v4 }
 0x311   : > { %1707 = vrot.lane.b32.xlu0 %v1665_v19, %s7953_s28  ;;  %v1668_v19 = vsub.f32 0.0, %v8960_v30 }
 0x312   : > { %v9053_v6 = vpack.c.bf16 %v5802_v63, %v5799_v36  ;;  %v5803_v43 = vpop.f32.mrb[52].mxu1 }
 0x313   : > { %v5804_v14 = vpop.f32.mrb[53].mxu1  ;;  %1769 = vrot.lane.b32.xlu1 %v8896_v20, %s7953_s28 }
 0x314   : > { %11179 = vst [vmem:[#allocation65_spill] sm:$0xff] %v9053_v6  ;;  %v5805_v18 = vadd.f32 %v5804_v14, %v5803_v43  ;;  %v9069_v6 = vld [vmem:[#allocation7] sm:$0xff] }
 0x315   : > { %1709 = vrot.lane.b32.xlu0 %v1666_v42, %s7953_s28  ;;  %11181 = vst [vmem:[#allocation67_spill] sm:$0xff] %v9069_v6 }
 0x316   : > { %v5806_v33 = vpop.f32.mrb[54].mxu1 }
 0x317   : > { %v5807_v3 = vpop.f32.mrb[55].mxu1  ;;  %1771 = vrot.lane.b32.xlu1 %v8912_v58, %s7953_s28  ;;  %v1670_v58 = vsub.f32 0.0, %v8992_v53 }
 0x318   : > { %v5808_v29 = vadd.f32 %v5807_v3, %v5806_v33  ;;  %v1669_v33 = vsub.f32 0.0, %v8975_v5 }
 0x319   : > { %1711 = vrot.lane.b32.xlu0 %v1667_v28, %s7953_s28 }
 0x31a   : > { %v9063_v36 = vpack.c.bf16 %v5808_v29, %v5805_v18  ;;  %v5809_v4 = vpop.f32.mrb[56].mxu1 }
 0x31b   : > { %v5810_v63 = vpop.f32.mrb[57].mxu1  ;;  %1773 = vrot.lane.b32.xlu1 %v8928_v37, %s7953_s28 }
 0x31c   : > { %11180 = vst [vmem:[#allocation66_spill] sm:$0xff] %v9063_v36  ;;  %v5811_v43 = vadd.f32 %v5810_v63, %v5809_v4  ;;  %v1815_v4 = vmul.f32 %v8752_v51, %v8754_v54 }
 0x31d   : > { %v1752_v42 = vpop.permute.xlu1 %1751  ;;  %1713 = vrot.lane.b32.xlu0 %v1668_v19, %s7953_s28 }
 0x31e   : > { %v5812_v14 = vpop.f32.mrb[58].mxu1 }
 0x31f   : > { %v5813_v28 = vpop.f32.mrb[59].mxu1  ;;  %1775 = vrot.lane.b32.xlu1 %v8943_v59, %s7953_s28  ;;  %v1688_v18 = vpop.permute.xlu0 %1687 }
 0x320   : > { %v5814_v3 = vadd.f32 %v5813_v28, %v5812_v14  ;;  %v1799_v29 = vsel %vm1590_vm0, %v1688_v18, %v1752_v42 }
 0x321   : > { %v1831_v63 = vmul.f32 %v1799_v29, %v9069_v6  ;;  %v1543_v19 = vpop.permute.xlu1 %1542  ;;  %1715 = vrot.lane.b32.xlu0 %v1669_v33, %s7953_s28  ;;  %v2329_v33 = vsub.f32 0.0, %v8759_v10 }
 0x322   : > { %v9079_v36 = vpack.c.bf16 %v5814_v3, %v5811_v43  ;;  %v5815_v37 = vpop.f32.mrb[60].mxu1 }
 0x323   : > { %v5816_v20 = vpop.f32.mrb[61].mxu1  ;;  %1777 = vrot.lane.b32.xlu1 %v8960_v30, %s7953_s28  ;;  %v1479_v14 = vpop.permute.xlu0 %1478  ;;  %v1847_v28 = vadd.f32 %v1831_v63, %v1815_v4 }
 0x324   : > { %11182 = vst [vmem:[#allocation68_spill] sm:$0xff] %v9079_v36  ;;  %v5817_v42 = vadd.f32 %v5816_v20, %v5815_v37  ;;  %v2330_v37 = vsub.f32 0.0, %v8776_v50  ;;  %v1591_v63 = vsel %vm1590_vm0, %v1479_v14, %v1543_v19  ;;  %v1608_v19 = vmul.f32 %v8782_v8, %v8767_v2 }
 0x325   : > { %v9084_v18 = vpop.permute.xlu1 %1753  ;;  %1717 = vrot.lane.b32.xlu0 %v1670_v58, %s7953_s28  ;;  %5981 = vmatprep.mubr.f32.mxu0 %v1847_v28  ;;  %v2331_v28 = vsub.f32 0.0, %v8791_v16  ;;  %v2332_v14 = vsub.f32 0.0, %v8807_v40 }
 0x326   : > { %v5818_v54 = vpop.f32.mrb[62].mxu1 }
 0x327   : > { %v5819_v43 = vpop.f32.mrb[63].mxu1  ;;  %1779 = vrot.lane.b32.xlu1 %v8975_v5, %s7953_s28  ;;  %v9090_v3 = vpop.permute.xlu0 %1689 }
 0x328   : > { %v5820_v29 = vadd.f32 %v5819_v43, %v5818_v54  ;;  %v1623_v54 = vmul.f32 %v1591_v63, %v9069_v6  ;;  %v9109_v43 = vld [vmem:[#allocation7 + $0x8] sm:$0xff] }
 0x329   : > { %v1545_v36 = vpop.permute.xlu1 %1544  ;;  %2361 = vrot.lane.b32.xlu0 %v2329_v33, %s7953_s28 }
 0x32a   : > { %v9093_v4 = vpack.c.bf16 %v5820_v29, %v5817_v42 }
 0x32b   : > { %1781 = vrot.lane.b32.xlu1 %v8992_v53, %s7953_s28  ;;  %v9098_v20 = vpop.permute.xlu0 %1691 }
 0x32c   : > { %11183 = vst [vmem:[#allocation69_spill] sm:$0xff] %v9093_v4 }
 0x32d   : > { %v9100_v58 = vpop.permute.xlu1 %1755  ;;  %2363 = vrot.lane.b32.xlu0 %v2330_v37, %s7953_s28  ;;  %v1607_v37 = vmul.f32 %v8761_v52, %v8752_v51 }
 0x32f   : > { %2425 = vrot.lane.b32.xlu1 %v8759_v10, %s7953_s28  ;;  %v1547_v42 = vpop.permute.xlu0 %1546  ;;  %v1639_v4 = vadd.f32 %v1623_v54, %v1607_v37  ;;  %v2335_v54 = vsub.f32 0.0, %v8852_v27 }
 0x331   : > { %v1481_v33 = vpop.permute.xlu1 %1480  ;;  %2365 = vrot.lane.b32.xlu0 %v2331_v28, %s7953_s28 }
 0x332   : > { %v1592_v29 = vsel %vm1590_vm0, %v1481_v33, %v1545_v36  ;;  %v2333_v36 = vsub.f32 0.0, %v8821_v31 }
 0x333   : > { %v1624_v10 = vmul.f32 %v1592_v29, %v9109_v43  ;;  %2427 = vrot.lane.b32.xlu1 %v8776_v50, %s7953_s28  ;;  %v1483_v63 = vpop.permute.xlu0 %1482  ;;  %v2334_v50 = vsub.f32 0.0, %v8838_v11  ;;  %v9141_v29 = vld [vmem:[#allocation7 + $0x10] sm:$0xff] }
 0x335   : > { %v1640_v28 = vadd.f32 %v1624_v10, %v1608_v19  ;;  %v9120_v6 = vpop.permute.xlu1 %1757  ;;  %2367 = vrot.lane.b32.xlu0 %v2332_v14, %s7953_s28  ;;  %v1610_v10 = vmul.f32 %v8809_v44, %v8799_v38  ;;  %v2338_v44 = vsub.f32 0.0, %v8900_v26 }
 0x337   : > { %v6301_v51 = vpack.c.bf16 %v1640_v28, %v1639_v4  ;;  %2429 = vrot.lane.b32.xlu1 %v8791_v16, %s7953_s28  ;;  %v9126_v52 = vpop.permute.xlu0 %1693  ;;  %v1593_v16 = vsel %vm1590_vm0, %v1483_v63, %v1547_v42  ;;  %v1609_v42 = vmul.f32 %v8793_v35, %v8784_v7 }
 0x338   : > { %v1625_v37 = vmul.f32 %v1593_v16, %v9141_v29 }
 0x339   : > { %v1549_v2 = vpop.permute.xlu1 %1548  ;;  %2369 = vrot.lane.b32.xlu0 %v2333_v36, %s7953_s28  ;;  %6302 = vmatprep.subr.bf16.mxu0 %v6301_v51 }
 0x33a   : > { %6366 = vmatprep.subr.bf16.mxu1 %v6301_v51  ;;  %6304 = vmatpush3.bf16.xpose.msra.mxu0 %v6301_v51  ;;  %v1641_v36 = vadd.f32 %v1625_v37, %v1609_v42 }
 0x33b   : > { %6368 = vmatpush3.bf16.xpose.msra.mxu1 %v6301_v51  ;;  %2431 = vrot.lane.b32.xlu1 %v8807_v40, %s7953_s28  ;;  %v9132_v8 = vpop.permute.xlu0 %1695  ;;  %v9145_v40 = vld [vmem:[#allocation7 + $0x18] sm:$0xff] }
 0x33d   : > { %v9134_v4 = vpop.permute.xlu1 %1759  ;;  %2371 = vrot.lane.b32.xlu0 %v2334_v50, %s7953_s28 }
 0x33f   : > { %2433 = vrot.lane.b32.xlu1 %v8821_v31, %s7953_s28  ;;  %v1551_v33 = vpop.permute.xlu0 %1550  ;;  %v2336_v31 = vsub.f32 0.0, %v8868_v17 }
 0x341   : > { %v1485_v19 = vpop.permute.xlu1 %1484  ;;  %2373 = vrot.lane.b32.xlu0 %v2335_v54, %s7953_s28  ;;  %v2339_v54 = vsub.f32 0.0, %v8916_v12 }
 0x342   : > { %v1594_v14 = vsel %vm1590_vm0, %v1485_v19, %v1549_v2  ;;  %v2337_v2 = vsub.f32 0.0, %v8883_v39  ;;  %v9177_v19 = vld [vmem:[#allocation7 + $0x20] sm:$0xff] }
 0x343   : > { %v1626_v63 = vmul.f32 %v1594_v14, %v9145_v40  ;;  %2435 = vrot.lane.b32.xlu1 %v8838_v11, %s7953_s28  ;;  %v1487_v28 = vpop.permute.xlu0 %1486 }
 0x345   : > { %v1642_v51 = vadd.f32 %v1626_v63, %v1610_v10  ;;  %v9156_v50 = vpop.permute.xlu1 %1761  ;;  %2375 = vrot.lane.b32.xlu0 %v2336_v31, %s7953_s28  ;;  %v1612_v31 = vmul.f32 %v8840_v25, %v8832_v13 }
 0x347   : > { %v6305_v7 = vpack.c.bf16 %v1642_v51, %v1641_v36  ;;  %2437 = vrot.lane.b32.xlu1 %v8852_v27, %s7953_s28  ;;  %v9162_v35 = vpop.permute.xlu0 %1697  ;;  %v1595_v27 = vsel %vm1590_vm0, %v1487_v28, %v1551_v33  ;;  %v1611_v33 = vmul.f32 %v8823_v56, %v8816_v62  ;;  %v2341_v56 = vsub.f32 0.0, %v8947_v55 }
 0x348   : > { %v1627_v14 = vmul.f32 %v1595_v27, %v9177_v19  ;;  %v9199_v27 = vld [vmem:[#allocation7 + $0x38] sm:$0xff] }
 0x349   : > { %v1553_v38 = vpop.permute.xlu1 %1552  ;;  %2377 = vrot.lane.b32.xlu0 %v2337_v2, %s7953_s28  ;;  %6306 = vmatprep.subr.bf16.mxu0 %v6305_v7 }
 0x34a   : > { %6370 = vmatprep.subr.bf16.mxu1 %v6305_v7  ;;  %6308 = vmatpush3.bf16.xpose.msra.mxu0 %v6305_v7  ;;  %v1643_v36 = vadd.f32 %v1627_v14, %v1611_v33 }
 0x34b   : > { %6372 = vmatpush3.bf16.xpose.msra.mxu1 %v6305_v7  ;;  %2439 = vrot.lane.b32.xlu1 %v8868_v17, %s7953_s28  ;;  %v9168_v11 = vpop.permute.xlu0 %1699  ;;  %v9181_v17 = vld [vmem:[#allocation7 + $0x28] sm:$0xff] }
 0x34d   : > { %v9170_v16 = vpop.permute.xlu1 %1763  ;;  %2379 = vrot.lane.b32.xlu0 %v2338_v44, %s7953_s28  ;;  %v9197_v44 = vld [vmem:[#allocation7 + $0x30] sm:$0xff] }
 0x34f   : > { %2441 = vrot.lane.b32.xlu1 %v8883_v39, %s7953_s28  ;;  %v1555_v37 = vpop.permute.xlu0 %1554  ;;  %v2340_v39 = vsub.f32 0.0, %v8932_v22 }
 0x351   : > { %v1489_v42 = vpop.permute.xlu1 %1488  ;;  %2381 = vrot.lane.b32.xlu0 %v2339_v54, %s7953_s28 }
 0x352   : > { %v1596_v10 = vsel %vm1590_vm0, %v1489_v42, %v1553_v38  ;;  %v2342_v42 = vsub.f32 0.0, %v8964_v61 }
 0x353   : > { %v1628_v63 = vmul.f32 %v1596_v10, %v9181_v17  ;;  %2443 = vrot.lane.b32.xlu1 %v8900_v26, %s7953_s28  ;;  %v1491_v28 = vpop.permute.xlu0 %1490 }
 0x354   : > { %v1597_v7 = vsel %vm1590_vm0, %v1491_v28, %v1555_v37  ;;  %v1613_v37 = vmul.f32 %v8854_v23, %v8847_v15  ;;  %v9213_v28 = vld [vmem:[#allocation7 + $0x40] sm:$0xff] }
 0x355   : > { %v1644_v51 = vadd.f32 %v1628_v63, %v1612_v31  ;;  %v1557_v2 = vpop.permute.xlu1 %1556  ;;  %2383 = vrot.lane.b32.xlu0 %v2340_v39, %s7953_s28  ;;  %v1629_v26 = vmul.f32 %v1597_v7, %v9197_v44 }
 0x357   : > { %v6309_v38 = vpack.c.bf16 %v1644_v51, %v1643_v36  ;;  %2445 = vrot.lane.b32.xlu1 %v8916_v12, %s7953_s28  ;;  %v1559_v25 = vpop.permute.xlu0 %1558  ;;  %v1614_v12 = vmul.f32 %v8870_v1, %v8862_v46  ;;  %v1645_v31 = vadd.f32 %v1629_v26, %v1613_v37  ;;  %v2343_v1 = vsub.f32 0.0, %v8979_v32 }
 0x359   : > { %v1493_v54 = vpop.permute.xlu1 %1492  ;;  %2385 = vrot.lane.b32.xlu0 %v2341_v56, %s7953_s28  ;;  %6310 = vmatprep.subr.bf16.mxu0 %v6309_v38 }
 0x35a   : > { %v1598_v14 = vsel %vm1590_vm0, %v1493_v54, %v1557_v2  ;;  %6374 = vmatprep.subr.bf16.mxu1 %v6309_v38  ;;  %6312 = vmatpush3.bf16.xpose.msra.mxu0 %v6309_v38  ;;  %v9219_v2 = vld [vmem:[#allocation7 + $0x48] sm:$0xff] }
 0x35b   : > { %v1630_v10 = vmul.f32 %v1598_v14, %v9199_v27  ;;  %6376 = vmatpush3.bf16.xpose.msra.mxu1 %v6309_v38  ;;  %2447 = vrot.lane.b32.xlu1 %v8932_v22, %s7953_s28  ;;  %v1495_v33 = vpop.permute.xlu0 %1494  ;;  %v1615_v38 = vmul.f32 %v8885_v41, %v8877_v57 }
 0x35c   : > { %v1599_v23 = vsel %vm1590_vm0, %v1495_v33, %v1559_v25  ;;  %v1616_v25 = vmul.f32 %v8902_v21, %v8894_v48  ;;  %v9238_v33 = vld [vmem:[#allocation7 + $0x58] sm:$0xff] }
 0x35d   : > { %v1646_v39 = vadd.f32 %v1630_v10, %v1614_v12  ;;  %v1561_v63 = vpop.permute.xlu1 %1560  ;;  %2387 = vrot.lane.b32.xlu0 %v2342_v42, %s7953_s28  ;;  %v1631_v22 = vmul.f32 %v1599_v23, %v9213_v28  ;;  %v9233_v42 = vld [vmem:[#allocation7 + $0x50] sm:$0xff] }
 0x35f   : > { %v6313_v36 = vpack.c.bf16 %v1646_v39, %v1645_v31  ;;  %2449 = vrot.lane.b32.xlu1 %v8947_v55, %s7953_s28  ;;  %v1563_v51 = vpop.permute.xlu0 %1562  ;;  %v2344_v55 = vsub.f32 0.0, %v8996_v24  ;;  %v1647_v14 = vadd.f32 %v1631_v22, %v1615_v38  ;;  %v9249_v38 = vld [vmem:[#allocation7 + $0x60] sm:$0xff] }
 0x361   : > { %v1497_v7 = vpop.permute.xlu1 %1496  ;;  %2389 = vrot.lane.b32.xlu0 %v2343_v1, %s7953_s28  ;;  %6314 = vmatprep.subr.bf16.mxu0 %v6313_v36  ;;  %v11185_v1 = vld [vmem:[#allocation49_spill] sm:$0xff] }
 0x362   : > { %v1600_v56 = vsel %vm1590_vm0, %v1497_v7, %v1561_v63  ;;  %6378 = vmatprep.subr.bf16.mxu1 %v6313_v36  ;;  %6316 = vmatpush3.bf16.xpose.msra.mxu0 %v6313_v36  ;;  %v11184_v63 = vld [vmem:[#allocation47_spill] sm:$0xff] }
 0x363   : > { %v1632_v26 = vmul.f32 %v1600_v56, %v9219_v2  ;;  %6380 = vmatpush3.bf16.xpose.msra.mxu1 %v6313_v36  ;;  %2451 = vrot.lane.b32.xlu1 %v8964_v61, %s7953_s28  ;;  %v1499_v54 = vpop.permute.xlu0 %1498  ;;  %v1617_v23 = vmul.f32 %v11184_v63, %v8910_v34  ;;  %v1618_v36 = vmul.f32 %v8934_v47, %v11185_v1 }
 0x364   : > { %v1601_v41 = vsel %vm1590_vm0, %v1499_v54, %v1563_v51  ;;  %v9252_v54 = vld [vmem:[#allocation7 + $0x68] sm:$0xff] }
 0x365   : > { %v1648_v37 = vadd.f32 %v1632_v26, %v1616_v25  ;;  %v1565_v12 = vpop.permute.xlu1 %1564  ;;  %2391 = vrot.lane.b32.xlu0 %v2344_v55, %s7953_s28  ;;  %v1633_v31 = vmul.f32 %v1601_v41, %v9233_v42  ;;  %v11187_v41 = vld [vmem:[#allocation54_spill] sm:$0xff] }
 0x367   : > { %v6317_v10 = vpack.c.bf16 %v1648_v37, %v1647_v14  ;;  %2453 = vrot.lane.b32.xlu1 %v8979_v32, %s7953_s28  ;;  %v1567_v21 = vpop.permute.xlu0 %1566  ;;  %v1649_v22 = vadd.f32 %v1633_v31, %v1617_v23  ;;  %v9261_v23 = vld [vmem:[#allocation7 + $0x70] sm:$0xff] }
 0x369   : > { %v1501_v61 = vpop.permute.xlu1 %1500  ;;  %6318 = vmatprep.subr.bf16.mxu0 %v6317_v10  ;;  %6382 = vmatprep.subr.bf16.mxu1 %v6317_v10 }
 0x36a   : > { %v1602_v39 = vsel %vm1590_vm0, %v1501_v61, %v1565_v12  ;;  %6320 = vmatpush3.bf16.xpose.msra.mxu0 %v6317_v10 }
 0x36b   : > { %v1634_v51 = vmul.f32 %v1602_v39, %v9238_v33  ;;  %6384 = vmatpush3.bf16.xpose.msra.mxu1 %v6317_v10  ;;  %2455 = vrot.lane.b32.xlu1 %v8996_v24, %s7953_s28  ;;  %v1503_v32 = vpop.permute.xlu0 %1502  ;;  %v11186_v24 = vld [vmem:[#allocation52_spill] sm:$0xff]  ;;  %v1620_v10 = vmul.f32 %v8966_v49, %v11187_v41  ;;  %s7853_s28 = sshll.u32 %s7954_s12, 4  ;;  %s7854_s28 = int_to_ptr.vmem [resolvable:$false] %s7853_s28 }
 0x36c   : > { %v1603_v25 = vsel %vm1590_vm0, %v1503_v32, %v1567_v21  ;;  %v1619_v12 = vmul.f32 %v8949_v45, %v11186_v24  ;;  %s7855_s15 = scalar_lea.vmem %s7854_s28, 8192  ;;  %p7856_p6 = scmp.lt.s32.totalorder %s10899_s19, %s7854_s28 }
 0x36d   : > { %v1650_v7 = vadd.f32 %v1634_v51, %v1618_v36  ;;  %v1569_v56 = vpop.permute.xlu1 %1568  ;;  %v1635_v47 = vmul.f32 %v1603_v25, %v9249_v38  ;;  %v11189_v25 = vld [vmem:[#allocation57_spill] sm:$0xff]  ;;  %p7857_p9 = scmp.lt.s32.totalorder %s7855_s15, %s7849_s1 }
 0x36f   : > { %v6321_v55 = vpack.c.bf16 %v1650_v7, %v1649_v22  ;;  %v1571_v26 = vpop.permute.xlu0 %1570  ;;  %v1651_v61 = vadd.f32 %v1635_v47, %v1619_v12  ;;  %v9264_v22 = vld [vmem:[#allocation7 + $0x78] sm:$0xff]  ;;  %p7858_p4 = por %p7857_p9, %p7856_p6 }
 0x370   : > { %v11190_v47 = vld [vmem:[#allocation59_spill] sm:$0xff] }
 0x371   : > { %v1505_v14 = vpop.permute.xlu1 %1504  ;;  %6322 = vmatprep.subr.bf16.mxu0 %v6321_v55  ;;  %6386 = vmatprep.subr.bf16.mxu1 %v6321_v55  ;;  %p7859_p3 = pnand %p7858_p4, %p7852_p8 }
 0x372   : > { %v1604_v37 = vsel %vm1590_vm0, %v1505_v14, %v1569_v56  ;;  %6324 = vmatpush3.bf16.xpose.msra.mxu0 %v6321_v55  ;;  %v11188_v56 = vld [vmem:[#allocation56_spill] sm:$0xff] }
 0x373   : > { %v1636_v21 = vmul.f32 %v1604_v37, %v9252_v54  ;;  %6388 = vmatpush3.bf16.xpose.msra.mxu1 %v6321_v55  ;;  %v1507_v31 = vpop.permute.xlu0 %1506  ;;  %v1621_v55 = vmul.f32 %v11189_v25, %v11188_v56  ;;  %v11191_v14 = vld [vmem:[#allocation60_spill] sm:$0xff] }
 0x374   : > { %v1605_v36 = vsel %vm1590_vm0, %v1507_v31, %v1571_v26  ;;  %v1622_v37 = vmul.f32 %v11191_v14, %v11190_v47 }
 0x375   : > { %v1652_v39 = vadd.f32 %v1636_v21, %v1620_v10  ;;  %v1573_v63 = vpop.permute.xlu1 %1572  ;;  %v1637_v45 = vmul.f32 %v1605_v36, %v9261_v23  ;;  %v1801_v36 = vsel %vm1590_vm0, %v9098_v20, %v9100_v58  ;;  %v11193_v58 = vld [vmem:[#allocation30_spill] sm:$0xff] }
 0x376   : > { %v1833_v25 = vmul.f32 %v1801_v36, %v9141_v29  ;;  %v11196_v36 = vld [vmem:[#allocation63_spill] sm:$0xff] }
 0x377   : > { %v6325_v51 = vpack.c.bf16 %v1652_v39, %v1651_v61  ;;  %v1702_v32 = vpop.permute.xlu0 %1701  ;;  %v1653_v10 = vadd.f32 %v1637_v45, %v1621_v55  ;;  %v11192_v45 = vld [vmem:[#allocation62_spill] sm:$0xff] }
 0x379   : > { %v1509_v7 = vpop.permute.xlu1 %1508  ;;  %6326 = vmatprep.subr.bf16.mxu0 %v6325_v51  ;;  %6390 = vmatprep.subr.bf16.mxu1 %v6325_v51 }
 0x37a   : > { %v1606_v49 = vsel %vm1590_vm0, %v1509_v7, %v1573_v63  ;;  %6328 = vmatpush3.bf16.xpose.msra.mxu0 %v6325_v51  ;;  %v1800_v63 = vsel %vm1590_vm0, %v9090_v3, %v9084_v18  ;;  %v1802_v18 = vsel %vm1590_vm0, %v9126_v52, %v9120_v6  ;;  %v1803_v3 = vsel %vm1590_vm0, %v9132_v8, %v9134_v4  ;;  %v11195_v8 = vld [vmem:[#allocation36_spill] sm:$0xff] }
 0x37b   : > { %v1638_v26 = vmul.f32 %v1606_v49, %v9264_v22  ;;  %6392 = vmatpush3.bf16.xpose.msra.mxu1 %v6325_v51  ;;  %v1704_v12 = vpop.permute.xlu0 %1703  ;;  %v1832_v51 = vmul.f32 %v1800_v63, %v9109_v43  ;;  %v1834_v14 = vmul.f32 %v1802_v18, %v9145_v40  ;;  %v1805_v6 = vsel %vm1590_vm0, %v9168_v11, %v9170_v16  ;;  %v11198_v16 = vld [vmem:[#allocation38_spill] sm:$0xff] }
 0x37c   : > { %v1819_v4 = vmul.f32 %v8816_v62, %v11195_v8 }
 0x37d   : > { %v1654_v21 = vadd.f32 %v1638_v26, %v1622_v37  ;;  %v1766_v31 = vpop.permute.xlu1 %1765  ;;  %v1848_v55 = vadd.f32 %v1832_v51, %v11193_v58  ;;  %v1835_v26 = vmul.f32 %v1803_v3, %v9177_v19  ;;  %v1820_v3 = vmul.f32 %v8832_v13, %v11198_v16 }
 0x37e   : > { %v1806_v18 = vsel %vm1590_vm0, %v1702_v32, %v1766_v31 }
 0x37f   : > { %v6329_v61 = vpack.c.bf16 %v1654_v21, %v1653_v10  ;;  %v1706_v39 = vpop.permute.xlu0 %1705  ;;  %v1804_v10 = vsel %vm1590_vm0, %v9162_v35, %v9156_v50  ;;  %v11194_v21 = vld [vmem:[#allocation32_spill] sm:$0xff]  ;;  %v11197_v50 = vld [vmem:[#allocation34_spill] sm:$0xff]  ;;  %v1851_v11 = vadd.f32 %v1835_v26, %v1819_v4 }
 0x380   : > { %v1836_v63 = vmul.f32 %v1804_v10, %v9181_v17  ;;  %v1850_v35 = vadd.f32 %v1834_v14, %v11197_v50  ;;  %v1838_v14 = vmul.f32 %v1806_v18, %v9199_v27 }
 0x381   : > { %v1768_v7 = vpop.permute.xlu1 %1767  ;;  %6330 = vmatprep.subr.bf16.mxu0 %v6329_v61  ;;  %6394 = vmatprep.subr.bf16.mxu1 %v6329_v61 }
 0x382   : > { %6332 = vmatpush3.bf16.xpose.msra.mxu0 %v6329_v61  ;;  %v1807_v62 = vsel %vm1590_vm0, %v1704_v12, %v1768_v7  ;;  %v1852_v32 = vadd.f32 %v1836_v63, %v1820_v3  ;;  %v1822_v12 = vmul.f32 %v8862_v46, %v8864_v60 }
 0x383   : > { %6396 = vmatpush3.bf16.xpose.msra.mxu1 %v6329_v61  ;;  %6334 = vmatprep.subr.bf16.mxu0 %v11192_v45  ;;  %v1708_v49 = vpop.permute.xlu0 %1707  ;;  %v1849_v61 = vadd.f32 %v1833_v25, %v11194_v21  ;;  %v1837_v25 = vmul.f32 %v1805_v6, %v9197_v44  ;;  %v11200_v21 = vld [vmem:[#allocation64_spill] sm:$0xff]  ;;  %v1839_v31 = vmul.f32 %v1807_v62, %v9213_v28 }
 0x384   : > { %v1823_v6 = vmul.f32 %v8877_v57, %v8879_v0  ;;  %v11202_v0 = vld [vmem:[#allocation46_spill] sm:$0xff] }
 0x385   : > { %v1770_v20 = vpop.permute.xlu1 %1769  ;;  %v1825_v50 = vmul.f32 %v8910_v34, %v11202_v0  ;;  %v1827_v34 = vmul.f32 %v11186_v24, %v8943_v59  ;;  %v1829_v59 = vmul.f32 %v11188_v56, %v8975_v5  ;;  %v11207_v5 = vld [vmem:[#allocation67_spill] sm:$0xff] }
 0x386   : > { %v1808_v13 = vsel %vm1590_vm0, %v1706_v39, %v1770_v20  ;;  %v1854_v39 = vadd.f32 %v1838_v14, %v1822_v12  ;;  %v1855_v60 = vadd.f32 %v1839_v31, %v1823_v6  ;;  %v11206_v12 = vld [vmem:[#allocation68_spill] sm:$0xff] }
 0x387   : > { %v1710_v37 = vpop.permute.xlu0 %1709  ;;  %v1840_v8 = vmul.f32 %v1808_v13, %v9219_v2 }
 0x389   : > { %v1772_v52 = vpop.permute.xlu1 %1771  ;;  %5982 = vmatmul.mubr.f32.vlgmr.msra.gmra.mrb[32].mxu0 %v1848_v55  ;;  %v11199_v55 = vld [vmem:[#allocation40_spill] sm:$0xff] }
 0x38a   : > { %5984 = vmatprep.mubr.f32.mxu0 %v1849_v61  ;;  %6336 = vmatpush3.bf16.msra.mxu0 %v11192_v45  ;;  %v1821_v10 = vmul.f32 %v8847_v15, %v11199_v55  ;;  %v1809_v7 = vsel %vm1590_vm0, %v1708_v49, %v1772_v52  ;;  %v11201_v49 = vld [vmem:[#allocation44_spill] sm:$0xff] }
 0x38b   : > { %6338 = vmatprep.subr.bf16.mxu0 %v11196_v36  ;;  %v1712_v51 = vpop.permute.xlu0 %1711  ;;  %v1841_v20 = vmul.f32 %v1809_v7, %v9233_v42  ;;  %v1824_v52 = vmul.f32 %v8894_v48, %v11201_v49 }
 0x38c   : > { %v1853_v26 = vadd.f32 %v1837_v25, %v1821_v10  ;;  %v11203_v25 = vld [vmem:[#allocation65_spill] sm:$0xff]  ;;  %v11205_v10 = vld [vmem:[#allocation66_spill] sm:$0xff] }
 0x38d   : > { %v1774_v58 = vpop.permute.xlu1 %1773  ;;  %5985 = vmatmul.mubr.f32.gmra.mrb[34].mxu0 %v1850_v35  ;;  %v1857_v16 = vadd.f32 %v1841_v20, %v1825_v50 }
 0x38e   : > { %5987 = vmatprep.mubr.f32.mxu0 %v1851_v11  ;;  %6340 = vmatpush3.bf16.msra.mxu0 %v11196_v36  ;;  %v1810_v46 = vsel %vm1590_vm0, %v1710_v37, %v1774_v58  ;;  %v1856_v37 = vadd.f32 %v1840_v8, %v1824_v52 }
 0x38f   : > { %6342 = vmatprep.subr.bf16.mxu0 %v11200_v21  ;;  %v1714_v61 = vpop.permute.xlu0 %1713  ;;  %v1842_v35 = vmul.f32 %v1810_v46, %v9238_v33 }
 0x391   : > { %v1776_v15 = vpop.permute.xlu1 %1775  ;;  %5988 = vmatmul.mubr.f32.gmra.mrb[36].mxu0 %v1852_v32 }
 0x392   : > { %5990 = vmatprep.mubr.f32.mxu0 %v1853_v26  ;;  %6344 = vmatpush3.bf16.msra.mxu0 %v11200_v21  ;;  %v1811_v63 = vsel %vm1590_vm0, %v1712_v51, %v1776_v15  ;;  %v11204_v51 = vld [vmem:[#allocation50_spill] sm:$0xff] }
 0x393   : > { %6346 = vmatprep.subr.bf16.mxu0 %v9043_v9  ;;  %v1716_v4 = vpop.permute.xlu0 %1715  ;;  %v1843_v11 = vmul.f32 %v1811_v63, %v9249_v38  ;;  %v1826_v3 = vmul.f32 %v11185_v1, %v11204_v51  ;;  %v1828_v1 = vmul.f32 %v11187_v41, %v8960_v30  ;;  %v1830_v30 = vmul.f32 %v11190_v47, %v8992_v53  ;;  %v11210_v63 = vld [vmem:[#allocation31_spill] sm:$0xff] }
 0x395   : > { %v1778_v57 = vpop.permute.xlu1 %1777  ;;  %5991 = vmatmul.mubr.f32.gmra.mrb[38].mxu0 %v1854_v39  ;;  %v1859_v31 = vadd.f32 %v1843_v11, %v1827_v34  ;;  %v11211_v11 = vld [vmem:[#allocation33_spill] sm:$0xff] }
 0x396   : > { %5993 = vmatprep.mubr.f32.mxu0 %v1855_v60  ;;  %6348 = vmatpush3.bf16.msra.mxu0 %v9043_v9  ;;  %v1812_v48 = vsel %vm1590_vm0, %v1714_v61, %v1778_v57  ;;  %v1858_v61 = vadd.f32 %v1842_v35, %v1826_v3  ;;  %v11209_v60 = vld [vmem:[#allocation29_spill] sm:$0xff] }
 0x397   : > { %6350 = vmatprep.subr.bf16.mxu0 %v11203_v25  ;;  %v1718_v18 = vpop.permute.xlu0 %1717  ;;  %v1844_v55 = vmul.f32 %v1812_v48, %v9252_v54 }
 0x399   : > { %v1780_v62 = vpop.permute.xlu1 %1779  ;;  %5994 = vmatmul.mubr.f32.gmra.mrb[40].mxu0 %v1856_v37  ;;  %v1860_v15 = vadd.f32 %v1844_v55, %v1828_v1 }
 0x39a   : > { %v1813_v58 = vsel %vm1590_vm0, %v1716_v4, %v1780_v62  ;;  %5996 = vmatprep.mubr.f32.mxu0 %v1857_v16  ;;  %6352 = vmatpush3.bf16.msra.mxu0 %v11203_v25  ;;  %v11208_v4 = vld [vmem:[#allocation69_spill] sm:$0xff]  ;;  %v11212_v62 = vld [vmem:[#allocation35_spill] sm:$0xff] }
 0x39b   : > { %6354 = vmatprep.subr.bf16.mxu0 %v11205_v10  ;;  %v2362_v14 = vpop.permute.xlu0 %2361  ;;  %v1845_v32 = vmul.f32 %v1813_v58, %v9261_v23 }
 0x39d   : > { %v1782_v13 = vpop.permute.xlu1 %1781  ;;  %5997 = vmatmul.mubr.f32.gmra.mrb[42].mxu0 %v1858_v61  ;;  %v1861_v6 = vadd.f32 %v1845_v32, %v1829_v59  ;;  %v11213_v61 = vld [vmem:[#allocation37_spill] sm:$0xff]  ;;  %v11214_v59 = vld [vmem:[#allocation39_spill] sm:$0xff] }
 0x39e   : > { %v1814_v24 = vsel %vm1590_vm0, %v1718_v18, %v1782_v13  ;;  %5999 = vmatprep.mubr.f32.mxu0 %v1859_v31  ;;  %6356 = vmatpush3.bf16.msra.mxu0 %v11205_v10 }
 0x39f   : > { %v1846_v26 = vmul.f32 %v1814_v24, %v9264_v22  ;;  %6358 = vmatprep.subr.bf16.mxu0 %v11206_v12  ;;  %v2364_v7 = vpop.permute.xlu0 %2363 }
 0x3a1   : > { %v2426_v41 = vpop.permute.xlu1 %2425  ;;  %6000 = vmatmul.mubr.f32.gmra.mrb[44].mxu0 %v1860_v15  ;;  %v1862_v20 = vadd.f32 %v1846_v26, %v1830_v30 }
 0x3a2   : > { %v2473_v8 = vsel %vm1590_vm0, %v2362_v14, %v2426_v41  ;;  %6002 = vmatprep.mubr.f32.mxu0 %v1861_v6  ;;  %6360 = vmatpush3.bf16.msra.mxu0 %v11206_v12  ;;  %v11215_v6 = vld [vmem:[#allocation41_spill] sm:$0xff] }
 0x3a3   : > { %v2505_v56 = vmul.f32 %v2473_v8, %v11207_v5  ;;  %6362 = vmatprep.subr.bf16.mxu0 %v11208_v4  ;;  %v2366_v39 = vpop.permute.xlu0 %2365 }
 0x3a5   : > { %v2428_v46 = vpop.permute.xlu1 %2427  ;;  %6003 = vmatmul.mubr.f32.gmra.mrb[46].mxu0 %v1862_v20  ;;  %v2521_v49 = vadd.f32 %v2505_v56, %v11209_v60  ;;  %v11216_v56 = vld [vmem:[#allocation42_spill] sm:$0xff] }
 0x3a6   : > { %v2474_v52 = vsel %vm1590_vm0, %v2364_v7, %v2428_v46  ;;  %6364 = vmatpush3.bf16.msra.mxu0 %v11208_v4 }
 0x3a7   : > { %v2506_v53 = vmul.f32 %v2474_v52, %v9109_v43  ;;  %6093 = vmatprep.mubr.f32.mxu1 %v2521_v49  ;;  %6398 = vmatprep.subr.bf16.mxu0 %v11192_v45  ;;  %v2368_v47 = vpop.permute.xlu0 %2367  ;;  %v11217_v49 = vld [vmem:[#allocation43_spill] sm:$0xff] }
 0x3a9   : > { %v2522_v57 = vadd.f32 %v2506_v53, %v11210_v63  ;;  %v2430_v0 = vpop.permute.xlu1 %2429 }
 0x3aa   : > { %v2475_v50 = vsel %vm1590_vm0, %v2366_v39, %v2430_v0 }
 0x3ab   : > { %v2507_v35 = vmul.f32 %v2475_v50, %v9141_v29  ;;  %6094 = vmatmul.mubr.f32.vlgmr.msra.gmra.mrb[64].mxu1 %v2522_v57  ;;  %v2370_v18 = vpop.permute.xlu0 %2369  ;;  %v11218_v57 = vld [vmem:[#allocation45_spill] sm:$0xff] }
 0x3ad   : > { %v2432_v37 = vpop.permute.xlu1 %2431  ;;  %v2523_v48 = vadd.f32 %v2507_v35, %v11211_v11 }
 0x3ae   : > { %v2476_v16 = vsel %vm1590_vm0, %v2368_v47, %v2432_v37  ;;  %v11219_v37 = vld [vmem:[#allocation48_spill] sm:$0xff] }
 0x3af   : > { %v2508_v43 = vmul.f32 %v2476_v16, %v9145_v40  ;;  %6096 = vmatprep.mubr.f32.mxu1 %v2523_v48  ;;  %v2372_v51 = vpop.permute.xlu0 %2371 }
 0x3b1   : > { %v2434_v3 = vpop.permute.xlu1 %2433  ;;  %v2524_v34 = vadd.f32 %v2508_v43, %v11212_v62 }
 0x3b2   : > { %v2477_v58 = vsel %vm1590_vm0, %v2370_v18, %v2434_v3 }
 0x3b3   : > { %v2509_v55 = vmul.f32 %v2477_v58, %v9177_v19  ;;  %6097 = vmatmul.mubr.f32.gmra.mrb[66].mxu1 %v2524_v34  ;;  %v2374_v29 = vpop.permute.xlu0 %2373  ;;  %v11221_v58 = vld [vmem:[#allocation53_spill] sm:$0xff] }
 0x3b5   : > { %v2436_v14 = vpop.permute.xlu1 %2435  ;;  %v2525_v32 = vadd.f32 %v2509_v55, %v11213_v61 }
 0x3b6   : > { %v2478_v31 = vsel %vm1590_vm0, %v2372_v51, %v2436_v14  ;;  %v11220_v51 = vld [vmem:[#allocation51_spill] sm:$0xff] }
 0x3b7   : > { %v2510_v1 = vmul.f32 %v2478_v31, %v9181_v17  ;;  %6099 = vmatprep.mubr.f32.mxu1 %v2525_v32  ;;  %v2376_v40 = vpop.permute.xlu0 %2375  ;;  %v11222_v32 = vld [vmem:[#allocation55_spill] sm:$0xff] }
 0x3b9   : > { %v2438_v13 = vpop.permute.xlu1 %2437  ;;  %v2526_v24 = vadd.f32 %v2510_v1, %v11214_v59  ;;  %v11223_v59 = vld [vmem:[#allocation58_spill] sm:$0xff] }
 0x3ba   : > { %v2479_v26 = vsel %vm1590_vm0, %v2374_v29, %v2438_v13 }
 0x3bb   : > { %v2511_v7 = vmul.f32 %v2479_v26, %v9197_v44  ;;  %6100 = vmatmul.mubr.f32.gmra.mrb[68].mxu1 %v2526_v24  ;;  %v2378_v19 = vpop.permute.xlu0 %2377 }
 0x3bd   : > { %v2440_v15 = vpop.permute.xlu1 %2439  ;;  %v2527_v30 = vadd.f32 %v2511_v7, %v11215_v6 }
 0x3be   : > { %v2480_v41 = vsel %vm1590_vm0, %v2376_v40, %v2440_v15  ;;  %v11225_v15 = vld [vmem:[#allocation28_spill] sm:$0xff] }
 0x3bf   : > { %v2512_v8 = vmul.f32 %v2480_v41, %v9199_v27  ;;  %6102 = vmatprep.mubr.f32.mxu1 %v2527_v30  ;;  %v2380_v17 = vpop.permute.xlu0 %2379  ;;  %v9408_v6 = vadd.s32 8, %v11225_v15  ;;  %v11226_v30 = vlaneseq }
 0x3c1   : > { %v2442_v5 = vpop.permute.xlu1 %2441  ;;  %v2528_v39 = vadd.f32 %v2512_v8, %v11216_v56  ;;  %v9411_v41 = vand.u32 127, %v11226_v30  ;;  %v9416_v8 = vadd.s32 24, %v11225_v15 }
 0x3c2   : > { %v2481_v20 = vsel %vm1590_vm0, %v2378_v19, %v2442_v5  ;;  %v11224_v19 = vld [vmem:[#allocation61_spill] sm:$0xff] }
 0x3c3   : > { %v2513_v46 = vmul.f32 %v2481_v20, %v9213_v28  ;;  %6103 = vmatmul.mubr.f32.gmra.mrb[70].mxu1 %v2528_v39  ;;  %v2382_v44 = vpop.permute.xlu0 %2381  ;;  %vm1431_vm1 = vcmp.le.s32.totalorder %v9411_v41, %v9408_v6  ;;  %vm1430_vm2 = vcmp.le.s32.totalorder %v9411_v41, %v11225_v15  ;;  %vm1433_vm3 = vcmp.le.s32.totalorder %v9411_v41, %v9416_v8 }
 0x3c5   : > { %v2444_v60 = vpop.permute.xlu1 %2443  ;;  %v2529_v52 = vadd.f32 %v2513_v46, %v11217_v49  ;;  %v9434_v46 = vadd.s32 40, %v11225_v15  ;;  %v9438_v49 = vadd.s32 16, %v11225_v15 }
 0x3c6   : > { %v2482_v53 = vsel %vm1590_vm0, %v2380_v17, %v2444_v60 }
 0x3c7   : > { %v2514_v47 = vmul.f32 %v2482_v53, %v9219_v2  ;;  %6105 = vmatprep.mubr.f32.mxu1 %v2529_v52  ;;  %v2384_v27 = vpop.permute.xlu0 %2383  ;;  %vm1435_vm4 = vcmp.le.s32.totalorder %v9411_v41, %v9434_v46  ;;  %vm1432_vm5 = vcmp.le.s32.totalorder %v9411_v41, %v9438_v49 }
 0x3c9   : > { %v2446_v63 = vpop.permute.xlu1 %2445  ;;  %v2530_v0 = vadd.f32 %v2514_v47, %v11218_v57 }
 0x3ca   : > { %v2483_v50 = vsel %vm1590_vm0, %v2382_v44, %v2446_v63 }
 0x3cb   : > { %v2515_v35 = vmul.f32 %v2483_v50, %v9233_v42  ;;  %6106 = vmatmul.mubr.f32.gmra.mrb[72].mxu1 %v2530_v0  ;;  %v2386_v28 = vpop.permute.xlu0 %2385  ;;  %v9454_v0 = vadd.s32 32, %v11225_v15 }
 0x3cd   : > { %v2448_v18 = vpop.permute.xlu1 %2447  ;;  %v2531_v11 = vadd.f32 %v2515_v35, %v11219_v37  ;;  %v9470_v37 = vadd.s32 72, %v11225_v15  ;;  %vm1434_vm7 = vcmp.le.s32.totalorder %v9411_v41, %v9454_v0 }
 0x3ce   : > { %v2484_v48 = vsel %vm1590_vm0, %v2384_v27, %v2448_v18  ;;  %v9448_v27 = vadd.s32 56, %v11225_v15 }
 0x3cf   : > { %v2516_v16 = vmul.f32 %v2484_v48, %v9238_v33  ;;  %6108 = vmatprep.mubr.f32.mxu1 %v2531_v11  ;;  %v2388_v2 = vpop.permute.xlu0 %2387  ;;  %vm1439_vm8 = vcmp.le.s32.totalorder %v9411_v41, %v9470_v37 }
 0x3d0   : > { %vm1437_vm6 = vcmp.le.s32.totalorder %v9411_v41, %v9448_v27 }
 0x3d1   : > { %v2450_v43 = vpop.permute.xlu1 %2449  ;;  %v2532_v3 = vadd.f32 %v2516_v16, %v11220_v51  ;;  %v9476_v16 = vadd.s32 48, %v11225_v15 }
 0x3d2   : > { %v2485_v62 = vsel %vm1590_vm0, %v2386_v28, %v2450_v43 }
 0x3d3   : > { %v2517_v34 = vmul.f32 %v2485_v62, %v9249_v38  ;;  %6109 = vmatmul.mubr.f32.gmra.mrb[74].mxu1 %v2532_v3  ;;  %v2390_v14 = vpop.permute.xlu0 %2389  ;;  %v9492_v62 = vadd.s32 88, %v11225_v15  ;;  %vm1436_vm9 = vcmp.le.s32.totalorder %v9411_v41, %v9476_v16 }
 0x3d5   : > { %v2452_v42 = vpop.permute.xlu1 %2451  ;;  %v2533_v55 = vadd.f32 %v2517_v34, %v11221_v58  ;;  %v9498_v58 = vadd.s32 64, %v11225_v15  ;;  %vm1441_vm10 = vcmp.le.s32.totalorder %v9411_v41, %v9492_v62 }
 0x3d6   : > { %v2486_v29 = vsel %vm1590_vm0, %v2388_v2, %v2452_v42 }
 0x3d7   : > { %v2518_v61 = vmul.f32 %v2486_v29, %v9252_v54  ;;  %6111 = vmatprep.mubr.f32.mxu1 %v2533_v55  ;;  %v2392_v13 = vpop.permute.xlu0 %2391  ;;  %vm1438_vm11 = vcmp.le.s32.totalorder %v9411_v41, %v9498_v58 }
 0x3d9   : > { %v2454_v33 = vpop.permute.xlu1 %2453  ;;  %v2534_v31 = vadd.f32 %v2518_v61, %v11222_v32 }
 0x3da   : > { %v2487_v1 = vsel %vm1590_vm0, %v2390_v14, %v2454_v33  ;;  %v9514_v33 = vadd.s32 104, %v11225_v15 }
 0x3db   : > { %v2519_v40 = vmul.f32 %v2487_v1, %v9261_v23  ;;  %6112 = vmatmul.mubr.f32.gmra.mrb[76].mxu1 %v2534_v31  ;;  %v9520_v1 = vadd.s32 80, %v11225_v15 }
 0x3dc   : > { %vm1443_vm12 = vcmp.le.s32.totalorder %v9411_v41, %v9514_v33 }
 0x3dd   : > { %v2456_v38 = vpop.permute.xlu1 %2455  ;;  %v2535_v24 = vadd.f32 %v2519_v40, %v11223_v59  ;;  %vm1440_vm13 = vcmp.le.s32.totalorder %v9411_v41, %v9520_v1 }
 0x3de   : > { %v2488_v26 = vsel %vm1590_vm0, %v2392_v13, %v2456_v38 }
 0x3df   : > { %v2520_v7 = vmul.f32 %v2488_v26, %v9264_v22  ;;  %6114 = vmatprep.mubr.f32.mxu1 %v2535_v24  ;;  %v9536_v24 = vadd.s32 120, %v11225_v15 }
 0x3e1   : > { %v2536_v54 = vadd.f32 %v2520_v7, %v11224_v19  ;;  %v9542_v19 = vadd.s32 96, %v11225_v15  ;;  %vm1445_vm14 = vcmp.le.s32.totalorder %v9411_v41, %v9536_v24 }
 0x3e3   : > { %6115 = vmatmul.mubr.f32.gmra.mrb[78].mxu1 %v2536_v54  ;;  %vm1442_vm15 = vcmp.le.s32.totalorder %v9411_v41, %v9542_v19 }
 0x45c   : > { %v5983_v23 = vpop.f32.mrb[32].mxu0 }
 0x45d   : > { %v2009_v17 = vmul.f32 0.088388346, %v5983_v23  ;;  %v1929_v5 = vpop.f32.mrb[33].mxu0 }
 0x45e   : > { %v2008_v22 = vmul.f32 0.088388346, %v1929_v5 }
 0x45f   : > { %v9423_v56 = vsel %vm1431_vm1, %v2009_v17, -inf }
 0x460   : > { %2042 = vmax.xlane.f32.xlu1 %v9423_v56  ;;  %v5986_v39 = vpop.f32.mrb[34].mxu0  ;;  %v9429_v20 = vsel %vm1430_vm2, %v2008_v22, -inf }
 0x461   : > { %v2011_v44 = vmul.f32 0.088388346, %v5986_v39  ;;  %2040 = vmax.xlane.f32.xlu0 %v9429_v20  ;;  %v1939_v60 = vpop.f32.mrb[35].mxu0  ;;  %v9561_v39 = vadd.s32 112, %v11225_v15 }
 0x462   : > { %v2010_v53 = vmul.f32 0.088388346, %v1939_v60 }
 0x463   : > { %v9443_v52 = vsel %vm1433_vm3, %v2011_v44, -inf  ;;  %vm1444_vm0 = vcmp.le.s32.totalorder %v9411_v41, %v9561_v39 }
 0x464   : > { %v5989_v47 = vpop.f32.mrb[36].mxu0  ;;  %v9465_v18 = vsel %vm1432_vm5, %v2010_v53, -inf }
 0x465   : > { %v2013_v63 = vmul.f32 0.088388346, %v5989_v47  ;;  %2046 = vmax.xlane.f32.xlu0 %v9443_v52  ;;  %v1949_v57 = vpop.f32.mrb[37].mxu0 }
 0x466   : > { %v2012_v35 = vmul.f32 0.088388346, %v1949_v57 }
 0x467   : > { %v9459_v50 = vsel %vm1435_vm4, %v2013_v63, -inf }
 0x468   : > { %2050 = vmax.xlane.f32.xlu1 %v9459_v50  ;;  %v5992_v28 = vpop.f32.mrb[38].mxu0  ;;  %v9487_v3 = vsel %vm1434_vm7, %v2012_v35, -inf }
 0x469   : > { %v2015_v11 = vmul.f32 0.088388346, %v5992_v28  ;;  %2044 = vmax.xlane.f32.xlu0 %v9465_v18  ;;  %v1959_v48 = vpop.f32.mrb[39].mxu0 }
 0x46a   : > { %v2014_v43 = vmul.f32 0.088388346, %v1959_v48 }
 0x46b   : > { %v9481_v2 = vsel %vm1437_vm6, %v2015_v11, -inf }
 0x46c   : > { %2054 = vmax.xlane.f32.xlu1 %v9481_v2  ;;  %v5995_v51 = vpop.f32.mrb[40].mxu0  ;;  %v9509_v61 = vsel %vm1436_vm9, %v2014_v43, -inf }
 0x46d   : > { %v2017_v34 = vmul.f32 0.088388346, %v5995_v51  ;;  %2048 = vmax.xlane.f32.xlu0 %v9487_v3  ;;  %v1969_v42 = vpop.f32.mrb[41].mxu0 }
 0x46e   : > { %v2016_v29 = vmul.f32 0.088388346, %v1969_v42 }
 0x46f   : > { %v9503_v55 = vsel %vm1439_vm8, %v2017_v34, -inf }
 0x470   : > { %2058 = vmax.xlane.f32.xlu1 %v9503_v55  ;;  %v5998_v14 = vpop.f32.mrb[42].mxu0  ;;  %v9531_v59 = vsel %vm1438_vm11, %v2016_v29, -inf }
 0x471   : > { %v2019_v32 = vmul.f32 0.088388346, %v5998_v14  ;;  %2052 = vmax.xlane.f32.xlu0 %v9509_v61  ;;  %v1979_v31 = vpop.f32.mrb[43].mxu0 }
 0x472   : > { %v2018_v13 = vmul.f32 0.088388346, %v1979_v31 }
 0x473   : > { %v9525_v40 = vsel %vm1441_vm10, %v2019_v32, -inf }
 0x474   : > { %2062 = vmax.xlane.f32.xlu1 %v9525_v40  ;;  %v6001_v38 = vpop.f32.mrb[44].mxu0  ;;  %v9553_v17 = vsel %vm1440_vm13, %v2018_v13, -inf }
 0x475   : > { %v2021_v26 = vmul.f32 0.088388346, %v6001_v38  ;;  %2056 = vmax.xlane.f32.xlu0 %v9531_v59  ;;  %v1989_v7 = vpop.f32.mrb[45].mxu0 }
 0x476   : > { %v2020_v30 = vmul.f32 0.088388346, %v1989_v7 }
 0x477   : > { %v9547_v54 = vsel %vm1443_vm12, %v2021_v26, -inf }
 0x478   : > { %2066 = vmax.xlane.f32.xlu1 %v9547_v54  ;;  %v6004_v23 = vpop.f32.mrb[46].mxu0  ;;  %v9572_v53 = vsel %vm1442_vm15, %v2020_v30, -inf }
 0x479   : > { %v2023_v5 = vmul.f32 0.088388346, %v6004_v23  ;;  %2060 = vmax.xlane.f32.xlu0 %v9553_v17  ;;  %v1999_v22 = vpop.f32.mrb[47].mxu0 }
 0x47a   : > { %v2022_v60 = vmul.f32 0.088388346, %v1999_v22 }
 0x47b   : > { %v9566_v44 = vsel %vm1445_vm14, %v2023_v5, -inf }
 0x47c   : > { %2070 = vmax.xlane.f32.xlu1 %v9566_v44  ;;  %v9580_v28 = vsel %vm1444_vm0, %v2022_v60, -inf }
 0x47d   : > { %2064 = vmax.xlane.f32.xlu0 %v9572_v53 }
 0x47e   : > { %v6095_v47 = vpop.f32.mrb[64].mxu1 }
 0x47f   : > { %v2683_v63 = vmul.f32 0.088388346, %v6095_v47  ;;  %v2603_v57 = vpop.f32.mrb[65].mxu1 }
 0x480   : > { %v2682_v35 = vmul.f32 0.088388346, %v2603_v57 }
 0x481   : > { %2068 = vmax.xlane.f32.xlu0 %v9580_v28  ;;  %v9586_v11 = vsel %vm1431_vm1, %v2683_v63, -inf }
 0x482   : > { %2716 = vmax.xlane.f32.xlu1 %v9586_v11  ;;  %v9592_v48 = vsel %vm1430_vm2, %v2682_v35, -inf }
 0x485   : > { %2714 = vmax.xlane.f32.xlu0 %v9592_v48 }
 0x486   : > { %v6098_v43 = vpop.f32.mrb[66].mxu1 }
 0x487   : > { %v2685_v51 = vmul.f32 0.088388346, %v6098_v43  ;;  %v2613_v34 = vpop.f32.mrb[67].mxu1 }
 0x488   : > { %v2684_v42 = vmul.f32 0.088388346, %v2613_v34 }
 0x489   : > { %v9598_v29 = vsel %vm1433_vm3, %v2685_v51, -inf }
 0x48a   : > { %2720 = vmax.xlane.f32.xlu1 %v9598_v29  ;;  %v9604_v6 = vsel %vm1432_vm5, %v2684_v42, -inf }
 0x48b   : > { %2718 = vmax.xlane.f32.xlu0 %v9604_v6 }
 0x48e   : > { %v6101_v14 = vpop.f32.mrb[68].mxu1 }
 0x48f   : > { %v2687_v32 = vmul.f32 0.088388346, %v6101_v14  ;;  %v2623_v31 = vpop.f32.mrb[69].mxu1 }
 0x490   : > { %v2686_v13 = vmul.f32 0.088388346, %v2623_v31 }
 0x491   : > { %v9610_v38 = vsel %vm1435_vm4, %v2687_v32, -inf }
 0x492   : > { %2724 = vmax.xlane.f32.xlu1 %v9610_v38  ;;  %v9616_v8 = vsel %vm1434_vm7, %v2686_v13, -inf }
 0x493   : > { %2722 = vmax.xlane.f32.xlu0 %v9616_v8 }
 0x496   : > { %v6104_v49 = vpop.f32.mrb[70].mxu1 }
 0x497   : > { %v2689_v26 = vmul.f32 0.088388346, %v6104_v49  ;;  %v2633_v7 = vpop.f32.mrb[71].mxu1 }
 0x498   : > { %v2688_v30 = vmul.f32 0.088388346, %v2633_v7 }
 0x499   : > { %v9622_v23 = vsel %vm1437_vm6, %v2689_v26, -inf }
 0x49a   : > { %2728 = vmax.xlane.f32.xlu1 %v9622_v23  ;;  %v9628_v46 = vsel %vm1436_vm9, %v2688_v30, -inf }
 0x49b   : > { %2726 = vmax.xlane.f32.xlu0 %v9628_v46 }
 0x49e   : > { %v6107_v0 = vpop.f32.mrb[72].mxu1 }
 0x49f   : > { %v2691_v5 = vmul.f32 0.088388346, %v6107_v0  ;;  %v2643_v22 = vpop.f32.mrb[73].mxu1 }
 0x4a0   : > { %v2690_v60 = vmul.f32 0.088388346, %v2643_v22 }
 0x4a1   : > { %v9634_v47 = vsel %vm1439_vm8, %v2691_v5, -inf }
 0x4a2   : > { %2732 = vmax.xlane.f32.xlu1 %v9634_v47  ;;  %v9640_v27 = vsel %vm1438_vm11, %v2690_v60, -inf }
 0x4a3   : > { %2730 = vmax.xlane.f32.xlu0 %v9640_v27 }
 0x4a6   : > { %v6110_v16 = vpop.f32.mrb[74].mxu1 }
 0x4a7   : > { %v2693_v63 = vmul.f32 0.088388346, %v6110_v16  ;;  %v2653_v57 = vpop.f32.mrb[75].mxu1 }
 0x4a8   : > { %v2692_v35 = vmul.f32 0.088388346, %v2653_v57 }
 0x4a9   : > { %v9646_v43 = vsel %vm1441_vm10, %v2693_v63, -inf }
 0x4aa   : > { %2736 = vmax.xlane.f32.xlu1 %v9646_v43  ;;  %v9652_v37 = vsel %vm1440_vm13, %v2692_v35, -inf }
 0x4ab   : > { %2734 = vmax.xlane.f32.xlu0 %v9652_v37 }
 0x4ae   : > { %v6113_v58 = vpop.f32.mrb[76].mxu1 }
 0x4af   : > { %v2695_v51 = vmul.f32 0.088388346, %v6113_v58  ;;  %v2663_v34 = vpop.f32.mrb[77].mxu1 }
 0x4b0   : > { %v2694_v42 = vmul.f32 0.088388346, %v2663_v34 }
 0x4b1   : > { %v9658_v14 = vsel %vm1443_vm12, %v2695_v51, -inf }
 0x4b2   : > { %2740 = vmax.xlane.f32.xlu1 %v9658_v14  ;;  %v9664_v62 = vsel %vm1442_vm15, %v2694_v42, -inf }
 0x4b3   : > { %2738 = vmax.xlane.f32.xlu0 %v9664_v62 }
 0x4b6   : > { %v6116_v1 = vpop.f32.mrb[78].mxu1 }
 0x4b7   : > { %v2697_v32 = vmul.f32 0.088388346, %v6116_v1  ;;  %v2673_v31 = vpop.f32.mrb[79].mxu1 }
 0x4b8   : > { %v2696_v13 = vmul.f32 0.088388346, %v2673_v31 }
 0x4b9   : > { %v9670_v49 = vsel %vm1445_vm14, %v2697_v32, -inf }
 0x4ba   : > { %2744 = vmax.xlane.f32.xlu1 %v9670_v49  ;;  %v9676_v33 = vsel %vm1444_vm0, %v2696_v13, -inf }
 0x4bb   : > { %2742 = vmax.xlane.f32.xlu0 %v9676_v33 }
 0x4ed   : > { %v2043_v19 = vpop.xlane.xlu1 %2042 }
 0x4ee   : > { %v2073_v26 = vsub.f32 %v9423_v56, %v2043_v19  ;;  %v2041_v7 = vpop.xlane.xlu0 %2040 }
 0x4ef   : > { %v2072_v30 = vsub.f32 %v9429_v20, %v2041_v7 }
 0x4f0   : > { %v2090_v0 = vmul.f32 1.442695, %v2073_v26 }
 0x4f1   : > { %v2088_v5 = vmul.f32 1.442695, %v2072_v30 }
 0x4f2   : > { %7119 = vpow2.f32 %v2090_v0  ;;  %v2047_v24 = vpop.xlane.xlu0 %2046 }
 0x4f3   : > { %7121 = vpow2.f32 %v2088_v5  ;;  %v2075_v22 = vsub.f32 %v9443_v52, %v2047_v24 }
 0x4f5   : > { %v2094_v60 = vmul.f32 1.442695, %v2075_v22  ;;  %v2051_v16 = vpop.xlane.xlu1 %2050 }
 0x4f6   : > { %v2077_v41 = vsub.f32 %v9459_v50, %v2051_v16  ;;  %v2045_v39 = vpop.xlane.xlu0 %2044 }
 0x4f7   : > { %7123 = vpow2.f32 %v2094_v60  ;;  %v2074_v63 = vsub.f32 %v9465_v18, %v2045_v39 }
 0x4f8   : > { %v2098_v57 = vmul.f32 1.442695, %v2077_v41 }
 0x4f9   : > { %v2092_v56 = vmul.f32 1.442695, %v2074_v63  ;;  %v2055_v35 = vpop.xlane.xlu1 %2054 }
 0x4fa   : > { %7125 = vpow2.f32 %v2098_v57  ;;  %v2079_v20 = vsub.f32 %v9481_v2, %v2055_v35  ;;  %v2049_v58 = vpop.xlane.xlu0 %2048 }
 0x4fb   : > { %7127 = vpow2.f32 %v2092_v56  ;;  %v2076_v51 = vsub.f32 %v9487_v3, %v2049_v58 }
 0x4fc   : > { %v9686_v34 = vpop.eup %7119  ;;  %v2102_v52 = vmul.f32 1.442695, %v2079_v20 }
 0x4fd   : > { %v9688_v42 = vpop.eup %7121  ;;  %v2096_v50 = vmul.f32 1.442695, %v2076_v51  ;;  %v2059_v1 = vpop.xlane.xlu1 %2058  ;;  %2122 = vadd.xlane.f32.xlu1 %v9686_v34 }
 0x4fe   : > { %7129 = vpow2.f32 %v2102_v52  ;;  %v2081_v18 = vsub.f32 %v9503_v55, %v2059_v1  ;;  %2120 = vadd.xlane.f32.xlu0 %v9688_v42  ;;  %v2053_v32 = vpop.xlane.xlu0 %2052 }
 0x4ff   : > { %7131 = vpow2.f32 %v2096_v50  ;;  %v2078_v2 = vsub.f32 %v9509_v61, %v2053_v32 }
 0x500   : > { %v2106_v31 = vmul.f32 1.442695, %v2081_v18 }
 0x501   : > { %v9694_v3 = vpop.eup %7123  ;;  %v2100_v13 = vmul.f32 1.442695, %v2078_v2  ;;  %v2063_v19 = vpop.xlane.xlu1 %2062 }
 0x502   : > { %7133 = vpow2.f32 %v2106_v31  ;;  %v2083_v26 = vsub.f32 %v9525_v40, %v2063_v19  ;;  %2126 = vadd.xlane.f32.xlu1 %v9694_v3  ;;  %v2057_v7 = vpop.xlane.xlu0 %2056 }
 0x503   : > { %7135 = vpow2.f32 %v2100_v13  ;;  %v2080_v55 = vsub.f32 %v9531_v59, %v2057_v7 }
 0x504   : > { %v9699_v30 = vpop.eup %7125  ;;  %v2110_v0 = vmul.f32 1.442695, %v2083_v26 }
 0x505   : > { %v9701_v5 = vpop.eup %7127  ;;  %v2104_v61 = vmul.f32 1.442695, %v2080_v55  ;;  %v2067_v24 = vpop.xlane.xlu1 %2066 }
 0x506   : > { %7137 = vpow2.f32 %v2110_v0  ;;  %v2085_v22 = vsub.f32 %v9547_v54, %v2067_v24  ;;  %2130 = vadd.xlane.f32.xlu1 %v9699_v30  ;;  %2124 = vadd.xlane.f32.xlu0 %v9701_v5  ;;  %v2061_v40 = vpop.xlane.xlu0 %2060 }
 0x507   : > { %7139 = vpow2.f32 %v2104_v61  ;;  %v2082_v60 = vsub.f32 %v9553_v17, %v2061_v40 }
 0x508   : > { %v9707_v16 = vpop.eup %7129  ;;  %v2114_v59 = vmul.f32 1.442695, %v2085_v22 }
 0x509   : > { %v9709_v41 = vpop.eup %7131  ;;  %v2108_v39 = vmul.f32 1.442695, %v2082_v60  ;;  %v2071_v63 = vpop.xlane.xlu1 %2070 }
 0x50a   : > { %7141 = vpow2.f32 %v2114_v59  ;;  %v2087_v57 = vsub.f32 %v9566_v44, %v2071_v63  ;;  %2134 = vadd.xlane.f32.xlu1 %v9707_v16  ;;  %2128 = vadd.xlane.f32.xlu0 %v9709_v41  ;;  %v2065_v54 = vpop.xlane.xlu0 %2064 }
 0x50b   : > { %7143 = vpow2.f32 %v2108_v39  ;;  %v2084_v56 = vsub.f32 %v9572_v53, %v2065_v54 }
 0x50c   : > { %v9715_v35 = vpop.eup %7133  ;;  %v2118_v17 = vmul.f32 1.442695, %v2087_v57 }
 0x50d   : > { %v9717_v20 = vpop.eup %7135  ;;  %v2112_v58 = vmul.f32 1.442695, %v2084_v56 }
 0x50e   : > { %7145 = vpow2.f32 %v2118_v17  ;;  %2138 = vadd.xlane.f32.xlu1 %v9715_v35  ;;  %2132 = vadd.xlane.f32.xlu0 %v9717_v20  ;;  %v2069_v44 = vpop.xlane.xlu0 %2068 }
 0x50f   : > { %7147 = vpow2.f32 %v2112_v58  ;;  %v2086_v51 = vsub.f32 %v9580_v28, %v2069_v44  ;;  %v2717_v52 = vpop.xlane.xlu1 %2716 }
 0x510   : > { %v9722_v50 = vpop.eup %7137  ;;  %v2747_v53 = vsub.f32 %v9586_v11, %v2717_v52 }
 0x511   : > { %v9725_v1 = vpop.eup %7139  ;;  %v2116_v18 = vmul.f32 1.442695, %v2086_v51 }
 0x512   : > { %v2764_v32 = vmul.f32 1.442695, %v2747_v53  ;;  %2142 = vadd.xlane.f32.xlu1 %v9722_v50  ;;  %2136 = vadd.xlane.f32.xlu0 %v9725_v1  ;;  %v2715_v2 = vpop.xlane.xlu0 %2714 }
 0x513   : > { %7149 = vpow2.f32 %v2116_v18  ;;  %v2746_v31 = vsub.f32 %v9592_v48, %v2715_v2 }
 0x514   : > { %v9730_v13 = vpop.eup %7141  ;;  %7151 = vpow2.f32 %v2764_v32 }
 0x515   : > { %v9732_v28 = vpop.eup %7143  ;;  %v2762_v19 = vmul.f32 1.442695, %v2746_v31 }
 0x516   : > { %2146 = vadd.xlane.f32.xlu1 %v9730_v13  ;;  %2140 = vadd.xlane.f32.xlu0 %v9732_v28 }
 0x517   : > { %7153 = vpow2.f32 %v2762_v19  ;;  %v2721_v11 = vpop.xlane.xlu1 %2720 }
 0x518   : > { %v9736_v26 = vpop.eup %7145  ;;  %v2749_v7 = vsub.f32 %v9598_v29, %v2721_v11  ;;  %v2719_v55 = vpop.xlane.xlu0 %2718 }
 0x519   : > { %v9739_v0 = vpop.eup %7147  ;;  %v2748_v48 = vsub.f32 %v9604_v6, %v2719_v55 }
 0x51a   : > { %v2768_v61 = vmul.f32 1.442695, %v2749_v7  ;;  %2150 = vadd.xlane.f32.xlu1 %v9736_v26  ;;  %2144 = vadd.xlane.f32.xlu0 %v9739_v0 }
 0x51b   : > { %v2766_v24 = vmul.f32 1.442695, %v2748_v48 }
 0x51c   : > { %7155 = vpow2.f32 %v2768_v61 }
 0x51d   : > { %v9744_v22 = vpop.eup %7149  ;;  %7157 = vpow2.f32 %v2766_v24 }
 0x51e   : > { %v9746_v40 = vpop.eup %7151  ;;  %2148 = vadd.xlane.f32.xlu0 %v9744_v22 }
 0x51f   : > { %v2725_v29 = vpop.xlane.xlu1 %2724  ;;  %2796 = vadd.xlane.f32.xlu1 %v9746_v40 }
 0x520   : > { %v2751_v60 = vsub.f32 %v9610_v38, %v2725_v29  ;;  %v2723_v6 = vpop.xlane.xlu0 %2722 }
 0x521   : > { %v9751_v59 = vpop.eup %7153  ;;  %v2750_v39 = vsub.f32 %v9616_v8, %v2723_v6 }
 0x522   : > { %v2772_v63 = vmul.f32 1.442695, %v2751_v60  ;;  %2794 = vadd.xlane.f32.xlu0 %v9751_v59 }
 0x523   : > { %v2770_v57 = vmul.f32 1.442695, %v2750_v39 }
 0x524   : > { %7159 = vpow2.f32 %v2772_v63 }
 0x525   : > { %7161 = vpow2.f32 %v2770_v57 }
 0x526   : > { %v9755_v54 = vpop.eup %7155 }
 0x527   : > { %v9757_v56 = vpop.eup %7157  ;;  %v2729_v17 = vpop.xlane.xlu1 %2728  ;;  %2800 = vadd.xlane.f32.xlu1 %v9755_v54 }
 0x528   : > { %v2753_v38 = vsub.f32 %v9622_v23, %v2729_v17  ;;  %2798 = vadd.xlane.f32.xlu0 %v9757_v56  ;;  %v2727_v58 = vpop.xlane.xlu0 %2726 }
 0x529   : > { %v2752_v8 = vsub.f32 %v9628_v46, %v2727_v58 }
 0x52a   : > { %v2776_v44 = vmul.f32 1.442695, %v2753_v38 }
 0x52b   : > { %v2774_v51 = vmul.f32 1.442695, %v2752_v8 }
 0x52c   : > { %7163 = vpow2.f32 %v2776_v44 }
 0x52d   : > { %7165 = vpow2.f32 %v2774_v51 }
 0x52e   : > { %v9763_v52 = vpop.eup %7159 }
 0x52f   : > { %v9765_v53 = vpop.eup %7161  ;;  %v2733_v18 = vpop.xlane.xlu1 %2732  ;;  %2804 = vadd.xlane.f32.xlu1 %v9763_v52 }
 0x530   : > { %v2755_v32 = vsub.f32 %v9634_v47, %v2733_v18  ;;  %2802 = vadd.xlane.f32.xlu0 %v9765_v53  ;;  %v2731_v23 = vpop.xlane.xlu0 %2730 }
 0x531   : > { %v2754_v2 = vsub.f32 %v9640_v27, %v2731_v23  ;;  %v3006_v23 = vld [vmem:[#allocation13 + $0x18] sm:$0xff] }
 0x532   : > { %v2780_v31 = vmul.f32 1.442695, %v2755_v32 }
 0x533   : > { %v2778_v46 = vmul.f32 1.442695, %v2754_v2  ;;  %v3003_v2 = vld [vmem:[#allocation13] sm:$0xff] }
 0x534   : > { %7167 = vpow2.f32 %v2780_v31 }
 0x535   : > { %7169 = vpow2.f32 %v2778_v46  ;;  %v3005_v46 = vld [vmem:[#allocation13 + $0x10] sm:$0xff] }
 0x536   : > { %v9771_v19 = vpop.eup %7163 }
 0x537   : > { %v9773_v11 = vpop.eup %7165  ;;  %v2737_v7 = vpop.xlane.xlu1 %2736  ;;  %2808 = vadd.xlane.f32.xlu1 %v9771_v19 }
 0x538   : > { %v2757_v55 = vsub.f32 %v9646_v43, %v2737_v7  ;;  %2806 = vadd.xlane.f32.xlu0 %v9773_v11  ;;  %v2735_v47 = vpop.xlane.xlu0 %2734  ;;  %v3008_v7 = vld [vmem:[#allocation13 + $0x28] sm:$0xff] }
 0x539   : > { %v2756_v48 = vsub.f32 %v9652_v37, %v2735_v47  ;;  %v6431_v47 = vpack.c.bf16 %v3005_v46, %v3003_v2  ;;  %v3019_v46 = vld [vmem:[#allocation13 + $0x80] sm:$0xff] }
 0x53a   : > { %v2784_v61 = vmul.f32 1.442695, %v2757_v55  ;;  %v3010_v55 = vld [vmem:[#allocation13 + $0x38] sm:$0xff] }
 0x53b   : > { %v2782_v27 = vmul.f32 1.442695, %v2756_v48  ;;  %v6433_v48 = vpack.c.bf16 %v3010_v55, %v3008_v7  ;;  %v3021_v7 = vld [vmem:[#allocation13 + $0x90] sm:$0xff]  ;;  %v3024_v55 = vld [vmem:[#allocation13 + $0xa8] sm:$0xff] }
 0x53c   : > { %7171 = vpow2.f32 %v2784_v61  ;;  %v3007_v61 = vld [vmem:[#allocation13 + $0x20] sm:$0xff] }
 0x53d   : > { %7173 = vpow2.f32 %v2782_v27  ;;  %v3009_v27 = vld [vmem:[#allocation13 + $0x30] sm:$0xff] }
 0x53e   : > { %v9779_v24 = vpop.eup %7167 }
 0x53f   : > { %v9781_v29 = vpop.eup %7169  ;;  %v2741_v60 = vpop.xlane.xlu1 %2740  ;;  %2812 = vadd.xlane.f32.xlu1 %v9779_v24 }
 0x540   : > { %v2759_v6 = vsub.f32 %v9658_v14, %v2741_v60  ;;  %2810 = vadd.xlane.f32.xlu0 %v9781_v29  ;;  %v2739_v43 = vpop.xlane.xlu0 %2738  ;;  %v3012_v60 = vld [vmem:[#allocation13 + $0x48] sm:$0xff] }
 0x541   : > { %v2758_v39 = vsub.f32 %v9664_v62, %v2739_v43  ;;  %v6435_v43 = vpack.c.bf16 %v3009_v27, %v3007_v61  ;;  %v3023_v27 = vld [vmem:[#allocation13 + $0xa0] sm:$0xff] }
 0x542   : > { %v2788_v63 = vmul.f32 1.442695, %v2759_v6  ;;  %v3014_v6 = vld [vmem:[#allocation13 + $0x58] sm:$0xff] }
 0x543   : > { %v2786_v37 = vmul.f32 1.442695, %v2758_v39  ;;  %v6437_v39 = vpack.c.bf16 %v3014_v6, %v3012_v60  ;;  %v3025_v60 = vld [vmem:[#allocation13 + $0xb0] sm:$0xff]  ;;  %v3028_v6 = vld [vmem:[#allocation13 + $0xc8] sm:$0xff] }
 0x544   : > { %7175 = vpow2.f32 %v2788_v63  ;;  %v3011_v63 = vld [vmem:[#allocation13 + $0x40] sm:$0xff] }
 0x545   : > { %7177 = vpow2.f32 %v2786_v37  ;;  %v3013_v37 = vld [vmem:[#allocation13 + $0x50] sm:$0xff] }
 0x546   : > { %v9787_v57 = vpop.eup %7171 }
 0x547   : > { %v9789_v17 = vpop.eup %7173  ;;  %v2745_v38 = vpop.xlane.xlu1 %2744  ;;  %2816 = vadd.xlane.f32.xlu1 %v9787_v57 }
 0x548   : > { %v2761_v58 = vsub.f32 %v9670_v49, %v2745_v38  ;;  %2814 = vadd.xlane.f32.xlu0 %v9789_v17  ;;  %v2743_v14 = vpop.xlane.xlu0 %2742  ;;  %v3016_v38 = vld [vmem:[#allocation13 + $0x68] sm:$0xff] }
 0x549   : > { %v2760_v8 = vsub.f32 %v9676_v33, %v2743_v14  ;;  %v3004_v33 = vld [vmem:[#allocation13 + $0x8] sm:$0xff]  ;;  %v6439_v14 = vpack.c.bf16 %v3013_v37, %v3011_v63 }
 0x54a   : > { %v2792_v44 = vmul.f32 1.442695, %v2761_v58  ;;  %v6429_v31 = vpack.c.bf16 %v3006_v23, %v3004_v33  ;;  %v3018_v58 = vld [vmem:[#allocation13 + $0x78] sm:$0xff]  ;;  %v3020_v33 = vld [vmem:[#allocation13 + $0x88] sm:$0xff] }
 0x54b   : > { %v2790_v62 = vmul.f32 1.442695, %v2760_v8  ;;  %v6441_v8 = vpack.c.bf16 %v3018_v58, %v3016_v38  ;;  %v3022_v23 = vld [vmem:[#allocation13 + $0x98] sm:$0xff] }
 0x54c   : > { %7179 = vpow2.f32 %v2792_v44  ;;  %6430 = vmatprep.subr.bf16.mxu1 %v6429_v31  ;;  %v3015_v44 = vld [vmem:[#allocation13 + $0x60] sm:$0xff]  ;;  %v6445_v31 = vpack.c.bf16 %v3022_v23, %v3020_v33 }
 0x54d   : > { %7181 = vpow2.f32 %v2790_v62  ;;  %6432 = vmatpush1.bf16.msra.mxu1 %v6431_v47  ;;  %v3017_v62 = vld [vmem:[#allocation13 + $0x70] sm:$0xff]  ;;  %v3026_v47 = vld [vmem:[#allocation13 + $0xb8] sm:$0xff] }
 0x54e   : > { %v9795_v51 = vpop.eup %7175  ;;  %6434 = vmatprep.subr.bf16.mxu1 %v6433_v48  ;;  %v6443_v2 = vpack.c.bf16 %v3017_v62, %v3015_v44  ;;  %v6447_v48 = vpack.c.bf16 %v3021_v7, %v3019_v46  ;;  %v6449_v61 = vpack.c.bf16 %v3026_v47, %v3024_v55 }
 0x54f   : > { %v9797_v18 = vpop.eup %7177  ;;  %2820 = vadd.xlane.f32.xlu1 %v9795_v51 }
 0x550   : > { %2818 = vadd.xlane.f32.xlu0 %v9797_v18 }
 0x551   : > { %6436 = vmatpush1.bf16.msra.mxu1 %v6435_v43  ;;  %v3030_v43 = vld [vmem:[#allocation13 + $0xd8] sm:$0xff] }
 0x552   : > { %6438 = vmatprep.subr.bf16.mxu1 %v6437_v39  ;;  %v6451_v39 = vpack.c.bf16 %v3025_v60, %v3023_v27  ;;  %v6453_v63 = vpack.c.bf16 %v3030_v43, %v3028_v6 }
 0x555   : > { %6440 = vmatpush1.bf16.msra.mxu1 %v6439_v14 }
 0x556   : > { %v9801_v32 = vpop.eup %7179  ;;  %6442 = vmatprep.subr.bf16.mxu1 %v6441_v8 }
 0x557   : > { %v9803_v49 = vpop.eup %7181  ;;  %2824 = vadd.xlane.f32.xlu1 %v9801_v32 }
 0x558   : > { %2822 = vadd.xlane.f32.xlu0 %v9803_v49 }
 0x559   : > { %6444 = vmatpush1.bf16.msra.mxu1 %v6443_v2 }
 0x55a   : > { %6446 = vmatprep.subr.bf16.mxu1 %v6445_v31 }
 0x55d   : > { %6448 = vmatpush1.bf16.msra.mxu1 %v6447_v48 }
 0x55e   : > { %6450 = vmatprep.subr.bf16.mxu1 %v6449_v61 }
 0x561   : > { %6452 = vmatpush1.bf16.msra.mxu1 %v6451_v39 }
 0x562   : > { %6454 = vmatprep.subr.bf16.mxu1 %v6453_v63 }
 0x58a   : > { %v2123_v37 = vpop.xlane.xlu1 %2122 }
 0x58b   : > { %7183 = vrcp.f32 %v2123_v37  ;;  %v2121_v38 = vpop.xlane.xlu0 %2120 }
 0x58c   : > { %7185 = vrcp.f32 %v2121_v38 }
 0x58f   : > { %v2127_v58 = vpop.xlane.xlu1 %2126 }
 0x590   : > { %7187 = vrcp.f32 %v2127_v58 }
 0x593   : > { %v2131_v14 = vpop.xlane.xlu1 %2130  ;;  %v2125_v8 = vpop.xlane.xlu0 %2124 }
 0x594   : > { %7189 = vrcp.f32 %v2125_v8 }
 0x595   : > { %v7184_v44 = vpop.eup %7183  ;;  %7191 = vrcp.f32 %v2131_v14 }
 0x596   : > { %v7186_v62 = vpop.eup %7185  ;;  %v2155_v31 = vmul.f32 %v7184_v44, %v9686_v34 }
 0x597   : > { %v2135_v33 = vpop.xlane.xlu1 %2134  ;;  %v2129_v23 = vpop.xlane.xlu0 %2128  ;;  %v2153_v2 = vmul.f32 %v7186_v62, %v9688_v42 }
 0x598   : > { %7193 = vrcp.f32 %v2129_v23 }
 0x599   : > { %6037 = vmatprep.mubr.f32.mxu0 %v2153_v2  ;;  %7195 = vrcp.f32 %v2135_v33 }
 0x59a   : > { %6038 = vmatmul.mubr.f32.vlgmr.msra.gmra.mrb[48].mxu0 %v2155_v31  ;;  %v7188_v55 = vpop.eup %7187 }
 0x59b   : > { %6400 = vmatpush3.bf16.msra.mxu0 %v11192_v45  ;;  %v2139_v46 = vpop.xlane.xlu1 %2138  ;;  %v2133_v7 = vpop.xlane.xlu0 %2132  ;;  %v2159_v45 = vmul.f32 %v7188_v55, %v9694_v3 }
 0x59c   : > { %6402 = vmatprep.subr.bf16.mxu0 %v11196_v36  ;;  %7197 = vrcp.f32 %v2133_v7 }
 0x59d   : > { %7199 = vrcp.f32 %v2139_v46 }
 0x59e   : > { %v7190_v47 = vpop.eup %7189 }
 0x59f   : > { %6404 = vmatpush3.bf16.msra.mxu0 %v11196_v36  ;;  %v2143_v48 = vpop.xlane.xlu1 %2142  ;;  %v2137_v42 = vpop.xlane.xlu0 %2136  ;;  %v2157_v34 = vmul.f32 %v7190_v47, %v9701_v5 }
 0x5a0   : > { %6406 = vmatprep.subr.bf16.mxu0 %v11200_v21  ;;  %7201 = vrcp.f32 %v2137_v42  ;;  %v7192_v61 = vpop.eup %7191 }
 0x5a1   : > { %6040 = vmatprep.mubr.f32.mxu0 %v2157_v34  ;;  %7203 = vrcp.f32 %v2143_v48  ;;  %v2163_v43 = vmul.f32 %v7192_v61, %v9699_v30 }
 0x5a2   : > { %v7194_v27 = vpop.eup %7193  ;;  %6041 = vmatmul.mubr.f32.gmra.mrb[50].mxu0 %v2159_v45 }
 0x5a3   : > { %v2147_v60 = vpop.xlane.xlu1 %2146  ;;  %v2141_v6 = vpop.xlane.xlu0 %2140  ;;  %6408 = vmatpush3.bf16.msra.mxu0 %v11200_v21  ;;  %v2161_v36 = vmul.f32 %v7194_v27, %v9709_v41 }
 0x5a4   : > { %6410 = vmatprep.subr.bf16.mxu0 %v9043_v9  ;;  %7205 = vrcp.f32 %v2141_v6  ;;  %v7196_v5 = vpop.eup %7195 }
 0x5a5   : > { %6043 = vmatprep.mubr.f32.mxu0 %v2161_v36  ;;  %7207 = vrcp.f32 %v2147_v60  ;;  %v2167_v21 = vmul.f32 %v7196_v5, %v9707_v16 }
 0x5a6   : > { %v7198_v39 = vpop.eup %7197  ;;  %6044 = vmatmul.mubr.f32.gmra.mrb[52].mxu0 %v2163_v43 }
 0x5a7   : > { %v2151_v3 = vpop.xlane.xlu1 %2150  ;;  %v2145_v63 = vpop.xlane.xlu0 %2144  ;;  %6412 = vmatpush3.bf16.msra.mxu0 %v9043_v9  ;;  %v2165_v37 = vmul.f32 %v7198_v39, %v9717_v20 }
 0x5a8   : > { %6414 = vmatprep.subr.bf16.mxu0 %v11203_v25  ;;  %7209 = vrcp.f32 %v2145_v63  ;;  %v7200_v41 = vpop.eup %7199 }
 0x5a9   : > { %6046 = vmatprep.mubr.f32.mxu0 %v2165_v37  ;;  %7211 = vrcp.f32 %v2151_v3  ;;  %v2171_v9 = vmul.f32 %v7200_v41, %v9715_v35 }
 0x5aa   : > { %v7202_v38 = vpop.eup %7201  ;;  %6047 = vmatmul.mubr.f32.gmra.mrb[54].mxu0 %v2167_v21 }
 0x5ab   : > { %v2149_v30 = vpop.xlane.xlu0 %2148  ;;  %6416 = vmatpush3.bf16.msra.mxu0 %v11203_v25  ;;  %v2169_v14 = vmul.f32 %v7202_v38, %v9725_v1  ;;  %v7204_v20 = vpop.eup %7203 }
 0x5ac   : > { %7213 = vrcp.f32 %v2149_v30  ;;  %v2797_v58 = vpop.xlane.xlu1 %2796  ;;  %6418 = vmatprep.subr.bf16.mxu0 %v11205_v10  ;;  %v2175_v25 = vmul.f32 %v7204_v20, %v9722_v50 }
 0x5ad   : > { %6049 = vmatprep.mubr.f32.mxu0 %v2169_v14  ;;  %7215 = vrcp.f32 %v2797_v58  ;;  %v3027_v14 = vld [vmem:[#allocation13 + $0xc0] sm:$0xff] }
 0x5ae   : > { %v7206_v8 = vpop.eup %7205  ;;  %6050 = vmatmul.mubr.f32.gmra.mrb[56].mxu0 %v2171_v9  ;;  %v3029_v9 = vld [vmem:[#allocation13 + $0xd0] sm:$0xff] }
 0x5af   : > { %v2795_v16 = vpop.xlane.xlu0 %2794  ;;  %6420 = vmatpush3.bf16.msra.mxu0 %v11205_v10  ;;  %v2173_v44 = vmul.f32 %v7206_v8, %v9732_v28  ;;  %v7208_v1 = vpop.eup %7207  ;;  %v6455_v20 = vpack.c.bf16 %v3029_v9, %v3027_v14  ;;  %v3034_v8 = vld [vmem:[#allocation13 + $0xf8] sm:$0xff] }
 0x5b0   : > { %7217 = vrcp.f32 %v2795_v16  ;;  %6422 = vmatprep.subr.bf16.mxu0 %v11206_v12  ;;  %v2179_v28 = vmul.f32 %v7208_v1, %v9730_v13  ;;  %v3036_v1 = vld [vmem:[#allocation13 + $0x108] sm:$0xff] }
 0x5b1   : > { %6052 = vmatprep.mubr.f32.mxu0 %v2173_v44  ;;  %6456 = vmatpush1.bf16.msra.mxu1 %v6455_v20 }
 0x5b2   : > { %v7210_v62 = vpop.eup %7209  ;;  %6053 = vmatmul.mubr.f32.gmra.mrb[58].mxu0 %v2175_v25  ;;  %v3033_v25 = vld [vmem:[#allocation13 + $0xf0] sm:$0xff] }
 0x5b3   : > { %6424 = vmatpush3.bf16.msra.mxu0 %v11206_v12  ;;  %v2177_v33 = vmul.f32 %v7210_v62, %v9739_v0  ;;  %v7212_v23 = vpop.eup %7211  ;;  %v3038_v62 = vld [vmem:[#allocation13 + $0x118] sm:$0xff] }
 0x5b4   : > { %v2801_v35 = vpop.xlane.xlu1 %2800  ;;  %6426 = vmatprep.subr.bf16.mxu0 %v11208_v4  ;;  %v2183_v12 = vmul.f32 %v7212_v23, %v9736_v26  ;;  %v6461_v23 = vpack.c.bf16 %v3038_v62, %v3036_v1 }
 0x5b5   : > { %7219 = vrcp.f32 %v2801_v35  ;;  %v2799_v10 = vpop.xlane.xlu0 %2798  ;;  %6055 = vmatprep.mubr.f32.mxu0 %v2177_v33 }
 0x5b6   : > { %v7214_v2 = vpop.eup %7213  ;;  %7221 = vrcp.f32 %v2799_v10  ;;  %6056 = vmatmul.mubr.f32.gmra.mrb[60].mxu0 %v2179_v28  ;;  %v3035_v10 = vld [vmem:[#allocation13 + $0x100] sm:$0xff]  ;;  %v3037_v28 = vld [vmem:[#allocation13 + $0x110] sm:$0xff] }
 0x5b7   : > { %v2181_v50 = vmul.f32 %v7214_v2, %v9744_v22  ;;  %6428 = vmatpush3.bf16.msra.mxu0 %v11208_v4  ;;  %v7216_v31 = vpop.eup %7215  ;;  %v6463_v2 = vpack.c.bf16 %v3037_v28, %v3035_v10 }
 0x5b8   : > { %v2829_v55 = vmul.f32 %v7216_v31, %v9746_v40  ;;  %v3042_v31 = vld [vmem:[#allocation13 + $0x138] sm:$0xff] }
 0x5b9   : > { %6058 = vmatprep.mubr.f32.mxu0 %v2181_v50  ;;  %v3040_v50 = vld [vmem:[#allocation13 + $0x128] sm:$0xff] }
 0x5ba   : > { %v7218_v0 = vpop.eup %7217  ;;  %6059 = vmatmul.mubr.f32.gmra.mrb[62].mxu0 %v2183_v12  ;;  %v6465_v12 = vpack.c.bf16 %v3042_v31, %v3040_v50 }
 0x5bb   : > { %v2827_v46 = vmul.f32 %v7218_v0, %v9751_v59  ;;  %v3039_v0 = vld [vmem:[#allocation13 + $0x120] sm:$0xff] }
 0x5bc   : > { %v2805_v7 = vpop.xlane.xlu1 %2804 }
 0x5bd   : > { %7223 = vrcp.f32 %v2805_v7  ;;  %6149 = vmatprep.mubr.f32.mxu0 %v2827_v46  ;;  %v2803_v13 = vpop.xlane.xlu0 %2802  ;;  %v3041_v46 = vld [vmem:[#allocation13 + $0x130] sm:$0xff] }
 0x5be   : > { %7225 = vrcp.f32 %v2803_v13  ;;  %6150 = vmatmul.mubr.f32.vlgmr.msra.gmra.mrb[64].mxu0 %v2829_v55  ;;  %v6467_v7 = vpack.c.bf16 %v3041_v46, %v3039_v0  ;;  %v3046_v55 = vld [vmem:[#allocation13 + $0x158] sm:$0xff] }
 0x5bf   : > { %v7220_v47 = vpop.eup %7219 }
 0x5c0   : > { %v7222_v22 = vpop.eup %7221  ;;  %v2833_v48 = vmul.f32 %v7220_v47, %v9755_v54  ;;  %v3045_v47 = vld [vmem:[#allocation13 + $0x150] sm:$0xff] }
 0x5c1   : > { %v2831_v4 = vmul.f32 %v7222_v22, %v9757_v56 }
 0x5c3   : > { %6152 = vmatprep.mubr.f32.mxu0 %v2831_v4  ;;  %v3048_v4 = vld [vmem:[#allocation13 + $0x168] sm:$0xff] }
 0x5c4   : > { %v2809_v26 = vpop.xlane.xlu1 %2808  ;;  %6153 = vmatmul.mubr.f32.gmra.mrb[66].mxu0 %v2833_v48  ;;  %v3050_v48 = vld [vmem:[#allocation13 + $0x178] sm:$0xff] }
 0x5c5   : > { %7227 = vrcp.f32 %v2809_v26  ;;  %v2807_v42 = vpop.xlane.xlu0 %2806  ;;  %v6473_v26 = vpack.c.bf16 %v3050_v48, %v3048_v4  ;;  %v3469_v4 = vld [vmem:[#allocation14 + $0x28] sm:$0xff]  ;;  %v3467_v48 = vld [vmem:[#allocation14 + $0x18] sm:$0xff] }
 0x5c6   : > { %7229 = vrcp.f32 %v2807_v42  ;;  %v3047_v42 = vld [vmem:[#allocation13 + $0x160] sm:$0xff] }
 0x5c7   : > { %v7224_v59 = vpop.eup %7223 }
 0x5c8   : > { %v7226_v34 = vpop.eup %7225  ;;  %v2837_v45 = vmul.f32 %v7224_v59, %v9763_v52  ;;  %v3049_v59 = vld [vmem:[#allocation13 + $0x170] sm:$0xff] }
 0x5c9   : > { %v2835_v40 = vmul.f32 %v7226_v34, %v9765_v53  ;;  %v6475_v34 = vpack.c.bf16 %v3049_v59, %v3047_v42  ;;  %v3471_v42 = vld [vmem:[#allocation14 + $0x38] sm:$0xff]  ;;  %v3464_v59 = vld [vmem:[#allocation14] sm:$0xff] }
 0x5cb   : > { %6155 = vmatprep.mubr.f32.mxu0 %v2835_v40  ;;  %v3052_v40 = vld [vmem:[#allocation13 + $0x188] sm:$0xff] }
 0x5cc   : > { %v2813_v61 = vpop.xlane.xlu1 %2812  ;;  %6156 = vmatmul.mubr.f32.gmra.mrb[68].mxu0 %v2837_v45  ;;  %v3054_v45 = vld [vmem:[#allocation13 + $0x198] sm:$0xff] }
 0x5cd   : > { %7231 = vrcp.f32 %v2813_v61  ;;  %v2811_v27 = vpop.xlane.xlu0 %2810  ;;  %v6477_v61 = vpack.c.bf16 %v3054_v45, %v3052_v40  ;;  %v6557_v40 = vpack.c.bf16 %v3471_v42, %v3467_v48  ;;  %v3504_v48 = vld [vmem:[#allocation14 + $0x140] sm:$0xff]  ;;  %v3506_v42 = vld [vmem:[#allocation14 + $0x150] sm:$0xff] }
 0x5ce   : > { %7233 = vrcp.f32 %v2811_v27  ;;  %v3051_v27 = vld [vmem:[#allocation13 + $0x180] sm:$0xff] }
 0x5cf   : > { %v7228_v56 = vpop.eup %7227 }
 0x5d0   : > { %v7230_v54 = vpop.eup %7229  ;;  %v2841_v6 = vmul.f32 %v7228_v56, %v9771_v19  ;;  %v3053_v56 = vld [vmem:[#allocation13 + $0x190] sm:$0xff] }
 0x5d1   : > { %v2839_v60 = vmul.f32 %v7230_v54, %v9773_v11  ;;  %v6479_v54 = vpack.c.bf16 %v3053_v56, %v3051_v27  ;;  %v3470_v27 = vld [vmem:[#allocation14 + $0x30] sm:$0xff]  ;;  %v3473_v56 = vld [vmem:[#allocation14 + $0x48] sm:$0xff] }
 0x5d3   : > { %6158 = vmatprep.mubr.f32.mxu0 %v2839_v60  ;;  %v3056_v60 = vld [vmem:[#allocation13 + $0x1a8] sm:$0xff] }
 0x5d4   : > { %v2817_v36 = vpop.xlane.xlu1 %2816  ;;  %6159 = vmatmul.mubr.f32.gmra.mrb[70].mxu0 %v2841_v6  ;;  %v3058_v6 = vld [vmem:[#allocation13 + $0x1b8] sm:$0xff] }
 0x5d5   : > { %7235 = vrcp.f32 %v2817_v36  ;;  %v2815_v43 = vpop.xlane.xlu0 %2814  ;;  %v6481_v36 = vpack.c.bf16 %v3058_v6, %v3056_v60  ;;  %v3477_v60 = vld [vmem:[#allocation14 + $0x68] sm:$0xff]  ;;  %v3475_v6 = vld [vmem:[#allocation14 + $0x58] sm:$0xff] }
 0x5d6   : > { %7237 = vrcp.f32 %v2815_v43  ;;  %v3055_v43 = vld [vmem:[#allocation13 + $0x1a0] sm:$0xff] }
 0x5d7   : > { %v7232_v53 = vpop.eup %7231 }
 0x5d8   : > { %v7234_v52 = vpop.eup %7233  ;;  %v2845_v39 = vmul.f32 %v7232_v53, %v9779_v24  ;;  %v3057_v53 = vld [vmem:[#allocation13 + $0x1b0] sm:$0xff] }
 0x5d9   : > { %v2843_v5 = vmul.f32 %v7234_v52, %v9781_v29  ;;  %v6483_v52 = vpack.c.bf16 %v3057_v53, %v3055_v43  ;;  %v6497_v43 = vpack.c.bf16 %v3477_v60, %v3473_v56 }
 0x5db   : > { %6161 = vmatprep.mubr.f32.mxu0 %v2843_v5  ;;  %v3060_v5 = vld [vmem:[#allocation13 + $0x1c8] sm:$0xff] }
 0x5dc   : > { %v2821_v3 = vpop.xlane.xlu1 %2820  ;;  %6162 = vmatmul.mubr.f32.gmra.mrb[72].mxu0 %v2845_v39  ;;  %v3062_v39 = vld [vmem:[#allocation13 + $0x1d8] sm:$0xff] }
 0x5dd   : > { %7239 = vrcp.f32 %v2821_v3  ;;  %v2819_v63 = vpop.xlane.xlu0 %2818  ;;  %v6485_v3 = vpack.c.bf16 %v3062_v39, %v3060_v5  ;;  %v3476_v5 = vld [vmem:[#allocation14 + $0x60] sm:$0xff]  ;;  %v3474_v39 = vld [vmem:[#allocation14 + $0x50] sm:$0xff] }
 0x5de   : > { %7241 = vrcp.f32 %v2819_v63  ;;  %v3059_v63 = vld [vmem:[#allocation13 + $0x1c0] sm:$0xff] }
 0x5df   : > { %v7236_v11 = vpop.eup %7235 }
 0x5e0   : > { %v7238_v19 = vpop.eup %7237  ;;  %v2849_v21 = vmul.f32 %v7236_v11, %v9787_v57  ;;  %v3031_v57 = vld [vmem:[#allocation13 + $0xe0] sm:$0xff]  ;;  %v3061_v11 = vld [vmem:[#allocation13 + $0x1d0] sm:$0xff] }
 0x5e1   : > { %v2847_v37 = vmul.f32 %v7238_v19, %v9789_v17  ;;  %v3032_v17 = vld [vmem:[#allocation13 + $0xe8] sm:$0xff]  ;;  %v6459_v33 = vpack.c.bf16 %v3033_v25, %v3031_v57  ;;  %v6487_v19 = vpack.c.bf16 %v3061_v11, %v3059_v63  ;;  %v3478_v63 = vld [vmem:[#allocation14 + $0x70] sm:$0xff] }
 0x5e2   : > { %v6457_v44 = vpack.c.bf16 %v3034_v8, %v3032_v17  ;;  %v3481_v11 = vld [vmem:[#allocation14 + $0x88] sm:$0xff] }
 0x5e3   : > { %6164 = vmatprep.mubr.f32.mxu0 %v2847_v37  ;;  %v3064_v37 = vld [vmem:[#allocation13 + $0x1e8] sm:$0xff] }
 0x5e4   : > { %v2825_v41 = vpop.xlane.xlu1 %2824  ;;  %6165 = vmatmul.mubr.f32.gmra.mrb[74].mxu0 %v2849_v21  ;;  %6458 = vmatprep.subr.bf16.mxu1 %v6457_v44  ;;  %v3066_v21 = vld [vmem:[#allocation13 + $0x1f8] sm:$0xff] }
 0x5e5   : > { %7243 = vrcp.f32 %v2825_v41  ;;  %v2823_v38 = vpop.xlane.xlu0 %2822  ;;  %6460 = vmatpush1.bf16.msra.mxu1 %v6459_v33  ;;  %v6489_v41 = vpack.c.bf16 %v3066_v21, %v3064_v37  ;;  %v6563_v37 = vpack.c.bf16 %v3478_v63, %v3474_v39  ;;  %v3525_v39 = vld [vmem:[#allocation14 + $0x1e8] sm:$0xff]  ;;  %v3527_v63 = vld [vmem:[#allocation14 + $0x1f8] sm:$0xff] }
 0x5e6   : > { %7245 = vrcp.f32 %v2823_v38  ;;  %6462 = vmatprep.subr.bf16.mxu1 %v6461_v23  ;;  %v3063_v38 = vld [vmem:[#allocation13 + $0x1e0] sm:$0xff] }
 0x5e7   : > { %v7240_v29 = vpop.eup %7239 }
 0x5e8   : > { %v7242_v24 = vpop.eup %7241  ;;  %v2853_v58 = vmul.f32 %v7240_v29, %v9795_v51  ;;  %v3065_v29 = vld [vmem:[#allocation13 + $0x1f0] sm:$0xff] }
 0x5e9   : > { %v2851_v30 = vmul.f32 %v7242_v24, %v9797_v18  ;;  %6464 = vmatpush1.bf16.msra.mxu1 %v6463_v2  ;;  %v6491_v24 = vpack.c.bf16 %v3065_v29, %v3063_v38  ;;  %v3487_v38 = vld [vmem:[#allocation14 + $0xb8] sm:$0xff]  ;;  %v3480_v29 = vld [vmem:[#allocation14 + $0x80] sm:$0xff] }
 0x5ea   : > { %6466 = vmatprep.subr.bf16.mxu1 %v6465_v12 }
 0x5eb   : > { %6167 = vmatprep.mubr.f32.mxu0 %v2851_v30 }
 0x5ec   : > { %6168 = vmatmul.mubr.f32.gmra.mrb[76].mxu0 %v2853_v58 }
 0x5ed   : > { %6468 = vmatpush1.bf16.msra.mxu1 %v6467_v7 }
 0x5ef   : > { %v7244_v16 = vpop.eup %7243 }
 0x5f0   : > { %v7246_v35 = vpop.eup %7245  ;;  %v2857_v51 = vmul.f32 %v7244_v16, %v9801_v32  ;;  %v3043_v32 = vld [vmem:[#allocation13 + $0x140] sm:$0xff] }
 0x5f1   : > { %v2855_v18 = vmul.f32 %v7246_v35, %v9803_v49  ;;  %v3044_v49 = vld [vmem:[#allocation13 + $0x148] sm:$0xff]  ;;  %v6471_v22 = vpack.c.bf16 %v3045_v47, %v3043_v32 }
 0x5f2   : > { %v6469_v13 = vpack.c.bf16 %v3046_v55, %v3044_v49 }
 0x5f3   : > { %6170 = vmatprep.mubr.f32.mxu0 %v2855_v18 }
 0x5f4   : > { %6171 = vmatmul.mubr.f32.gmra.mrb[78].mxu0 %v2857_v51  ;;  %6470 = vmatprep.subr.bf16.mxu1 %v6469_v13 }
 0x5f5   : > { %6472 = vmatpush1.bf16.msra.mxu1 %v6471_v22  ;;  %v3465_v22 = vld [vmem:[#allocation14 + $0x8] sm:$0xff] }
 0x5f6   : > { %6474 = vmatprep.subr.bf16.mxu1 %v6473_v26  ;;  %v6493_v26 = vpack.c.bf16 %v3469_v4, %v3465_v22 }
 0x5f8   : > { %6494 = vmatprep.subr.bf16.mxu0 %v6493_v26  ;;  %v3508_v26 = vld [vmem:[#allocation14 + $0x160] sm:$0xff] }
 0x5f9   : > { %6476 = vmatpush1.bf16.msra.mxu1 %v6475_v34  ;;  %v3468_v34 = vld [vmem:[#allocation14 + $0x20] sm:$0xff]  ;;  %v6515_v56 = vpack.c.bf16 %v3508_v26, %v3504_v48  ;;  %v3546_v48 = vld [vmem:[#allocation14 + $0x290] sm:$0xff] }
 0x5fa   : > { %6478 = vmatprep.subr.bf16.mxu1 %v6477_v61  ;;  %v6495_v45 = vpack.c.bf16 %v3468_v34, %v3464_v59  ;;  %v3466_v61 = vld [vmem:[#allocation14 + $0x10] sm:$0xff] }
 0x5fb   : > { %v3510_v34 = vld [vmem:[#allocation14 + $0x170] sm:$0xff] }
 0x5fc   : > { %6496 = vmatpush1.bf16.msra.mxu0 %v6495_v45  ;;  %v3517_v45 = vld [vmem:[#allocation14 + $0x1a8] sm:$0xff]  ;;  %v3550_v26 = vld [vmem:[#allocation14 + $0x2b0] sm:$0xff] }
 0x5fd   : > { %6480 = vmatpush1.bf16.msra.mxu1 %v6479_v54  ;;  %v6559_v54 = vpack.c.bf16 %v3470_v27, %v3466_v61  ;;  %6498 = vmatprep.subr.bf16.mxu0 %v6497_v43  ;;  %v3515_v61 = vld [vmem:[#allocation14 + $0x198] sm:$0xff]  ;;  %v3514_v43 = vld [vmem:[#allocation14 + $0x190] sm:$0xff] }
 0x5fe   : > { %6482 = vmatprep.subr.bf16.mxu1 %v6481_v36  ;;  %v3479_v36 = vld [vmem:[#allocation14 + $0x78] sm:$0xff] }
 0x5ff   : > { %v6561_v53 = vpack.c.bf16 %v3479_v36, %v3475_v6  ;;  %v3519_v27 = vld [vmem:[#allocation14 + $0x1b8] sm:$0xff]  ;;  %v3512_v6 = vld [vmem:[#allocation14 + $0x180] sm:$0xff] }
 0x600   : > { %v3516_v36 = vld [vmem:[#allocation14 + $0x1a0] sm:$0xff] }
 0x601   : > { %6484 = vmatpush1.bf16.msra.mxu1 %v6483_v52  ;;  %v3472_v52 = vld [vmem:[#allocation14 + $0x40] sm:$0xff] }
 0x602   : > { %6486 = vmatprep.subr.bf16.mxu1 %v6485_v3  ;;  %v6499_v3 = vpack.c.bf16 %v3476_v5, %v3472_v52  ;;  %v3518_v52 = vld [vmem:[#allocation14 + $0x1b0] sm:$0xff]  ;;  %v3521_v5 = vld [vmem:[#allocation14 + $0x1c8] sm:$0xff] }
 0x604   : > { %6500 = vmatpush1.bf16.msra.mxu0 %v6499_v3  ;;  %v3523_v3 = vld [vmem:[#allocation14 + $0x1d8] sm:$0xff] }
 0x605   : > { %6488 = vmatpush1.bf16.msra.mxu1 %v6487_v19  ;;  %v3485_v19 = vld [vmem:[#allocation14 + $0xa8] sm:$0xff] }
 0x606   : > { %6490 = vmatprep.subr.bf16.mxu1 %v6489_v41  ;;  %v6501_v21 = vpack.c.bf16 %v3485_v19, %v3481_v11  ;;  %v3483_v41 = vld [vmem:[#allocation14 + $0x98] sm:$0xff]  ;;  %v6519_v11 = vpack.c.bf16 %v3516_v36, %v3512_v6  ;;  %v6583_v19 = vpack.c.bf16 %v3518_v52, %v3514_v43  ;;  %v7537_v36 = vld [vmem:[%s8371_s13 + $0x10] sm:$0xff] }
 0x607   : > { %v7538_v52 = vld [vmem:[%s8371_s13 + $0x18] sm:$0xff] }
 0x608   : > { %6502 = vmatprep.subr.bf16.mxu0 %v6501_v21  ;;  %v3520_v21 = vld [vmem:[#allocation14 + $0x1c0] sm:$0xff] }
 0x609   : > { %6492 = vmatpush1.bf16.msra.mxu1 %v6491_v24  ;;  %v6565_v24 = vpack.c.bf16 %v3487_v38, %v3483_v41  ;;  %v3524_v41 = vld [vmem:[#allocation14 + $0x1e0] sm:$0xff]  ;;  %v3522_v38 = vld [vmem:[#allocation14 + $0x1d0] sm:$0xff] }
 0x60a   : > { %6558 = vmatprep.subr.bf16.mxu1 %v6557_v40  ;;  %v3513_v40 = vld [vmem:[#allocation14 + $0x188] sm:$0xff] }
 0x60b   : > { %v6517_v60 = vpack.c.bf16 %v3517_v45, %v3513_v40  ;;  %v7535_v40 = vld [vmem:[%s8371_s13] sm:$0xff] }
 0x66d   : > { %v6039_v30 = vpop.f32.mrb[48].mxu0 }
 0x66e   : > { %v2250_v58 = vpop.f32.mrb[49].mxu0 }
 0x675   : > { %v6042_v14 = vpop.f32.mrb[50].mxu0 }
 0x676   : > { %v2260_v9 = vpop.f32.mrb[51].mxu0 }
 0x679   : > { %v6045_v20 = vpop.f32.mrb[52].mxu0 }
 0x67a   : > { %v2270_v17 = vpop.f32.mrb[53].mxu0 }
 0x67d   : > { %v6048_v8 = vpop.f32.mrb[54].mxu0 }
 0x67e   : > { %v2280_v57 = vpop.f32.mrb[55].mxu0 }
 0x681   : > { %v6051_v16 = vpop.f32.mrb[56].mxu0 }
 0x682   : > { %v2290_v44 = vpop.f32.mrb[57].mxu0 }
 0x685   : > { %v6054_v25 = vpop.f32.mrb[58].mxu0 }
 0x686   : > { %v2300_v1 = vpop.f32.mrb[59].mxu0 }
 0x689   : > { %v6057_v62 = vpop.f32.mrb[60].mxu0 }
 0x68a   : > { %v2310_v35 = vpop.f32.mrb[61].mxu0 }
 0x68d   : > { %v6060_v33 = vpop.f32.mrb[62].mxu0 }
 0x68e   : > { %v2320_v23 = vpop.f32.mrb[63].mxu0 }
 0x691   : > { %v6151_v18 = vpop.f32.mrb[64].mxu0 }
 0x692   : > { %v2924_v51 = vpop.f32.mrb[65].mxu0 }
 0x693   : > { %3131 = vmatprep.mubr.f32.mxu1 %v2924_v51  ;;  %v3499_v51 = vld [vmem:[#allocation14 + $0x118] sm:$0xff] }
 0x694   : > { %3132 = vmatmul.mubr.f32.vlgmr.msra.gmra.mrb[80].mxu1 %v2250_v58  ;;  %v3482_v58 = vld [vmem:[#allocation14 + $0x90] sm:$0xff] }
 0x695   : > { %3137 = vmatprep.mubr.f32.mxu1 %v6151_v18  ;;  %6560 = vmatpush1.bf16.msra.mxu1 %v6559_v54  ;;  %v3501_v18 = vld [vmem:[#allocation14 + $0x128] sm:$0xff]  ;;  %v6579_v54 = vpack.c.bf16 %v3510_v34, %v3506_v42 }
 0x696   : > { %6562 = vmatprep.subr.bf16.mxu1 %v6561_v53  ;;  %v6581_v53 = vpack.c.bf16 %v3519_v27, %v3515_v61  ;;  %v7536_v27 = vld [vmem:[%s8371_s13 + $0x8] sm:$0xff] }
 0x697   : > { %v6154_v10 = vpop.f32.mrb[66].mxu0 }
 0x698   : > { %v2934_v28 = vpop.f32.mrb[67].mxu0  ;;  %3138 = vmatmul.mubr.f32.gmra.mrb[82].mxu1 %v6039_v30  ;;  %v3484_v30 = vld [vmem:[#allocation14 + $0xa0] sm:$0xff] }
 0x699   : > { %3143 = vmatprep.mubr.f32.mxu1 %v2934_v28  ;;  %6564 = vmatpush1.bf16.msra.mxu1 %v6563_v37  ;;  %v6521_v37 = vpack.c.bf16 %v3525_v39, %v3521_v5 }
 0x69a   : > { %6566 = vmatprep.subr.bf16.mxu1 %v6565_v24  ;;  %v3526_v24 = vld [vmem:[#allocation14 + $0x1f0] sm:$0xff] }
 0x69c   : > { %3144 = vmatmul.mubr.f32.gmra.mrb[84].mxu1 %v2260_v9  ;;  %v6503_v9 = vpack.c.bf16 %v3484_v30, %v3480_v29  ;;  %v6585_v29 = vpack.c.bf16 %v3527_v63, %v3523_v3  ;;  %v3529_v30 = vld [vmem:[#allocation14 + $0x208] sm:$0xff] }
 0x69d   : > { %3149 = vmatprep.mubr.f32.mxu1 %v6154_v10  ;;  %v3503_v10 = vld [vmem:[#allocation14 + $0x138] sm:$0xff] }
 0x69e   : > { %6504 = vmatpush1.bf16.msra.mxu0 %v6503_v9  ;;  %v3535_v9 = vld [vmem:[#allocation14 + $0x238] sm:$0xff] }
 0x69f   : > { %v6157_v2 = vpop.f32.mrb[68].mxu0 }
 0x6a0   : > { %v2944_v50 = vpop.f32.mrb[69].mxu0  ;;  %3150 = vmatmul.mubr.f32.gmra.mrb[86].mxu1 %v6042_v14  ;;  %v3486_v14 = vld [vmem:[#allocation14 + $0xb0] sm:$0xff] }
 0x6a1   : > { %3155 = vmatprep.mubr.f32.mxu1 %v2944_v50 }
 0x6a4   : > { %3156 = vmatmul.mubr.f32.gmra.mrb[88].mxu1 %v2270_v17  ;;  %v3493_v17 = vld [vmem:[#allocation14 + $0xe8] sm:$0xff] }
 0x6a5   : > { %3161 = vmatprep.mubr.f32.mxu1 %v6157_v2 }
 0x6a7   : > { %v6160_v31 = vpop.f32.mrb[70].mxu0 }
 0x6a8   : > { %v2954_v12 = vpop.f32.mrb[71].mxu0  ;;  %3162 = vmatmul.mubr.f32.gmra.mrb[90].mxu1 %v6045_v20  ;;  %v3489_v20 = vld [vmem:[#allocation14 + $0xc8] sm:$0xff] }
 0x6a9   : > { %3167 = vmatprep.mubr.f32.mxu1 %v2954_v12  ;;  %v3500_v12 = vld [vmem:[#allocation14 + $0x120] sm:$0xff] }
 0x6ac   : > { %3168 = vmatmul.mubr.f32.gmra.mrb[92].mxu1 %v2280_v57  ;;  %v6567_v57 = vpack.c.bf16 %v3486_v14, %v3482_v58  ;;  %v3533_v58 = vld [vmem:[#allocation14 + $0x228] sm:$0xff]  ;;  %v3531_v14 = vld [vmem:[#allocation14 + $0x218] sm:$0xff] }
 0x6ad   : > { %3173 = vmatprep.mubr.f32.mxu1 %v6160_v31  ;;  %v3496_v31 = vld [vmem:[#allocation14 + $0x100] sm:$0xff] }
 0x6ae   : > { %6568 = vmatpush1.bf16.msra.mxu1 %v6567_v57  ;;  %v3528_v57 = vld [vmem:[#allocation14 + $0x200] sm:$0xff] }
 0x6af   : > { %v6163_v0 = vpop.f32.mrb[72].mxu0 }
 0x6b0   : > { %v2964_v46 = vpop.f32.mrb[73].mxu0  ;;  %3174 = vmatmul.mubr.f32.gmra.mrb[94].mxu1 %v6048_v8  ;;  %v3491_v8 = vld [vmem:[#allocation14 + $0xd8] sm:$0xff] }
 0x6b1   : > { %3179 = vmatprep.mubr.f32.mxu1 %v2964_v46  ;;  %v6573_v46 = vpack.c.bf16 %v3503_v10, %v3499_v51 }
 0x6b4   : > { %3180 = vmatmul.mubr.f32.gmra.mrb[96].mxu1 %v2290_v44  ;;  %v3495_v44 = vld [vmem:[#allocation14 + $0xf8] sm:$0xff] }
 0x6b5   : > { %3185 = vmatprep.mubr.f32.mxu1 %v6163_v0  ;;  %v3498_v0 = vld [vmem:[#allocation14 + $0x110] sm:$0xff] }
 0x6b7   : > { %v6166_v7 = vpop.f32.mrb[74].mxu0 }
 0x6b8   : > { %v2974_v49 = vpop.f32.mrb[75].mxu0  ;;  %3186 = vmatmul.mubr.f32.gmra.mrb[98].mxu1 %v6051_v16  ;;  %v6505_v16 = vpack.c.bf16 %v3493_v17, %v3489_v20  ;;  %v6523_v20 = vpack.c.bf16 %v3524_v41, %v3520_v21  ;;  %v6587_v17 = vpack.c.bf16 %v3526_v24, %v3522_v38  ;;  %v7540_v41 = vld [vmem:[%s8371_s13 + $0x28] sm:$0xff] }
 0x6b9   : > { %3191 = vmatprep.mubr.f32.mxu1 %v2974_v49  ;;  %v3505_v49 = vld [vmem:[#allocation14 + $0x148] sm:$0xff] }
 0x6ba   : > { %6506 = vmatprep.subr.bf16.mxu0 %v6505_v16  ;;  %v3532_v16 = vld [vmem:[#allocation14 + $0x220] sm:$0xff] }
 0x6bc   : > { %3192 = vmatmul.mubr.f32.gmra.mrb[100].mxu1 %v2300_v1  ;;  %v3492_v1 = vld [vmem:[#allocation14 + $0xe0] sm:$0xff] }
 0x6bd   : > { %3197 = vmatprep.mubr.f32.mxu1 %v6166_v7  ;;  %v3502_v7 = vld [vmem:[#allocation14 + $0x130] sm:$0xff] }
 0x6be   : > { %v6575_v22 = vpack.c.bf16 %v3502_v7, %v3498_v0  ;;  %v3545_v0 = vld [vmem:[#allocation14 + $0x288] sm:$0xff]  ;;  %v3547_v7 = vld [vmem:[#allocation14 + $0x298] sm:$0xff] }
 0x6bf   : > { %v6169_v55 = vpop.f32.mrb[76].mxu0 }
 0x6c0   : > { %v2984_v13 = vpop.f32.mrb[77].mxu0  ;;  %3198 = vmatmul.mubr.f32.gmra.mrb[102].mxu1 %v6054_v25  ;;  %v3488_v25 = vld [vmem:[#allocation14 + $0xc0] sm:$0xff] }
 0x6c1   : > { %3203 = vmatprep.mubr.f32.mxu1 %v2984_v13  ;;  %v6507_v28 = vpack.c.bf16 %v3492_v1, %v3488_v25  ;;  %v3507_v13 = vld [vmem:[#allocation14 + $0x158] sm:$0xff]  ;;  %v6589_v25 = vpack.c.bf16 %v3535_v9, %v3531_v14  ;;  %v3534_v1 = vld [vmem:[#allocation14 + $0x230] sm:$0xff] }
 0x6c2   : > { %v7541_v14 = vld [vmem:[%s8371_s13 + $0x30] sm:$0xff] }
 0x6c3   : > { %6508 = vmatpush1.bf16.msra.mxu0 %v6507_v28  ;;  %v3536_v28 = vld [vmem:[#allocation14 + $0x240] sm:$0xff] }
 0x6c4   : > { %3204 = vmatmul.mubr.f32.gmra.mrb[104].mxu1 %v2310_v35  ;;  %v3490_v35 = vld [vmem:[#allocation14 + $0xd0] sm:$0xff] }
 0x6c5   : > { %3209 = vmatprep.mubr.f32.mxu1 %v6169_v55  ;;  %v3509_v55 = vld [vmem:[#allocation14 + $0x168] sm:$0xff] }
 0x6c6   : > { %v6513_v4 = vpack.c.bf16 %v3509_v55, %v3505_v49  ;;  %v3551_v49 = vld [vmem:[#allocation14 + $0x2b8] sm:$0xff] }
 0x6c7   : > { %v6172_v32 = vpop.f32.mrb[78].mxu0 }
 0x6c8   : > { %v2994_v47 = vpop.f32.mrb[79].mxu0  ;;  %3210 = vmatmul.mubr.f32.gmra.mrb[106].mxu1 %v6057_v62  ;;  %v6569_v62 = vpack.c.bf16 %v3495_v44, %v3491_v8  ;;  %v6525_v8 = vpack.c.bf16 %v3533_v58, %v3529_v30  ;;  %v3530_v44 = vld [vmem:[#allocation14 + $0x210] sm:$0xff] }
 0x6c9   : > { %3215 = vmatprep.mubr.f32.mxu1 %v2994_v47  ;;  %v6511_v47 = vpack.c.bf16 %v3500_v12, %v3496_v31  ;;  %v6591_v51 = vpack.c.bf16 %v3534_v1, %v3530_v44  ;;  %v3542_v12 = vld [vmem:[#allocation14 + $0x270] sm:$0xff]  ;;  %v7543_v1 = vld [vmem:[%s8371_s13 + $0x40] sm:$0xff] }
 0x6ca   : > { %6570 = vmatprep.subr.bf16.mxu1 %v6569_v62  ;;  %v3537_v62 = vld [vmem:[#allocation14 + $0x248] sm:$0xff] }
 0x6cc   : > { %3216 = vmatmul.mubr.f32.gmra.mrb[108].mxu1 %v2320_v23  ;;  %v3497_v23 = vld [vmem:[#allocation14 + $0x108] sm:$0xff] }
 0x6cd   : > { %3221 = vmatprep.mubr.f32.mxu1 %v6172_v32  ;;  %v6509_v50 = vpack.c.bf16 %v3501_v18, %v3497_v23  ;;  %v3511_v32 = vld [vmem:[#allocation14 + $0x178] sm:$0xff]  ;;  %v6527_v18 = vpack.c.bf16 %v3532_v16, %v3528_v57 }
 0x6ce   : > { %v6577_v59 = vpack.c.bf16 %v3511_v32, %v3507_v13  ;;  %v3543_v23 = vld [vmem:[#allocation14 + $0x278] sm:$0xff] }
 0x6cf   : > { %6510 = vmatprep.subr.bf16.mxu0 %v6509_v50  ;;  %v3538_v50 = vld [vmem:[#allocation14 + $0x250] sm:$0xff] }
 0x6d0   : > { %3222 = vmatmul.mubr.f32.gmra.mrb[110].mxu1 %v6060_v33  ;;  %v3494_v33 = vld [vmem:[#allocation14 + $0xf0] sm:$0xff]  ;;  %6512 = vmatpush1.bf16.msra.mxu0 %v6511_v47  ;;  %v6595_v13 = vpack.c.bf16 %v3542_v12, %v3538_v50  ;;  %v3544_v47 = vld [vmem:[#allocation14 + $0x280] sm:$0xff]  ;;  %v3557_v50 = vld [vmem:[#allocation14 + $0x2e8] sm:$0xff] }
 0x6d1   : > { %v6571_v2 = vpack.c.bf16 %v3494_v33, %v3490_v35  ;;  %6514 = vmatprep.subr.bf16.mxu0 %v6513_v4  ;;  %v3541_v35 = vld [vmem:[#allocation14 + $0x268] sm:$0xff]  ;;  %v3539_v33 = vld [vmem:[#allocation14 + $0x258] sm:$0xff]  ;;  %v6597_v4 = vpack.c.bf16 %v3551_v49, %v3547_v7  ;;  %v7545_v12 = vld [vmem:[%s8371_s13 + $0x50] sm:$0xff] }
 0x6d2   : > { %v6529_v10 = vpack.c.bf16 %v3541_v35, %v3537_v62  ;;  %v6593_v31 = vpack.c.bf16 %v3543_v23, %v3539_v33  ;;  %v7544_v33 = vld [vmem:[%s8371_s13 + $0x48] sm:$0xff]  ;;  %v3559_v49 = vld [vmem:[#allocation14 + $0x2f8] sm:$0xff] }
 0x6d3   : > { %6572 = vmatpush1.bf16.msra.mxu1 %v6571_v2  ;;  %v3540_v2 = vld [vmem:[#allocation14 + $0x260] sm:$0xff] }
 0x6d4   : > { %6574 = vmatprep.subr.bf16.mxu1 %v6573_v46  ;;  %6516 = vmatpush1.bf16.msra.mxu0 %v6515_v56  ;;  %v3549_v46 = vld [vmem:[#allocation14 + $0x2a8] sm:$0xff]  ;;  %v6531_v55 = vpack.c.bf16 %v3540_v2, %v3536_v28 }
 0x6d5   : > { %6518 = vmatprep.subr.bf16.mxu0 %v6517_v60  ;;  %v6533_v32 = vpack.c.bf16 %v3549_v46, %v3545_v0  ;;  %v3553_v2 = vld [vmem:[#allocation14 + $0x2c8] sm:$0xff] }
 0x6d6   : > { %v6537_v7 = vpack.c.bf16 %v3557_v50, %v3553_v2 }
 0x6d7   : > { %6576 = vmatpush1.bf16.msra.mxu1 %v6575_v22  ;;  %v3548_v22 = vld [vmem:[#allocation14 + $0x2a0] sm:$0xff] }
 0x6d8   : > { %6578 = vmatprep.subr.bf16.mxu1 %v6577_v59  ;;  %6520 = vmatpush1.bf16.msra.mxu0 %v6519_v11  ;;  %v6535_v42 = vpack.c.bf16 %v3548_v22, %v3544_v47  ;;  %v6599_v59 = vpack.c.bf16 %v3550_v26, %v3546_v48  ;;  %v3554_v26 = vld [vmem:[#allocation14 + $0x2d0] sm:$0xff] }
 0x6d9   : > { %6522 = vmatprep.subr.bf16.mxu0 %v6521_v37 }
 0x6db   : > { %6580 = vmatpush1.bf16.msra.mxu1 %v6579_v54 }
 0x6dc   : > { %6582 = vmatprep.subr.bf16.mxu1 %v6581_v53  ;;  %6524 = vmatpush1.bf16.msra.mxu0 %v6523_v20 }
 0x6dd   : > { %6526 = vmatprep.subr.bf16.mxu0 %v6525_v8 }
 0x6df   : > { %6584 = vmatpush1.bf16.msra.mxu1 %v6583_v19  ;;  %v7539_v19 = vld [vmem:[%s8371_s13 + $0x20] sm:$0xff] }
 0x6e0   : > { %6586 = vmatprep.subr.bf16.mxu1 %v6585_v29  ;;  %6528 = vmatpush1.bf16.msra.mxu0 %v6527_v18 }
 0x6e1   : > { %6530 = vmatprep.subr.bf16.mxu0 %v6529_v10 }
 0x6e3   : > { %6588 = vmatpush1.bf16.msra.mxu1 %v6587_v17  ;;  %v7542_v17 = vld [vmem:[%s8371_s13 + $0x38] sm:$0xff] }
 0x6e4   : > { %6590 = vmatprep.subr.bf16.mxu1 %v6589_v25  ;;  %6532 = vmatpush1.bf16.msra.mxu0 %v6531_v55  ;;  %v3552_v55 = vld [vmem:[#allocation14 + $0x2c0] sm:$0xff] }
 0x6e5   : > { %6534 = vmatprep.subr.bf16.mxu0 %v6533_v32  ;;  %v7546_v32 = vld [vmem:[%s8371_s13 + $0x58] sm:$0xff] }
 0x6e7   : > { %6592 = vmatpush1.bf16.msra.mxu1 %v6591_v51 }
 0x6e8   : > { %6594 = vmatprep.subr.bf16.mxu1 %v6593_v31  ;;  %6536 = vmatpush1.bf16.msra.mxu0 %v6535_v42  ;;  %v3555_v31 = vld [vmem:[#allocation14 + $0x2d8] sm:$0xff]  ;;  %v3558_v42 = vld [vmem:[#allocation14 + $0x2f0] sm:$0xff] }
 0x6e9   : > { %6538 = vmatprep.subr.bf16.mxu0 %v6537_v7  ;;  %v3574_v7 = vld [vmem:[#allocation14 + $0x370] sm:$0xff] }
 0x6eb   : > { %6596 = vmatpush1.bf16.msra.mxu1 %v6595_v13  ;;  %v3556_v13 = vld [vmem:[#allocation14 + $0x2e0] sm:$0xff] }
 0x6ec   : > { %6598 = vmatprep.subr.bf16.mxu1 %v6597_v4  ;;  %v6601_v4 = vpack.c.bf16 %v3559_v49, %v3555_v31  ;;  %v6539_v48 = vpack.c.bf16 %v3556_v13, %v3552_v55 }
 0x6ee   : > { %6540 = vmatpush1.bf16.msra.mxu0 %v6539_v48  ;;  %v3579_v48 = vld [vmem:[#allocation14 + $0x398] sm:$0xff] }
 0x6ef   : > { %6600 = vmatpush1.bf16.msra.mxu1 %v6599_v59 }
 0x6f0   : > { %6602 = vmatprep.subr.bf16.mxu1 %v6601_v4  ;;  %v3581_v4 = vld [vmem:[#allocation14 + $0x3a8] sm:$0xff] }
 0x767   : > { %v3133_v34 = vpop.f32.mrb[80].mxu1 }
 0x768   : > { %v9855_v45 = vadd.f32 %v7535_v40, %v3133_v34  ;;  %v3135_v61 = vpop.f32.mrb[81].mxu1  ;;  %v6603_v34 = vpack.c.bf16 %v3558_v42, %v3554_v26  ;;  %v7551_v26 = vld [vmem:[%s8371_s13 + $0x80] sm:$0xff] }
 0x769   : > { %v9858_v56 = vadd.f32 %v7536_v27, %v3135_v61  ;;  %v3561_v27 = vld [vmem:[#allocation14 + $0x308] sm:$0xff] }
 0x76a   : > { %11227 = vst [vmem:[#allocation47_spill] sm:$0xff] %v9855_v45  ;;  %v3260_v54 = vmul.f32 %v9855_v45, %v9855_v45  ;;  %6604 = vmatpush1.bf16.msra.mxu1 %v6603_v34 }
 0x76b   : > { %11228 = vst [vmem:[#allocation49_spill] sm:$0xff] %v9858_v56  ;;  %v3261_v60 = vmul.f32 %v9858_v56, %v9858_v56  ;;  %v3139_v6 = vpop.f32.mrb[82].mxu1 }
 0x76c   : > { %v9865_v43 = vadd.f32 %v7537_v36, %v3139_v6  ;;  %v3141_v53 = vpop.f32.mrb[83].mxu1  ;;  %v7547_v6 = vld [vmem:[%s8371_s13 + $0x60] sm:$0xff] }
 0x76d   : > { %v9868_v5 = vadd.f32 %v7538_v52, %v3141_v53  ;;  %v3292_v39 = vadd.f32 %v3261_v60, %v3260_v54  ;;  %v3565_v54 = vld [vmem:[#allocation14 + $0x328] sm:$0xff]  ;;  %v3563_v60 = vld [vmem:[#allocation14 + $0x318] sm:$0xff] }
 0x76e   : > { %11229 = vst [vmem:[#allocation52_spill] sm:$0xff] %v9865_v43  ;;  %v3262_v3 = vmul.f32 %v9865_v43, %v9865_v43  ;;  %v6541_v52 = vpack.c.bf16 %v3565_v54, %v3561_v27  ;;  %v3580_v27 = vld [vmem:[#allocation14 + $0x3a0] sm:$0xff]  ;;  %v7552_v54 = vld [vmem:[%s8371_s13 + $0x88] sm:$0xff] }
 0x76f   : > { %11230 = vst [vmem:[#allocation54_spill] sm:$0xff] %v9868_v5  ;;  %v3263_v63 = vmul.f32 %v9868_v5, %v9868_v5  ;;  %3293 = vadd.xlane.f32.xlu0 %v3292_v39  ;;  %v3145_v11 = vpop.f32.mrb[84].mxu1  ;;  %v3567_v39 = vld [vmem:[#allocation14 + $0x338] sm:$0xff] }
 0x770   : > { %v9875_v37 = vadd.f32 %v7539_v19, %v3145_v11  ;;  %v3147_v21 = vpop.f32.mrb[85].mxu1  ;;  %v7548_v11 = vld [vmem:[%s8371_s13 + $0x68] sm:$0xff]  ;;  %6542 = vmatprep.subr.bf16.mxu0 %v6541_v52 }
 0x771   : > { %v9878_v38 = vadd.f32 %v7540_v41, %v3147_v21  ;;  %v3295_v29 = vadd.f32 %v3263_v63, %v3262_v3  ;;  %v3560_v3 = vld [vmem:[#allocation14 + $0x300] sm:$0xff]  ;;  %v6605_v41 = vpack.c.bf16 %v3567_v39, %v3563_v60  ;;  %v3578_v39 = vld [vmem:[#allocation14 + $0x390] sm:$0xff] }
 0x772   : > { %11231 = vst [vmem:[#allocation56_spill] sm:$0xff] %v9875_v37  ;;  %v3264_v24 = vmul.f32 %v9875_v37, %v9875_v37  ;;  %v3564_v63 = vld [vmem:[#allocation14 + $0x320] sm:$0xff] }
 0x773   : > { %11232 = vst [vmem:[#allocation57_spill] sm:$0xff] %v9878_v38  ;;  %v3265_v30 = vmul.f32 %v9878_v38, %v9878_v38  ;;  %3296 = vadd.xlane.f32.xlu1 %v3295_v29  ;;  %v3151_v58 = vpop.f32.mrb[86].mxu1  ;;  %v6543_v29 = vpack.c.bf16 %v3564_v63, %v3560_v3  ;;  %6606 = vmatprep.subr.bf16.mxu1 %v6605_v41  ;;  %v3582_v3 = vld [vmem:[#allocation14 + $0x3b0] sm:$0xff] }
 0x774   : > { %v9885_v9 = vadd.f32 %v7541_v14, %v3151_v58  ;;  %v3153_v20 = vpop.f32.mrb[87].mxu1 }
 0x775   : > { %v9888_v8 = vadd.f32 %v7542_v17, %v3153_v20  ;;  %v3298_v57 = vadd.f32 %v3265_v30, %v3264_v24  ;;  %v3562_v24 = vld [vmem:[#allocation14 + $0x310] sm:$0xff]  ;;  %6544 = vmatpush1.bf16.msra.mxu0 %v6543_v29  ;;  %v3585_v29 = vld [vmem:[#allocation14 + $0x3c8] sm:$0xff] }
 0x776   : > { %11233 = vst [vmem:[#allocation59_spill] sm:$0xff] %v9885_v9  ;;  %v3266_v16 = vmul.f32 %v9885_v9, %v9885_v9  ;;  %v3566_v30 = vld [vmem:[#allocation14 + $0x330] sm:$0xff] }
 0x777   : > { %11234 = vst [vmem:[#allocation60_spill] sm:$0xff] %v9888_v8  ;;  %v3267_v44 = vmul.f32 %v9888_v8, %v9888_v8  ;;  %3299 = vadd.xlane.f32.xlu0 %v3298_v57  ;;  %v3157_v25 = vpop.f32.mrb[88].mxu1  ;;  %v6607_v14 = vpack.c.bf16 %v3566_v30, %v3562_v24  ;;  %v3569_v57 = vld [vmem:[#allocation14 + $0x348] sm:$0xff]  ;;  %v3587_v30 = vld [vmem:[#allocation14 + $0x3d8] sm:$0xff] }
 0x778   : > { %v9895_v62 = vadd.f32 %v7543_v1, %v3157_v25  ;;  %v3159_v35 = vpop.f32.mrb[89].mxu1  ;;  %v7549_v25 = vld [vmem:[%s8371_s13 + $0x70] sm:$0xff]  ;;  %v3589_v24 = vld [vmem:[#allocation14 + $0x3e8] sm:$0xff] }
 0x779   : > { %v9898_v23 = vadd.f32 %v7544_v33, %v3159_v35  ;;  %v3301_v18 = vadd.f32 %v3267_v44, %v3266_v16  ;;  %v3573_v16 = vld [vmem:[#allocation14 + $0x368] sm:$0xff]  ;;  %v3571_v44 = vld [vmem:[#allocation14 + $0x358] sm:$0xff]  ;;  %6608 = vmatpush1.bf16.msra.mxu1 %v6607_v14 }
 0x77a   : > { %11235 = vst [vmem:[#allocation62_spill] sm:$0xff] %v9895_v62  ;;  %v3268_v51 = vmul.f32 %v9895_v62, %v9895_v62  ;;  %v6545_v33 = vpack.c.bf16 %v3573_v16, %v3569_v57  ;;  %v3591_v57 = vld [vmem:[#allocation14 + $0x3f8] sm:$0xff]  ;;  %v3584_v16 = vld [vmem:[#allocation14 + $0x3c0] sm:$0xff] }
 0x77b   : > { %11236 = vst [vmem:[#allocation30_spill] sm:$0xff] %v9898_v23  ;;  %v3269_v10 = vmul.f32 %v9898_v23, %v9898_v23  ;;  %3302 = vadd.xlane.f32.xlu1 %v3301_v18  ;;  %v3163_v28 = vpop.f32.mrb[90].mxu1  ;;  %v3575_v18 = vld [vmem:[#allocation14 + $0x378] sm:$0xff] }
 0x77c   : > { %v9905_v0 = vadd.f32 %v7545_v12, %v3163_v28  ;;  %v3165_v46 = vpop.f32.mrb[91].mxu1  ;;  %v7550_v28 = vld [vmem:[%s8371_s13 + $0x78] sm:$0xff]  ;;  %v6609_v31 = vpack.c.bf16 %v3575_v18, %v3571_v44  ;;  %6546 = vmatprep.subr.bf16.mxu0 %v6545_v33  ;;  %v3588_v44 = vld [vmem:[#allocation14 + $0x3e0] sm:$0xff]  ;;  %v6617_v18 = vpack.c.bf16 %v3591_v57, %v3587_v30 }
 0x77d   : > { %v9908_v47 = vadd.f32 %v7546_v32, %v3165_v46  ;;  %v3304_v22 = vadd.f32 %v3269_v10, %v3268_v51  ;;  %v3568_v51 = vld [vmem:[#allocation14 + $0x340] sm:$0xff]  ;;  %v3570_v46 = vld [vmem:[#allocation14 + $0x350] sm:$0xff] }
 0x77e   : > { %11237 = vst [vmem:[#allocation32_spill] sm:$0xff] %v9905_v0  ;;  %v3270_v59 = vmul.f32 %v9905_v0, %v9905_v0  ;;  %v3572_v10 = vld [vmem:[#allocation14 + $0x360] sm:$0xff]  ;;  %v6611_v55 = vpack.c.bf16 %v3574_v7, %v3570_v46  ;;  %6610 = vmatprep.subr.bf16.mxu1 %v6609_v31  ;;  %v3915_v7 = vld [vmem:[#allocation16 + $0x8] sm:$0xff] }
 0x77f   : > { %11238 = vst [vmem:[#allocation36_spill] sm:$0xff] %v9908_v47  ;;  %v3271_v40 = vmul.f32 %v9908_v47, %v9908_v47  ;;  %3305 = vadd.xlane.f32.xlu0 %v3304_v22  ;;  %v3169_v61 = vpop.f32.mrb[92].mxu1  ;;  %v6547_v12 = vpack.c.bf16 %v3572_v10, %v3568_v51  ;;  %v3577_v22 = vld [vmem:[#allocation14 + $0x388] sm:$0xff]  ;;  %v6555_v51 = vpack.c.bf16 %v3588_v44, %v3584_v16  ;;  %v3586_v10 = vld [vmem:[#allocation14 + $0x3d0] sm:$0xff] }
 0x780   : > { %v9915_v36 = vadd.f32 %v7547_v6, %v3169_v61  ;;  %v3171_v53 = vpop.f32.mrb[93].mxu1  ;;  %6612 = vmatpush1.bf16.msra.mxu1 %v6611_v55  ;;  %v6549_v34 = vpack.c.bf16 %v3581_v4, %v3577_v22  ;;  %v3576_v61 = vld [vmem:[#allocation14 + $0x380] sm:$0xff]  ;;  %v3917_v55 = vld [vmem:[#allocation16 + $0x18] sm:$0xff] }
 0x781   : > { %v9918_v19 = vadd.f32 %v7548_v11, %v3171_v53  ;;  %v3307_v21 = vadd.f32 %v3271_v40, %v3270_v59  ;;  %6548 = vmatpush1.bf16.msra.mxu0 %v6547_v12  ;;  %v3583_v40 = vld [vmem:[#allocation14 + $0x3b8] sm:$0xff]  ;;  %v6551_v52 = vpack.c.bf16 %v3580_v27, %v3576_v61  ;;  %v6615_v11 = vpack.c.bf16 %v3582_v3, %v3578_v39 }
 0x782   : > { %11239 = vst [vmem:[#allocation63_spill] sm:$0xff] %v9915_v36  ;;  %v3272_v58 = vmul.f32 %v9915_v36, %v9915_v36  ;;  %v6613_v53 = vpack.c.bf16 %v3583_v40, %v3579_v48  ;;  %6550 = vmatprep.subr.bf16.mxu0 %v6549_v34  ;;  %v3921_v48 = vld [vmem:[#allocation16 + $0x38] sm:$0xff] }
 0x783   : > { %11240 = vst [vmem:[#allocation34_spill] sm:$0xff] %v9918_v19  ;;  %v3273_v20 = vmul.f32 %v9918_v19, %v9918_v19  ;;  %3308 = vadd.xlane.f32.xlu1 %v3307_v21  ;;  %v3175_v17 = vpop.f32.mrb[94].mxu1  ;;  %v6685_v40 = vpack.c.bf16 %v3921_v48, %v3917_v55  ;;  %v7558_v39 = vld [vmem:[%s8371_s13 + $0xb8] sm:$0xff]  ;;  %v7564_v55 = vld [vmem:[%s8371_s13 + $0xe8] sm:$0xff] }
 0x784   : > { %v9925_v1 = vadd.f32 %v7549_v25, %v3175_v17  ;;  %v3177_v35 = vpop.f32.mrb[95].mxu1  ;;  %6614 = vmatprep.subr.bf16.mxu1 %v6613_v53  ;;  %v6553_v17 = vpack.c.bf16 %v3589_v24, %v3585_v29  ;;  %v7554_v25 = vld [vmem:[%s8371_s13 + $0x98] sm:$0xff]  ;;  %v7559_v29 = vld [vmem:[%s8371_s13 + $0xc0] sm:$0xff] }
 0x785   : > { %v9928_v2 = vadd.f32 %v7550_v28, %v3177_v35  ;;  %v3310_v50 = vadd.f32 %v3273_v20, %v3272_v58  ;;  %v7553_v58 = vld [vmem:[%s8371_s13 + $0x90] sm:$0xff]  ;;  %6552 = vmatpush1.bf16.msra.mxu0 %v6551_v52  ;;  %6616 = vmatpush1.bf16.msra.mxu1 %v6615_v11 }
 0x786   : > { %11241 = vst [vmem:[#allocation38_spill] sm:$0xff] %v9925_v1  ;;  %v3274_v49 = vmul.f32 %v9925_v1, %v9925_v1  ;;  %v3590_v28 = vld [vmem:[#allocation14 + $0x3f0] sm:$0xff]  ;;  %6554 = vmatprep.subr.bf16.mxu0 %v6553_v17  ;;  %6618 = vmatprep.subr.bf16.mxu1 %v6617_v18 }
 0x787   : > { %11242 = vst [vmem:[#allocation40_spill] sm:$0xff] %v9928_v2  ;;  %v3275_v13 = vmul.f32 %v9928_v2, %v9928_v2  ;;  %3311 = vadd.xlane.f32.xlu0 %v3310_v50  ;;  %v3181_v32 = vpop.f32.mrb[96].mxu1  ;;  %v6619_v31 = vpack.c.bf16 %v3590_v28, %v3586_v10 }
 0x788   : > { %v9935_v42 = vadd.f32 %v7551_v26, %v3181_v32  ;;  %v3183_v59 = vpop.f32.mrb[97].mxu1  ;;  %v7556_v26 = vld [vmem:[%s8371_s13 + $0xa8] sm:$0xff] }
 0x789   : > { %v9938_v60 = vadd.f32 %v7552_v54, %v3183_v59  ;;  %v3313_v6 = vadd.f32 %v3275_v13, %v3274_v49  ;;  %v3919_v49 = vld [vmem:[#allocation16 + $0x28] sm:$0xff]  ;;  %v7555_v13 = vld [vmem:[%s8371_s13 + $0xa0] sm:$0xff]  ;;  %6556 = vmatpush1.bf16.msra.mxu0 %v6555_v51  ;;  %6620 = vmatpush1.bf16.msra.mxu1 %v6619_v31  ;;  %v7562_v51 = vld [vmem:[%s8371_s13 + $0xd8] sm:$0xff] }
 0x78a   : > { %11243 = vst [vmem:[#allocation64_spill] sm:$0xff] %v9935_v42  ;;  %v3276_v63 = vmul.f32 %v9935_v42, %v9935_v42  ;;  %v6621_v4 = vpack.c.bf16 %v3919_v49, %v3915_v7  ;;  %6686 = vmatprep.subr.bf16.mxu1 %v6685_v40 }
 0x78b   : > { %11244 = vst [vmem:[#allocation44_spill] sm:$0xff] %v9938_v60  ;;  %v3277_v21 = vmul.f32 %v9938_v60, %v9938_v60  ;;  %3314 = vadd.xlane.f32.xlu1 %v3313_v6  ;;  %v3187_v41 = vpop.f32.mrb[98].mxu1  ;;  %v7557_v6 = vld [vmem:[%s8371_s13 + $0xb0] sm:$0xff] }
 0x78c   : > { %v9945_v14 = vadd.f32 %v7553_v58, %v3187_v41  ;;  %v3189_v20 = vpop.f32.mrb[99].mxu1  ;;  %6622 = vmatprep.subr.bf16.mxu0 %v6621_v4  ;;  %v7560_v58 = vld [vmem:[%s8371_s13 + $0xc8] sm:$0xff] }
 0x78d   : > { %v9948_v35 = vadd.f32 %v7554_v25, %v3189_v20  ;;  %v3316_v33 = vadd.f32 %v3277_v21, %v3276_v63  ;;  %v7561_v25 = vld [vmem:[%s8371_s13 + $0xd0] sm:$0xff] }
 0x78e   : > { %11245 = vst [vmem:[#allocation46_spill] sm:$0xff] %v9945_v14  ;;  %v3278_v50 = vmul.f32 %v9945_v14, %v9945_v14 }
 0x78f   : > { %11246 = vst [vmem:[#allocation65_spill] sm:$0xff] %v9948_v35  ;;  %v3279_v12 = vmul.f32 %v9948_v35, %v9948_v35  ;;  %3317 = vadd.xlane.f32.xlu0 %v3316_v33  ;;  %v3193_v46 = vpop.f32.mrb[100].mxu1 }
 0x790   : > { %v9955_v32 = vadd.f32 %v7555_v13, %v3193_v46  ;;  %v3195_v22 = vpop.f32.mrb[101].mxu1  ;;  %v7563_v46 = vld [vmem:[%s8371_s13 + $0xe0] sm:$0xff] }
 0x791   : > { %v9958_v59 = vadd.f32 %v7556_v26, %v3195_v22  ;;  %v3319_v34 = vadd.f32 %v3279_v12, %v3278_v50 }
 0x792   : > { %11247 = vst [vmem:[#allocation50_spill] sm:$0xff] %v9955_v32  ;;  %v3280_v61 = vmul.f32 %v9955_v32, %v9955_v32 }
 0x793   : > { %11248 = vst [vmem:[#allocation66_spill] sm:$0xff] %v9958_v59  ;;  %v3281_v27 = vmul.f32 %v9958_v59, %v9958_v59  ;;  %3320 = vadd.xlane.f32.xlu1 %v3319_v34  ;;  %v3199_v54 = vpop.f32.mrb[102].mxu1  ;;  %v7565_v34 = vld [vmem:[%s8371_s13 + $0xf0] sm:$0xff] }
 0x794   : > { %v9965_v53 = vadd.f32 %v7557_v6, %v3199_v54  ;;  %v3201_v52 = vpop.f32.mrb[103].mxu1 }
 0x795   : > { %v9968_v3 = vadd.f32 %v7558_v39, %v3201_v52  ;;  %v3322_v63 = vadd.f32 %v3281_v27, %v3280_v61  ;;  %v7566_v27 = vld [vmem:[%s8371_s13 + $0xf8] sm:$0xff]  ;;  %s11435_s13 = sld [smem:[#allocation135_spill]] }
 0x796   : > { %11249 = vst [vmem:[#allocation68_spill] sm:$0xff] %v9965_v53  ;;  %v3282_v11 = vmul.f32 %v9965_v53, %v9965_v53 }
 0x797   : > { %11250 = vst [vmem:[#allocation67_spill] sm:$0xff] %v9968_v3  ;;  %v3283_v21 = vmul.f32 %v9968_v3, %v9968_v3  ;;  %3323 = vadd.xlane.f32.xlu0 %v3322_v63  ;;  %v3205_v41 = vpop.f32.mrb[104].mxu1 }
 0x798   : > { %v9975_v24 = vadd.f32 %v7559_v29, %v3205_v41  ;;  %v3207_v30 = vpop.f32.mrb[105].mxu1 }
 0x799   : > { %v9978_v20 = vadd.f32 %v7560_v58, %v3207_v30  ;;  %v3325_v17 = vadd.f32 %v3283_v21, %v3282_v11 }
 0x79a   : > { %11251 = vst [vmem:[#allocation69_spill] sm:$0xff] %v9975_v24  ;;  %v3284_v57 = vmul.f32 %v9975_v24, %v9975_v24 }
 0x79b   : > { %11252 = vst [vmem:[#allocation29_spill] sm:$0xff] %v9978_v20  ;;  %v3285_v16 = vmul.f32 %v9978_v20, %v9978_v20  ;;  %3326 = vadd.xlane.f32.xlu1 %v3325_v17  ;;  %v3211_v44 = vpop.f32.mrb[106].mxu1  ;;  %s10897_s17 = scalar_lea.hbm %s11435_s13, %s5660_s26 }
 0x79c   : > { %v9985_v33 = vadd.f32 %v7561_v25, %v3211_v44  ;;  %v3213_v18 = vpop.f32.mrb[107].mxu1 }
 0x79d   : > { %v9988_v10 = vadd.f32 %v7562_v51, %v3213_v18  ;;  %v3328_v28 = vadd.f32 %v3285_v16, %v3284_v57  ;;  %v3420_v16 = vld [vmem:[%s11259_s29] sm:$0x3]  ;;  %v11260_v51 = vsub.s32 0, %v11225_v15 }
 0x79e   : > { %11253 = vst [vmem:[#allocation31_spill] sm:$0xff] %v9985_v33  ;;  %v3286_v50 = vmul.f32 %v9985_v33, %v9985_v33 }
 0x79f   : > { %11254 = vst [vmem:[#allocation33_spill] sm:$0xff] %v9988_v10  ;;  %v3287_v31 = vmul.f32 %v9988_v10, %v9988_v10  ;;  %3329 = vadd.xlane.f32.xlu0 %v3328_v28  ;;  %v3217_v12 = vpop.f32.mrb[108].mxu1  ;;  %v10019_v28 = vrot.slane %v3420_v16, %v11260_v51 }
 0x7a0   : > { %v9995_v7 = vadd.f32 %v7563_v46, %v3217_v12  ;;  %v3219_v49 = vpop.f32.mrb[109].mxu1  ;;  %v3914_v12 = vld [vmem:[#allocation16] sm:$0xff] }
 0x7a1   : > { %v9998_v13 = vadd.f32 %v7564_v55, %v3219_v49  ;;  %v3331_v22 = vadd.f32 %v3287_v31, %v3286_v50  ;;  %v11261_v50 = vsub.s32 1, %v11225_v15  ;;  %v3918_v46 = vld [vmem:[#allocation16 + $0x20] sm:$0xff] }
 0x7a2   : > { %11255 = vst [vmem:[#allocation35_spill] sm:$0xff] %v9995_v7  ;;  %v3288_v4 = vmul.f32 %v9995_v7, %v9995_v7 }
 0x7a3   : > { %11256 = vst [vmem:[#allocation37_spill] sm:$0xff] %v9998_v13  ;;  %v3289_v48 = vmul.f32 %v9998_v13, %v9998_v13  ;;  %3332 = vadd.xlane.f32.xlu1 %v3331_v22  ;;  %v3223_v26 = vpop.f32.mrb[110].mxu1  ;;  %v10023_v31 = vrot.slane %v3420_v16, %v11261_v50  ;;  %v3916_v22 = vld [vmem:[#allocation16 + $0x10] sm:$0xff] }
 0x7a4   : > { %v10005_v40 = vadd.f32 %v7565_v34, %v3223_v26  ;;  %v3225_v61 = vpop.f32.mrb[111].mxu1  ;;  %v3924_v16 = vld [vmem:[#allocation16 + $0x50] sm:$0xff] }
 0x7a5   : > { %v10008_v54 = vadd.f32 %v7566_v27, %v3225_v61  ;;  %v3334_v6 = vadd.f32 %v3289_v48, %v3288_v4  ;;  %v3920_v4 = vld [vmem:[#allocation16 + $0x30] sm:$0xff]  ;;  %v3923_v48 = vld [vmem:[#allocation16 + $0x48] sm:$0xff] }
 0x7a6   : > { %11257 = vst [vmem:[#allocation39_spill] sm:$0xff] %v10005_v40  ;;  %v3290_v52 = vmul.f32 %v10005_v40, %v10005_v40  ;;  %v3927_v27 = vld [vmem:[#allocation16 + $0x68] sm:$0xff] }
 0x7a7   : > { %11258 = vst [vmem:[#allocation41_spill] sm:$0xff] %v10008_v54  ;;  %v3291_v39 = vmul.f32 %v10008_v54, %v10008_v54  ;;  %3335 = vadd.xlane.f32.xlu0 %v3334_v6  ;;  %v3925_v6 = vld [vmem:[#allocation16 + $0x58] sm:$0xff] }
 0x7a9   : > { %v3337_v63 = vadd.f32 %v3291_v39, %v3290_v52  ;;  %v3929_v52 = vld [vmem:[#allocation16 + $0x78] sm:$0xff] }
 0x7ab   : > { %3338 = vadd.xlane.f32.xlu1 %v3337_v63 }
 0x7fc   : > { %v3294_v11 = vpop.xlane.xlu0 %3293 }
 0x7fd   : > { %v3340_v21 = vmul.f32 0.00390625, %v3294_v11  ;;  %v6623_v11 = vpack.c.bf16 %v3918_v46, %v3914_v12  ;;  %v3935_v12 = vld [vmem:[#allocation16 + $0xa8] sm:$0xff]  ;;  %v3933_v46 = vld [vmem:[#allocation16 + $0x98] sm:$0xff] }
 0x7ff   : > { %v3356_v41 = vadd.f32 1e-06, %v3340_v21  ;;  %v6687_v21 = vpack.c.bf16 %v3920_v4, %v3916_v22 }
 0x800   : > { %v3297_v29 = vpop.xlane.xlu1 %3296 }
 0x801   : > { %7247 = vrsqrt.f32 %v3356_v41  ;;  %v3341_v30 = vmul.f32 0.00390625, %v3297_v29  ;;  %v3922_v41 = vld [vmem:[#allocation16 + $0x40] sm:$0xff] }
 0x802   : > { %v3926_v29 = vld [vmem:[#allocation16 + $0x60] sm:$0xff] }
 0x803   : > { %v3357_v58 = vadd.f32 1e-06, %v3341_v30  ;;  %v6627_v22 = vpack.c.bf16 %v3926_v29, %v3922_v41  ;;  %v3939_v41 = vld [vmem:[#allocation16 + $0xc8] sm:$0xff] }
 0x804   : > { %v3300_v17 = vpop.xlane.xlu0 %3299 }
 0x805   : > { %7249 = vrsqrt.f32 %v3357_v58  ;;  %v3342_v57 = vmul.f32 0.00390625, %v3300_v17  ;;  %v6625_v17 = vpack.c.bf16 %v3927_v27, %v3923_v48 }
 0x807   : > { %v3358_v44 = vadd.f32 1e-06, %v3342_v57  ;;  %v6689_v57 = vpack.c.bf16 %v3929_v52, %v3925_v6 }
 0x808   : > { %v3303_v25 = vpop.xlane.xlu1 %3302 }
 0x809   : > { %7251 = vrsqrt.f32 %v3358_v44  ;;  %v3343_v18 = vmul.f32 0.00390625, %v3303_v25  ;;  %v3928_v44 = vld [vmem:[#allocation16 + $0x70] sm:$0xff]  ;;  %v3931_v25 = vld [vmem:[#allocation16 + $0x88] sm:$0xff] }
 0x80a   : > { %v6629_v52 = vpack.c.bf16 %v3935_v12, %v3931_v25  ;;  %v3938_v12 = vld [vmem:[#allocation16 + $0xc0] sm:$0xff] }
 0x80b   : > { %v7248_v49 = vpop.eup %7247  ;;  %v3359_v55 = vadd.f32 1e-06, %v3343_v18 }
 0x80c   : > { %v3388_v26 = vmul.f32 %v7248_v49, %v9855_v45  ;;  %v3306_v34 = vpop.xlane.xlu0 %3305  ;;  %v3389_v61 = vmul.f32 %v7248_v49, %v9858_v56  ;;  %v3937_v49 = vld [vmem:[#allocation16 + $0xb8] sm:$0xff]  ;;  %v3968_v56 = vld [vmem:[#allocation16 + $0x1b0] sm:$0xff] }
 0x80d   : > { %7253 = vrsqrt.f32 %v3359_v55  ;;  %v3344_v39 = vmul.f32 0.00390625, %v3306_v34  ;;  %v3930_v34 = vld [vmem:[#allocation16 + $0x80] sm:$0xff]  ;;  %v3972_v45 = vld [vmem:[#allocation16 + $0x1d0] sm:$0xff] }
 0x80e   : > { %v10028_v15 = vmul.f32 %v10023_v31, %v3389_v61  ;;  %v10031_v63 = vmul.f32 %v10019_v28, %v3388_v26  ;;  %v6691_v26 = vpack.c.bf16 %v3928_v44, %v3924_v16  ;;  %v3934_v61 = vld [vmem:[#allocation16 + $0xa0] sm:$0xff]  ;;  %v3943_v16 = vld [vmem:[#allocation16 + $0xe8] sm:$0xff]  ;;  %v3941_v44 = vld [vmem:[#allocation16 + $0xd8] sm:$0xff] }
 0x80f   : > { %v7250_v30 = vpop.eup %7249  ;;  %v3360_v58 = vadd.f32 1e-06, %v3344_v39  ;;  %v6693_v39 = vpack.c.bf16 %v3937_v49, %v3933_v46  ;;  %v3942_v46 = vld [vmem:[#allocation16 + $0xe0] sm:$0xff] }
 0x810   : > { %v3309_v18 = vpop.xlane.xlu1 %3308  ;;  %3656 = vmatprep.mubr.f32.mxu0 %v10028_v15  ;;  %3817 = vmatprep.mubr.f32.mxu1 %v10028_v15  ;;  %v3391_v51 = vmul.f32 %v7250_v30, %v9868_v5  ;;  %v3390_v50 = vmul.f32 %v7250_v30, %v9865_v43  ;;  %v3932_v30 = vld [vmem:[#allocation16 + $0x90] sm:$0xff] }
 0x811   : > { %7255 = vrsqrt.f32 %v3360_v58  ;;  %v3345_v55 = vmul.f32 0.00390625, %v3309_v18  ;;  %3657 = vmatmul.mubr.f32.vlgmr.msra.gmra.mrb[80].mxu0 %v10031_v63  ;;  %3818 = vmatmul.mubr.f32.vlgmr.msra.gmra.mrb[112].mxu1 %v10031_v63  ;;  %v3936_v58 = vld [vmem:[#allocation16 + $0xb0] sm:$0xff]  ;;  %v3945_v18 = vld [vmem:[#allocation16 + $0xf8] sm:$0xff] }
 0x812   : > { %6624 = vmatpush1.bf16.msra.mxu0 %v6623_v11  ;;  %6688 = vmatpush1.bf16.msra.mxu1 %v6687_v21  ;;  %v10040_v4 = vmul.f32 %v10023_v31, %v3391_v51  ;;  %v10043_v48 = vmul.f32 %v10019_v28, %v3390_v50  ;;  %v6695_v50 = vpack.c.bf16 %v3936_v58, %v3932_v30  ;;  %v3951_v30 = vld [vmem:[#allocation16 + $0x128] sm:$0xff]  ;;  %v3949_v58 = vld [vmem:[#allocation16 + $0x118] sm:$0xff]  ;;  %v3960_v5 = vld [vmem:[#allocation16 + $0x170] sm:$0xff] }
 0x813   : > { %v7252_v27 = vpop.eup %7251  ;;  %v3361_v6 = vadd.f32 1e-06, %v3345_v55  ;;  %6626 = vmatprep.subr.bf16.mxu0 %v6625_v17  ;;  %6690 = vmatprep.subr.bf16.mxu1 %v6689_v57  ;;  %v6631_v57 = vpack.c.bf16 %v3934_v61, %v3930_v34  ;;  %v3947_v34 = vld [vmem:[#allocation16 + $0x108] sm:$0xff]  ;;  %v3964_v43 = vld [vmem:[#allocation16 + $0x190] sm:$0xff] }
 0x814   : > { %3662 = vmatprep.mubr.f32.mxu0 %v10040_v4  ;;  %3823 = vmatprep.mubr.f32.mxu1 %v10040_v4  ;;  %v3312_v11 = vpop.xlane.xlu0 %3311  ;;  %v3393_v21 = vmul.f32 %v7252_v27, %v9878_v38  ;;  %v3392_v29 = vmul.f32 %v7252_v27, %v9875_v37  ;;  %v6633_v27 = vpack.c.bf16 %v3943_v16, %v3939_v41  ;;  %v3944_v38 = vld [vmem:[#allocation16 + $0xf0] sm:$0xff] }
 0x815   : > { %7257 = vrsqrt.f32 %v3361_v6  ;;  %v3346_v17 = vmul.f32 0.00390625, %v3312_v11  ;;  %3663 = vmatmul.mubr.f32.gmra.mrb[82].mxu0 %v10043_v48  ;;  %3824 = vmatmul.mubr.f32.gmra.mrb[114].mxu1 %v10043_v48  ;;  %v6697_v6 = vpack.c.bf16 %v3945_v18, %v3941_v44  ;;  %v3940_v11 = vld [vmem:[#allocation16 + $0xd0] sm:$0xff]  ;;  %v3946_v44 = vld [vmem:[#allocation16 + $0x100] sm:$0xff] }
 0x816   : > { %6628 = vmatpush1.bf16.msra.mxu0 %v6627_v22  ;;  %6692 = vmatpush1.bf16.msra.mxu1 %v6691_v26  ;;  %v10052_v25 = vmul.f32 %v10023_v31, %v3393_v21  ;;  %v10055_v51 = vmul.f32 %v10019_v28, %v3392_v29  ;;  %v3953_v21 = vld [vmem:[#allocation16 + $0x138] sm:$0xff]  ;;  %v6699_v16 = vpack.c.bf16 %v3944_v38, %v3940_v11  ;;  %v3950_v18 = vld [vmem:[#allocation16 + $0x120] sm:$0xff]  ;;  %v3956_v37 = vld [vmem:[#allocation16 + $0x150] sm:$0xff] }
 0x817   : > { %v7254_v49 = vpop.eup %7253  ;;  %v3362_v55 = vadd.f32 1e-06, %v3346_v17  ;;  %6630 = vmatprep.subr.bf16.mxu0 %v6629_v52  ;;  %6694 = vmatprep.subr.bf16.mxu1 %v6693_v39  ;;  %v6635_v39 = vpack.c.bf16 %v3942_v46, %v3938_v12  ;;  %v3955_v12 = vld [vmem:[#allocation16 + $0x148] sm:$0xff]  ;;  %v3957_v11 = vld [vmem:[#allocation16 + $0x158] sm:$0xff] }
 0x818   : > { %v3315_v22 = vpop.xlane.xlu1 %3314  ;;  %3668 = vmatprep.mubr.f32.mxu0 %v10052_v25  ;;  %3829 = vmatprep.mubr.f32.mxu1 %v10052_v25  ;;  %v3395_v26 = vmul.f32 %v7254_v49, %v9888_v8  ;;  %v3394_v61 = vmul.f32 %v7254_v49, %v9885_v9  ;;  %v3948_v8 = vld [vmem:[#allocation16 + $0x110] sm:$0xff]  ;;  %v3959_v46 = vld [vmem:[#allocation16 + $0x168] sm:$0xff] }
 0x819   : > { %7259 = vrsqrt.f32 %v3362_v55  ;;  %v3347_v52 = vmul.f32 0.00390625, %v3315_v22  ;;  %3669 = vmatmul.mubr.f32.gmra.mrb[84].mxu0 %v10055_v51  ;;  %3830 = vmatmul.mubr.f32.gmra.mrb[116].mxu1 %v10055_v51  ;;  %v6637_v55 = vpack.c.bf16 %v3951_v30, %v3947_v34  ;;  %v6701_v22 = vpack.c.bf16 %v3953_v21, %v3949_v58  ;;  %v3952_v9 = vld [vmem:[#allocation16 + $0x130] sm:$0xff]  ;;  %v3954_v58 = vld [vmem:[#allocation16 + $0x140] sm:$0xff] }
 0x81a   : > { %6632 = vmatpush1.bf16.msra.mxu0 %v6631_v57  ;;  %6696 = vmatpush1.bf16.msra.mxu1 %v6695_v50  ;;  %v10064_v41 = vmul.f32 %v10023_v31, %v3395_v26  ;;  %v10067_v29 = vmul.f32 %v10019_v28, %v3394_v61  ;;  %v3961_v26 = vld [vmem:[#allocation16 + $0x178] sm:$0xff]  ;;  %v6703_v30 = vpack.c.bf16 %v3952_v9, %v3948_v8  ;;  %v3958_v21 = vld [vmem:[#allocation16 + $0x160] sm:$0xff]  ;;  %v3967_v8 = vld [vmem:[#allocation16 + $0x1a8] sm:$0xff] }
 0x81b   : > { %v7256_v17 = vpop.eup %7255  ;;  %v3363_v49 = vadd.f32 1e-06, %v3347_v52  ;;  %6634 = vmatprep.subr.bf16.mxu0 %v6633_v27  ;;  %6698 = vmatprep.subr.bf16.mxu1 %v6697_v6  ;;  %v6639_v6 = vpack.c.bf16 %v3950_v18, %v3946_v44  ;;  %v3963_v44 = vld [vmem:[#allocation16 + $0x188] sm:$0xff]  ;;  %v3965_v18 = vld [vmem:[#allocation16 + $0x198] sm:$0xff] }
 0x81c   : > { %3674 = vmatprep.mubr.f32.mxu0 %v10064_v41  ;;  %3835 = vmatprep.mubr.f32.mxu1 %v10064_v41  ;;  %v3318_v57 = vpop.xlane.xlu0 %3317  ;;  %v3397_v50 = vmul.f32 %v7256_v17, %v9898_v23  ;;  %v3396_v38 = vmul.f32 %v7256_v17, %v9895_v62 }
 0x81d   : > { %7261 = vrsqrt.f32 %v3363_v49  ;;  %v3348_v27 = vmul.f32 0.00390625, %v3318_v57  ;;  %3675 = vmatmul.mubr.f32.gmra.mrb[86].mxu0 %v10067_v29  ;;  %3836 = vmatmul.mubr.f32.gmra.mrb[118].mxu1 %v10067_v29  ;;  %v6641_v49 = vpack.c.bf16 %v3959_v46, %v3955_v12  ;;  %v6705_v57 = vpack.c.bf16 %v3961_v26, %v3957_v11  ;;  %v3962_v11 = vld [vmem:[#allocation16 + $0x180] sm:$0xff] }
 0x81e   : > { %6636 = vmatpush1.bf16.msra.mxu0 %v6635_v39  ;;  %6700 = vmatpush1.bf16.msra.mxu1 %v6699_v16  ;;  %v10076_v34 = vmul.f32 %v10023_v31, %v3397_v50  ;;  %v10079_v61 = vmul.f32 %v10019_v28, %v3396_v38  ;;  %v3969_v50 = vld [vmem:[#allocation16 + $0x1b8] sm:$0xff]  ;;  %v6707_v46 = vpack.c.bf16 %v3960_v5, %v3956_v37  ;;  %v3966_v26 = vld [vmem:[#allocation16 + $0x1a0] sm:$0xff]  ;;  %v3975_v37 = vld [vmem:[#allocation16 + $0x1e8] sm:$0xff] }
 0x81f   : > { %v7258_v52 = vpop.eup %7257  ;;  %v3364_v17 = vadd.f32 1e-06, %v3348_v27  ;;  %6638 = vmatprep.subr.bf16.mxu0 %v6637_v55  ;;  %6702 = vmatprep.subr.bf16.mxu1 %v6701_v22  ;;  %v6643_v22 = vpack.c.bf16 %v3958_v21, %v3954_v58  ;;  %v3971_v58 = vld [vmem:[#allocation16 + $0x1c8] sm:$0xff]  ;;  %v3973_v21 = vld [vmem:[#allocation16 + $0x1d8] sm:$0xff] }
 0x820   : > { %v3321_v39 = vpop.xlane.xlu1 %3320  ;;  %3680 = vmatprep.mubr.f32.mxu0 %v10076_v34  ;;  %3841 = vmatprep.mubr.f32.mxu1 %v10076_v34  ;;  %v3399_v16 = vmul.f32 %v7258_v52, %v9908_v47  ;;  %v3398_v9 = vmul.f32 %v7258_v52, %v9905_v0 }
 0x821   : > { %7263 = vrsqrt.f32 %v3364_v17  ;;  %v3349_v55 = vmul.f32 0.00390625, %v3321_v39  ;;  %3681 = vmatmul.mubr.f32.gmra.mrb[88].mxu0 %v10079_v61  ;;  %3842 = vmatmul.mubr.f32.gmra.mrb[120].mxu1 %v10079_v61  ;;  %v6645_v17 = vpack.c.bf16 %v3967_v8, %v3963_v44  ;;  %v6709_v39 = vpack.c.bf16 %v3969_v50, %v3965_v18  ;;  %v3970_v18 = vld [vmem:[#allocation16 + $0x1c0] sm:$0xff] }
 0x822   : > { %6640 = vmatpush1.bf16.msra.mxu0 %v6639_v6  ;;  %6704 = vmatpush1.bf16.msra.mxu1 %v6703_v30  ;;  %v10088_v12 = vmul.f32 %v10023_v31, %v3399_v16  ;;  %v10091_v38 = vmul.f32 %v10019_v28, %v3398_v9  ;;  %v3977_v16 = vld [vmem:[#allocation16 + $0x1f8] sm:$0xff]  ;;  %v6711_v8 = vpack.c.bf16 %v3968_v56, %v3964_v43  ;;  %v3974_v50 = vld [vmem:[#allocation16 + $0x1e0] sm:$0xff]  ;;  %v3983_v43 = vld [vmem:[#allocation16 + $0x228] sm:$0xff] }
 0x823   : > { %v7260_v27 = vpop.eup %7259  ;;  %v3365_v52 = vadd.f32 1e-06, %v3349_v55  ;;  %6642 = vmatprep.subr.bf16.mxu0 %v6641_v49  ;;  %6706 = vmatprep.subr.bf16.mxu1 %v6705_v57  ;;  %v6647_v57 = vpack.c.bf16 %v3966_v26, %v3962_v11  ;;  %v3979_v11 = vld [vmem:[#allocation16 + $0x208] sm:$0xff]  ;;  %v3981_v26 = vld [vmem:[#allocation16 + $0x218] sm:$0xff] }
 0x824   : > { %3686 = vmatprep.mubr.f32.mxu0 %v10088_v12  ;;  %3847 = vmatprep.mubr.f32.mxu1 %v10088_v12  ;;  %v3324_v6 = vpop.xlane.xlu0 %3323  ;;  %v3401_v30 = vmul.f32 %v7260_v27, %v9918_v19  ;;  %v3400_v5 = vmul.f32 %v7260_v27, %v9915_v36  ;;  %v3976_v19 = vld [vmem:[#allocation16 + $0x1f0] sm:$0xff] }
 0x825   : > { %7265 = vrsqrt.f32 %v3365_v52  ;;  %v3350_v49 = vmul.f32 0.00390625, %v3324_v6  ;;  %3687 = vmatmul.mubr.f32.gmra.mrb[90].mxu0 %v10091_v38  ;;  %3848 = vmatmul.mubr.f32.gmra.mrb[122].mxu1 %v10091_v38  ;;  %v6649_v52 = vpack.c.bf16 %v3975_v37, %v3971_v58  ;;  %v6713_v6 = vpack.c.bf16 %v3977_v16, %v3973_v21  ;;  %v3978_v21 = vld [vmem:[#allocation16 + $0x200] sm:$0xff] }
 0x826   : > { %6644 = vmatpush1.bf16.msra.mxu0 %v6643_v22  ;;  %6708 = vmatpush1.bf16.msra.mxu1 %v6707_v46  ;;  %v10100_v44 = vmul.f32 %v10023_v31, %v3401_v30  ;;  %v10103_v9 = vmul.f32 %v10019_v28, %v3400_v5  ;;  %v3985_v30 = vld [vmem:[#allocation16 + $0x238] sm:$0xff]  ;;  %v6715_v37 = vpack.c.bf16 %v3976_v19, %v3972_v45  ;;  %v3982_v16 = vld [vmem:[#allocation16 + $0x220] sm:$0xff]  ;;  %v3991_v19 = vld [vmem:[#allocation16 + $0x268] sm:$0xff] }
 0x827   : > { %v7262_v55 = vpop.eup %7261  ;;  %v3366_v27 = vadd.f32 1e-06, %v3350_v49  ;;  %6646 = vmatprep.subr.bf16.mxu0 %v6645_v17  ;;  %6710 = vmatprep.subr.bf16.mxu1 %v6709_v39  ;;  %v6651_v39 = vpack.c.bf16 %v3974_v50, %v3970_v18  ;;  %v3987_v18 = vld [vmem:[#allocation16 + $0x248] sm:$0xff]  ;;  %v3989_v50 = vld [vmem:[#allocation16 + $0x258] sm:$0xff] }
 0x828   : > { %v3327_v22 = vpop.xlane.xlu1 %3326  ;;  %3692 = vmatprep.mubr.f32.mxu0 %v10100_v44  ;;  %3853 = vmatprep.mubr.f32.mxu1 %v10100_v44  ;;  %v3403_v46 = vmul.f32 %v7262_v55, %v9928_v2  ;;  %v3402_v56 = vmul.f32 %v7262_v55, %v9925_v1  ;;  %v3980_v2 = vld [vmem:[#allocation16 + $0x210] sm:$0xff] }
 0x829   : > { %7267 = vrsqrt.f32 %v3366_v27  ;;  %v3351_v17 = vmul.f32 0.00390625, %v3327_v22  ;;  %3693 = vmatmul.mubr.f32.gmra.mrb[92].mxu0 %v10103_v9  ;;  %3854 = vmatmul.mubr.f32.gmra.mrb[124].mxu1 %v10103_v9  ;;  %v6653_v27 = vpack.c.bf16 %v3983_v43, %v3979_v11  ;;  %v6717_v22 = vpack.c.bf16 %v3985_v30, %v3981_v26  ;;  %v3984_v1 = vld [vmem:[#allocation16 + $0x230] sm:$0xff]  ;;  %v3986_v26 = vld [vmem:[#allocation16 + $0x240] sm:$0xff] }
 0x82a   : > { %6648 = vmatpush1.bf16.msra.mxu0 %v6647_v57  ;;  %6712 = vmatpush1.bf16.msra.mxu1 %v6711_v8  ;;  %v10112_v58 = vmul.f32 %v10023_v31, %v3403_v46  ;;  %v10115_v5 = vmul.f32 %v10019_v28, %v3402_v56  ;;  %v3993_v46 = vld [vmem:[#allocation16 + $0x278] sm:$0xff]  ;;  %v6719_v43 = vpack.c.bf16 %v3984_v1, %v3980_v2  ;;  %v3990_v30 = vld [vmem:[#allocation16 + $0x260] sm:$0xff]  ;;  %v3999_v2 = vld [vmem:[#allocation16 + $0x2a8] sm:$0xff] }
 0x82b   : > { %v7264_v49 = vpop.eup %7263  ;;  %v3367_v55 = vadd.f32 1e-06, %v3351_v17  ;;  %6650 = vmatprep.subr.bf16.mxu0 %v6649_v52  ;;  %6714 = vmatprep.subr.bf16.mxu1 %v6713_v6  ;;  %v6655_v6 = vpack.c.bf16 %v3982_v16, %v3978_v21  ;;  %v3995_v21 = vld [vmem:[#allocation16 + $0x288] sm:$0xff]  ;;  %v3997_v16 = vld [vmem:[#allocation16 + $0x298] sm:$0xff] }
 0x82c   : > { %3698 = vmatprep.mubr.f32.mxu0 %v10112_v58  ;;  %3859 = vmatprep.mubr.f32.mxu1 %v10112_v58  ;;  %v3330_v57 = vpop.xlane.xlu0 %3329  ;;  %v3405_v8 = vmul.f32 %v7264_v49, %v9938_v60  ;;  %v3404_v45 = vmul.f32 %v7264_v49, %v9935_v42  ;;  %v3988_v60 = vld [vmem:[#allocation16 + $0x250] sm:$0xff] }
 0x82d   : > { %7269 = vrsqrt.f32 %v3367_v55  ;;  %v3352_v52 = vmul.f32 0.00390625, %v3330_v57  ;;  %3699 = vmatmul.mubr.f32.gmra.mrb[94].mxu0 %v10115_v5  ;;  %3860 = vmatmul.mubr.f32.gmra.mrb[126].mxu1 %v10115_v5  ;;  %v6657_v55 = vpack.c.bf16 %v3991_v19, %v3987_v18  ;;  %v6721_v57 = vpack.c.bf16 %v3993_v46, %v3989_v50  ;;  %v3992_v42 = vld [vmem:[#allocation16 + $0x270] sm:$0xff]  ;;  %v3994_v50 = vld [vmem:[#allocation16 + $0x280] sm:$0xff] }
 0x82e   : > { %6652 = vmatpush1.bf16.msra.mxu0 %v6651_v39  ;;  %6716 = vmatpush1.bf16.msra.mxu1 %v6715_v37  ;;  %v10124_v11 = vmul.f32 %v10023_v31, %v3405_v8  ;;  %v10127_v56 = vmul.f32 %v10019_v28, %v3404_v45  ;;  %v4001_v8 = vld [vmem:[#allocation16 + $0x2b8] sm:$0xff]  ;;  %v6723_v19 = vpack.c.bf16 %v3992_v42, %v3988_v60  ;;  %v3998_v46 = vld [vmem:[#allocation16 + $0x2a0] sm:$0xff]  ;;  %v4007_v60 = vld [vmem:[#allocation16 + $0x2e8] sm:$0xff] }
 0x82f   : > { %v7266_v17 = vpop.eup %7265  ;;  %v3368_v49 = vadd.f32 1e-06, %v3352_v52  ;;  %6654 = vmatprep.subr.bf16.mxu0 %v6653_v27  ;;  %6718 = vmatprep.subr.bf16.mxu1 %v6717_v22  ;;  %v6659_v22 = vpack.c.bf16 %v3990_v30, %v3986_v26  ;;  %v4003_v26 = vld [vmem:[#allocation16 + $0x2c8] sm:$0xff]  ;;  %v4005_v30 = vld [vmem:[#allocation16 + $0x2d8] sm:$0xff] }
 0x830   : > { %v3333_v39 = vpop.xlane.xlu1 %3332  ;;  %3704 = vmatprep.mubr.f32.mxu0 %v10124_v11  ;;  %3865 = vmatprep.mubr.f32.mxu1 %v10124_v11  ;;  %v3407_v37 = vmul.f32 %v7266_v17, %v9948_v35  ;;  %v3406_v1 = vmul.f32 %v7266_v17, %v9945_v14  ;;  %v3996_v35 = vld [vmem:[#allocation16 + $0x290] sm:$0xff] }
 0x831   : > { %7271 = vrsqrt.f32 %v3368_v49  ;;  %v3353_v27 = vmul.f32 0.00390625, %v3333_v39  ;;  %3705 = vmatmul.mubr.f32.gmra.mrb[96].mxu0 %v10127_v56  ;;  %3866 = vmatmul.mubr.f32.gmra.mrb[128].mxu1 %v10127_v56  ;;  %v6661_v49 = vpack.c.bf16 %v3999_v2, %v3995_v21  ;;  %v6725_v39 = vpack.c.bf16 %v4001_v8, %v3997_v16  ;;  %v4000_v14 = vld [vmem:[#allocation16 + $0x2b0] sm:$0xff]  ;;  %v4002_v16 = vld [vmem:[#allocation16 + $0x2c0] sm:$0xff] }
 0x832   : > { %6656 = vmatpush1.bf16.msra.mxu0 %v6655_v6  ;;  %6720 = vmatpush1.bf16.msra.mxu1 %v6719_v43  ;;  %v10136_v18 = vmul.f32 %v10023_v31, %v3407_v37  ;;  %v10139_v45 = vmul.f32 %v10019_v28, %v3406_v1  ;;  %v4009_v37 = vld [vmem:[#allocation16 + $0x2f8] sm:$0xff]  ;;  %v6727_v2 = vpack.c.bf16 %v4000_v14, %v3996_v35  ;;  %v4006_v8 = vld [vmem:[#allocation16 + $0x2e0] sm:$0xff]  ;;  %v4015_v35 = vld [vmem:[#allocation16 + $0x328] sm:$0xff] }
 0x833   : > { %v7268_v52 = vpop.eup %7267  ;;  %v3369_v17 = vadd.f32 1e-06, %v3353_v27  ;;  %6658 = vmatprep.subr.bf16.mxu0 %v6657_v55  ;;  %6722 = vmatprep.subr.bf16.mxu1 %v6721_v57  ;;  %v6663_v57 = vpack.c.bf16 %v3998_v46, %v3994_v50  ;;  %v4011_v50 = vld [vmem:[#allocation16 + $0x308] sm:$0xff]  ;;  %v4013_v46 = vld [vmem:[#allocation16 + $0x318] sm:$0xff] }
 0x834   : > { %3710 = vmatprep.mubr.f32.mxu0 %v10136_v18  ;;  %3871 = vmatprep.mubr.f32.mxu1 %v10136_v18  ;;  %v3336_v6 = vpop.xlane.xlu0 %3335  ;;  %v3409_v43 = vmul.f32 %v7268_v52, %v9958_v59  ;;  %v3408_v42 = vmul.f32 %v7268_v52, %v9955_v32  ;;  %v4004_v59 = vld [vmem:[#allocation16 + $0x2d0] sm:$0xff] }
 0x835   : > { %7273 = vrsqrt.f32 %v3369_v17  ;;  %v3354_v55 = vmul.f32 0.00390625, %v3336_v6  ;;  %3711 = vmatmul.mubr.f32.gmra.mrb[98].mxu0 %v10139_v45  ;;  %3872 = vmatmul.mubr.f32.gmra.mrb[130].mxu1 %v10139_v45  ;;  %v6665_v17 = vpack.c.bf16 %v4007_v60, %v4003_v26  ;;  %v6729_v6 = vpack.c.bf16 %v4009_v37, %v4005_v30  ;;  %v4008_v32 = vld [vmem:[#allocation16 + $0x2f0] sm:$0xff]  ;;  %v4010_v30 = vld [vmem:[#allocation16 + $0x300] sm:$0xff] }
 0x836   : > { %6660 = vmatpush1.bf16.msra.mxu0 %v6659_v22  ;;  %6724 = vmatpush1.bf16.msra.mxu1 %v6723_v19  ;;  %v10148_v21 = vmul.f32 %v10023_v31, %v3409_v43  ;;  %v10151_v1 = vmul.f32 %v10019_v28, %v3408_v42  ;;  %v4017_v43 = vld [vmem:[#allocation16 + $0x338] sm:$0xff]  ;;  %v6731_v60 = vpack.c.bf16 %v4008_v32, %v4004_v59  ;;  %v4014_v37 = vld [vmem:[#allocation16 + $0x320] sm:$0xff]  ;;  %v4023_v32 = vld [vmem:[#allocation16 + $0x368] sm:$0xff] }
 0x837   : > { %v7270_v27 = vpop.eup %7269  ;;  %v3370_v52 = vadd.f32 1e-06, %v3354_v55  ;;  %6662 = vmatprep.subr.bf16.mxu0 %v6661_v49  ;;  %6726 = vmatprep.subr.bf16.mxu1 %v6725_v39  ;;  %v6667_v39 = vpack.c.bf16 %v4006_v8, %v4002_v16  ;;  %v4019_v16 = vld [vmem:[#allocation16 + $0x348] sm:$0xff]  ;;  %v4021_v59 = vld [vmem:[#allocation16 + $0x358] sm:$0xff] }
 0x838   : > { %v3339_v22 = vpop.xlane.xlu1 %3338  ;;  %3716 = vmatprep.mubr.f32.mxu0 %v10148_v21  ;;  %3877 = vmatprep.mubr.f32.mxu1 %v10148_v21  ;;  %v3411_v19 = vmul.f32 %v7270_v27, %v9968_v3  ;;  %v3410_v14 = vmul.f32 %v7270_v27, %v9965_v53  ;;  %v4012_v3 = vld [vmem:[#allocation16 + $0x310] sm:$0xff]  ;;  %v4025_v8 = vld [vmem:[#allocation16 + $0x378] sm:$0xff] }
 0x839   : > { %7275 = vrsqrt.f32 %v3370_v52  ;;  %v3355_v49 = vmul.f32 0.00390625, %v3339_v22  ;;  %3717 = vmatmul.mubr.f32.gmra.mrb[100].mxu0 %v10151_v1  ;;  %3878 = vmatmul.mubr.f32.gmra.mrb[132].mxu1 %v10151_v1  ;;  %v6669_v52 = vpack.c.bf16 %v4015_v35, %v4011_v50  ;;  %v6733_v22 = vpack.c.bf16 %v4017_v43, %v4013_v46  ;;  %v4016_v53 = vld [vmem:[#allocation16 + $0x330] sm:$0xff]  ;;  %v4022_v35 = vld [vmem:[#allocation16 + $0x360] sm:$0xff] }
 0x83a   : > { %6664 = vmatpush1.bf16.msra.mxu0 %v6663_v57  ;;  %6728 = vmatpush1.bf16.msra.mxu1 %v6727_v2  ;;  %v10160_v26 = vmul.f32 %v10023_v31, %v3411_v19  ;;  %v10163_v42 = vmul.f32 %v10019_v28, %v3410_v14  ;;  %v6735_v19 = vpack.c.bf16 %v4016_v53, %v4012_v3  ;;  %v4018_v14 = vld [vmem:[#allocation16 + $0x340] sm:$0xff]  ;;  %v4029_v53 = vld [vmem:[#allocation16 + $0x398] sm:$0xff] }
 0x83b   : > { %v7272_v55 = vpop.eup %7271  ;;  %v3371_v27 = vadd.f32 1e-06, %v3355_v49  ;;  %6666 = vmatprep.subr.bf16.mxu0 %v6665_v17  ;;  %6730 = vmatprep.subr.bf16.mxu1 %v6729_v6  ;;  %v6671_v17 = vpack.c.bf16 %v4014_v37, %v4010_v30  ;;  %v6673_v43 = vpack.c.bf16 %v4023_v32, %v4019_v16  ;;  %v6737_v49 = vpack.c.bf16 %v4025_v8, %v4021_v59  ;;  %v4031_v30 = vld [vmem:[#allocation16 + $0x3a8] sm:$0xff]  ;;  %v4033_v3 = vld [vmem:[#allocation16 + $0x3b8] sm:$0xff] }
 0x83c   : > { %3722 = vmatprep.mubr.f32.mxu0 %v10160_v26  ;;  %3883 = vmatprep.mubr.f32.mxu1 %v10160_v26  ;;  %v3413_v57 = vmul.f32 %v7272_v55, %v9978_v20  ;;  %v3412_v2 = vmul.f32 %v7272_v55, %v9975_v24  ;;  %v4020_v55 = vld [vmem:[#allocation16 + $0x350] sm:$0xff]  ;;  %v4027_v20 = vld [vmem:[#allocation16 + $0x388] sm:$0xff]  ;;  %v6675_v37 = vpack.c.bf16 %v4022_v35, %v4018_v14  ;;  %v4037_v35 = vld [vmem:[#allocation16 + $0x3d8] sm:$0xff] }
 0x83d   : > { %7277 = vrsqrt.f32 %v3371_v27  ;;  %3723 = vmatmul.mubr.f32.gmra.mrb[102].mxu0 %v10163_v42  ;;  %3884 = vmatmul.mubr.f32.gmra.mrb[134].mxu1 %v10163_v42  ;;  %v4024_v27 = vld [vmem:[#allocation16 + $0x370] sm:$0xff]  ;;  %v6677_v59 = vpack.c.bf16 %v4031_v30, %v4027_v20  ;;  %v6741_v8 = vpack.c.bf16 %v4033_v3, %v4029_v53  ;;  %v4039_v14 = vld [vmem:[#allocation16 + $0x3e8] sm:$0xff]  ;;  %v4034_v53 = vld [vmem:[#allocation16 + $0x3c0] sm:$0xff] }
 0x83e   : > { %6668 = vmatpush1.bf16.msra.mxu0 %v6667_v39  ;;  %6732 = vmatpush1.bf16.msra.mxu1 %v6731_v60  ;;  %v10172_v6 = vmul.f32 %v10023_v31, %v3413_v57  ;;  %v10175_v50 = vmul.f32 %v10019_v28, %v3412_v2  ;;  %v6739_v16 = vpack.c.bf16 %v4024_v27, %v4020_v55  ;;  %v4026_v57 = vld [vmem:[#allocation16 + $0x380] sm:$0xff]  ;;  %v4041_v55 = vld [vmem:[#allocation16 + $0x3f8] sm:$0xff] }
 0x83f   : > { %v7274_v46 = vpop.eup %7273  ;;  %6670 = vmatprep.subr.bf16.mxu0 %v6669_v52  ;;  %6734 = vmatprep.subr.bf16.mxu1 %v6733_v22  ;;  %v4030_v2 = vld [vmem:[#allocation16 + $0x3a0] sm:$0xff]  ;;  %v6745_v30 = vpack.c.bf16 %v4041_v55, %v4037_v35  ;;  %v4942_v35 = vld [vmem:[#allocation17 + $0x210] sm:$0xff] }
 0x840   : > { %3728 = vmatprep.mubr.f32.mxu0 %v10172_v6  ;;  %3889 = vmatprep.mubr.f32.mxu1 %v10172_v6  ;;  %v3415_v39 = vmul.f32 %v7274_v46, %v9988_v10  ;;  %v3414_v60 = vmul.f32 %v7274_v46, %v9985_v33  ;;  %v4028_v46 = vld [vmem:[#allocation16 + $0x390] sm:$0xff]  ;;  %v4035_v33 = vld [vmem:[#allocation16 + $0x3c8] sm:$0xff]  ;;  %v6679_v20 = vpack.c.bf16 %v4030_v2, %v4026_v57  ;;  %v4038_v3 = vld [vmem:[#allocation16 + $0x3e0] sm:$0xff] }
 0x841   : > { %3729 = vmatmul.mubr.f32.gmra.mrb[104].mxu0 %v10175_v50  ;;  %3890 = vmatmul.mubr.f32.gmra.mrb[136].mxu1 %v10175_v50  ;;  %v4032_v10 = vld [vmem:[#allocation16 + $0x3b0] sm:$0xff] }
 0x842   : > { %6672 = vmatpush1.bf16.msra.mxu0 %v6671_v17  ;;  %6736 = vmatpush1.bf16.msra.mxu1 %v6735_v19  ;;  %v10184_v52 = vmul.f32 %v10023_v31, %v3415_v39  ;;  %v10187_v22 = vmul.f32 %v10019_v28, %v3414_v60  ;;  %v6743_v27 = vpack.c.bf16 %v4032_v10, %v4028_v46  ;;  %v4036_v57 = vld [vmem:[#allocation16 + $0x3d0] sm:$0xff]  ;;  %v4892_v46 = vld [vmem:[#allocation17 + $0x80] sm:$0xff] }
 0x843   : > { %v7276_v32 = vpop.eup %7275  ;;  %6674 = vmatprep.subr.bf16.mxu0 %v6673_v43  ;;  %6738 = vmatprep.subr.bf16.mxu1 %v6737_v49  ;;  %v6681_v60 = vpack.c.bf16 %v4039_v14, %v4035_v33  ;;  %v4040_v2 = vld [vmem:[#allocation16 + $0x3f0] sm:$0xff]  ;;  %v4940_v14 = vld [vmem:[#allocation17 + $0x200] sm:$0xff] }
 0x844   : > { %3734 = vmatprep.mubr.f32.mxu0 %v10184_v52  ;;  %3895 = vmatprep.mubr.f32.mxu1 %v10184_v52  ;;  %v3417_v17 = vmul.f32 %v7276_v32, %v9998_v13  ;;  %v3416_v19 = vmul.f32 %v7276_v32, %v9995_v7  ;;  %v6683_v32 = vpack.c.bf16 %v4038_v3, %v4034_v53  ;;  %v4944_v3 = vld [vmem:[#allocation17 + $0x220] sm:$0xff] }
 0x845   : > { %3735 = vmatmul.mubr.f32.gmra.mrb[106].mxu0 %v10187_v22  ;;  %3896 = vmatmul.mubr.f32.gmra.mrb[138].mxu1 %v10187_v22  ;;  %v10277_v55 = vpack.c.bf16 %v4942_v35, %v4940_v14  ;;  %v4961_v14 = vld [vmem:[#allocation17 + $0x2a8] sm:$0xff] }
 0x846   : > { %6676 = vmatpush1.bf16.msra.mxu0 %v6675_v37  ;;  %6740 = vmatpush1.bf16.msra.mxu1 %v6739_v16  ;;  %v10196_v43 = vmul.f32 %v10023_v31, %v3417_v17  ;;  %v10199_v49 = vmul.f32 %v10019_v28, %v3416_v19  ;;  %v4894_v17 = vld [vmem:[#allocation17 + $0x90] sm:$0xff] }
 0x847   : > { %v7278_v39 = vpop.eup %7277  ;;  %6678 = vmatprep.subr.bf16.mxu0 %v6677_v59  ;;  %6742 = vmatprep.subr.bf16.mxu1 %v6741_v8  ;;  %v6747_v59 = vpack.c.bf16 %v4040_v2, %v4036_v57  ;;  %v4943_v8 = vld [vmem:[#allocation17 + $0x218] sm:$0xff]  ;;  %v6767_v19 = vpack.c.bf16 %v4894_v17, %v4892_v46  ;;  %v4901_v57 = vld [vmem:[#allocation17 + $0xc8] sm:$0xff] }
 0x848   : > { %3740 = vmatprep.mubr.f32.mxu0 %v10196_v43  ;;  %3901 = vmatprep.mubr.f32.mxu1 %v10196_v43  ;;  %v3419_v37 = vmul.f32 %v7278_v39, %v10008_v54  ;;  %v3418_v16 = vmul.f32 %v7278_v39, %v10005_v40  ;;  %v4947_v39 = vld [vmem:[#allocation17 + $0x238] sm:$0xff]  ;;  %v4913_v17 = vld [vmem:[#allocation17 + $0x128] sm:$0xff] }
 0x849   : > { %3741 = vmatmul.mubr.f32.gmra.mrb[108].mxu0 %v10199_v49  ;;  %3902 = vmatmul.mubr.f32.gmra.mrb[140].mxu1 %v10199_v49  ;;  %v4903_v2 = vld [vmem:[#allocation17 + $0xd8] sm:$0xff] }
 0x84a   : > { %6680 = vmatpush1.bf16.msra.mxu0 %v6679_v20  ;;  %6744 = vmatpush1.bf16.msra.mxu1 %v6743_v27  ;;  %v10208_v33 = vmul.f32 %v10023_v31, %v3419_v37  ;;  %v10211_v10 = vmul.f32 %v10019_v28, %v3418_v16  ;;  %v4877_v28 = vld [vmem:[#allocation17 + $0x8] sm:$0xff]  ;;  %v4879_v31 = vld [vmem:[#allocation17 + $0x18] sm:$0xff]  ;;  %v4946_v37 = vld [vmem:[#allocation17 + $0x230] sm:$0xff] }
 0x84b   : > { %6682 = vmatprep.subr.bf16.mxu0 %v6681_v60  ;;  %6746 = vmatprep.subr.bf16.mxu1 %v6745_v30  ;;  %v4899_v20 = vld [vmem:[#allocation17 + $0xb8] sm:$0xff]  ;;  %v4896_v60 = vld [vmem:[#allocation17 + $0xa0] sm:$0xff]  ;;  %v4898_v30 = vld [vmem:[#allocation17 + $0xb0] sm:$0xff]  ;;  %v10289_v16 = vpack.c.bf16 %v4946_v37, %v4944_v3 }
 0x84c   : > { %3746 = vmatprep.mubr.f32.mxu0 %v10208_v33  ;;  %3907 = vmatprep.mubr.f32.mxu1 %v10208_v33  ;;  %v4917_v3 = vld [vmem:[#allocation17 + $0x148] sm:$0xff]  ;;  %v4919_v37 = vld [vmem:[#allocation17 + $0x158] sm:$0xff] }
 0x84d   : > { %3747 = vmatmul.mubr.f32.gmra.mrb[110].mxu0 %v10211_v10  ;;  %3908 = vmatmul.mubr.f32.gmra.mrb[142].mxu1 %v10211_v10 }
 0x84e   : > { %6684 = vmatpush1.bf16.msra.mxu0 %v6683_v32  ;;  %4106 = vmatprep.mubr.f32.mxu0 %v10028_v15  ;;  %v4951_v32 = vld [vmem:[#allocation17 + $0x258] sm:$0xff] }
 0x84f   : > { %6748 = vmatpush1.bf16.msra.mxu1 %v6747_v59  ;;  %4267 = vmatprep.mubr.f32.mxu1 %v10028_v15  ;;  %v6749_v15 = vpack.c.bf16 %v4879_v31, %v4877_v28  ;;  %v4900_v59 = vld [vmem:[#allocation17 + $0xc0] sm:$0xff]  ;;  %v4902_v28 = vld [vmem:[#allocation17 + $0xd0] sm:$0xff] }
 0x851   : > { %4107 = vmatmul.mubr.f32.vlgmr.msra.gmra.mrb[112].mxu0 %v10031_v63  ;;  %6750 = vmatprep.subr.bf16.mxu0 %v6749_v15  ;;  %v6775_v15 = vpack.c.bf16 %v4902_v28, %v4900_v59 }
 0x852   : > { %4268 = vmatmul.mubr.f32.vlgmr.msra.gmra.mrb[144].mxu1 %v10031_v63  ;;  %4112 = vmatprep.mubr.f32.mxu0 %v10040_v4  ;;  %v4876_v63 = vld [vmem:[#allocation17] sm:$0xff] }
 0x853   : > { %4273 = vmatprep.mubr.f32.mxu1 %v10040_v4  ;;  %v4878_v4 = vld [vmem:[#allocation17 + $0x10] sm:$0xff] }
 0x855   : > { %4113 = vmatmul.mubr.f32.gmra.mrb[114].mxu0 %v10043_v48 }
 0x856   : > { %4274 = vmatmul.mubr.f32.gmra.mrb[146].mxu1 %v10043_v48  ;;  %4118 = vmatprep.mubr.f32.mxu0 %v10052_v25  ;;  %v6751_v48 = vpack.c.bf16 %v4878_v4, %v4876_v63  ;;  %v4948_v63 = vld [vmem:[#allocation17 + $0x240] sm:$0xff]  ;;  %v4950_v4 = vld [vmem:[#allocation17 + $0x250] sm:$0xff] }
 0x857   : > { %4279 = vmatprep.mubr.f32.mxu1 %v10052_v25  ;;  %v4881_v25 = vld [vmem:[#allocation17 + $0x28] sm:$0xff] }
 0x858   : > { %6752 = vmatpush1.bf16.msra.mxu0 %v6751_v48  ;;  %v10295_v48 = vpack.c.bf16 %v4950_v4, %v4948_v63  ;;  %v4966_v63 = vld [vmem:[#allocation17 + $0x2d0] sm:$0xff] }
 0x859   : > { %4119 = vmatmul.mubr.f32.gmra.mrb[116].mxu0 %v10055_v51 }
 0x85a   : > { %4280 = vmatmul.mubr.f32.gmra.mrb[148].mxu1 %v10055_v51  ;;  %4124 = vmatprep.mubr.f32.mxu0 %v10064_v41  ;;  %v4883_v51 = vld [vmem:[#allocation17 + $0x38] sm:$0xff]  ;;  %11262 = vst [vmem:[#allocation42_spill] sm:$0xff] %v10295_v48 }
 0x85b   : > { %4285 = vmatprep.mubr.f32.mxu1 %v10064_v41  ;;  %v6753_v41 = vpack.c.bf16 %v4883_v51, %v4881_v25  ;;  %v4905_v25 = vld [vmem:[#allocation17 + $0xe8] sm:$0xff]  ;;  %v4907_v51 = vld [vmem:[#allocation17 + $0xf8] sm:$0xff] }
 0x85d   : > { %4125 = vmatmul.mubr.f32.gmra.mrb[118].mxu0 %v10067_v29  ;;  %6754 = vmatprep.subr.bf16.mxu0 %v6753_v41  ;;  %v4953_v41 = vld [vmem:[#allocation17 + $0x268] sm:$0xff] }
 0x85e   : > { %4286 = vmatmul.mubr.f32.gmra.mrb[150].mxu1 %v10067_v29  ;;  %4130 = vmatprep.mubr.f32.mxu0 %v10076_v34  ;;  %v4880_v29 = vld [vmem:[#allocation17 + $0x20] sm:$0xff] }
 0x85f   : > { %4291 = vmatprep.mubr.f32.mxu1 %v10076_v34  ;;  %v4882_v34 = vld [vmem:[#allocation17 + $0x30] sm:$0xff] }
 0x861   : > { %4131 = vmatmul.mubr.f32.gmra.mrb[120].mxu0 %v10079_v61 }
 0x862   : > { %4292 = vmatmul.mubr.f32.gmra.mrb[152].mxu1 %v10079_v61  ;;  %4136 = vmatprep.mubr.f32.mxu0 %v10088_v12  ;;  %v6755_v61 = vpack.c.bf16 %v4882_v34, %v4880_v29  ;;  %v6777_v29 = vpack.c.bf16 %v4907_v51, %v4905_v25  ;;  %v4955_v34 = vld [vmem:[#allocation17 + $0x278] sm:$0xff]  ;;  %v4921_v25 = vld [vmem:[#allocation17 + $0x168] sm:$0xff] }
 0x863   : > { %4297 = vmatprep.mubr.f32.mxu1 %v10088_v12  ;;  %v4885_v12 = vld [vmem:[#allocation17 + $0x48] sm:$0xff]  ;;  %v4923_v51 = vld [vmem:[#allocation17 + $0x178] sm:$0xff] }
 0x864   : > { %6756 = vmatpush1.bf16.msra.mxu0 %v6755_v61  ;;  %v4904_v61 = vld [vmem:[#allocation17 + $0xe0] sm:$0xff] }
 0x865   : > { %4137 = vmatmul.mubr.f32.gmra.mrb[122].mxu0 %v10091_v38 }
 0x866   : > { %4298 = vmatmul.mubr.f32.gmra.mrb[154].mxu1 %v10091_v38  ;;  %4142 = vmatprep.mubr.f32.mxu0 %v10100_v44  ;;  %v4887_v38 = vld [vmem:[#allocation17 + $0x58] sm:$0xff] }
 0x867   : > { %4303 = vmatprep.mubr.f32.mxu1 %v10100_v44  ;;  %v6757_v44 = vpack.c.bf16 %v4887_v38, %v4885_v12  ;;  %v4906_v12 = vld [vmem:[#allocation17 + $0xf0] sm:$0xff]  ;;  %v10299_v38 = vpack.c.bf16 %v4955_v34, %v4953_v41  ;;  %v4969_v41 = vld [vmem:[#allocation17 + $0x2e8] sm:$0xff]  ;;  %v4971_v34 = vld [vmem:[#allocation17 + $0x2f8] sm:$0xff] }
 0x869   : > { %4143 = vmatmul.mubr.f32.gmra.mrb[124].mxu0 %v10103_v9  ;;  %6758 = vmatprep.subr.bf16.mxu0 %v6757_v44  ;;  %11263 = vst [vmem:[#allocation43_spill] sm:$0xff] %v10299_v38  ;;  %v6779_v44 = vpack.c.bf16 %v4906_v12, %v4904_v61  ;;  %v4920_v61 = vld [vmem:[#allocation17 + $0x160] sm:$0xff]  ;;  %v4922_v12 = vld [vmem:[#allocation17 + $0x170] sm:$0xff] }
 0x86a   : > { %4304 = vmatmul.mubr.f32.gmra.mrb[156].mxu1 %v10103_v9  ;;  %4148 = vmatprep.mubr.f32.mxu0 %v10112_v58  ;;  %v4884_v9 = vld [vmem:[#allocation17 + $0x40] sm:$0xff] }
 0x86b   : > { %4309 = vmatprep.mubr.f32.mxu1 %v10112_v58  ;;  %v4886_v58 = vld [vmem:[#allocation17 + $0x50] sm:$0xff] }
 0x86d   : > { %4149 = vmatmul.mubr.f32.gmra.mrb[126].mxu0 %v10115_v5 }
 0x86e   : > { %4310 = vmatmul.mubr.f32.gmra.mrb[158].mxu1 %v10115_v5  ;;  %4154 = vmatprep.mubr.f32.mxu0 %v10124_v11  ;;  %v6759_v5 = vpack.c.bf16 %v4886_v58, %v4884_v9  ;;  %v4952_v9 = vld [vmem:[#allocation17 + $0x260] sm:$0xff]  ;;  %v4954_v58 = vld [vmem:[#allocation17 + $0x270] sm:$0xff] }
 0x86f   : > { %4315 = vmatprep.mubr.f32.mxu1 %v10124_v11  ;;  %v4889_v11 = vld [vmem:[#allocation17 + $0x68] sm:$0xff] }
 0x870   : > { %6760 = vmatpush1.bf16.msra.mxu0 %v6759_v5  ;;  %v10301_v5 = vpack.c.bf16 %v4954_v58, %v4952_v9  ;;  %v6795_v9 = vpack.c.bf16 %v4922_v12, %v4920_v61  ;;  %v4968_v58 = vld [vmem:[#allocation17 + $0x2e0] sm:$0xff]  ;;  %v4982_v12 = vld [vmem:[#allocation17 + $0x350] sm:$0xff] }
 0x871   : > { %4155 = vmatmul.mubr.f32.gmra.mrb[128].mxu0 %v10127_v56  ;;  %v4980_v61 = vld [vmem:[#allocation17 + $0x340] sm:$0xff] }
 0x872   : > { %4316 = vmatmul.mubr.f32.gmra.mrb[160].mxu1 %v10127_v56  ;;  %4160 = vmatprep.mubr.f32.mxu0 %v10136_v18  ;;  %v4891_v56 = vld [vmem:[#allocation17 + $0x78] sm:$0xff]  ;;  %11264 = vst [vmem:[#allocation45_spill] sm:$0xff] %v10301_v5 }
 0x873   : > { %4321 = vmatprep.mubr.f32.mxu1 %v10136_v18  ;;  %v6761_v18 = vpack.c.bf16 %v4891_v56, %v4889_v11  ;;  %v4909_v11 = vld [vmem:[#allocation17 + $0x108] sm:$0xff]  ;;  %v4911_v56 = vld [vmem:[#allocation17 + $0x118] sm:$0xff] }
 0x875   : > { %4161 = vmatmul.mubr.f32.gmra.mrb[130].mxu0 %v10139_v45  ;;  %6762 = vmatprep.subr.bf16.mxu0 %v6761_v18  ;;  %v4957_v18 = vld [vmem:[#allocation17 + $0x288] sm:$0xff] }
 0x876   : > { %4322 = vmatmul.mubr.f32.gmra.mrb[162].mxu1 %v10139_v45  ;;  %4166 = vmatprep.mubr.f32.mxu0 %v10148_v21  ;;  %v4888_v45 = vld [vmem:[#allocation17 + $0x60] sm:$0xff] }
 0x877   : > { %4327 = vmatprep.mubr.f32.mxu1 %v10148_v21  ;;  %v4890_v21 = vld [vmem:[#allocation17 + $0x70] sm:$0xff] }
 0x879   : > { %4167 = vmatmul.mubr.f32.gmra.mrb[132].mxu0 %v10151_v1 }
 0x87a   : > { %4328 = vmatmul.mubr.f32.gmra.mrb[164].mxu1 %v10151_v1  ;;  %4172 = vmatprep.mubr.f32.mxu0 %v10160_v26  ;;  %v6763_v1 = vpack.c.bf16 %v4890_v21, %v4888_v45  ;;  %v6781_v45 = vpack.c.bf16 %v4911_v56, %v4909_v11  ;;  %v4959_v21 = vld [vmem:[#allocation17 + $0x298] sm:$0xff]  ;;  %v4970_v11 = vld [vmem:[#allocation17 + $0x2f0] sm:$0xff] }
 0x87b   : > { %4333 = vmatprep.mubr.f32.mxu1 %v10160_v26  ;;  %v4893_v26 = vld [vmem:[#allocation17 + $0x88] sm:$0xff]  ;;  %v10325_v56 = vpack.c.bf16 %v4970_v11, %v4968_v58  ;;  %v4939_v11 = vld [vmem:[#allocation17 + $0x1f8] sm:$0xff] }
 0x87c   : > { %6764 = vmatpush1.bf16.msra.mxu0 %v6763_v1  ;;  %v4908_v1 = vld [vmem:[#allocation17 + $0x100] sm:$0xff]  ;;  %v4937_v58 = vld [vmem:[#allocation17 + $0x1e8] sm:$0xff] }
 0x87d   : > { %4173 = vmatmul.mubr.f32.gmra.mrb[134].mxu0 %v10163_v42  ;;  %11272 = vst [vmem:[#allocation70_spill] sm:$0xff] %v10325_v56 }
 0x87e   : > { %4334 = vmatmul.mubr.f32.gmra.mrb[166].mxu1 %v10163_v42  ;;  %4178 = vmatprep.mubr.f32.mxu0 %v10172_v6  ;;  %v4895_v42 = vld [vmem:[#allocation17 + $0x98] sm:$0xff] }
 0x87f   : > { %4339 = vmatprep.mubr.f32.mxu1 %v10172_v6  ;;  %v4941_v6 = vld [vmem:[#allocation17 + $0x208] sm:$0xff] }
 0x881   : > { %4179 = vmatmul.mubr.f32.gmra.mrb[136].mxu0 %v10175_v50 }
 0x882   : > { %4340 = vmatmul.mubr.f32.gmra.mrb[168].mxu1 %v10175_v50  ;;  %4184 = vmatprep.mubr.f32.mxu0 %v10184_v52  ;;  %v6765_v50 = vpack.c.bf16 %v4895_v42, %v4893_v26  ;;  %v4910_v26 = vld [vmem:[#allocation17 + $0x110] sm:$0xff]  ;;  %v10305_v42 = vpack.c.bf16 %v4959_v21, %v4957_v18  ;;  %v4925_v18 = vld [vmem:[#allocation17 + $0x188] sm:$0xff] }
 0x883   : > { %4345 = vmatprep.mubr.f32.mxu1 %v10184_v52  ;;  %v10275_v52 = vpack.c.bf16 %v4943_v8, %v4941_v6  ;;  %v6783_v6 = vpack.c.bf16 %v4910_v26, %v4908_v1  ;;  %v4958_v8 = vld [vmem:[#allocation17 + $0x290] sm:$0xff]  ;;  %v4973_v21 = vld [vmem:[#allocation17 + $0x308] sm:$0xff]  ;;  %v4975_v26 = vld [vmem:[#allocation17 + $0x318] sm:$0xff] }
 0x884   : > { %6766 = vmatprep.subr.bf16.mxu0 %v6765_v50  ;;  %11265 = vst [vmem:[#allocation48_spill] sm:$0xff] %v10305_v42  ;;  %v4956_v50 = vld [vmem:[#allocation17 + $0x280] sm:$0xff] }
 0x885   : > { %4185 = vmatmul.mubr.f32.gmra.mrb[138].mxu0 %v10187_v22  ;;  %6877 = vmatprep.subr.bf16.mxu1 %v10275_v52  ;;  %v10307_v46 = vpack.c.bf16 %v4958_v8, %v4956_v50  ;;  %v4926_v50 = vld [vmem:[#allocation17 + $0x190] sm:$0xff]  ;;  %v10329_v8 = vpack.c.bf16 %v4975_v26, %v4973_v21  ;;  %v4987_v21 = vld [vmem:[#allocation17 + $0x378] sm:$0xff] }
 0x886   : > { %4346 = vmatmul.mubr.f32.gmra.mrb[170].mxu1 %v10187_v22  ;;  %4190 = vmatprep.mubr.f32.mxu0 %v10196_v43  ;;  %v4897_v22 = vld [vmem:[#allocation17 + $0xa8] sm:$0xff]  ;;  %v4938_v26 = vld [vmem:[#allocation17 + $0x1f0] sm:$0xff] }
 0x887   : > { %4351 = vmatprep.mubr.f32.mxu1 %v10196_v43  ;;  %6768 = vmatpush1.bf16.msra.mxu0 %v6767_v19  ;;  %v4945_v43 = vld [vmem:[#allocation17 + $0x228] sm:$0xff]  ;;  %v6769_v27 = vpack.c.bf16 %v4899_v20, %v4897_v22  ;;  %11266 = vst [vmem:[#allocation51_spill] sm:$0xff] %v10307_v46  ;;  %v4915_v19 = vld [vmem:[#allocation17 + $0x138] sm:$0xff]  ;;  %v4912_v20 = vld [vmem:[#allocation17 + $0x120] sm:$0xff] }
 0x888   : > { %6893 = vmatpush1.bf16.msra.mxu1 %v10277_v55  ;;  %v10287_v53 = vpack.c.bf16 %v4947_v39, %v4945_v43  ;;  %v6785_v35 = vpack.c.bf16 %v4915_v19, %v4913_v17  ;;  %v4963_v22 = vld [vmem:[#allocation17 + $0x2b8] sm:$0xff]  ;;  %v4914_v43 = vld [vmem:[#allocation17 + $0x130] sm:$0xff]  ;;  %11273 = vst [vmem:[#allocation71_spill] sm:$0xff] %v10329_v8  ;;  %v4972_v19 = vld [vmem:[#allocation17 + $0x300] sm:$0xff] }
 0x889   : > { %4191 = vmatmul.mubr.f32.gmra.mrb[140].mxu0 %v10199_v49  ;;  %6770 = vmatprep.subr.bf16.mxu0 %v6769_v27  ;;  %v10311_v27 = vpack.c.bf16 %v4963_v22, %v4961_v14  ;;  %v6787_v39 = vpack.c.bf16 %v4914_v43, %v4912_v20  ;;  %v4974_v14 = vld [vmem:[#allocation17 + $0x310] sm:$0xff]  ;;  %v4929_v22 = vld [vmem:[#allocation17 + $0x1a8] sm:$0xff]  ;;  %v4931_v20 = vld [vmem:[#allocation17 + $0x1b8] sm:$0xff] }
 0x88a   : > { %4352 = vmatmul.mubr.f32.gmra.mrb[172].mxu1 %v10199_v49  ;;  %4196 = vmatprep.mubr.f32.mxu0 %v10208_v33  ;;  %v6771_v49 = vpack.c.bf16 %v4898_v30, %v4896_v60  ;;  %v4960_v60 = vld [vmem:[#allocation17 + $0x2a0] sm:$0xff]  ;;  %v4962_v30 = vld [vmem:[#allocation17 + $0x2b0] sm:$0xff]  ;;  %v4977_v43 = vld [vmem:[#allocation17 + $0x328] sm:$0xff] }
 0x88b   : > { %4357 = vmatprep.mubr.f32.mxu1 %v10208_v33  ;;  %6878 = vmatprep.subr.bf16.mxu1 %v10287_v53  ;;  %v4949_v33 = vld [vmem:[#allocation17 + $0x248] sm:$0xff]  ;;  %11267 = vst [vmem:[#allocation53_spill] sm:$0xff] %v10311_v27 }
 0x88c   : > { %6772 = vmatpush1.bf16.msra.mxu0 %v6771_v49  ;;  %6894 = vmatpush1.bf16.msra.mxu1 %v10289_v16  ;;  %v10293_v31 = vpack.c.bf16 %v4951_v32, %v4949_v33  ;;  %v10313_v49 = vpack.c.bf16 %v4962_v30, %v4960_v60  ;;  %v4967_v33 = vld [vmem:[#allocation17 + $0x2d8] sm:$0xff]  ;;  %v4918_v32 = vld [vmem:[#allocation17 + $0x150] sm:$0xff]  ;;  %v4928_v30 = vld [vmem:[#allocation17 + $0x1a0] sm:$0xff] }
 0x88d   : > { %4197 = vmatmul.mubr.f32.gmra.mrb[142].mxu0 %v10211_v10  ;;  %v4979_v60 = vld [vmem:[#allocation17 + $0x338] sm:$0xff] }
 0x88e   : > { %4358 = vmatmul.mubr.f32.gmra.mrb[174].mxu1 %v10211_v10  ;;  %v6773_v10 = vpack.c.bf16 %v4903_v2, %v4901_v57  ;;  %6879 = vmatprep.subr.bf16.mxu1 %v10293_v31  ;;  %11268 = vst [vmem:[#allocation55_spill] sm:$0xff] %v10313_v49  ;;  %v4965_v57 = vld [vmem:[#allocation17 + $0x2c8] sm:$0xff]  ;;  %v6789_v2 = vpack.c.bf16 %v4919_v37, %v4917_v3  ;;  %v4930_v3 = vld [vmem:[#allocation17 + $0x1b0] sm:$0xff] }
 0x88f   : > { %v10317_v59 = vpack.c.bf16 %v4967_v33, %v4965_v57  ;;  %v10335_v37 = vpack.c.bf16 %v4979_v60, %v4977_v43  ;;  %v6803_v57 = vpack.c.bf16 %v4930_v3, %v4928_v30  ;;  %v4978_v33 = vld [vmem:[#allocation17 + $0x330] sm:$0xff]  ;;  %v4993_v3 = vld [vmem:[#allocation17 + $0x3a8] sm:$0xff] }
 0x890   : > { %6774 = vmatprep.subr.bf16.mxu0 %v6773_v10  ;;  %6895 = vmatpush1.bf16.msra.mxu1 %v10295_v48  ;;  %v4916_v10 = vld [vmem:[#allocation17 + $0x140] sm:$0xff]  ;;  %v4990_v60 = vld [vmem:[#allocation17 + $0x390] sm:$0xff] }
 0x891   : > { %6776 = vmatpush1.bf16.msra.mxu0 %v6775_v15  ;;  %6880 = vmatprep.subr.bf16.mxu1 %v10299_v38  ;;  %11269 = vst [vmem:[#allocation58_spill] sm:$0xff] %v10317_v59  ;;  %v6791_v28 = vpack.c.bf16 %v4918_v32, %v4916_v10  ;;  %v4964_v15 = vld [vmem:[#allocation17 + $0x2c0] sm:$0xff]  ;;  %11275 = vst [vmem:[#allocation73_spill] sm:$0xff] %v10335_v37  ;;  %v4933_v32 = vld [vmem:[#allocation17 + $0x1c8] sm:$0xff] }
 0x892   : > { %6778 = vmatprep.subr.bf16.mxu0 %v6777_v29  ;;  %v10319_v4 = vpack.c.bf16 %v4966_v63, %v4964_v15  ;;  %v6793_v29 = vpack.c.bf16 %v4923_v51, %v4921_v25  ;;  %v4981_v15 = vld [vmem:[#allocation17 + $0x348] sm:$0xff]  ;;  %v4983_v25 = vld [vmem:[#allocation17 + $0x358] sm:$0xff]  ;;  %v4932_v51 = vld [vmem:[#allocation17 + $0x1c0] sm:$0xff] }
 0x894   : > { %6896 = vmatpush1.bf16.msra.mxu1 %v10301_v5  ;;  %11270 = vst [vmem:[#allocation61_spill] sm:$0xff] %v10319_v4 }
 0x895   : > { %6780 = vmatpush1.bf16.msra.mxu0 %v6779_v44  ;;  %6881 = vmatprep.subr.bf16.mxu1 %v10305_v42  ;;  %v10323_v44 = vpack.c.bf16 %v4971_v34, %v4969_v41  ;;  %v4934_v41 = vld [vmem:[#allocation17 + $0x1d0] sm:$0xff] }
 0x896   : > { %6782 = vmatprep.subr.bf16.mxu0 %v6781_v45  ;;  %v4927_v45 = vld [vmem:[#allocation17 + $0x198] sm:$0xff]  ;;  %v6807_v34 = vpack.c.bf16 %v4934_v41, %v4932_v51 }
 0x897   : > { %11271 = vst [vmem:[#allocation28_spill] sm:$0xff] %v10323_v44  ;;  %v6797_v1 = vpack.c.bf16 %v4927_v45, %v4925_v18  ;;  %v4985_v18 = vld [vmem:[#allocation17 + $0x368] sm:$0xff]  ;;  %v6809_v45 = vpack.c.bf16 %v4939_v11, %v4937_v58 }
 0x898   : > { %6897 = vmatpush1.bf16.msra.mxu1 %v10307_v46 }
 0x899   : > { %6784 = vmatpush1.bf16.msra.mxu0 %v6783_v6  ;;  %6882 = vmatprep.subr.bf16.mxu1 %v10311_v27  ;;  %v4924_v6 = vld [vmem:[#allocation17 + $0x180] sm:$0xff] }
 0x89a   : > { %6786 = vmatprep.subr.bf16.mxu0 %v6785_v35  ;;  %v6799_v17 = vpack.c.bf16 %v4926_v50, %v4924_v6  ;;  %v10331_v35 = vpack.c.bf16 %v4974_v14, %v4972_v19  ;;  %v10347_v6 = vpack.c.bf16 %v4987_v21, %v4985_v18  ;;  %v4986_v19 = vld [vmem:[#allocation17 + $0x370] sm:$0xff]  ;;  %v4996_v18 = vld [vmem:[#allocation17 + $0x3c0] sm:$0xff] }
 0x89c   : > { %6898 = vmatpush1.bf16.msra.mxu1 %v10313_v49  ;;  %11274 = vst [vmem:[#allocation72_spill] sm:$0xff] %v10331_v35  ;;  %11279 = vst [vmem:[#allocation77_spill] sm:$0xff] %v10347_v6 }
 0x89d   : > { %6788 = vmatpush1.bf16.msra.mxu0 %v6787_v39  ;;  %6883 = vmatprep.subr.bf16.mxu1 %v10317_v59  ;;  %v6801_v39 = vpack.c.bf16 %v4931_v20, %v4929_v22  ;;  %v4989_v22 = vld [vmem:[#allocation17 + $0x388] sm:$0xff]  ;;  %v4991_v20 = vld [vmem:[#allocation17 + $0x398] sm:$0xff] }
 0x89e   : > { %6790 = vmatprep.subr.bf16.mxu0 %v6789_v2  ;;  %v4976_v2 = vld [vmem:[#allocation17 + $0x320] sm:$0xff]  ;;  %v10354_v43 = vpack.c.bf16 %v4991_v20, %v4989_v22 }
 0x89f   : > { %v10337_v10 = vpack.c.bf16 %v4978_v33, %v4976_v2  ;;  %v4992_v33 = vld [vmem:[#allocation17 + $0x3a0] sm:$0xff] }
 0x8a0   : > { %6899 = vmatpush1.bf16.msra.mxu1 %v10319_v4  ;;  %11281 = vst [vmem:[#allocation79_spill] sm:$0xff] %v10354_v43 }
 0x8a1   : > { %6792 = vmatpush1.bf16.msra.mxu0 %v6791_v28  ;;  %6884 = vmatprep.subr.bf16.mxu1 %v10323_v44  ;;  %11276 = vst [vmem:[#allocation74_spill] sm:$0xff] %v10337_v10  ;;  %v4935_v28 = vld [vmem:[#allocation17 + $0x1d8] sm:$0xff] }
 0x8a2   : > { %6794 = vmatprep.subr.bf16.mxu0 %v6793_v29  ;;  %v6805_v63 = vpack.c.bf16 %v4935_v28, %v4933_v32  ;;  %v10341_v29 = vpack.c.bf16 %v4983_v25, %v4981_v15  ;;  %v4994_v32 = vld [vmem:[#allocation17 + $0x3b0] sm:$0xff]  ;;  %v4999_v25 = vld [vmem:[#allocation17 + $0x3d8] sm:$0xff] }
 0x8a3   : > { %v10362_v28 = vpack.c.bf16 %v4994_v32, %v4992_v33  ;;  %v5000_v33 = vld [vmem:[#allocation17 + $0x3e0] sm:$0xff]  ;;  %v5002_v32 = vld [vmem:[#allocation17 + $0x3f0] sm:$0xff] }
 0x8a4   : > { %6900 = vmatpush1.bf16.msra.mxu1 %v10325_v56  ;;  %11277 = vst [vmem:[#allocation75_spill] sm:$0xff] %v10341_v29 }
 0x8a5   : > { %6796 = vmatpush1.bf16.msra.mxu0 %v6795_v9  ;;  %6885 = vmatprep.subr.bf16.mxu1 %v10329_v8  ;;  %v10343_v9 = vpack.c.bf16 %v4982_v12, %v4980_v61  ;;  %11284 = vst [vmem:[#allocation82_spill] sm:$0xff] %v10362_v28 }
 0x8a6   : > { %6798 = vmatprep.subr.bf16.mxu0 %v6797_v1  ;;  %v4936_v1 = vld [vmem:[#allocation17 + $0x1e0] sm:$0xff] }
 0x8a7   : > { %11278 = vst [vmem:[#allocation76_spill] sm:$0xff] %v10343_v9  ;;  %v6811_v50 = vpack.c.bf16 %v4938_v26, %v4936_v1 }
 0x8a8   : > { %6901 = vmatpush1.bf16.msra.mxu1 %v10331_v35 }
 0x8a9   : > { %6800 = vmatpush1.bf16.msra.mxu0 %v6799_v17  ;;  %6886 = vmatprep.subr.bf16.mxu1 %v10335_v37  ;;  %v4984_v17 = vld [vmem:[#allocation17 + $0x360] sm:$0xff] }
 0x8aa   : > { %6802 = vmatprep.subr.bf16.mxu0 %v6801_v39  ;;  %v10349_v14 = vpack.c.bf16 %v4986_v19, %v4984_v17  ;;  %v4988_v39 = vld [vmem:[#allocation17 + $0x380] sm:$0xff]  ;;  %v5003_v17 = vld [vmem:[#allocation17 + $0x3f8] sm:$0xff] }
 0x8ab   : > { %v10356_v30 = vpack.c.bf16 %v4990_v60, %v4988_v39 }
 0x8ac   : > { %6902 = vmatpush1.bf16.msra.mxu1 %v10337_v10  ;;  %11280 = vst [vmem:[#allocation78_spill] sm:$0xff] %v10349_v14 }
 0x8ad   : > { %6804 = vmatpush1.bf16.msra.mxu0 %v6803_v57  ;;  %6887 = vmatprep.subr.bf16.mxu1 %v10341_v29  ;;  %11282 = vst [vmem:[#allocation80_spill] sm:$0xff] %v10356_v30  ;;  %v4995_v57 = vld [vmem:[#allocation17 + $0x3b8] sm:$0xff] }
 0x8ae   : > { %6806 = vmatprep.subr.bf16.mxu0 %v6805_v63  ;;  %v10360_v2 = vpack.c.bf16 %v4995_v57, %v4993_v3  ;;  %v4997_v63 = vld [vmem:[#allocation17 + $0x3c8] sm:$0xff] }
 0x8af   : > { %v10376_v12 = vpack.c.bf16 %v4999_v25, %v4997_v63  ;;  %v10399_v63 = vpack.c.bf16 %v5002_v32, %v5000_v33 }
 0x8b0   : > { %6903 = vmatpush1.bf16.msra.mxu1 %v10343_v9  ;;  %11283 = vst [vmem:[#allocation81_spill] sm:$0xff] %v10360_v2 }
 0x8b1   : > { %6808 = vmatpush1.bf16.msra.mxu0 %v6807_v34  ;;  %6888 = vmatprep.subr.bf16.mxu1 %v10347_v6  ;;  %11285 = vst [vmem:[#allocation83_spill] sm:$0xff] %v10376_v12  ;;  %11288 = vst [vmem:[#allocation86_spill] sm:$0xff] %v10399_v63 }
 0x8b2   : > { %6810 = vmatprep.subr.bf16.mxu0 %v6809_v45  ;;  %v4998_v45 = vld [vmem:[#allocation17 + $0x3d0] sm:$0xff] }
 0x8b3   : > { %v10381_v21 = vpack.c.bf16 %v4998_v45, %v4996_v18 }
 0x8b4   : > { %6904 = vmatpush1.bf16.msra.mxu1 %v10349_v14 }
 0x8b5   : > { %6812 = vmatpush1.bf16.msra.mxu0 %v6811_v50  ;;  %6889 = vmatprep.subr.bf16.mxu1 %v10354_v43  ;;  %11286 = vst [vmem:[#allocation84_spill] sm:$0xff] %v10381_v21  ;;  %v5001_v50 = vld [vmem:[#allocation17 + $0x3e8] sm:$0xff] }
 0x8b6   : > { %6814 = vmatprep.subr.bf16.mxu0 %v10275_v52  ;;  %v10394_v60 = vpack.c.bf16 %v5003_v17, %v5001_v50 }
 0x8b8   : > { %6905 = vmatpush1.bf16.msra.mxu1 %v10356_v30  ;;  %11287 = vst [vmem:[#allocation85_spill] sm:$0xff] %v10394_v60 }
 0x8b9   : > { %6890 = vmatprep.subr.bf16.mxu1 %v10360_v2 }
 0x8bc   : > { %6906 = vmatpush1.bf16.msra.mxu1 %v10362_v28 }
 0x8bd   : > { %6891 = vmatprep.subr.bf16.mxu1 %v10376_v12 }
 0x8c0   : > { %6907 = vmatpush1.bf16.msra.mxu1 %v10381_v21 }
 0x8c1   : > { %6892 = vmatprep.subr.bf16.mxu1 %v10394_v60 }
 0x8c4   : > { %6908 = vmatpush1.bf16.msra.mxu1 %v10399_v63 }
 0x8e4   : > { %v10365_v52 = vpop.f32.mrb[80].mxu0  ;;  %v10367_v15 = vpop.f32.mrb[112].mxu1 }
 0x8e5   : > { %v5590_v51 = vmul.f32 -1.442695, %v10365_v52  ;;  %v5592_v41 = vmul.f32 -1.442695, %v10367_v15  ;;  %v10371_v34 = vpop.f32.mrb[81].mxu0  ;;  %v10373_v61 = vpop.f32.mrb[113].mxu1 }
 0x8e6   : > { %v5591_v58 = vmul.f32 -1.442695, %v10371_v34  ;;  %v5593_v11 = vmul.f32 -1.442695, %v10373_v61 }
 0x8e7   : > { %7279 = vpow2.f32 %v5590_v51 }
 0x8e8   : > { %7281 = vpow2.f32 %v5592_v41  ;;  %v10383_v1 = vpop.f32.mrb[82].mxu0  ;;  %v10385_v26 = vpop.f32.mrb[114].mxu1 }
 0x8e9   : > { %7283 = vpow2.f32 %v5591_v58  ;;  %v5594_v19 = vmul.f32 -1.442695, %v10383_v1  ;;  %v5596_v22 = vmul.f32 -1.442695, %v10385_v26  ;;  %v10389_v20 = vpop.f32.mrb[83].mxu0  ;;  %v10391_v39 = vpop.f32.mrb[115].mxu1 }
 0x8ea   : > { %7285 = vpow2.f32 %v5593_v11  ;;  %v5595_v3 = vmul.f32 -1.442695, %v10389_v20  ;;  %v5597_v57 = vmul.f32 -1.442695, %v10391_v39 }
 0x8eb   : > { %7287 = vpow2.f32 %v5594_v19 }
 0x8ec   : > { %7289 = vpow2.f32 %v5596_v22  ;;  %v10401_v25 = vpop.f32.mrb[84].mxu0  ;;  %v10403_v51 = vpop.f32.mrb[116].mxu1 }
 0x8ed   : > { %7291 = vpow2.f32 %v5595_v3  ;;  %v5598_v41 = vmul.f32 -1.442695, %v10401_v25  ;;  %v5600_v58 = vmul.f32 -1.442695, %v10403_v51  ;;  %v10407_v11 = vpop.f32.mrb[85].mxu0  ;;  %v10409_v18 = vpop.f32.mrb[117].mxu1 }
 0x8ee   : > { %7293 = vpow2.f32 %v5597_v57  ;;  %v5599_v45 = vmul.f32 -1.442695, %v10407_v11  ;;  %v5601_v50 = vmul.f32 -1.442695, %v10409_v18 }
 0x8ef   : > { %7295 = vpow2.f32 %v5598_v41 }
 0x8f0   : > { %7297 = vpow2.f32 %v5600_v58  ;;  %v10414_v17 = vpop.f32.mrb[86].mxu0  ;;  %v10416_v19 = vpop.f32.mrb[118].mxu1 }
 0x8f1   : > { %v7280_v22 = vpop.eup %7279  ;;  %7299 = vpow2.f32 %v5599_v45  ;;  %v5602_v3 = vmul.f32 -1.442695, %v10414_v17  ;;  %v10419_v33 = vpop.f32.mrb[87].mxu0 }
 0x8f2   : > { %v10421_v32 = vpop.f32.mrb[119].mxu1  ;;  %v7282_v54 = vpop.eup %7281  ;;  %v4556_v57 = vadd.f32 1.0, %v7280_v22  ;;  %7301 = vpow2.f32 %v5601_v50 }
 0x8f3   : > { %v7284_v40 = vpop.eup %7283  ;;  %v4558_v13 = vadd.f32 1.0, %v7282_v54  ;;  %7303 = vpow2.f32 %v5602_v3 }
 0x8f4   : > { %v7286_v41 = vpop.eup %7285  ;;  %7305 = vrcp.f32 %v4556_v57  ;;  %v4557_v58 = vadd.f32 1.0, %v7284_v40  ;;  %v10423_v7 = vpop.f32.mrb[88].mxu0 }
 0x8f5   : > { %11289 = vst [vmem:[#allocation87_spill] sm:$0xff] %v10423_v7  ;;  %v10425_v24 = vpop.f32.mrb[120].mxu1  ;;  %v7288_v45 = vpop.eup %7287  ;;  %7307 = vrcp.f32 %v4558_v13  ;;  %v4559_v36 = vadd.f32 1.0, %v7286_v41 }
 0x8f6   : > { %11290 = vst [vmem:[#allocation88_spill] sm:$0xff] %v10425_v24  ;;  %v10427_v47 = vpop.f32.mrb[89].mxu0  ;;  %v7290_v0 = vpop.eup %7289  ;;  %7309 = vrcp.f32 %v4557_v58  ;;  %v4560_v23 = vadd.f32 1.0, %v7288_v45 }
 0x8f7   : > { %11291 = vst [vmem:[#allocation89_spill] sm:$0xff] %v10427_v47  ;;  %v10429_v22 = vpop.f32.mrb[121].mxu1  ;;  %v7292_v50 = vpop.eup %7291  ;;  %7311 = vrcp.f32 %v4559_v36  ;;  %v4562_v54 = vadd.f32 1.0, %v7290_v0 }
 0x8f8   : > { %11292 = vst [vmem:[#allocation90_spill] sm:$0xff] %v10429_v22  ;;  %v7294_v3 = vpop.eup %7293  ;;  %7313 = vrcp.f32 %v4560_v23  ;;  %v4561_v40 = vadd.f32 1.0, %v7292_v50  ;;  %v10431_v57 = vpop.f32.mrb[90].mxu0  ;;  %v5609_v29 = vmul.f32 -1.442695, %v10429_v22 }
 0x8f9   : > { %11293 = vst [vmem:[#allocation91_spill] sm:$0xff] %v10431_v57  ;;  %v10433_v62 = vpop.f32.mrb[122].mxu1  ;;  %v7296_v63 = vpop.eup %7295  ;;  %7315 = vrcp.f32 %v4562_v54  ;;  %v4563_v13 = vadd.f32 1.0, %v7294_v3  ;;  %v5604_v3 = vmul.f32 -1.442695, %v10416_v19 }
 0x8fa   : > { %11294 = vst [vmem:[#allocation92_spill] sm:$0xff] %v10433_v62  ;;  %v10435_v41 = vpop.f32.mrb[91].mxu0  ;;  %v7298_v60 = vpop.eup %7297  ;;  %7317 = vrcp.f32 %v4561_v40  ;;  %v4564_v58 = vadd.f32 1.0, %v7296_v63 }
 0x8fb   : > { %11295 = vst [vmem:[#allocation93_spill] sm:$0xff] %v10435_v41  ;;  %v10437_v45 = vpop.f32.mrb[123].mxu1  ;;  %v7300_v21 = vpop.eup %7299  ;;  %7319 = vrcp.f32 %v4563_v13  ;;  %v4566_v0 = vadd.f32 1.0, %v7298_v60  ;;  %v5603_v60 = vmul.f32 -1.442695, %v10419_v33 }
 0x8fc   : > { %11296 = vst [vmem:[#allocation94_spill] sm:$0xff] %v10437_v45  ;;  %v7302_v36 = vpop.eup %7301  ;;  %7321 = vrcp.f32 %v4564_v58  ;;  %v4565_v23 = vadd.f32 1.0, %v7300_v21  ;;  %v10439_v50 = vpop.f32.mrb[92].mxu0  ;;  %v5605_v58 = vmul.f32 -1.442695, %v10421_v32 }
 0x8fd   : > { %11297 = vst [vmem:[#allocation95_spill] sm:$0xff] %v10439_v50  ;;  %v10441_v12 = vpop.f32.mrb[124].mxu1  ;;  %v7304_v28 = vpop.eup %7303  ;;  %7323 = vrcp.f32 %v4566_v0  ;;  %v4567_v54 = vadd.f32 1.0, %v7302_v36  ;;  %v5606_v0 = vmul.f32 -1.442695, %v10423_v7 }
 0x8fe   : > { %11298 = vst [vmem:[#allocation96_spill] sm:$0xff] %v10441_v12  ;;  %v10444_v2 = vpop.f32.mrb[93].mxu0  ;;  %v10446_v63 = vpop.eup %7305  ;;  %7325 = vrcp.f32 %v4565_v23  ;;  %v4568_v40 = vadd.f32 1.0, %v7304_v28  ;;  %v5608_v28 = vmul.f32 -1.442695, %v10425_v24 }
 0x8ff   : > { %v10449_v13 = vpop.f32.mrb[125].mxu1  ;;  %v10451_v21 = vpop.eup %7307  ;;  %7327 = vrcp.f32 %v4567_v54  ;;  %v5613_v59 = vmul.f32 -1.442695, %v10437_v45 }
 0x900   : > { %11299 = vst [vmem:[#allocation97_spill] sm:$0xff] %v10449_v13  ;;  %v10454_v30 = vpop.eup %7309  ;;  %7329 = vrcp.f32 %v4568_v40  ;;  %v10457_v36 = vpop.f32.mrb[94].mxu0  ;;  %v5607_v40 = vmul.f32 -1.442695, %v10427_v47 }
 0x901   : > { %11300 = vst [vmem:[#allocation98_spill] sm:$0xff] %v10457_v36  ;;  %v10459_v43 = vpop.f32.mrb[126].mxu1  ;;  %v10461_v23 = vpop.eup %7311  ;;  %7331 = vpow2.f32 %v5604_v3  ;;  %v5610_v3 = vmul.f32 -1.442695, %v10431_v57 }
 0x902   : > { %11301 = vst [vmem:[#allocation99_spill] sm:$0xff] %v10459_v43  ;;  %v10464_v14 = vpop.f32.mrb[95].mxu0  ;;  %v10466_v6 = vpop.f32.mrb[127].mxu1  ;;  %7333 = vpow2.f32 %v5603_v60  ;;  %v5612_v60 = vmul.f32 -1.442695, %v10433_v62 }
 0x903   : > { %11302 = vst [vmem:[#allocation100_spill] sm:$0xff] %v10464_v14  ;;  %11303 = vst [vmem:[#allocation101_spill] sm:$0xff] %v10466_v6  ;;  %v10468_v54 = vpop.eup %7313  ;;  %7335 = vpow2.f32 %v5605_v58 }
 0x904   : > { %v10471_v9 = vpop.eup %7315  ;;  %7337 = vpow2.f32 %v5606_v0  ;;  %v10477_v37 = vpop.f32.mrb[96].mxu0  ;;  %v5611_v0 = vmul.f32 -1.442695, %v10435_v41 }
 0x905   : > { %v10474_v10 = vpop.eup %7317  ;;  %11304 = vst [vmem:[#allocation102_spill] sm:$0xff] %v10477_v37  ;;  %v10479_v35 = vpop.f32.mrb[128].mxu1  ;;  %7339 = vpow2.f32 %v5608_v28  ;;  %v5614_v28 = vmul.f32 -1.442695, %v10439_v50 }
 0x906   : > { %11305 = vst [vmem:[#allocation103_spill] sm:$0xff] %v10479_v35  ;;  %v10481_v8 = vpop.eup %7319  ;;  %v10484_v56 = vpop.f32.mrb[97].mxu0  ;;  %7341 = vpow2.f32 %v5607_v40  ;;  %v5616_v40 = vmul.f32 -1.442695, %v10441_v12 }
 0x907   : > { %11306 = vst [vmem:[#allocation104_spill] sm:$0xff] %v10484_v56  ;;  %v10486_v44 = vpop.f32.mrb[129].mxu1  ;;  %v10488_v58 = vpop.eup %7321  ;;  %7343 = vpow2.f32 %v5609_v29 }
 0x908   : > { %11307 = vst [vmem:[#allocation105_spill] sm:$0xff] %v10486_v44  ;;  %v10491_v4 = vpop.eup %7323  ;;  %7345 = vpow2.f32 %v5610_v3  ;;  %v10497_v27 = vpop.f32.mrb[98].mxu0 }
 0x909   : > { %v10494_v49 = vpop.eup %7325  ;;  %11308 = vst [vmem:[#allocation106_spill] sm:$0xff] %v10497_v27  ;;  %v10499_v46 = vpop.f32.mrb[130].mxu1  ;;  %7347 = vpow2.f32 %v5612_v60 }
 0x90a   : > { %11309 = vst [vmem:[#allocation107_spill] sm:$0xff] %v10499_v46  ;;  %v10501_v62 = vpop.eup %7327  ;;  %v10504_v41 = vpop.f32.mrb[99].mxu0  ;;  %7349 = vpow2.f32 %v5611_v0 }
 0x90b   : > { %11310 = vst [vmem:[#allocation108_spill] sm:$0xff] %v10504_v41  ;;  %v10506_v42 = vpop.f32.mrb[131].mxu1  ;;  %v10508_v29 = vpop.eup %7329  ;;  %7351 = vpow2.f32 %v5613_v59 }
 0x90c   : > { %v7332_v45 = vpop.eup %7331  ;;  %7353 = vpow2.f32 %v5614_v28  ;;  %v10510_v57 = vpop.f32.mrb[100].mxu0 }
 0x90d   : > { %v7334_v3 = vpop.eup %7333  ;;  %v4570_v50 = vadd.f32 1.0, %v7332_v45  ;;  %v10512_v5 = vpop.f32.mrb[132].mxu1  ;;  %7355 = vpow2.f32 %v5616_v40 }
 0x90e   : > { %11311 = vst [vmem:[#allocation109_spill] sm:$0xff] %v10512_v5  ;;  %v7336_v22 = vpop.eup %7335  ;;  %v4569_v60 = vadd.f32 1.0, %v7334_v3  ;;  %v10514_v12 = vpop.f32.mrb[101].mxu0 }
 0x90f   : > { %11312 = vst [vmem:[#allocation110_spill] sm:$0xff] %v10514_v12  ;;  %v7338_v47 = vpop.eup %7337  ;;  %7357 = vrcp.f32 %v4570_v50  ;;  %v4571_v24 = vadd.f32 1.0, %v7336_v22  ;;  %v10516_v38 = vpop.f32.mrb[133].mxu1 }
 0x910   : > { %11313 = vst [vmem:[#allocation111_spill] sm:$0xff] %v10516_v38  ;;  %v7340_v0 = vpop.eup %7339  ;;  %7359 = vrcp.f32 %v4569_v60  ;;  %v4572_v59 = vadd.f32 1.0, %v7338_v47  ;;  %v10518_v28 = vpop.f32.mrb[102].mxu0 }
 0x911   : > { %v7342_v7 = vpop.eup %7341  ;;  %7361 = vrcp.f32 %v4571_v24  ;;  %v4574_v45 = vadd.f32 1.0, %v7340_v0  ;;  %11314 = vst [vmem:[#allocation112_spill] sm:$0xff] %v10518_v28  ;;  %v10520_v48 = vpop.f32.mrb[134].mxu1 }
 0x912   : > { %11315 = vst [vmem:[#allocation113_spill] sm:$0xff] %v10520_v48  ;;  %v7344_v5 = vpop.eup %7343  ;;  %7363 = vrcp.f32 %v4572_v59  ;;  %v4573_v40 = vadd.f32 1.0, %v7342_v7  ;;  %v10522_v3 = vpop.f32.mrb[103].mxu0 }
 0x913   : > { %11316 = vst [vmem:[#allocation114_spill] sm:$0xff] %v10522_v3  ;;  %v7346_v12 = vpop.eup %7345  ;;  %7365 = vrcp.f32 %v4574_v45  ;;  %v4575_v22 = vadd.f32 1.0, %v7344_v5  ;;  %v10524_v50 = vpop.f32.mrb[135].mxu1 }
 0x914   : > { %11317 = vst [vmem:[#allocation115_spill] sm:$0xff] %v10524_v50  ;;  %v7348_v38 = vpop.eup %7347  ;;  %7367 = vrcp.f32 %v4573_v40  ;;  %v4576_v47 = vadd.f32 1.0, %v7346_v12  ;;  %v10526_v0 = vpop.f32.mrb[104].mxu0  ;;  %v5615_v40 = vmul.f32 -1.442695, %v10444_v2 }
 0x915   : > { %v7350_v60 = vpop.eup %7349  ;;  %7369 = vrcp.f32 %v4575_v22  ;;  %v4578_v24 = vadd.f32 1.0, %v7348_v38  ;;  %v10528_v28 = vpop.f32.mrb[136].mxu1 }
 0x916   : > { %11318 = vst [vmem:[#allocation116_spill] sm:$0xff] %v10528_v28  ;;  %v7352_v48 = vpop.eup %7351  ;;  %7371 = vrcp.f32 %v4576_v47  ;;  %v4577_v7 = vadd.f32 1.0, %v7350_v60  ;;  %v10530_v59 = vpop.f32.mrb[105].mxu0  ;;  %v5617_v28 = vmul.f32 -1.442695, %v10449_v13 }
 0x917   : > { %11319 = vst [vmem:[#allocation117_spill] sm:$0xff] %v10530_v59  ;;  %v7354_v3 = vpop.eup %7353  ;;  %7373 = vrcp.f32 %v4578_v24  ;;  %v4579_v5 = vadd.f32 1.0, %v7352_v48  ;;  %v10532_v45 = vpop.f32.mrb[137].mxu1  ;;  %v5618_v48 = vmul.f32 -1.442695, %v10457_v36 }
 0x918   : > { %11320 = vst [vmem:[#allocation118_spill] sm:$0xff] %v10532_v45  ;;  %v7356_v50 = vpop.eup %7355  ;;  %7375 = vrcp.f32 %v4577_v7  ;;  %v4580_v12 = vadd.f32 1.0, %v7354_v3  ;;  %v10538_v47 = vpop.f32.mrb[106].mxu0 }
 0x919   : > { %v10535_v38 = vpop.eup %7357  ;;  %7377 = vrcp.f32 %v4579_v5  ;;  %v4582_v22 = vadd.f32 1.0, %v7356_v50  ;;  %11321 = vst [vmem:[#allocation119_spill] sm:$0xff] %v10538_v47  ;;  %v10540_v60 = vpop.f32.mrb[138].mxu1  ;;  %v5620_v50 = vmul.f32 -1.442695, %v10459_v43 }
 0x91a   : > { %11322 = vst [vmem:[#allocation120_spill] sm:$0xff] %v10540_v60  ;;  %v10542_v59 = vpop.eup %7359  ;;  %7379 = vrcp.f32 %v4580_v12  ;;  %v10545_v24 = vpop.f32.mrb[107].mxu0  ;;  %v5619_v47 = vmul.f32 -1.442695, %v10464_v14  ;;  %v5621_v12 = vmul.f32 -1.442695, %v10466_v6 }
 0x91b   : > { %11323 = vst [vmem:[#allocation121_spill] sm:$0xff] %v10545_v24  ;;  %v10547_v3 = vpop.f32.mrb[139].mxu1  ;;  %v10549_v7 = vpop.eup %7361  ;;  %7381 = vrcp.f32 %v4582_v22  ;;  %v5622_v22 = vmul.f32 -1.442695, %v10477_v37 }
 0x91c   : > { %11324 = vst [vmem:[#allocation122_spill] sm:$0xff] %v10547_v3  ;;  %v10552_v5 = vpop.eup %7363  ;;  %7383 = vpow2.f32 %v5615_v40  ;;  %v10558_v36 = vpop.f32.mrb[108].mxu0 }
 0x91d   : > { %v10555_v60 = vpop.eup %7365  ;;  %7385 = vpow2.f32 %v5617_v28  ;;  %11325 = vst [vmem:[#allocation123_spill] sm:$0xff] %v10558_v36  ;;  %v10560_v24 = vpop.f32.mrb[140].mxu1  ;;  %v5624_v28 = vmul.f32 -1.442695, %v10479_v35  ;;  %v5623_v36 = vmul.f32 -1.442695, %v10484_v56 }
 0x91e   : > { %11326 = vst [vmem:[#allocation124_spill] sm:$0xff] %v10560_v24  ;;  %v10562_v3 = vpop.eup %7367  ;;  %7387 = vpow2.f32 %v5618_v48  ;;  %v10565_v43 = vpop.f32.mrb[109].mxu0  ;;  %v5625_v48 = vmul.f32 -1.442695, %v10486_v44 }
 0x91f   : > { %11327 = vst [vmem:[#allocation125_spill] sm:$0xff] %v10565_v43  ;;  %v10567_v45 = vpop.f32.mrb[141].mxu1  ;;  %v10569_v40 = vpop.eup %7369  ;;  %7389 = vpow2.f32 %v5620_v50  ;;  %v5626_v50 = vmul.f32 -1.442695, %v10497_v27 }
 0x920   : > { %11328 = vst [vmem:[#allocation126_spill] sm:$0xff] %v10567_v45  ;;  %v10572_v14 = vpop.eup %7371  ;;  %7391 = vpow2.f32 %v5619_v47  ;;  %v10578_v37 = vpop.f32.mrb[110].mxu0 }
 0x921   : > { %v10575_v24 = vpop.eup %7373  ;;  %7393 = vpow2.f32 %v5621_v12  ;;  %11329 = vst [vmem:[#allocation127_spill] sm:$0xff] %v10578_v37  ;;  %v10580_v43 = vpop.f32.mrb[142].mxu1  ;;  %v5628_v12 = vmul.f32 -1.442695, %v10499_v46  ;;  %v4748_v37 = vmul.f32 %v10446_v63, %v10365_v52  ;;  %v4752_v52 = vmul.f32 %v10468_v54, %v10383_v1 }
 0x922   : > { %11330 = vst [vmem:[#allocation128_spill] sm:$0xff] %v10580_v43  ;;  %v10582_v45 = vpop.eup %7375  ;;  %7395 = vpow2.f32 %v5622_v22  ;;  %v10585_v35 = vpop.f32.mrb[111].mxu0  ;;  %v5627_v43 = vmul.f32 -1.442695, %v10504_v41  ;;  %v4754_v63 = vmul.f32 %v10471_v9, %v10385_v26 }
 0x923   : > { %11331 = vst [vmem:[#allocation129_spill] sm:$0xff] %v10585_v35  ;;  %v10587_v6 = vpop.f32.mrb[143].mxu1  ;;  %v10589_v47 = vpop.eup %7377  ;;  %7397 = vpow2.f32 %v5624_v28  ;;  %v4750_v35 = vmul.f32 %v10451_v21, %v10367_v15  ;;  %v4751_v28 = vmul.f32 %v10461_v23, %v10373_v61 }
 0x924   : > { %11332 = vst [vmem:[#allocation130_spill] sm:$0xff] %v10587_v6  ;;  %v10592_v56 = vpop.eup %7379  ;;  %7399 = vpow2.f32 %v5623_v36  ;;  %v4749_v6 = vmul.f32 %v10454_v30, %v10371_v34  ;;  %v4108_v46 = vpop.f32.mrb[112].mxu0 }
 0x925   : > { %v10597_v22 = vpop.eup %7381  ;;  %7401 = vpow2.f32 %v5625_v48  ;;  %v4812_v36 = vmul.f32 %v4748_v37, %v4108_v46  ;;  %v4269_v41 = vpop.f32.mrb[144].mxu1  ;;  %v4753_v48 = vmul.f32 %v10474_v10, %v10389_v20  ;;  %v4755_v46 = vmul.f32 %v10481_v8, %v10391_v39 }
 0x926   : > { %v7384_v27 = vpop.eup %7383  ;;  %7403 = vpow2.f32 %v5626_v50  ;;  %v4110_v44 = vpop.f32.mrb[113].mxu0  ;;  %v10609_v30 = vmul.f32 %v4750_v35, %v4269_v41  ;;  %v4757_v50 = vmul.f32 %v10494_v49, %v10407_v11  ;;  %v4760_v49 = vmul.f32 %v10508_v29, %v10414_v17 }
 0x927   : > { %v7386_v15 = vpop.eup %7385  ;;  %v4581_v21 = vadd.f32 1.0, %v7384_v27  ;;  %7405 = vpow2.f32 %v5628_v12  ;;  %v4813_v34 = vmul.f32 %v4749_v6, %v4110_v44  ;;  %v4271_v61 = vpop.f32.mrb[145].mxu1  ;;  %v4756_v27 = vmul.f32 %v10488_v58, %v10401_v25 }
 0x928   : > { %v7388_v23 = vpop.eup %7387  ;;  %v4583_v13 = vadd.f32 1.0, %v7386_v15  ;;  %7407 = vpow2.f32 %v5627_v43  ;;  %v10613_v1 = vmul.f32 %v4751_v28, %v4271_v61  ;;  %v4114_v37 = vpop.f32.mrb[114].mxu0  ;;  %v4758_v6 = vmul.f32 %v10491_v4, %v10403_v51 }
 0x929   : > { %v7390_v9 = vpop.eup %7389  ;;  %7409 = vrcp.f32 %v4581_v21  ;;  %v4584_v35 = vadd.f32 1.0, %v7388_v23  ;;  %5068 = vmatprep.mubr.f32.mxu0 %v4813_v34  ;;  %v4816_v43 = vmul.f32 %v4752_v52, %v4114_v37  ;;  %v4275_v26 = vpop.f32.mrb[146].mxu1  ;;  %v4759_v12 = vmul.f32 %v10501_v62, %v10409_v18 }
 0x92a   : > { %v7392_v44 = vpop.eup %7391  ;;  %7411 = vrcp.f32 %v4583_v13  ;;  %v4586_v10 = vadd.f32 1.0, %v7390_v9  ;;  %v4116_v20 = vpop.f32.mrb[115].mxu0  ;;  %5069 = vmatmul.mubr.f32.vlgmr.msra.gmra.mrb[144].mxu0 %v4812_v36  ;;  %v10621_v39 = vmul.f32 %v4754_v63, %v4275_v26  ;;  %v5629_v52 = vmul.f32 -1.442695, %v10506_v42 }
 0x92b   : > { %v7394_v41 = vpop.eup %7393  ;;  %7413 = vrcp.f32 %v4584_v35  ;;  %v4585_v8 = vadd.f32 1.0, %v7392_v44  ;;  %v4817_v25 = vmul.f32 %v4753_v48, %v4116_v20  ;;  %v4277_v54 = vpop.f32.mrb[147].mxu1  ;;  %6816 = vmatpush1.bf16.msra.mxu0 %v10277_v55  ;;  %v5630_v17 = vmul.f32 -1.442695, %v10510_v57  ;;  %v11333_v20 = vld [vmem:[#allocation42_spill] sm:$0xff] }
 0x92c   : > { %v7396_v58 = vpop.eup %7395  ;;  %7415 = vrcp.f32 %v4586_v10  ;;  %v4587_v4 = vadd.f32 1.0, %v7394_v41  ;;  %v10626_v51 = vmul.f32 %v4755_v46, %v4277_v54  ;;  %6818 = vmatprep.subr.bf16.mxu0 %v10287_v53  ;;  %v4120_v63 = vpop.f32.mrb[116].mxu0  ;;  %v4762_v46 = vmul.f32 %v10535_v38, %v10416_v19 }
 0x92d   : > { %v7398_v13 = vpop.eup %7397  ;;  %7417 = vrcp.f32 %v4585_v8  ;;  %v4588_v28 = vadd.f32 1.0, %v7396_v58  ;;  %5074 = vmatprep.mubr.f32.mxu0 %v4817_v25  ;;  %v4820_v36 = vmul.f32 %v4756_v27, %v4120_v63  ;;  %v4281_v15 = vpop.f32.mrb[148].mxu1  ;;  %v4761_v27 = vmul.f32 %v10542_v59, %v10419_v33  ;;  %v11334_v8 = vld [vmem:[#allocation87_spill] sm:$0xff]  ;;  %v11339_v63 = vld [vmem:[#allocation110_spill] sm:$0xff] }
 0x92e   : > { %v7400_v55 = vpop.eup %7399  ;;  %7419 = vrcp.f32 %v4587_v4  ;;  %v4590_v11 = vadd.f32 1.0, %v7398_v13  ;;  %v4122_v21 = vpop.f32.mrb[117].mxu0  ;;  %5075 = vmatmul.mubr.f32.gmra.mrb[146].mxu0 %v4816_v43  ;;  %v10634_v62 = vmul.f32 %v4758_v6, %v4281_v15  ;;  %v4763_v44 = vmul.f32 %v10549_v7, %v10421_v32  ;;  %v11335_v7 = vld [vmem:[#allocation109_spill] sm:$0xff]  ;;  %v11336_v58 = vld [vmem:[#allocation43_spill] sm:$0xff]  ;;  %v11337_v4 = vld [vmem:[#allocation88_spill] sm:$0xff] }
 0x92f   : > { %v7402_v53 = vpop.eup %7401  ;;  %7421 = vrcp.f32 %v4588_v28  ;;  %v4589_v34 = vadd.f32 1.0, %v7400_v55  ;;  %v4821_v18 = vmul.f32 %v4757_v50, %v4122_v21  ;;  %v4283_v61 = vpop.f32.mrb[149].mxu1  ;;  %6820 = vmatpush1.bf16.msra.mxu0 %v10289_v16  ;;  %v4764_v32 = vmul.f32 %v10552_v5, %v11334_v8  ;;  %v11341_v15 = vld [vmem:[#allocation111_spill] sm:$0xff] }
 0x930   : > { %v7404_v23 = vpop.eup %7403  ;;  %7423 = vrcp.f32 %v4590_v11  ;;  %v4591_v48 = vadd.f32 1.0, %v7402_v53  ;;  %v10638_v29 = vmul.f32 %v4759_v12, %v4283_v61  ;;  %6822 = vmatprep.subr.bf16.mxu0 %v10293_v31  ;;  %v4126_v37 = vpop.f32.mrb[118].mxu0  ;;  %v5632_v25 = vmul.f32 -1.442695, %v11335_v7  ;;  %v11338_v12 = vld [vmem:[#allocation89_spill] sm:$0xff]  ;;  %v11340_v11 = vld [vmem:[#allocation90_spill] sm:$0xff] }
 0x931   : > { %v7406_v9 = vpop.eup %7405  ;;  %7425 = vrcp.f32 %v4589_v34  ;;  %v4592_v35 = vadd.f32 1.0, %v7404_v23  ;;  %5080 = vmatprep.mubr.f32.mxu0 %v4821_v18  ;;  %v4824_v10 = vmul.f32 %v4760_v49, %v4126_v37  ;;  %v4287_v43 = vpop.f32.mrb[150].mxu1  ;;  %v4766_v13 = vmul.f32 %v10555_v60, %v11337_v4 }
 0x932   : > { %v7408_v16 = vpop.eup %7407  ;;  %7427 = vrcp.f32 %v4591_v48  ;;  %v4594_v6 = vadd.f32 1.0, %v7406_v9  ;;  %v4128_v31 = vpop.f32.mrb[119].mxu0  ;;  %5081 = vmatmul.mubr.f32.gmra.mrb[148].mxu0 %v4820_v36  ;;  %v10649_v38 = vmul.f32 %v4762_v46, %v4287_v43  ;;  %v4765_v28 = vmul.f32 %v10562_v3, %v11338_v12  ;;  %v11342_v3 = vld [vmem:[#allocation112_spill] sm:$0xff]  ;;  %v11343_v46 = vld [vmem:[#allocation45_spill] sm:$0xff] }
 0x933   : > { %v10647_v26 = vpop.eup %7409  ;;  %7429 = vrcp.f32 %v4592_v35  ;;  %v4593_v19 = vadd.f32 1.0, %v7408_v16  ;;  %v4825_v33 = vmul.f32 %v4761_v27, %v4128_v31  ;;  %v4289_v59 = vpop.f32.mrb[151].mxu1  ;;  %6824 = vmatpush1.bf16.msra.mxu0 %v11333_v20  ;;  %v5631_v55 = vmul.f32 -1.442695, %v11339_v63  ;;  %v11345_v35 = vld [vmem:[#allocation113_spill] sm:$0xff]  ;;  %v11350_v20 = vld [vmem:[#allocation94_spill] sm:$0xff] }
 0x934   : > { %v10652_v41 = vpop.eup %7411  ;;  %7431 = vrcp.f32 %v4594_v6  ;;  %v10657_v54 = vmul.f32 %v4763_v44, %v4289_v59  ;;  %6826 = vmatprep.subr.bf16.mxu0 %v11336_v58  ;;  %v4132_v49 = vpop.f32.mrb[120].mxu0  ;;  %v4767_v36 = vmul.f32 %v10569_v40, %v11340_v11  ;;  %v5633_v21 = vmul.f32 -1.442695, %v11341_v15  ;;  %v11344_v40 = vld [vmem:[#allocation91_spill] sm:$0xff]  ;;  %v11346_v44 = vld [vmem:[#allocation48_spill] sm:$0xff]  ;;  %v11348_v43 = vld [vmem:[#allocation93_spill] sm:$0xff] }
 0x935   : > { %v10660_v50 = vpop.eup %7413  ;;  %7433 = vrcp.f32 %v4593_v19  ;;  %5086 = vmatprep.mubr.f32.mxu0 %v4825_v33  ;;  %v4828_v53 = vmul.f32 %v4764_v32, %v4132_v49  ;;  %v4293_v34 = vpop.f32.mrb[152].mxu1  ;;  %v5634_v61 = vmul.f32 -1.442695, %v11342_v3  ;;  %v5636_v37 = vmul.f32 -1.442695, %v11345_v35  ;;  %v11349_v19 = vld [vmem:[#allocation114_spill] sm:$0xff] }
 0x936   : > { %v10667_v5 = vpop.eup %7415  ;;  %7435 = vpow2.f32 %v5629_v52  ;;  %v4134_v18 = vpop.f32.mrb[121].mxu0  ;;  %5087 = vmatmul.mubr.f32.gmra.mrb[150].mxu0 %v4824_v10  ;;  %v4830_v23 = vmul.f32 %v4766_v13, %v4293_v34  ;;  %v4768_v52 = vmul.f32 %v10572_v14, %v11344_v40  ;;  %v4769_v31 = vmul.f32 %v10582_v45, %v11348_v43  ;;  %v11351_v32 = vld [vmem:[#allocation115_spill] sm:$0xff] }
 0x937   : > { %v10672_v60 = vpop.eup %7417  ;;  %7437 = vpow2.f32 %v5630_v17  ;;  %v4829_v48 = vmul.f32 %v4765_v28, %v4134_v18  ;;  %v4295_v9 = vpop.f32.mrb[153].mxu1  ;;  %6828 = vmatpush1.bf16.msra.mxu0 %v11343_v46  ;;  %v11347_v17 = vld [vmem:[#allocation92_spill] sm:$0xff]  ;;  %v5635_v33 = vmul.f32 -1.442695, %v11349_v19  ;;  %v4771_v8 = vmul.f32 %v10589_v47, %v11350_v20  ;;  %v11352_v49 = vld [vmem:[#allocation51_spill] sm:$0xff]  ;;  %v11355_v18 = vld [vmem:[#allocation53_spill] sm:$0xff] }
 0x938   : > { %v10676_v27 = vpop.eup %7419  ;;  %7439 = vpow2.f32 %v5632_v25  ;;  %v4831_v16 = vmul.f32 %v4767_v36, %v4295_v9  ;;  %6830 = vmatprep.subr.bf16.mxu0 %v11346_v44  ;;  %v4770_v10 = vmul.f32 %v10575_v24, %v11347_v17  ;;  %v4138_v59 = vpop.f32.mrb[122].mxu0  ;;  %v5637_v25 = vmul.f32 -1.442695, %v11351_v32  ;;  %v11353_v11 = vld [vmem:[#allocation95_spill] sm:$0xff]  ;;  %v11357_v46 = vld [vmem:[#allocation117_spill] sm:$0xff]  ;;  %v11359_v44 = vld [vmem:[#allocation118_spill] sm:$0xff] }
 0x939   : > { %v10682_v6 = vpop.eup %7421  ;;  %7441 = vpow2.f32 %v5631_v55  ;;  %5092 = vmatprep.mubr.f32.mxu0 %v4829_v48  ;;  %v4832_v58 = vmul.f32 %v4768_v52, %v4138_v59  ;;  %v4299_v4 = vpop.f32.mrb[154].mxu1  ;;  %v5638_v45 = vmul.f32 -1.442695, %v10526_v0  ;;  %v4772_v36 = vmul.f32 %v10592_v56, %v11353_v11  ;;  %v11356_v48 = vld [vmem:[#allocation96_spill] sm:$0xff]  ;;  %v11360_v59 = vld [vmem:[#allocation55_spill] sm:$0xff] }
 0x93a   : > { %v10689_v14 = vpop.eup %7423  ;;  %7443 = vpow2.f32 %v5633_v21  ;;  %5253 = vmatprep.mubr.f32.mxu1 %v4831_v16  ;;  %v4140_v24 = vpop.f32.mrb[123].mxu0  ;;  %5093 = vmatmul.mubr.f32.gmra.mrb[152].mxu0 %v4828_v53  ;;  %v4834_v12 = vmul.f32 %v4770_v10, %v4299_v4  ;;  %v11354_v21 = vld [vmem:[#allocation116_spill] sm:$0xff]  ;;  %v4774_v9 = vmul.f32 %v10597_v22, %v11356_v48  ;;  %v5639_v40 = vmul.f32 -1.442695, %v11357_v46  ;;  %v11362_v4 = vld [vmem:[#allocation58_spill] sm:$0xff] }
 0x93b   : > { %v10694_v13 = vpop.eup %7425  ;;  %7445 = vpow2.f32 %v5634_v61  ;;  %v4833_v28 = vmul.f32 %v4769_v31, %v4140_v24  ;;  %v4301_v55 = vpop.f32.mrb[155].mxu1  ;;  %5254 = vmatmul.mubr.f32.vlgmr.msra.gmra.mrb[176].mxu1 %v4830_v23  ;;  %6832 = vmatpush1.bf16.msra.mxu0 %v11352_v49  ;;  %v5640_v34 = vmul.f32 -1.442695, %v11354_v21  ;;  %v4773_v23 = vmul.f32 %v10647_v26, %v10444_v2 }
 0x93c   : > { %v10698_v47 = vpop.eup %7427  ;;  %7447 = vpow2.f32 %v5636_v37  ;;  %v4835_v53 = vmul.f32 %v4771_v8, %v4301_v55  ;;  %6834 = vmatprep.subr.bf16.mxu0 %v11355_v18  ;;  %v4144_v52 = vpop.f32.mrb[124].mxu0  ;;  %v11358_v37 = vld [vmem:[#allocation97_spill] sm:$0xff]  ;;  %v5641_v17 = vmul.f32 -1.442695, %v11359_v44  ;;  %v11361_v8 = vld [vmem:[#allocation98_spill] sm:$0xff]  ;;  %v11364_v55 = vld [vmem:[#allocation100_spill] sm:$0xff] }
 0x93d   : > { %v10704_v61 = vpop.eup %7429  ;;  %7449 = vpow2.f32 %v5635_v33  ;;  %5098 = vmatprep.mubr.f32.mxu0 %v4833_v28  ;;  %v4775_v16 = vmul.f32 %v10652_v41, %v11358_v37  ;;  %v4836_v10 = vmul.f32 %v4772_v36, %v4144_v52  ;;  %v4305_v43 = vpop.f32.mrb[156].mxu1  ;;  %v4776_v41 = vmul.f32 %v10660_v50, %v11361_v8  ;;  %v11363_v28 = vld [vmem:[#allocation99_spill] sm:$0xff]  ;;  %v11365_v36 = vld [vmem:[#allocation101_spill] sm:$0xff] }
 0x93e   : > { %v10711_v56 = vpop.eup %7431  ;;  %7451 = vpow2.f32 %v5637_v25  ;;  %5259 = vmatprep.mubr.f32.mxu1 %v4835_v53  ;;  %v4146_v22 = vpop.f32.mrb[125].mxu0  ;;  %5099 = vmatmul.mubr.f32.gmra.mrb[154].mxu0 %v4832_v58  ;;  %v4838_v2 = vmul.f32 %v4774_v9, %v4305_v43  ;;  %v4778_v58 = vmul.f32 %v10667_v5, %v11363_v28  ;;  %v4779_v53 = vmul.f32 %v10676_v27, %v11365_v36  ;;  %v11373_v36 = vld [vmem:[#allocation106_spill] sm:$0xff] }
 0x93f   : > { %v10716_v31 = vpop.eup %7433  ;;  %7453 = vpow2.f32 %v5638_v45  ;;  %v4837_v26 = vmul.f32 %v4773_v23, %v4146_v22  ;;  %v4307_v33 = vpop.f32.mrb[157].mxu1  ;;  %5260 = vmatmul.mubr.f32.gmra.mrb[178].mxu1 %v4834_v12  ;;  %6836 = vmatpush1.bf16.msra.mxu0 %v11360_v59  ;;  %v4777_v45 = vmul.f32 %v10672_v60, %v11364_v55  ;;  %v11368_v22 = vld [vmem:[#allocation28_spill] sm:$0xff] }
 0x940   : > { %v7436_v20 = vpop.eup %7435  ;;  %7455 = vpow2.f32 %v5640_v34  ;;  %v4839_v25 = vmul.f32 %v4775_v16, %v4307_v33  ;;  %6838 = vmatprep.subr.bf16.mxu0 %v11362_v4  ;;  %v4150_v12 = vpop.f32.mrb[126].mxu0  ;;  %v11367_v16 = vld [vmem:[#allocation102_spill] sm:$0xff]  ;;  %v11370_v59 = vld [vmem:[#allocation104_spill] sm:$0xff] }
 0x941   : > { %v7438_v24 = vpop.eup %7437  ;;  %v4595_v49 = vadd.f32 1.0, %v7436_v20  ;;  %7457 = vpow2.f32 %v5639_v40  ;;  %5104 = vmatprep.mubr.f32.mxu0 %v4837_v26  ;;  %v4840_v34 = vmul.f32 %v4776_v41, %v4150_v12  ;;  %v4311_v18 = vpop.f32.mrb[158].mxu1  ;;  %v11366_v40 = vld [vmem:[#allocation61_spill] sm:$0xff]  ;;  %v4780_v27 = vmul.f32 %v10682_v6, %v11367_v16  ;;  %v11372_v12 = vld [vmem:[#allocation70_spill] sm:$0xff] }
 0x942   : > { %v7440_v11 = vpop.eup %7439  ;;  %v4596_v50 = vadd.f32 1.0, %v7438_v24  ;;  %7459 = vpow2.f32 %v5641_v17  ;;  %5265 = vmatprep.mubr.f32.mxu1 %v4839_v25  ;;  %v4152_v48 = vpop.f32.mrb[127].mxu0  ;;  %5105 = vmatmul.mubr.f32.gmra.mrb[156].mxu0 %v4836_v10  ;;  %v4842_v23 = vmul.f32 %v4778_v58, %v4311_v18  ;;  %v11369_v10 = vld [vmem:[#allocation103_spill] sm:$0xff]  ;;  %v4781_v20 = vmul.f32 %v10694_v13, %v11370_v59  ;;  %v11371_v25 = vld [vmem:[#allocation105_spill] sm:$0xff] }
 0x943   : > { %v7442_v9 = vpop.eup %7441  ;;  %7461 = vrcp.f32 %v4595_v49  ;;  %v4598_v5 = vadd.f32 1.0, %v7440_v11  ;;  %v4841_v60 = vmul.f32 %v4777_v45, %v4152_v48  ;;  %v4313_v52 = vpop.f32.mrb[159].mxu1  ;;  %5266 = vmatmul.mubr.f32.gmra.mrb[180].mxu1 %v4838_v2  ;;  %6840 = vmatpush1.bf16.msra.mxu0 %v11366_v40  ;;  %v4782_v33 = vmul.f32 %v10689_v14, %v11369_v10  ;;  %v11374_v18 = vld [vmem:[#allocation71_spill] sm:$0xff] }
 0x944   : > { %v7444_v37 = vpop.eup %7443  ;;  %7463 = vrcp.f32 %v4596_v50  ;;  %v4597_v17 = vadd.f32 1.0, %v7442_v9  ;;  %v4843_v43 = vmul.f32 %v4779_v53, %v4313_v52  ;;  %6842 = vmatprep.subr.bf16.mxu0 %v11368_v22  ;;  %v4156_v8 = vpop.f32.mrb[128].mxu0  ;;  %v4783_v6 = vmul.f32 %v10698_v47, %v11371_v25  ;;  %v11378_v59 = vld [vmem:[#allocation119_spill] sm:$0xff]  ;;  %v11380_v25 = vld [vmem:[#allocation120_spill] sm:$0xff] }
 0x945   : > { %v7446_v26 = vpop.eup %7445  ;;  %7465 = vrcp.f32 %v4598_v5  ;;  %v4599_v2 = vadd.f32 1.0, %v7444_v37  ;;  %5110 = vmatprep.mubr.f32.mxu0 %v4841_v60  ;;  %v4844_v24 = vmul.f32 %v4780_v27, %v4156_v8  ;;  %v4317_v28 = vpop.f32.mrb[160].mxu1  ;;  %v4784_v47 = vmul.f32 %v10704_v61, %v11373_v36  ;;  %v11376_v5 = vld [vmem:[#allocation108_spill] sm:$0xff] }
 0x946   : > { %v7448_v41 = vpop.eup %7447  ;;  %7467 = vrcp.f32 %v4597_v17  ;;  %v4600_v4 = vadd.f32 1.0, %v7446_v26  ;;  %5271 = vmatprep.mubr.f32.mxu1 %v4843_v43  ;;  %v4158_v58 = vpop.f32.mrb[129].mxu0  ;;  %5111 = vmatmul.mubr.f32.gmra.mrb[158].mxu0 %v4840_v34  ;;  %v4846_v45 = vmul.f32 %v4782_v33, %v4317_v28  ;;  %v11375_v34 = vld [vmem:[#allocation107_spill] sm:$0xff]  ;;  %v4785_v60 = vmul.f32 %v10716_v31, %v11376_v5  ;;  %v11377_v31 = vld [vmem:[#allocation72_spill] sm:$0xff] }
 0x947   : > { %v7450_v55 = vpop.eup %7449  ;;  %7469 = vrcp.f32 %v4599_v2  ;;  %v4602_v14 = vadd.f32 1.0, %v7448_v41  ;;  %v4845_v13 = vmul.f32 %v4781_v20, %v4158_v58  ;;  %v4319_v49 = vpop.f32.mrb[161].mxu1  ;;  %5272 = vmatmul.mubr.f32.gmra.mrb[182].mxu1 %v4842_v23  ;;  %6844 = vmatpush1.bf16.msra.mxu0 %v11372_v12  ;;  %v4786_v9 = vmul.f32 %v10711_v56, %v11375_v34  ;;  %v11379_v2 = vld [vmem:[#allocation73_spill] sm:$0xff]  ;;  %v11382_v12 = vld [vmem:[#allocation122_spill] sm:$0xff]  ;;  %v11385_v34 = vld [vmem:[#allocation75_spill] sm:$0xff] }
 0x948   : > { %v7452_v11 = vpop.eup %7451  ;;  %7471 = vrcp.f32 %v4600_v4  ;;  %v4601_v53 = vadd.f32 1.0, %v7450_v55  ;;  %v4847_v50 = vmul.f32 %v4783_v6, %v4319_v49  ;;  %6846 = vmatprep.subr.bf16.mxu0 %v11374_v18  ;;  %v4162_v52 = vpop.f32.mrb[130].mxu0  ;;  %v5642_v20 = vmul.f32 -1.442695, %v11378_v59  ;;  %v11381_v58 = vld [vmem:[#allocation121_spill] sm:$0xff] }
 0x949   : > { %v7454_v48 = vpop.eup %7453  ;;  %7473 = vrcp.f32 %v4602_v14  ;;  %v4603_v23 = vadd.f32 1.0, %v7452_v11  ;;  %5116 = vmatprep.mubr.f32.mxu0 %v4845_v13  ;;  %v4848_v61 = vmul.f32 %v4784_v47, %v4162_v52  ;;  %v4323_v16 = vpop.f32.mrb[162].mxu1  ;;  %v5644_v6 = vmul.f32 -1.442695, %v11380_v25  ;;  %v11383_v47 = vld [vmem:[#allocation74_spill] sm:$0xff] }
 0x94a   : > { %v7456_v40 = vpop.eup %7455  ;;  %7475 = vrcp.f32 %v4601_v53  ;;  %v4604_v37 = vadd.f32 1.0, %v7454_v48  ;;  %5277 = vmatprep.mubr.f32.mxu1 %v4847_v50  ;;  %v4164_v27 = vpop.f32.mrb[131].mxu0  ;;  %5117 = vmatmul.mubr.f32.gmra.mrb[160].mxu0 %v4844_v24  ;;  %v4850_v22 = vmul.f32 %v4786_v9, %v4323_v16  ;;  %v5643_v55 = vmul.f32 -1.442695, %v11381_v58 }
 0x94b   : > { %v7458_v17 = vpop.eup %7457  ;;  %7477 = vrcp.f32 %v4603_v23  ;;  %v4606_v43 = vadd.f32 1.0, %v7456_v40  ;;  %v4849_v56 = vmul.f32 %v4785_v60, %v4164_v27  ;;  %v4325_v26 = vpop.f32.mrb[163].mxu1  ;;  %5278 = vmatmul.mubr.f32.gmra.mrb[184].mxu1 %v4846_v45  ;;  %6848 = vmatpush1.bf16.msra.mxu0 %v11377_v31  ;;  %v5645_v11 = vmul.f32 -1.442695, %v11382_v12 }
 0x94c   : > { %v7460_v10 = vpop.eup %7459  ;;  %7479 = vrcp.f32 %v4604_v37  ;;  %v4605_v33 = vadd.f32 1.0, %v7458_v17  ;;  %6850 = vmatprep.subr.bf16.mxu0 %v11379_v2  ;;  %v4168_v4 = vpop.f32.mrb[132].mxu0  ;;  %v11390_v2 = vld [vmem:[#allocation127_spill] sm:$0xff] }
 0x94d   : > { %v7462_v8 = vpop.eup %7461  ;;  %7481 = vrcp.f32 %v4606_v43  ;;  %v4607_v41 = vadd.f32 1.0, %v7460_v10  ;;  %5122 = vmatprep.mubr.f32.mxu0 %v4849_v56  ;;  %v4329_v14 = vpop.f32.mrb[164].mxu1 }
 0x94e   : > { %v7464_v24 = vpop.eup %7463  ;;  %v4787_v28 = vmul.f32 %v7462_v8, %v10506_v42  ;;  %7483 = vrcp.f32 %v4605_v33  ;;  %v4170_v45 = vpop.f32.mrb[133].mxu0  ;;  %5123 = vmatmul.mubr.f32.gmra.mrb[162].mxu0 %v4848_v61  ;;  %v11384_v42 = vld [vmem:[#allocation123_spill] sm:$0xff]  ;;  %v11387_v61 = vld [vmem:[#allocation125_spill] sm:$0xff]  ;;  %v11389_v33 = vld [vmem:[#allocation76_spill] sm:$0xff]  ;;  %v5650_v8 = vmul.f32 -1.442695, %v11390_v2 }
 0x94f   : > { %v7466_v13 = vpop.eup %7465  ;;  %v4788_v49 = vmul.f32 %v7464_v24, %v10510_v57  ;;  %7485 = vrcp.f32 %v4607_v41  ;;  %v4331_v36 = vpop.f32.mrb[165].mxu1  ;;  %6852 = vmatpush1.bf16.msra.mxu0 %v11383_v47  ;;  %v5646_v18 = vmul.f32 -1.442695, %v11384_v42  ;;  %v11386_v57 = vld [vmem:[#allocation124_spill] sm:$0xff] }
 0x950   : > { %v7468_v53 = vpop.eup %7467  ;;  %v4790_v50 = vmul.f32 %v7466_v13, %v11335_v7  ;;  %7487 = vpow2.f32 %v5642_v20  ;;  %v4851_v48 = vmul.f32 %v4787_v28, %v4325_v26  ;;  %6854 = vmatprep.subr.bf16.mxu0 %v11385_v34  ;;  %v5648_v60 = vmul.f32 -1.442695, %v11386_v57  ;;  %v4174_v52 = vpop.f32.mrb[134].mxu0  ;;  %v11392_v24 = vld [vmem:[#allocation128_spill] sm:$0xff]  ;;  %v11395_v34 = vld [vmem:[#allocation78_spill] sm:$0xff] }
 0x951   : > { %v7470_v9 = vpop.eup %7469  ;;  %v4789_v5 = vmul.f32 %v7468_v53, %v11339_v63  ;;  %7489 = vpow2.f32 %v5644_v6  ;;  %v4852_v23 = vmul.f32 %v4788_v49, %v4168_v4  ;;  %v5647_v7 = vmul.f32 -1.442695, %v11387_v61  ;;  %v4335_v27 = vpop.f32.mrb[166].mxu1  ;;  %v11388_v63 = vld [vmem:[#allocation126_spill] sm:$0xff]  ;;  %v11391_v6 = vld [vmem:[#allocation77_spill] sm:$0xff] }
 0x952   : > { %v7472_v40 = vpop.eup %7471  ;;  %v4791_v37 = vmul.f32 %v7470_v9, %v11341_v15  ;;  %7491 = vpow2.f32 %v5643_v55  ;;  %v4854_v16 = vmul.f32 %v4790_v50, %v4329_v14  ;;  %5283 = vmatprep.mubr.f32.mxu1 %v4851_v48  ;;  %v4176_v17 = vpop.f32.mrb[135].mxu0  ;;  %v5649_v26 = vmul.f32 -1.442695, %v11388_v63  ;;  %v11394_v53 = vld [vmem:[#allocation130_spill] sm:$0xff] }
 0x953   : > { %v7474_v43 = vpop.eup %7473  ;;  %v4792_v56 = vmul.f32 %v7472_v40, %v11342_v3  ;;  %7493 = vpow2.f32 %v5645_v11  ;;  %v4853_v31 = vmul.f32 %v4789_v5, %v4170_v45  ;;  %5284 = vmatmul.mubr.f32.gmra.mrb[186].mxu1 %v4850_v22  ;;  %v4337_v10 = vpop.f32.mrb[167].mxu1  ;;  %6856 = vmatpush1.bf16.msra.mxu0 %v11389_v33  ;;  %v5652_v28 = vmul.f32 -1.442695, %v11392_v24  ;;  %v11398_v33 = vld [vmem:[#allocation81_spill] sm:$0xff] }
 0x954   : > { %v7476_v20 = vpop.eup %7475  ;;  %v4794_v15 = vmul.f32 %v7474_v43, %v11345_v35  ;;  %7495 = vpow2.f32 %v5646_v18  ;;  %v4855_v41 = vmul.f32 %v4791_v37, %v4331_v36  ;;  %6858 = vmatprep.subr.bf16.mxu0 %v11391_v6  ;;  %v4180_v22 = vpop.f32.mrb[136].mxu0  ;;  %v11393_v35 = vld [vmem:[#allocation129_spill] sm:$0xff]  ;;  %v5653_v50 = vmul.f32 -1.442695, %v11394_v53 }
 0x955   : > { %v7478_v4 = vpop.eup %7477  ;;  %v4793_v3 = vmul.f32 %v7476_v20, %v11349_v19  ;;  %7497 = vpow2.f32 %v5648_v60  ;;  %v4856_v55 = vmul.f32 %v4792_v56, %v4174_v52  ;;  %5128 = vmatprep.mubr.f32.mxu0 %v4853_v31  ;;  %v5651_v13 = vmul.f32 -1.442695, %v11393_v35  ;;  %v4341_v11 = vpop.f32.mrb[168].mxu1  ;;  %v11396_v60 = vld [vmem:[#allocation79_spill] sm:$0xff] }
 0x956   : > { %v7480_v14 = vpop.eup %7479  ;;  %v4795_v45 = vmul.f32 %v7478_v4, %v11351_v32  ;;  %7499 = vpow2.f32 %v5647_v7  ;;  %v4858_v49 = vmul.f32 %v4794_v15, %v4335_v27  ;;  %5289 = vmatprep.mubr.f32.mxu1 %v4855_v41  ;;  %5129 = vmatmul.mubr.f32.gmra.mrb[164].mxu0 %v4852_v23  ;;  %v4182_v36 = vpop.f32.mrb[137].mxu0 }
 0x957   : > { %v7482_v47 = vpop.eup %7481  ;;  %v4796_v19 = vmul.f32 %v7480_v14, %v10526_v0  ;;  %7501 = vpow2.f32 %v5649_v26  ;;  %v4857_v18 = vmul.f32 %v4793_v3, %v4176_v17  ;;  %5290 = vmatmul.mubr.f32.gmra.mrb[188].mxu1 %v4854_v16  ;;  %v4343_v48 = vpop.f32.mrb[169].mxu1  ;;  %6860 = vmatpush1.bf16.msra.mxu0 %v11395_v34  ;;  %v11397_v26 = vld [vmem:[#allocation80_spill] sm:$0xff]  ;;  %v11399_v14 = vld [vmem:[#allocation82_spill] sm:$0xff] }
 0x958   : > { %v7484_v32 = vpop.eup %7483  ;;  %v4798_v9 = vmul.f32 %v7482_v47, %v11354_v21  ;;  %7503 = vpow2.f32 %v5650_v8  ;;  %v4859_v5 = vmul.f32 %v4795_v45, %v4337_v10  ;;  %6862 = vmatprep.subr.bf16.mxu0 %v11396_v60  ;;  %v10778_v40 = vpop.f32.mrb[138].mxu0 }
 0x959   : > { %v7486_v23 = vpop.eup %7485  ;;  %v4797_v52 = vmul.f32 %v7484_v32, %v11357_v46  ;;  %7505 = vpow2.f32 %v5652_v28  ;;  %v4860_v0 = vmul.f32 %v4796_v19, %v4180_v22  ;;  %5134 = vmatprep.mubr.f32.mxu0 %v4857_v18  ;;  %v10781_v21 = vpop.f32.mrb[170].mxu1 }
 0x95a   : > { %v7488_v37 = vpop.eup %7487  ;;  %v4799_v7 = vmul.f32 %v7486_v23, %v11359_v44  ;;  %7507 = vpow2.f32 %v5651_v13  ;;  %v4862_v16 = vmul.f32 %v4798_v9, %v4341_v11  ;;  %5295 = vmatprep.mubr.f32.mxu1 %v4859_v5  ;;  %5135 = vmatmul.mubr.f32.gmra.mrb[166].mxu0 %v4856_v55  ;;  %v10783_v27 = vpop.f32.mrb[139].mxu0  ;;  %v11401_v5 = vld [vmem:[#allocation84_spill] sm:$0xff] }
 0x95b   : > { %v7490_v17 = vpop.eup %7489  ;;  %v4608_v43 = vadd.f32 1.0, %v7488_v37  ;;  %7509 = vpow2.f32 %v5653_v50  ;;  %v4861_v46 = vmul.f32 %v4797_v52, %v4182_v36  ;;  %5296 = vmatmul.mubr.f32.gmra.mrb[190].mxu1 %v4858_v49  ;;  %v10785_v56 = vpop.f32.mrb[171].mxu1  ;;  %6864 = vmatpush1.bf16.msra.mxu0 %v11397_v26  ;;  %v11400_v49 = vld [vmem:[#allocation83_spill] sm:$0xff]  ;;  %v11402_v52 = vld [vmem:[#allocation85_spill] sm:$0xff] }
 0x95c   : > { %v7492_v31 = vpop.eup %7491  ;;  %v4610_v10 = vadd.f32 1.0, %v7490_v17  ;;  %v4863_v44 = vmul.f32 %v4799_v7, %v4343_v48  ;;  %6866 = vmatprep.subr.bf16.mxu0 %v11398_v33  ;;  %v10789_v8 = vpop.f32.mrb[140].mxu0  ;;  %v11403_v17 = vld [vmem:[#allocation86_spill] sm:$0xff] }
 0x95d   : > { %v7494_v20 = vpop.eup %7493  ;;  %7511 = vrcp.f32 %v4608_v43  ;;  %v4609_v15 = vadd.f32 1.0, %v7492_v31  ;;  %5140 = vmatprep.mubr.f32.mxu0 %v4861_v46  ;;  %v4353_v4 = vpop.f32.mrb[172].mxu1 }
 0x95e   : > { %v7496_v41 = vpop.eup %7495  ;;  %7513 = vrcp.f32 %v4610_v10  ;;  %v4611_v6 = vadd.f32 1.0, %v7494_v20  ;;  %5301 = vmatprep.mubr.f32.mxu1 %v4863_v44  ;;  %5141 = vmatmul.mubr.f32.gmra.mrb[168].mxu0 %v4860_v0  ;;  %v10791_v3 = vpop.f32.mrb[141].mxu0 }
 0x95f   : > { %v7498_v28 = vpop.eup %7497  ;;  %7515 = vrcp.f32 %v4609_v15  ;;  %v4612_v55 = vadd.f32 1.0, %v7496_v41  ;;  %5302 = vmatmul.mubr.f32.gmra.mrb[192].mxu1 %v4862_v16  ;;  %v10793_v22 = vpop.f32.mrb[173].mxu1  ;;  %6868 = vmatpush1.bf16.msra.mxu0 %v11399_v14 }
 0x960   : > { %v7500_v45 = vpop.eup %7499  ;;  %7517 = vrcp.f32 %v4611_v6  ;;  %v4614_v13 = vadd.f32 1.0, %v7498_v28  ;;  %6870 = vmatprep.subr.bf16.mxu0 %v11400_v49  ;;  %v4198_v47 = vpop.f32.mrb[142].mxu0 }
 0x961   : > { %v7502_v11 = vpop.eup %7501  ;;  %7519 = vrcp.f32 %v4612_v55  ;;  %v4613_v36 = vadd.f32 1.0, %v7500_v45  ;;  %v4359_v18 = vpop.f32.mrb[174].mxu1 }
 0x962   : > { %v7504_v19 = vpop.eup %7503  ;;  %7521 = vrcp.f32 %v4614_v13  ;;  %v4615_v50 = vadd.f32 1.0, %v7502_v11  ;;  %v4200_v48 = vpop.f32.mrb[143].mxu0 }
 0x963   : > { %v7506_v34 = vpop.eup %7505  ;;  %7523 = vrcp.f32 %v4613_v36  ;;  %v4616_v32 = vadd.f32 1.0, %v7504_v19  ;;  %v4361_v9 = vpop.f32.mrb[175].mxu1  ;;  %6872 = vmatpush1.bf16.msra.mxu0 %v11401_v5 }
 0x964   : > { %v7508_v60 = vpop.eup %7507  ;;  %7525 = vrcp.f32 %v4615_v50  ;;  %v4618_v23 = vadd.f32 1.0, %v7506_v34  ;;  %6874 = vmatprep.subr.bf16.mxu0 %v11402_v52  ;;  %v11405_v50 = vld [vmem:[#allocation30_spill] sm:$0xff] }
 0x965   : > { %v7510_v0 = vpop.eup %7509  ;;  %7527 = vrcp.f32 %v4616_v32  ;;  %v4617_v37 = vadd.f32 1.0, %v7508_v60 }
 0x966   : > { %7529 = vrcp.f32 %v4618_v23  ;;  %v4619_v7 = vadd.f32 1.0, %v7510_v0 }
 0x967   : > { %v7512_v16 = vpop.eup %7511  ;;  %7531 = vrcp.f32 %v4617_v37  ;;  %6876 = vmatpush1.bf16.msra.mxu0 %v11403_v17 }
 0x968   : > { %v7514_v43 = vpop.eup %7513  ;;  %v4800_v46 = vmul.f32 %v7512_v16, %v11378_v59  ;;  %7533 = vrcp.f32 %v4619_v7  ;;  %v11408_v7 = vld [vmem:[#allocation63_spill] sm:$0xff] }
 0x969   : > { %v7516_v26 = vpop.eup %7515  ;;  %v4802_v31 = vmul.f32 %v7514_v43, %v11380_v25  ;;  %v11409_v43 = vld [vmem:[#allocation34_spill] sm:$0xff] }
 0x96a   : > { %v7518_v10 = vpop.eup %7517  ;;  %v4801_v44 = vmul.f32 %v7516_v26, %v11381_v58  ;;  %v4864_v33 = vmul.f32 %v4800_v46, %v10778_v40 }
 0x96b   : > { %v7520_v20 = vpop.eup %7519  ;;  %v4803_v15 = vmul.f32 %v7518_v10, %v11382_v12  ;;  %v4866_v41 = vmul.f32 %v4802_v31, %v10781_v21 }
 0x96c   : > { %v7522_v6 = vpop.eup %7521  ;;  %v4804_v28 = vmul.f32 %v7520_v20, %v11384_v42  ;;  %v4865_v55 = vmul.f32 %v4801_v44, %v10783_v27  ;;  %v11410_v20 = vld [vmem:[#allocation38_spill] sm:$0xff] }
 0x96d   : > { %v7524_v59 = vpop.eup %7523  ;;  %v4806_v14 = vmul.f32 %v7522_v6, %v11386_v57  ;;  %v4867_v25 = vmul.f32 %v4803_v15, %v10785_v56  ;;  %v11411_v6 = vld [vmem:[#allocation40_spill] sm:$0xff] }
 0x96e   : > { %v7526_v45 = vpop.eup %7525  ;;  %v4805_v58 = vmul.f32 %v7524_v59, %v11387_v61  ;;  %v4868_v40 = vmul.f32 %v4804_v28, %v10789_v8  ;;  %5146 = vmatprep.mubr.f32.mxu0 %v4865_v55 }
 0x96f   : > { %v7528_v13 = vpop.eup %7527  ;;  %v4807_v12 = vmul.f32 %v7526_v45, %v11388_v63  ;;  %v4870_v21 = vmul.f32 %v4806_v14, %v4353_v4  ;;  %5307 = vmatprep.mubr.f32.mxu1 %v4867_v25  ;;  %5147 = vmatmul.mubr.f32.gmra.mrb[170].mxu0 %v4864_v33 }
 0x970   : > { %v7530_v42 = vpop.eup %7529  ;;  %v4808_v27 = vmul.f32 %v7528_v13, %v11390_v2  ;;  %v4869_v49 = vmul.f32 %v4805_v58, %v10791_v3  ;;  %5308 = vmatmul.mubr.f32.gmra.mrb[194].mxu1 %v4866_v41  ;;  %v11412_v58 = vld [vmem:[#allocation64_spill] sm:$0xff] }
 0x971   : > { %v7532_v57 = vpop.eup %7531  ;;  %v4810_v56 = vmul.f32 %v7530_v42, %v11392_v24  ;;  %v4871_v61 = vmul.f32 %v4807_v12, %v10793_v22  ;;  %v11413_v12 = vld [vmem:[#allocation44_spill] sm:$0xff] }
 0x972   : > { %v7534_v11 = vpop.eup %7533  ;;  %v4809_v8 = vmul.f32 %v7532_v57, %v11393_v35  ;;  %v4872_v36 = vmul.f32 %v4808_v27, %v4198_v47  ;;  %5152 = vmatprep.mubr.f32.mxu0 %v4869_v49 }
 0x973   : > { %v4811_v63 = vmul.f32 %v7534_v11, %v11394_v53  ;;  %v4874_v4 = vmul.f32 %v4810_v56, %v4359_v18  ;;  %5313 = vmatprep.mubr.f32.mxu1 %v4871_v61  ;;  %5153 = vmatmul.mubr.f32.gmra.mrb[172].mxu0 %v4868_v40  ;;  %v11414_v61 = vld [vmem:[#allocation46_spill] sm:$0xff] }
 0x974   : > { %v4873_v19 = vmul.f32 %v4809_v8, %v4200_v48  ;;  %5314 = vmatmul.mubr.f32.gmra.mrb[196].mxu1 %v4870_v21 }
 0x975   : > { %v4875_v2 = vmul.f32 %v4811_v63, %v4361_v9  ;;  %v11407_v9 = vld [vmem:[#allocation36_spill] sm:$0xff] }
 0x976   : > { %5158 = vmatprep.mubr.f32.mxu0 %v4873_v19 }
 0x977   : > { %5319 = vmatprep.mubr.f32.mxu1 %v4875_v2  ;;  %5159 = vmatmul.mubr.f32.gmra.mrb[174].mxu0 %v4872_v36  ;;  %v11415_v36 = vld [vmem:[#allocation65_spill] sm:$0xff] }
 0x978   : > { %5320 = vmatmul.mubr.f32.gmra.mrb[198].mxu1 %v4874_v4  ;;  %5229 = vmatprep.mubr.f32.mxu0 %v10613_v1 }
 0x97b   : > { %5230 = vmatmul.mubr.f32.vlgmr.msra.gmra.mrb[144].mxu0 %v10609_v30  ;;  %v11404_v30 = vld [vmem:[#allocation62_spill] sm:$0xff] }
 0x97c   : > { %5235 = vmatprep.mubr.f32.mxu0 %v10626_v51 }
 0x97f   : > { %5236 = vmatmul.mubr.f32.gmra.mrb[146].mxu0 %v10621_v39 }
 0x980   : > { %5241 = vmatprep.mubr.f32.mxu0 %v10638_v29 }
 0x983   : > { %5242 = vmatmul.mubr.f32.gmra.mrb[148].mxu0 %v10634_v62 }
 0x984   : > { %5247 = vmatprep.mubr.f32.mxu0 %v10657_v54  ;;  %v11406_v54 = vld [vmem:[#allocation32_spill] sm:$0xff] }
 0x987   : > { %5248 = vmatmul.mubr.f32.gmra.mrb[150].mxu0 %v10649_v38 }
 0xa0d   : > { %v5094_v24 = vpop.f32.mrb[152].mxu0 }
 0xa0e   : > { %v5255_v35 = vpop.f32.mrb[176].mxu1  ;;  %v5096_v53 = vpop.f32.mrb[153].mxu0 }
 0xa0f   : > { %v5256_v3 = vadd.f32 %v5255_v35, %v5094_v24  ;;  %v5257_v1 = vpop.f32.mrb[177].mxu1 }
 0xa10   : > { %v5258_v22 = vadd.f32 %v5257_v1, %v5096_v53  ;;  %v11416_v53 = vld [vmem:[#allocation50_spill] sm:$0xff] }
 0xa11   : > { %v5334_v47 = vadd.f32 %v5256_v3, %v11404_v30  ;;  %v5100_v51 = vpop.f32.mrb[154].mxu0 }
 0xa12   : > { %v5335_v39 = vadd.f32 %v5258_v22, %v11405_v50  ;;  %v5261_v18 = vpop.f32.mrb[178].mxu1  ;;  %v5102_v48 = vpop.f32.mrb[155].mxu0  ;;  %v11417_v22 = vld [vmem:[#allocation66_spill] sm:$0xff] }
 0xa13   : > { %5366 = vst [vmem:[%s10831_s18 + $0x40] sm:$0xff] %v5334_v47  ;;  %v5262_v62 = vadd.f32 %v5261_v18, %v5100_v51  ;;  %v5263_v29 = vpop.f32.mrb[179].mxu1 }
 0xa14   : > { %5367 = vst [vmem:[%s10831_s18 + $0x48] sm:$0xff] %v5335_v39  ;;  %v5264_v38 = vadd.f32 %v5263_v29, %v5102_v48  ;;  %v11418_v48 = vld [vmem:[#allocation68_spill] sm:$0xff] }
 0xa15   : > { %v5336_v34 = vadd.f32 %v5262_v62, %v11406_v54  ;;  %v5106_v32 = vpop.f32.mrb[156].mxu0 }
 0xa16   : > { %v5337_v5 = vadd.f32 %v5264_v38, %v11407_v9  ;;  %v5267_v60 = vpop.f32.mrb[180].mxu1  ;;  %v5108_v23 = vpop.f32.mrb[157].mxu0  ;;  %v11419_v38 = vld [vmem:[#allocation67_spill] sm:$0xff] }
 0xa17   : > { %5368 = vst [vmem:[%s10831_s18 + $0x50] sm:$0xff] %v5336_v34  ;;  %v5268_v52 = vadd.f32 %v5267_v60, %v5106_v32  ;;  %v5269_v0 = vpop.f32.mrb[181].mxu1 }
 0xa18   : > { %5369 = vst [vmem:[%s10831_s18 + $0x58] sm:$0xff] %v5337_v5  ;;  %v5270_v37 = vadd.f32 %v5269_v0, %v5108_v23  ;;  %v11420_v23 = vld [vmem:[#allocation69_spill] sm:$0xff] }
 0xa19   : > { %v5338_v16 = vadd.f32 %v5268_v52, %v11408_v7  ;;  %v5112_v17 = vpop.f32.mrb[158].mxu0  ;;  %v11421_v0 = vld [vmem:[#allocation29_spill] sm:$0xff] }
 0xa1a   : > { %v5339_v46 = vadd.f32 %v5270_v37, %v11409_v43  ;;  %v5273_v26 = vpop.f32.mrb[182].mxu1  ;;  %v5114_v31 = vpop.f32.mrb[159].mxu0 }
 0xa1b   : > { %5370 = vst [vmem:[%s10831_s18 + $0x60] sm:$0xff] %v5338_v16  ;;  %v5274_v10 = vadd.f32 %v5273_v26, %v5112_v17  ;;  %v5275_v44 = vpop.f32.mrb[183].mxu1 }
 0xa1c   : > { %5371 = vst [vmem:[%s10831_s18 + $0x68] sm:$0xff] %v5339_v46  ;;  %v5276_v33 = vadd.f32 %v5275_v44, %v5114_v31  ;;  %v11422_v31 = vld [vmem:[#allocation31_spill] sm:$0xff] }
 0xa1d   : > { %v5340_v15 = vadd.f32 %v5274_v10, %v11410_v20  ;;  %v5118_v41 = vpop.f32.mrb[160].mxu0 }
 0xa1e   : > { %v5341_v28 = vadd.f32 %v5276_v33, %v11411_v6  ;;  %v5279_v55 = vpop.f32.mrb[184].mxu1  ;;  %v5120_v59 = vpop.f32.mrb[161].mxu0  ;;  %v11423_v33 = vld [vmem:[#allocation33_spill] sm:$0xff] }
 0xa1f   : > { %5372 = vst [vmem:[%s10831_s18 + $0x70] sm:$0xff] %v5340_v15  ;;  %v5280_v14 = vadd.f32 %v5279_v55, %v5118_v41  ;;  %v5281_v25 = vpop.f32.mrb[185].mxu1 }
 0xa20   : > { %5373 = vst [vmem:[%s10831_s18 + $0x78] sm:$0xff] %v5341_v28  ;;  %v5282_v45 = vadd.f32 %v5281_v25, %v5120_v59  ;;  %v11424_v59 = vld [vmem:[#allocation35_spill] sm:$0xff] }
 0xa21   : > { %v5342_v40 = vadd.f32 %v5280_v14, %v11412_v58  ;;  %v5124_v13 = vpop.f32.mrb[162].mxu0 }
 0xa22   : > { %v5343_v21 = vadd.f32 %v5282_v45, %v11413_v12  ;;  %v5126_v42 = vpop.f32.mrb[163].mxu0  ;;  %v11425_v45 = vld [vmem:[#allocation37_spill] sm:$0xff] }
 0xa23   : > { %5374 = vst [vmem:[%s10831_s18 + $0x80] sm:$0xff] %v5342_v40 }
 0xa24   : > { %5375 = vst [vmem:[%s10831_s18 + $0x88] sm:$0xff] %v5343_v21 }
 0xa26   : > { %v5285_v27 = vpop.f32.mrb[186].mxu1 }
 0xa27   : > { %v5286_v49 = vadd.f32 %v5285_v27, %v5124_v13  ;;  %v5287_v57 = vpop.f32.mrb[187].mxu1  ;;  %v11426_v27 = vld [vmem:[#allocation39_spill] sm:$0xff] }
 0xa28   : > { %v5288_v56 = vadd.f32 %v5287_v57, %v5126_v42 }
 0xa29   : > { %v5344_v11 = vadd.f32 %v5286_v49, %v11414_v61  ;;  %v5130_v8 = vpop.f32.mrb[164].mxu0 }
 0xa2a   : > { %v5345_v63 = vadd.f32 %v5288_v56, %v11415_v36  ;;  %v5291_v4 = vpop.f32.mrb[188].mxu1  ;;  %v5132_v19 = vpop.f32.mrb[165].mxu0  ;;  %v11427_v56 = vld [vmem:[#allocation41_spill] sm:$0xff] }
 0xa2b   : > { %5376 = vst [vmem:[%s10831_s18 + $0x90] sm:$0xff] %v5344_v11  ;;  %v5292_v2 = vadd.f32 %v5291_v4, %v5130_v8  ;;  %v5293_v24 = vpop.f32.mrb[189].mxu1  ;;  %v11428_v11 = vld [vmem:[#allocation47_spill] sm:$0xff] }
 0xa2c   : > { %5377 = vst [vmem:[%s10831_s18 + $0x98] sm:$0xff] %v5345_v63  ;;  %v5294_v35 = vadd.f32 %v5293_v24, %v5132_v19  ;;  %v11429_v63 = vld [vmem:[#allocation49_spill] sm:$0xff] }
 0xa2d   : > { %v5346_v3 = vadd.f32 %v5292_v2, %v11416_v53  ;;  %v5136_v1 = vpop.f32.mrb[166].mxu0  ;;  %v11430_v2 = vld [vmem:[#allocation52_spill] sm:$0xff]  ;;  %v11431_v53 = vld [vmem:[#allocation54_spill] sm:$0xff] }
 0xa2e   : > { %v5347_v30 = vadd.f32 %v5294_v35, %v11417_v22  ;;  %v5297_v47 = vpop.f32.mrb[190].mxu1  ;;  %v5138_v51 = vpop.f32.mrb[167].mxu0  ;;  %v11432_v22 = vld [vmem:[#allocation56_spill] sm:$0xff] }
 0xa2f   : > { %5378 = vst [vmem:[%s10831_s18 + $0xa0] sm:$0xff] %v5346_v3  ;;  %v5298_v50 = vadd.f32 %v5297_v47, %v5136_v1  ;;  %v5299_v39 = vpop.f32.mrb[191].mxu1 }
 0xa30   : > { %5379 = vst [vmem:[%s10831_s18 + $0xa8] sm:$0xff] %v5347_v30  ;;  %v5300_v18 = vadd.f32 %v5299_v39, %v5138_v51  ;;  %v11433_v51 = vld [vmem:[#allocation57_spill] sm:$0xff] }
 0xa31   : > { %v5348_v62 = vadd.f32 %v5298_v50, %v11418_v48  ;;  %v5142_v29 = vpop.f32.mrb[168].mxu0 }
 0xa32   : > { %v5349_v54 = vadd.f32 %v5300_v18, %v11419_v38  ;;  %v5303_v34 = vpop.f32.mrb[192].mxu1  ;;  %v5144_v32 = vpop.f32.mrb[169].mxu0  ;;  %v11434_v18 = vld [vmem:[#allocation59_spill] sm:$0xff] }
 0xa33   : > { %5380 = vst [vmem:[%s10831_s18 + $0xb0] sm:$0xff] %v5348_v62  ;;  %v5304_v9 = vadd.f32 %v5303_v34, %v5142_v29  ;;  %v5305_v5 = vpop.f32.mrb[193].mxu1  ;;  %v11436_v29 = vld [vmem:[#allocation60_spill] sm:$0xff] }
 0xa34   : > { %5381 = vst [vmem:[%s10831_s18 + $0xb8] sm:$0xff] %v5349_v54  ;;  %v5306_v60 = vadd.f32 %v5305_v5, %v5144_v32 }
 0xa35   : > { %v5350_v52 = vadd.f32 %v5304_v9, %v11420_v23 }
 0xa36   : > { %v5351_v37 = vadd.f32 %v5306_v60, %v11421_v0 }
 0xa37   : > { %5382 = vst [vmem:[%s10831_s18 + $0xc0] sm:$0xff] %v5350_v52 }
 0xa38   : > { %5383 = vst [vmem:[%s10831_s18 + $0xc8] sm:$0xff] %v5351_v37 }
 0xa42   : > { %v5148_v7 = vpop.f32.mrb[170].mxu0 }
 0xa43   : > { %v5309_v16 = vpop.f32.mrb[194].mxu1  ;;  %v5150_v17 = vpop.f32.mrb[171].mxu0 }
 0xa44   : > { %v5310_v43 = vadd.f32 %v5309_v16, %v5148_v7  ;;  %v5311_v46 = vpop.f32.mrb[195].mxu1 }
 0xa45   : > { %v5312_v26 = vadd.f32 %v5311_v46, %v5150_v17 }
 0xa46   : > { %v5352_v10 = vadd.f32 %v5310_v43, %v11422_v31  ;;  %v5154_v44 = vpop.f32.mrb[172].mxu0 }
 0xa47   : > { %v5353_v20 = vadd.f32 %v5312_v26, %v11423_v33  ;;  %v5315_v15 = vpop.f32.mrb[196].mxu1  ;;  %v5156_v41 = vpop.f32.mrb[173].mxu0 }
 0xa48   : > { %5384 = vst [vmem:[%s10831_s18 + $0xd0] sm:$0xff] %v5352_v10  ;;  %v5316_v6 = vadd.f32 %v5315_v15, %v5154_v44  ;;  %v5317_v28 = vpop.f32.mrb[197].mxu1 }
 0xa49   : > { %5385 = vst [vmem:[%s10831_s18 + $0xd8] sm:$0xff] %v5353_v20  ;;  %v5318_v55 = vadd.f32 %v5317_v28, %v5156_v41 }
 0xa4a   : > { %v5354_v14 = vadd.f32 %v5316_v6, %v11424_v59  ;;  %v5160_v25 = vpop.f32.mrb[174].mxu0 }
 0xa4b   : > { %v5355_v58 = vadd.f32 %v5318_v55, %v11425_v45  ;;  %v5321_v40 = vpop.f32.mrb[198].mxu1  ;;  %v5162_v13 = vpop.f32.mrb[175].mxu0 }
 0xa4c   : > { %5386 = vst [vmem:[%s10831_s18 + $0xe0] sm:$0xff] %v5354_v14  ;;  %v5322_v12 = vadd.f32 %v5321_v40, %v5160_v25  ;;  %v5323_v21 = vpop.f32.mrb[199].mxu1 }
 0xa4d   : > { %5387 = vst [vmem:[%s10831_s18 + $0xe8] sm:$0xff] %v5355_v58  ;;  %v5324_v42 = vadd.f32 %v5323_v21, %v5162_v13 }
 0xa4e   : > { %v5356_v49 = vadd.f32 %v5322_v12, %v11426_v27  ;;  %v5231_v57 = vpop.f32.mrb[144].mxu0 }
 0xa4f   : > { %v5357_v61 = vadd.f32 %v5324_v42, %v11427_v56  ;;  %v5326_v8 = vadd.f32 %v5231_v57, %v11428_v11  ;;  %v5233_v36 = vpop.f32.mrb[145].mxu0 }
 0xa50   : > { %5388 = vst [vmem:[%s10831_s18 + $0xf0] sm:$0xff] %v5356_v49  ;;  %v5327_v4 = vadd.f32 %v5233_v36, %v11429_v63 }
 0xa51   : > { %5389 = vst [vmem:[%s10831_s18 + $0xf8] sm:$0xff] %v5357_v61  ;;  %5358 = vst [vmem:[%s10831_s18] sm:$0xff] %v5326_v8 }
 0xa52   : > { %5359 = vst [vmem:[%s10831_s18 + $0x8] sm:$0xff] %v5327_v4  ;;  %v5237_v19 = vpop.f32.mrb[146].mxu0 }
 0xa53   : > { %v5328_v24 = vadd.f32 %v5237_v19, %v11430_v2  ;;  %v5239_v35 = vpop.f32.mrb[147].mxu0 }
 0xa54   : > { %v5329_v3 = vadd.f32 %v5239_v35, %v11431_v53 }
 0xa55   : > { %5360 = vst [vmem:[%s10831_s18 + $0x10] sm:$0xff] %v5328_v24 }
 0xa56   : > { %5361 = vst [vmem:[%s10831_s18 + $0x18] sm:$0xff] %v5329_v3  ;;  %v5243_v1 = vpop.f32.mrb[148].mxu0 }
 0xa57   : > { %v5330_v30 = vadd.f32 %v5243_v1, %v11432_v22  ;;  %v5245_v47 = vpop.f32.mrb[149].mxu0 }
 0xa58   : > { %v5331_v50 = vadd.f32 %v5245_v47, %v11433_v51 }
 0xa59   : > { %5362 = vst [vmem:[%s10831_s18 + $0x20] sm:$0xff] %v5330_v30 }
 0xa5a   : > { %5363 = vst [vmem:[%s10831_s18 + $0x28] sm:$0xff] %v5331_v50  ;;  %v5249_v39 = vpop.f32.mrb[150].mxu0 }
 0xa5b   : > { %v5332_v48 = vadd.f32 %v5249_v39, %v11434_v18  ;;  %v5251_v62 = vpop.f32.mrb[151].mxu0 }
 0xa5c   : > { %v5333_v38 = vadd.f32 %v5251_v62, %v11436_v29 }
 0xa5d   : > { %5364 = vst [vmem:[%s10831_s18 + $0x30] sm:$0xff] %v5332_v48 }
 0xa5e   : > { %5365 = vst [vmem:[%s10831_s18 + $0x38] sm:$0xff] %v5333_v38 }
 0xa5f   : > { %7862 = shalt.err (!%p7859_p3)
}
 0xa60   : > { %s7863_s16 = scalar_lea.hbm %s10897_s17, 4096  ;;  %s7867_s26 = scalar_lea.hbm %s11435_s13, 8192 }
 0xa61   : > { %p7864_p0 = scmp.ne.s32.totalorder %s10897_s17, %s7863_s16  ;;  %p7868_p7 = scmp.lt.u32.totalorder %s10897_s17, %s11435_s13 }
 0xa62   : > { %p7869_p10 = scmp.lt.u32.totalorder %s7867_s26, %s7863_s16  ;;  %p7871_p11 = scmp.lt.u32.totalorder %s7863_s16, %s10897_s17 }
 0xa63   : > { %p7865_p5 = pnand %p7864_p0, %p11437_p12 }
 0xa64   : > { %p7870_p1 = por %p7869_p10, %p7868_p7 }
 0xa65   : > { %p7866_p2 = pneg %p7865_p5 }
 0xa66   : > { %p7872_p13 = por %p7871_p11, %p7870_p1 }
 0xa68   : > { %p7873_p8 = pnand %p7872_p13, %p7866_p2 }
 0xa6a   : > { %7876 = shalt.err (!%p7873_p8)
}
 0xa6b   : > { %s7955_s1 = smov 256   ;;  %s7956_s12 = smov 16  }
 0xa6c   : > { %6979 = dma.vmem_to_hbm [thread:$0]  (%p11437_p12), %s10899_s19, 4096, %s10897_s17, %s5391_s27, %s7955_s1, %s7955_s1, %s7956_s12  }
 0xa6d PF: > { %s5419_s28 = sand.u32 1, %s7923_s21   ;;  %p11438_p6 = scmp.ne.s32.totalorder %s11127_s3, 0 }
 0xa6e   : > { %p11439_p9 = scmp.ge.s32.totalorder %s7935_s24, 2  ;;  %s5420_s15 = scalar_lea.sflag [#allocation4], %s5419_s28 }
 0xa70   : > { %p7014_p4 = pnand %p11439_p9, %p11438_p6 }
 0xa72   : > { %7918 = dma.done.wait (!%p7014_p4), %s5420_s15, 4096  }
 0xa73   : > { %7920 = vsyncadd (!%p7014_p4), %s5420_s15, 4294963200  ;;  %p30_p3 = scmp.ge.s32.totalorder %s8289_s25, 4   ;;  %s11440_s21 = smov %s7927_s22 }
 0xa74   : > { %s11441_s22 = smov %s7931_s23  ;;  %s11442_s23 = smov %s8301_s14 }
 0xa75   : > { %s11443_s24 = smov %s8289_s25  ;;  %32 = sbr.rel (!%p30_p3) target bundleno = 16 (0x10), region = 149 }
 0xa7c   :  { %5425 = vsyncpa [#allocation3], 1 }
 0xa7d   :  { %5427 = vsyncpa [#allocation3 + $0x1], 1 }
 0xa7e   :  { %5428 = vsyncpa [#allocation6], 1 }
 0xa7f   :  { %5429 = vsyncpa [#allocation9], 1 }
 0xa80   :  { %5430 = vsyncpa [#allocation12], 1 }
 0xa81   :  { %5431 = vsyncpa [#allocation15], 1 }
 0xa82   :  { %5432 = vsyncpa [#allocation18], 1 }
 0xa83   :  { %5433 = vsyncpa [#allocation4], 1 }
 0xa84   :  { %5435 = vsyncpa [#allocation4 + $0x1], 1 }

</bundles_post_ra>
